<compile_context>
chip_gen: v6e
topology: v6e:2x2x1
jax: 0.10.0
libtpu: 0.0.40
codegen_flags: <defaults>
</compile_context>

<pallas_src>
import numpy as np
import jax
import jax.numpy as jnp
from jax.experimental import pallas as pl
from jax.experimental.pallas import tpu as pltpu


def _toeplitz_over_width(w_hwio, w_in):
    """HWIO conv weight -> KH banded matrices for 'matmul over a full row' conv.

    Returns m with shape (KH, W_in*Cin, W_out*Cout) such that
        m[dy, w*Cin + ci, xo*Cout + co] = w[dy, w - xo, ci, co]  if 0 <= w-xo < KW else 0.
    For a row-flattened activation slab p[(b, yo), w*Cin + ci] = a[b, yo+dy, w, ci],
    p @ m[dy] is the dy-contribution of a VALID conv, laid out as lanes = xo*Cout+co.
    """
    kh, kw, cin, cout = w_hwio.shape
    w_out = w_in - kw + 1
    wn = np.asarray(w_hwio, np.float32)
    m = np.zeros((kh, w_in * cin, w_out * cout), np.float32)
    for dy in range(kh):
        for xo in range(w_out):
            for dx in range(kw):
                w_pos = xo + dx
                m[dy, w_pos * cin:(w_pos + 1) * cin,
                      xo * cout:(xo + 1) * cout] = wn[dy, dx]
    return jnp.asarray(m)


def cnn_kernel(x_ref, w1_ref, b1_ref, w2_ref, b2_ref, w3_ref, b3_ref,
               wf1_ref, bf1_ref, wf2_ref, bf2_ref, out_ref):
    bb = x_ref.shape[0]
    x = x_ref[...]                                          # (bb, 28, 28) f32

    # ---- conv1 3x3, 1->12 : accumulate 3 Toeplitz matmuls over dy --------------
    acc1 = jnp.zeros((bb * 26, 26 * 12), jnp.float32)
    for dy in range(3):
        p = x[:, dy:dy + 26, :].reshape(bb * 26, 28)
        acc1 = acc1 + jnp.dot(p, w1_ref[dy], preferred_element_type=jnp.float32)
    h1 = jnp.maximum(acc1 + b1_ref[...], 0.0).reshape(bb, 26, 26 * 12)

    # ---- conv2 6x6, 12->24 ------------------------------------------------------
    acc2 = jnp.zeros((bb * 21, 21 * 24), jnp.float32)
    for dy in range(6):
        p = h1[:, dy:dy + 21, :].reshape(bb * 21, 26 * 12)
        acc2 = acc2 + jnp.dot(p, w2_ref[dy], preferred_element_type=jnp.float32)
    h2 = jnp.maximum(acc2 + b2_ref[...], 0.0).reshape(bb, 21, 21 * 24)

    # ---- max_pool2d(2), floor mode: 21x21 -> 10x10, C=24 ------------------------
    hv = jnp.max(h2[:, :20, :].reshape(bb, 10, 2, 21 * 24), axis=2)   # (bb,10,504)
    ev = jnp.concatenate([hv[:, :, 48 * j:48 * j + 24] for j in range(10)], axis=-1)
    od = jnp.concatenate([hv[:, :, 48 * j + 24:48 * j + 48] for j in range(10)], axis=-1)
    h2p = jnp.maximum(ev, od)                                         # (bb,10,10*24)

    # ---- conv3 6x6, 24->32 ------------------------------------------------------
    acc3 = jnp.zeros((bb * 5, 5 * 32), jnp.float32)
    for dy in range(6):
        p = h2p[:, dy:dy + 5, :].reshape(bb * 5, 10 * 24)
        acc3 = acc3 + jnp.dot(p, w3_ref[dy], preferred_element_type=jnp.float32)
    h3 = jnp.maximum(acc3 + b3_ref[...], 0.0).reshape(bb, 5, 5 * 32)

    # ---- max_pool2d(2), floor mode: 5x5 -> 2x2, C=32 ----------------------------
    hv3 = jnp.max(h3[:, :4, :].reshape(bb, 2, 2, 5 * 32), axis=2)     # (bb,2,160)
    ev3 = jnp.concatenate([hv3[:, :, 64 * j:64 * j + 32] for j in range(2)], axis=-1)
    od3 = jnp.concatenate([hv3[:, :, 64 * j + 32:64 * j + 64] for j in range(2)], axis=-1)
    h3p = jnp.maximum(ev3, od3)                                       # (bb,2,2*32)

    feat = h3p.reshape(bb, 128)                                       # (h, w, c) flatten

    # ---- fc1 -> relu -> fc2 -> log_softmax --------------------------------------
    z = jnp.maximum(
        jnp.dot(feat, wf1_ref[...], preferred_element_type=jnp.float32) + bf1_ref[...],
        0.0)                                                          # (bb, 200)
    logits = jnp.dot(z, wf2_ref[...], preferred_element_type=jnp.float32) + bf2_ref[...]
    m = jnp.max(logits, axis=-1, keepdims=True)
    s = logits - m
    out_ref[...] = s - jnp.log(jnp.sum(jnp.exp(s), axis=-1, keepdims=True))


def cnn_forward(x_nchw, params, block_b=16):
    """x_nchw: (B, 1, 28, 28) float32 (same layout as the PyTorch module).

    Returns (B, 10) log-probabilities.  block_b=16 fits all generations; it can be
    raised to 32-64 on v5e/v6e (128 MiB VMEM) if desired.
    """
    B = x_nchw.shape[0]
    x = x_nchw.reshape(B, 28, 28)                     # drop the size-1 channel dim

    bb = min(block_b, B)
    Bp = ((B + bb - 1) // bb) * bb
    if Bp != B:
        x = jnp.pad(x, ((0, Bp - B), (0, 0), (0, 0)))

    out = pl.pallas_call(
        cnn_kernel,
        out_shape=jax.ShapeDtypeStruct((Bp, 10), jnp.float32),
        grid_spec=pltpu.PrefetchScalarGridSpec(
            num_scalar_prefetch=0,
            grid=(Bp // bb,),
            in_specs=[
                pl.BlockSpec((bb, 28, 28),    lambda i: (i, 0, 0)),   # x block
                pl.BlockSpec((3, 28, 312),    lambda i: (0, 0, 0)),   # conv1 Toeplitz
                pl.BlockSpec((1, 312),        lambda i: (0, 0)),      # conv1 bias (tiled)
                pl.BlockSpec((6, 312, 504),   lambda i: (0, 0, 0)),   # conv2 Toeplitz
                pl.BlockSpec((1, 504),        lambda i: (0, 0)),      # conv2 bias (tiled)
                pl.BlockSpec((6, 240, 160),   lambda i: (0, 0, 0)),   # conv3 Toeplitz
                pl.BlockSpec((1, 160),        lambda i: (0, 0)),      # conv3 bias (tiled)
                pl.BlockSpec((128, 200),      lambda i: (0, 0)),      # fc1 w (in,out)
                pl.BlockSpec((1, 200),        lambda i: (0, 0)),      # fc1 b
                pl.BlockSpec((200, 10),       lambda i: (0, 0)),      # fc2 w (in,out)
                pl.BlockSpec((1, 10),         lambda i: (0, 0)),      # fc2 b
            ],
            out_specs=pl.BlockSpec((bb, 10), lambda i: (i, 0)),
        ),
        compiler_params=pltpu.CompilerParams(
            dimension_semantics=("parallel",),
            vmem_limit_bytes=40 * 1024 * 1024,
        ),
    )(x, *params)
    return out[:B]


def init_params(key):
    """Synthetic parameters in 'module-like' shapes (HWIO convs, (in,out) linears)."""
    ks = jax.random.split(key, 10)

    def w(k, shape, fan_in):
        return jax.random.normal(k, shape, jnp.float32) * (1.0 / float(fan_in) ** 0.5)

    w1 = w(ks[0], (3, 3, 1, 12), 3 * 3 * 1)
    b1 = w(ks[1], (12,), 3 * 3 * 1)
    w2 = w(ks[2], (6, 6, 12, 24), 6 * 6 * 12)
    b2 = w(ks[3], (24,), 6 * 6 * 12)
    w3 = w(ks[4], (6, 6, 24, 32), 6 * 6 * 24)
    b3 = w(ks[5], (32,), 6 * 6 * 24)
    wf1 = w(ks[6], (128, 200), 128)        # in-features ordered (h, w, c)
    bf1 = w(ks[7], (200,), 128)
    wf2 = w(ks[8], (200, 10), 200)
    bf2 = w(ks[9], (10,), 200)
    return (w1, b1, w2, b2, w3, b3, wf1, bf1, wf2, bf2)


def prep_params(raw):
    """Host-side conversion to the kernel's layout (Toeplitz convs, tiled biases)."""
    (w1, b1, w2, b2, w3, b3, wf1, bf1, wf2, bf2) = raw
    w1m = _toeplitz_over_width(w1, 28)                 # (3, 28, 312)
    w2m = _toeplitz_over_width(w2, 26)                 # (6, 312, 504)
    w3m = _toeplitz_over_width(w3, 10)                 # (6, 240, 160)
    b1t = jnp.tile(b1.reshape(1, -1), (1, 26))         # lanes = x*12 + c
    b2t = jnp.tile(b2.reshape(1, -1), (1, 21))         # lanes = x*24 + c
    b3t = jnp.tile(b3.reshape(1, -1), (1, 5))          # lanes = x*32 + c
    return (w1m, b1t, w2m, b2t, w3m, b3t,
            wf1, bf1.reshape(1, -1), wf2, bf2.reshape(1, -1))


if __name__ == "__main__":
    B = 2
    key = jax.random.PRNGKey(0)
    kx, kp = jax.random.split(key)
    # MNIST-shaped input, PyTorch NCHW layout: (B, 1, 28, 28).
    x = jax.random.normal(kx, (B, 1, 28, 28), jnp.float32)
    params = prep_params(init_params(kp))

    out = cnn_forward(x, params)
    jax.block_until_ready(out)
    assert out.shape == (B, 10)
    assert bool(jnp.all(jnp.isfinite(out)))
    print("KERNEL_OK")
</pallas_src>

<mosaic_0001>
module attributes {stable_mosaic.version = 11 : i64} {
  func.func @cnn_kernel(%arg0: i32, %arg1: memref<2x28x28xf32, #tpu.memory_space<vmem>>, %arg2: memref<3x28x312xf32, #tpu.memory_space<vmem>>, %arg3: memref<1x312xf32, #tpu.memory_space<vmem>>, %arg4: memref<6x312x504xf32, #tpu.memory_space<vmem>>, %arg5: memref<1x504xf32, #tpu.memory_space<vmem>>, %arg6: memref<6x240x160xf32, #tpu.memory_space<vmem>>, %arg7: memref<1x160xf32, #tpu.memory_space<vmem>>, %arg8: memref<128x200xf32, #tpu.memory_space<vmem>>, %arg9: memref<1x200xf32, #tpu.memory_space<vmem>>, %arg10: memref<200x10xf32, #tpu.memory_space<vmem>>, %arg11: memref<1x10xf32, #tpu.memory_space<vmem>>, %arg12: memref<2x10xf32, #tpu.memory_space<vmem>>) attributes {dimension_semantics = [#tpu.dimension_semantics<parallel>], iteration_bounds = array<i64: 1>, scalar_prefetch = 0 : i64, scratch_operands = 0 : i64, tpu.core_type = #tpu.core_type<tc>, window_params = [{transform_indices = @transform_0, window_bounds = array<i64: 2, 28, 28>}, {pipeline_mode = #tpu.pipeline_mode<synchronous>, transform_indices = @transform_1, window_bounds = array<i64: 3, 28, 312>}, {pipeline_mode = #tpu.pipeline_mode<synchronous>, transform_indices = @transform_2, window_bounds = array<i64: 1, 312>}, {pipeline_mode = #tpu.pipeline_mode<synchronous>, transform_indices = @transform_3, window_bounds = array<i64: 6, 312, 504>}, {pipeline_mode = #tpu.pipeline_mode<synchronous>, transform_indices = @transform_4, window_bounds = array<i64: 1, 504>}, {pipeline_mode = #tpu.pipeline_mode<synchronous>, transform_indices = @transform_5, window_bounds = array<i64: 6, 240, 160>}, {pipeline_mode = #tpu.pipeline_mode<synchronous>, transform_indices = @transform_6, window_bounds = array<i64: 1, 160>}, {pipeline_mode = #tpu.pipeline_mode<synchronous>, transform_indices = @transform_7, window_bounds = array<i64: 128, 200>}, {pipeline_mode = #tpu.pipeline_mode<synchronous>, transform_indices = @transform_8, window_bounds = array<i64: 1, 200>}, {pipeline_mode = #tpu.pipeline_mode<synchronous>, transform_indices = @transform_9, window_bounds = array<i64: 200, 10>}, {pipeline_mode = #tpu.pipeline_mode<synchronous>, transform_indices = @transform_10, window_bounds = array<i64: 1, 10>}, {transform_indices = @transform_11, window_bounds = array<i64: 2, 10>}]} {
    %c0 = arith.constant 0 : index
    %c0_0 = arith.constant 0 : index
    %c0_1 = arith.constant 0 : index
    %0 = vector.load %arg1[%c0, %c0_0, %c0_1] : memref<2x28x28xf32, #tpu.memory_space<vmem>>, vector<2x28x28xf32>
    %cst = arith.constant 0.000000e+00 : f32
    %1 = vector.broadcast %cst : f32 to vector<52x312xf32>
    %2 = vector.extract_strided_slice %0 {offsets = [0, 0, 0], sizes = [2, 26, 28], strides = [1, 1, 1]} : vector<2x28x28xf32> to vector<2x26x28xf32>
    %3 = vector.shape_cast %2 : vector<2x26x28xf32> to vector<52x28xf32>
    %c0_2 = arith.constant 0 : index
    %c0_3 = arith.constant 0 : index
    %c0_4 = arith.constant 0 : index
    %4 = vector.load %arg2[%c0_2, %c0_3, %c0_4] : memref<3x28x312xf32, #tpu.memory_space<vmem>>, vector<1x28x312xf32>
    %5 = vector.shape_cast %4 : vector<1x28x312xf32> to vector<28x312xf32>
    %cst_5 = arith.constant dense<0.000000e+00> : vector<52x312xf32>
    %6 = tpu.matmul %3, %5, %cst_5 {dimension_numbers = #tpu.dot_dimension_numbers<[1], [0], [0], [1], [0, 0, 1, 1], [], []>} : vector<52x28xf32>, vector<28x312xf32>, vector<52x312xf32> -> vector<52x312xf32>
    %7 = arith.addf %1, %6 : vector<52x312xf32>
    %8 = vector.extract_strided_slice %0 {offsets = [0, 1, 0], sizes = [2, 26, 28], strides = [1, 1, 1]} : vector<2x28x28xf32> to vector<2x26x28xf32>
    %9 = vector.shape_cast %8 : vector<2x26x28xf32> to vector<52x28xf32>
    %c1 = arith.constant 1 : index
    %c0_6 = arith.constant 0 : index
    %c0_7 = arith.constant 0 : index
    %10 = vector.load %arg2[%c1, %c0_6, %c0_7] : memref<3x28x312xf32, #tpu.memory_space<vmem>>, vector<1x28x312xf32>
    %11 = vector.shape_cast %10 : vector<1x28x312xf32> to vector<28x312xf32>
    %cst_8 = arith.constant dense<0.000000e+00> : vector<52x312xf32>
    %12 = tpu.matmul %9, %11, %cst_8 {dimension_numbers = #tpu.dot_dimension_numbers<[1], [0], [0], [1], [0, 0, 1, 1], [], []>} : vector<52x28xf32>, vector<28x312xf32>, vector<52x312xf32> -> vector<52x312xf32>
    %13 = arith.addf %7, %12 : vector<52x312xf32>
    %14 = vector.extract_strided_slice %0 {offsets = [0, 2, 0], sizes = [2, 26, 28], strides = [1, 1, 1]} : vector<2x28x28xf32> to vector<2x26x28xf32>
    %15 = vector.shape_cast %14 : vector<2x26x28xf32> to vector<52x28xf32>
    %c2 = arith.constant 2 : index
    %c0_9 = arith.constant 0 : index
    %c0_10 = arith.constant 0 : index
    %16 = vector.load %arg2[%c2, %c0_9, %c0_10] : memref<3x28x312xf32, #tpu.memory_space<vmem>>, vector<1x28x312xf32>
    %17 = vector.shape_cast %16 : vector<1x28x312xf32> to vector<28x312xf32>
    %cst_11 = arith.constant dense<0.000000e+00> : vector<52x312xf32>
    %18 = tpu.matmul %15, %17, %cst_11 {dimension_numbers = #tpu.dot_dimension_numbers<[1], [0], [0], [1], [0, 0, 1, 1], [], []>} : vector<52x28xf32>, vector<28x312xf32>, vector<52x312xf32> -> vector<52x312xf32>
    %19 = arith.addf %13, %18 : vector<52x312xf32>
    %c0_12 = arith.constant 0 : index
    %c0_13 = arith.constant 0 : index
    %20 = vector.load %arg3[%c0_12, %c0_13] : memref<1x312xf32, #tpu.memory_space<vmem>>, vector<1x312xf32>
    %21 = vector.broadcast %20 : vector<1x312xf32> to vector<52x312xf32>
    %22 = arith.addf %19, %21 : vector<52x312xf32>
    %cst_14 = arith.constant 0.000000e+00 : f32
    %23 = vector.broadcast %cst_14 : f32 to vector<52x312xf32>
    %24 = arith.maximumf %22, %23 : vector<52x312xf32>
    %25 = vector.shape_cast %24 : vector<52x312xf32> to vector<2x26x312xf32>
    %cst_15 = arith.constant 0.000000e+00 : f32
    %26 = vector.broadcast %cst_15 : f32 to vector<42x504xf32>
    %27 = vector.extract_strided_slice %25 {offsets = [0, 0, 0], sizes = [2, 21, 312], strides = [1, 1, 1]} : vector<2x26x312xf32> to vector<2x21x312xf32>
    %28 = vector.shape_cast %27 : vector<2x21x312xf32> to vector<42x312xf32>
    %c0_16 = arith.constant 0 : index
    %c0_17 = arith.constant 0 : index
    %c0_18 = arith.constant 0 : index
    %29 = vector.load %arg4[%c0_16, %c0_17, %c0_18] : memref<6x312x504xf32, #tpu.memory_space<vmem>>, vector<1x312x504xf32>
    %30 = vector.shape_cast %29 : vector<1x312x504xf32> to vector<312x504xf32>
    %cst_19 = arith.constant dense<0.000000e+00> : vector<42x504xf32>
    %31 = tpu.matmul %28, %30, %cst_19 {dimension_numbers = #tpu.dot_dimension_numbers<[1], [0], [0], [1], [0, 0, 1, 1], [], []>} : vector<42x312xf32>, vector<312x504xf32>, vector<42x504xf32> -> vector<42x504xf32>
    %32 = arith.addf %26, %31 : vector<42x504xf32>
    %33 = vector.extract_strided_slice %25 {offsets = [0, 1, 0], sizes = [2, 21, 312], strides = [1, 1, 1]} : vector<2x26x312xf32> to vector<2x21x312xf32>
    %34 = vector.shape_cast %33 : vector<2x21x312xf32> to vector<42x312xf32>
    %c1_20 = arith.constant 1 : index
    %c0_21 = arith.constant 0 : index
    %c0_22 = arith.constant 0 : index
    %35 = vector.load %arg4[%c1_20, %c0_21, %c0_22] : memref<6x312x504xf32, #tpu.memory_space<vmem>>, vector<1x312x504xf32>
    %36 = vector.shape_cast %35 : vector<1x312x504xf32> to vector<312x504xf32>
    %cst_23 = arith.constant dense<0.000000e+00> : vector<42x504xf32>
    %37 = tpu.matmul %34, %36, %cst_23 {dimension_numbers = #tpu.dot_dimension_numbers<[1], [0], [0], [1], [0, 0, 1, 1], [], []>} : vector<42x312xf32>, vector<312x504xf32>, vector<42x504xf32> -> vector<42x504xf32>
    %38 = arith.addf %32, %37 : vector<42x504xf32>
    %39 = vector.extract_strided_slice %25 {offsets = [0, 2, 0], sizes = [2, 21, 312], strides = [1, 1, 1]} : vector<2x26x312xf32> to vector<2x21x312xf32>
    %40 = vector.shape_cast %39 : vector<2x21x312xf32> to vector<42x312xf32>
    %c2_24 = arith.constant 2 : index
    %c0_25 = arith.constant 0 : index
    %c0_26 = arith.constant 0 : index
    %41 = vector.load %arg4[%c2_24, %c0_25, %c0_26] : memref<6x312x504xf32, #tpu.memory_space<vmem>>, vector<1x312x504xf32>
    %42 = vector.shape_cast %41 : vector<1x312x504xf32> to vector<312x504xf32>
    %cst_27 = arith.constant dense<0.000000e+00> : vector<42x504xf32>
    %43 = tpu.matmul %40, %42, %cst_27 {dimension_numbers = #tpu.dot_dimension_numbers<[1], [0], [0], [1], [0, 0, 1, 1], [], []>} : vector<42x312xf32>, vector<312x504xf32>, vector<42x504xf32> -> vector<42x504xf32>
    %44 = arith.addf %38, %43 : vector<42x504xf32>
    %45 = vector.extract_strided_slice %25 {offsets = [0, 3, 0], sizes = [2, 21, 312], strides = [1, 1, 1]} : vector<2x26x312xf32> to vector<2x21x312xf32>
    %46 = vector.shape_cast %45 : vector<2x21x312xf32> to vector<42x312xf32>
    %c3 = arith.constant 3 : index
    %c0_28 = arith.constant 0 : index
    %c0_29 = arith.constant 0 : index
    %47 = vector.load %arg4[%c3, %c0_28, %c0_29] : memref<6x312x504xf32, #tpu.memory_space<vmem>>, vector<1x312x504xf32>
    %48 = vector.shape_cast %47 : vector<1x312x504xf32> to vector<312x504xf32>
    %cst_30 = arith.constant dense<0.000000e+00> : vector<42x504xf32>
    %49 = tpu.matmul %46, %48, %cst_30 {dimension_numbers = #tpu.dot_dimension_numbers<[1], [0], [0], [1], [0, 0, 1, 1], [], []>} : vector<42x312xf32>, vector<312x504xf32>, vector<42x504xf32> -> vector<42x504xf32>
    %50 = arith.addf %44, %49 : vector<42x504xf32>
    %51 = vector.extract_strided_slice %25 {offsets = [0, 4, 0], sizes = [2, 21, 312], strides = [1, 1, 1]} : vector<2x26x312xf32> to vector<2x21x312xf32>
    %52 = vector.shape_cast %51 : vector<2x21x312xf32> to vector<42x312xf32>
    %c4 = arith.constant 4 : index
    %c0_31 = arith.constant 0 : index
    %c0_32 = arith.constant 0 : index
    %53 = vector.load %arg4[%c4, %c0_31, %c0_32] : memref<6x312x504xf32, #tpu.memory_space<vmem>>, vector<1x312x504xf32>
    %54 = vector.shape_cast %53 : vector<1x312x504xf32> to vector<312x504xf32>
    %cst_33 = arith.constant dense<0.000000e+00> : vector<42x504xf32>
    %55 = tpu.matmul %52, %54, %cst_33 {dimension_numbers = #tpu.dot_dimension_numbers<[1], [0], [0], [1], [0, 0, 1, 1], [], []>} : vector<42x312xf32>, vector<312x504xf32>, vector<42x504xf32> -> vector<42x504xf32>
    %56 = arith.addf %50, %55 : vector<42x504xf32>
    %57 = vector.extract_strided_slice %25 {offsets = [0, 5, 0], sizes = [2, 21, 312], strides = [1, 1, 1]} : vector<2x26x312xf32> to vector<2x21x312xf32>
    %58 = vector.shape_cast %57 : vector<2x21x312xf32> to vector<42x312xf32>
    %c5 = arith.constant 5 : index
    %c0_34 = arith.constant 0 : index
    %c0_35 = arith.constant 0 : index
    %59 = vector.load %arg4[%c5, %c0_34, %c0_35] : memref<6x312x504xf32, #tpu.memory_space<vmem>>, vector<1x312x504xf32>
    %60 = vector.shape_cast %59 : vector<1x312x504xf32> to vector<312x504xf32>
    %cst_36 = arith.constant dense<0.000000e+00> : vector<42x504xf32>
    %61 = tpu.matmul %58, %60, %cst_36 {dimension_numbers = #tpu.dot_dimension_numbers<[1], [0], [0], [1], [0, 0, 1, 1], [], []>} : vector<42x312xf32>, vector<312x504xf32>, vector<42x504xf32> -> vector<42x504xf32>
    %62 = arith.addf %56, %61 : vector<42x504xf32>
    %c0_37 = arith.constant 0 : index
    %c0_38 = arith.constant 0 : index
    %63 = vector.load %arg5[%c0_37, %c0_38] : memref<1x504xf32, #tpu.memory_space<vmem>>, vector<1x504xf32>
    %64 = vector.broadcast %63 : vector<1x504xf32> to vector<42x504xf32>
    %65 = arith.addf %62, %64 : vector<42x504xf32>
    %cst_39 = arith.constant 0.000000e+00 : f32
    %66 = vector.broadcast %cst_39 : f32 to vector<42x504xf32>
    %67 = arith.maximumf %65, %66 : vector<42x504xf32>
    %68 = vector.shape_cast %67 : vector<42x504xf32> to vector<2x21x504xf32>
    %69 = vector.extract_strided_slice %68 {offsets = [0, 0, 0], sizes = [2, 20, 504], strides = [1, 1, 1]} : vector<2x21x504xf32> to vector<2x20x504xf32>
    %70 = vector.shape_cast %69 : vector<2x20x504xf32> to vector<2x10x2x504xf32>
    %cst_40 = arith.constant dense<0xFF800000> : vector<2x10x504xf32>
    %71 = vector.multi_reduction <maximumf>, %70, %cst_40 [2] : vector<2x10x2x504xf32> to vector<2x10x504xf32>
    %72 = vector.extract_strided_slice %71 {offsets = [0, 0, 0], sizes = [2, 10, 24], strides = [1, 1, 1]} : vector<2x10x504xf32> to vector<2x10x24xf32>
    %73 = vector.extract_strided_slice %71 {offsets = [0, 0, 48], sizes = [2, 10, 24], strides = [1, 1, 1]} : vector<2x10x504xf32> to vector<2x10x24xf32>
    %74 = vector.extract_strided_slice %71 {offsets = [0, 0, 96], sizes = [2, 10, 24], strides = [1, 1, 1]} : vector<2x10x504xf32> to vector<2x10x24xf32>
    %75 = vector.extract_strided_slice %71 {offsets = [0, 0, 144], sizes = [2, 10, 24], strides = [1, 1, 1]} : vector<2x10x504xf32> to vector<2x10x24xf32>
    %76 = vector.extract_strided_slice %71 {offsets = [0, 0, 192], sizes = [2, 10, 24], strides = [1, 1, 1]} : vector<2x10x504xf32> to vector<2x10x24xf32>
    %77 = vector.extract_strided_slice %71 {offsets = [0, 0, 240], sizes = [2, 10, 24], strides = [1, 1, 1]} : vector<2x10x504xf32> to vector<2x10x24xf32>
    %78 = vector.extract_strided_slice %71 {offsets = [0, 0, 288], sizes = [2, 10, 24], strides = [1, 1, 1]} : vector<2x10x504xf32> to vector<2x10x24xf32>
    %79 = vector.extract_strided_slice %71 {offsets = [0, 0, 336], sizes = [2, 10, 24], strides = [1, 1, 1]} : vector<2x10x504xf32> to vector<2x10x24xf32>
    %80 = vector.extract_strided_slice %71 {offsets = [0, 0, 384], sizes = [2, 10, 24], strides = [1, 1, 1]} : vector<2x10x504xf32> to vector<2x10x24xf32>
    %81 = vector.extract_strided_slice %71 {offsets = [0, 0, 432], sizes = [2, 10, 24], strides = [1, 1, 1]} : vector<2x10x504xf32> to vector<2x10x24xf32>
    %82 = tpu.concatenate %72, %73, %74, %75, %76, %77, %78, %79, %80, %81 in 2 : vector<2x10x24xf32>, vector<2x10x24xf32>, vector<2x10x24xf32>, vector<2x10x24xf32>, vector<2x10x24xf32>, vector<2x10x24xf32>, vector<2x10x24xf32>, vector<2x10x24xf32>, vector<2x10x24xf32>, vector<2x10x24xf32> -> vector<2x10x240xf32>
    %83 = vector.extract_strided_slice %71 {offsets = [0, 0, 24], sizes = [2, 10, 24], strides = [1, 1, 1]} : vector<2x10x504xf32> to vector<2x10x24xf32>
    %84 = vector.extract_strided_slice %71 {offsets = [0, 0, 72], sizes = [2, 10, 24], strides = [1, 1, 1]} : vector<2x10x504xf32> to vector<2x10x24xf32>
    %85 = vector.extract_strided_slice %71 {offsets = [0, 0, 120], sizes = [2, 10, 24], strides = [1, 1, 1]} : vector<2x10x504xf32> to vector<2x10x24xf32>
    %86 = vector.extract_strided_slice %71 {offsets = [0, 0, 168], sizes = [2, 10, 24], strides = [1, 1, 1]} : vector<2x10x504xf32> to vector<2x10x24xf32>
    %87 = vector.extract_strided_slice %71 {offsets = [0, 0, 216], sizes = [2, 10, 24], strides = [1, 1, 1]} : vector<2x10x504xf32> to vector<2x10x24xf32>
    %88 = vector.extract_strided_slice %71 {offsets = [0, 0, 264], sizes = [2, 10, 24], strides = [1, 1, 1]} : vector<2x10x504xf32> to vector<2x10x24xf32>
    %89 = vector.extract_strided_slice %71 {offsets = [0, 0, 312], sizes = [2, 10, 24], strides = [1, 1, 1]} : vector<2x10x504xf32> to vector<2x10x24xf32>
    %90 = vector.extract_strided_slice %71 {offsets = [0, 0, 360], sizes = [2, 10, 24], strides = [1, 1, 1]} : vector<2x10x504xf32> to vector<2x10x24xf32>
    %91 = vector.extract_strided_slice %71 {offsets = [0, 0, 408], sizes = [2, 10, 24], strides = [1, 1, 1]} : vector<2x10x504xf32> to vector<2x10x24xf32>
    %92 = vector.extract_strided_slice %71 {offsets = [0, 0, 456], sizes = [2, 10, 24], strides = [1, 1, 1]} : vector<2x10x504xf32> to vector<2x10x24xf32>
    %93 = tpu.concatenate %83, %84, %85, %86, %87, %88, %89, %90, %91, %92 in 2 : vector<2x10x24xf32>, vector<2x10x24xf32>, vector<2x10x24xf32>, vector<2x10x24xf32>, vector<2x10x24xf32>, vector<2x10x24xf32>, vector<2x10x24xf32>, vector<2x10x24xf32>, vector<2x10x24xf32>, vector<2x10x24xf32> -> vector<2x10x240xf32>
    %94 = arith.maximumf %82, %93 : vector<2x10x240xf32>
    %cst_41 = arith.constant 0.000000e+00 : f32
    %95 = vector.broadcast %cst_41 : f32 to vector<10x160xf32>
    %96 = vector.extract_strided_slice %94 {offsets = [0, 0, 0], sizes = [2, 5, 240], strides = [1, 1, 1]} : vector<2x10x240xf32> to vector<2x5x240xf32>
    %97 = vector.shape_cast %96 : vector<2x5x240xf32> to vector<10x240xf32>
    %c0_42 = arith.constant 0 : index
    %c0_43 = arith.constant 0 : index
    %c0_44 = arith.constant 0 : index
    %98 = vector.load %arg6[%c0_42, %c0_43, %c0_44] : memref<6x240x160xf32, #tpu.memory_space<vmem>>, vector<1x240x160xf32>
    %99 = vector.shape_cast %98 : vector<1x240x160xf32> to vector<240x160xf32>
    %cst_45 = arith.constant dense<0.000000e+00> : vector<10x160xf32>
    %100 = tpu.matmul %97, %99, %cst_45 {dimension_numbers = #tpu.dot_dimension_numbers<[1], [0], [0], [1], [0, 0, 1, 1], [], []>} : vector<10x240xf32>, vector<240x160xf32>, vector<10x160xf32> -> vector<10x160xf32>
    %101 = arith.addf %95, %100 : vector<10x160xf32>
    %102 = vector.extract_strided_slice %94 {offsets = [0, 1, 0], sizes = [2, 5, 240], strides = [1, 1, 1]} : vector<2x10x240xf32> to vector<2x5x240xf32>
    %103 = vector.shape_cast %102 : vector<2x5x240xf32> to vector<10x240xf32>
    %c1_46 = arith.constant 1 : index
    %c0_47 = arith.constant 0 : index
    %c0_48 = arith.constant 0 : index
    %104 = vector.load %arg6[%c1_46, %c0_47, %c0_48] : memref<6x240x160xf32, #tpu.memory_space<vmem>>, vector<1x240x160xf32>
    %105 = vector.shape_cast %104 : vector<1x240x160xf32> to vector<240x160xf32>
    %cst_49 = arith.constant dense<0.000000e+00> : vector<10x160xf32>
    %106 = tpu.matmul %103, %105, %cst_49 {dimension_numbers = #tpu.dot_dimension_numbers<[1], [0], [0], [1], [0, 0, 1, 1], [], []>} : vector<10x240xf32>, vector<240x160xf32>, vector<10x160xf32> -> vector<10x160xf32>
    %107 = arith.addf %101, %106 : vector<10x160xf32>
    %108 = vector.extract_strided_slice %94 {offsets = [0, 2, 0], sizes = [2, 5, 240], strides = [1, 1, 1]} : vector<2x10x240xf32> to vector<2x5x240xf32>
    %109 = vector.shape_cast %108 : vector<2x5x240xf32> to vector<10x240xf32>
    %c2_50 = arith.constant 2 : index
    %c0_51 = arith.constant 0 : index
    %c0_52 = arith.constant 0 : index
    %110 = vector.load %arg6[%c2_50, %c0_51, %c0_52] : memref<6x240x160xf32, #tpu.memory_space<vmem>>, vector<1x240x160xf32>
    %111 = vector.shape_cast %110 : vector<1x240x160xf32> to vector<240x160xf32>
    %cst_53 = arith.constant dense<0.000000e+00> : vector<10x160xf32>
    %112 = tpu.matmul %109, %111, %cst_53 {dimension_numbers = #tpu.dot_dimension_numbers<[1], [0], [0], [1], [0, 0, 1, 1], [], []>} : vector<10x240xf32>, vector<240x160xf32>, vector<10x160xf32> -> vector<10x160xf32>
    %113 = arith.addf %107, %112 : vector<10x160xf32>
    %114 = vector.extract_strided_slice %94 {offsets = [0, 3, 0], sizes = [2, 5, 240], strides = [1, 1, 1]} : vector<2x10x240xf32> to vector<2x5x240xf32>
    %115 = vector.shape_cast %114 : vector<2x5x240xf32> to vector<10x240xf32>
    %c3_54 = arith.constant 3 : index
    %c0_55 = arith.constant 0 : index
    %c0_56 = arith.constant 0 : index
    %116 = vector.load %arg6[%c3_54, %c0_55, %c0_56] : memref<6x240x160xf32, #tpu.memory_space<vmem>>, vector<1x240x160xf32>
    %117 = vector.shape_cast %116 : vector<1x240x160xf32> to vector<240x160xf32>
    %cst_57 = arith.constant dense<0.000000e+00> : vector<10x160xf32>
    %118 = tpu.matmul %115, %117, %cst_57 {dimension_numbers = #tpu.dot_dimension_numbers<[1], [0], [0], [1], [0, 0, 1, 1], [], []>} : vector<10x240xf32>, vector<240x160xf32>, vector<10x160xf32> -> vector<10x160xf32>
    %119 = arith.addf %113, %118 : vector<10x160xf32>
    %120 = vector.extract_strided_slice %94 {offsets = [0, 4, 0], sizes = [2, 5, 240], strides = [1, 1, 1]} : vector<2x10x240xf32> to vector<2x5x240xf32>
    %121 = vector.shape_cast %120 : vector<2x5x240xf32> to vector<10x240xf32>
    %c4_58 = arith.constant 4 : index
    %c0_59 = arith.constant 0 : index
    %c0_60 = arith.constant 0 : index
    %122 = vector.load %arg6[%c4_58, %c0_59, %c0_60] : memref<6x240x160xf32, #tpu.memory_space<vmem>>, vector<1x240x160xf32>
    %123 = vector.shape_cast %122 : vector<1x240x160xf32> to vector<240x160xf32>
    %cst_61 = arith.constant dense<0.000000e+00> : vector<10x160xf32>
    %124 = tpu.matmul %121, %123, %cst_61 {dimension_numbers = #tpu.dot_dimension_numbers<[1], [0], [0], [1], [0, 0, 1, 1], [], []>} : vector<10x240xf32>, vector<240x160xf32>, vector<10x160xf32> -> vector<10x160xf32>
    %125 = arith.addf %119, %124 : vector<10x160xf32>
    %126 = vector.extract_strided_slice %94 {offsets = [0, 5, 0], sizes = [2, 5, 240], strides = [1, 1, 1]} : vector<2x10x240xf32> to vector<2x5x240xf32>
    %127 = vector.shape_cast %126 : vector<2x5x240xf32> to vector<10x240xf32>
    %c5_62 = arith.constant 5 : index
    %c0_63 = arith.constant 0 : index
    %c0_64 = arith.constant 0 : index
    %128 = vector.load %arg6[%c5_62, %c0_63, %c0_64] : memref<6x240x160xf32, #tpu.memory_space<vmem>>, vector<1x240x160xf32>
    %129 = vector.shape_cast %128 : vector<1x240x160xf32> to vector<240x160xf32>
    %cst_65 = arith.constant dense<0.000000e+00> : vector<10x160xf32>
    %130 = tpu.matmul %127, %129, %cst_65 {dimension_numbers = #tpu.dot_dimension_numbers<[1], [0], [0], [1], [0, 0, 1, 1], [], []>} : vector<10x240xf32>, vector<240x160xf32>, vector<10x160xf32> -> vector<10x160xf32>
    %131 = arith.addf %125, %130 : vector<10x160xf32>
    %c0_66 = arith.constant 0 : index
    %c0_67 = arith.constant 0 : index
    %132 = vector.load %arg7[%c0_66, %c0_67] : memref<1x160xf32, #tpu.memory_space<vmem>>, vector<1x160xf32>
    %133 = vector.broadcast %132 : vector<1x160xf32> to vector<10x160xf32>
    %134 = arith.addf %131, %133 : vector<10x160xf32>
    %cst_68 = arith.constant 0.000000e+00 : f32
    %135 = vector.broadcast %cst_68 : f32 to vector<10x160xf32>
    %136 = arith.maximumf %134, %135 : vector<10x160xf32>
    %137 = vector.shape_cast %136 : vector<10x160xf32> to vector<2x5x160xf32>
    %138 = vector.extract_strided_slice %137 {offsets = [0, 0, 0], sizes = [2, 4, 160], strides = [1, 1, 1]} : vector<2x5x160xf32> to vector<2x4x160xf32>
    %139 = vector.shape_cast %138 : vector<2x4x160xf32> to vector<2x2x2x160xf32>
    %cst_69 = arith.constant dense<0xFF800000> : vector<2x2x160xf32>
    %140 = vector.multi_reduction <maximumf>, %139, %cst_69 [2] : vector<2x2x2x160xf32> to vector<2x2x160xf32>
    %141 = vector.extract_strided_slice %140 {offsets = [0, 0, 0], sizes = [2, 2, 32], strides = [1, 1, 1]} : vector<2x2x160xf32> to vector<2x2x32xf32>
    %142 = vector.extract_strided_slice %140 {offsets = [0, 0, 64], sizes = [2, 2, 32], strides = [1, 1, 1]} : vector<2x2x160xf32> to vector<2x2x32xf32>
    %143 = tpu.concatenate %141, %142 in 2 : vector<2x2x32xf32>, vector<2x2x32xf32> -> vector<2x2x64xf32>
    %144 = vector.extract_strided_slice %140 {offsets = [0, 0, 32], sizes = [2, 2, 32], strides = [1, 1, 1]} : vector<2x2x160xf32> to vector<2x2x32xf32>
    %145 = vector.extract_strided_slice %140 {offsets = [0, 0, 96], sizes = [2, 2, 32], strides = [1, 1, 1]} : vector<2x2x160xf32> to vector<2x2x32xf32>
    %146 = tpu.concatenate %144, %145 in 2 : vector<2x2x32xf32>, vector<2x2x32xf32> -> vector<2x2x64xf32>
    %147 = arith.maximumf %143, %146 : vector<2x2x64xf32>
    %148 = vector.shape_cast %147 : vector<2x2x64xf32> to vector<2x128xf32>
    %c0_70 = arith.constant 0 : index
    %c0_71 = arith.constant 0 : index
    %149 = vector.load %arg8[%c0_70, %c0_71] : memref<128x200xf32, #tpu.memory_space<vmem>>, vector<128x200xf32>
    %cst_72 = arith.constant dense<0.000000e+00> : vector<2x200xf32>
    %150 = tpu.matmul %148, %149, %cst_72 {dimension_numbers = #tpu.dot_dimension_numbers<[1], [0], [0], [1], [0, 0, 1, 1], [], []>} : vector<2x128xf32>, vector<128x200xf32>, vector<2x200xf32> -> vector<2x200xf32>
    %c0_73 = arith.constant 0 : index
    %c0_74 = arith.constant 0 : index
    %151 = vector.load %arg9[%c0_73, %c0_74] : memref<1x200xf32, #tpu.memory_space<vmem>>, vector<1x200xf32>
    %152 = vector.broadcast %151 : vector<1x200xf32> to vector<2x200xf32>
    %153 = arith.addf %150, %152 : vector<2x200xf32>
    %cst_75 = arith.constant 0.000000e+00 : f32
    %154 = vector.broadcast %cst_75 : f32 to vector<2x200xf32>
    %155 = arith.maximumf %153, %154 : vector<2x200xf32>
    %c0_76 = arith.constant 0 : index
    %c0_77 = arith.constant 0 : index
    %156 = vector.load %arg10[%c0_76, %c0_77] : memref<200x10xf32, #tpu.memory_space<vmem>>, vector<200x10xf32>
    %cst_78 = arith.constant dense<0.000000e+00> : vector<2x10xf32>
    %157 = tpu.matmul %155, %156, %cst_78 {dimension_numbers = #tpu.dot_dimension_numbers<[1], [0], [0], [1], [0, 0, 1, 1], [], []>} : vector<2x200xf32>, vector<200x10xf32>, vector<2x10xf32> -> vector<2x10xf32>
    %c0_79 = arith.constant 0 : index
    %c0_80 = arith.constant 0 : index
    %158 = vector.load %arg11[%c0_79, %c0_80] : memref<1x10xf32, #tpu.memory_space<vmem>>, vector<1x10xf32>
    %159 = vector.broadcast %158 : vector<1x10xf32> to vector<2x10xf32>
    %160 = arith.addf %157, %159 : vector<2x10xf32>
    %cst_81 = arith.constant dense<0xFF800000> : vector<2xf32>
    %161 = vector.multi_reduction <maximumf>, %160, %cst_81 [1] : vector<2x10xf32> to vector<2xf32>
    %162 = vector.shape_cast %161 : vector<2xf32> to vector<2x1xf32>
    %163 = vector.broadcast %162 : vector<2x1xf32> to vector<2x10xf32>
    %164 = arith.subf %160, %163 : vector<2x10xf32>
    %165 = math.exp %164 : vector<2x10xf32>
    %cst_82 = arith.constant dense<0.000000e+00> : vector<2xf32>
    %166 = vector.multi_reduction <add>, %165, %cst_82 [1] : vector<2x10xf32> to vector<2xf32>
    %167 = vector.shape_cast %166 : vector<2xf32> to vector<2x1xf32>
    %168 = math.log %167 : vector<2x1xf32>
    %169 = vector.broadcast %168 : vector<2x1xf32> to vector<2x10xf32>
    %170 = arith.subf %164, %169 : vector<2x10xf32>
    %c0_83 = arith.constant 0 : index
    %c0_84 = arith.constant 0 : index
    %171 = vector.load %arg12[%c0_83, %c0_84] : memref<2x10xf32, #tpu.memory_space<vmem>>, vector<2x10xf32>
    tpu.vector_store %arg12[%c0_83, %c0_84], %170 {strides = array<i32>} : memref<2x10xf32, #tpu.memory_space<vmem>>, vector<2x10xf32>,
    return
  }
  func.func @transform_0(%arg0: i32) -> (i32, i32, i32) {
    %c0_i32 = arith.constant 0 : i32
    %c0_i32_0 = arith.constant 0 : i32
    %c0_i32_1 = arith.constant 0 : i32
    return %arg0, %c0_i32, %c0_i32_0 : i32, i32, i32
  }
  func.func @transform_1(%arg0: i32) -> (i32, i32, i32) {
    %c0_i32 = arith.constant 0 : i32
    %c0_i32_0 = arith.constant 0 : i32
    %c0_i32_1 = arith.constant 0 : i32
    %c0_i32_2 = arith.constant 0 : i32
    return %c0_i32, %c0_i32_0, %c0_i32_1 : i32, i32, i32
  }
  func.func @transform_2(%arg0: i32) -> (i32, i32) {
    %c0_i32 = arith.constant 0 : i32
    %c0_i32_0 = arith.constant 0 : i32
    %c0_i32_1 = arith.constant 0 : i32
    return %c0_i32, %c0_i32_0 : i32, i32
  }
  func.func @transform_3(%arg0: i32) -> (i32, i32, i32) {
    %c0_i32 = arith.constant 0 : i32
    %c0_i32_0 = arith.constant 0 : i32
    %c0_i32_1 = arith.constant 0 : i32
    %c0_i32_2 = arith.constant 0 : i32
    return %c0_i32, %c0_i32_0, %c0_i32_1 : i32, i32, i32
  }
  func.func @transform_4(%arg0: i32) -> (i32, i32) {
    %c0_i32 = arith.constant 0 : i32
    %c0_i32_0 = arith.constant 0 : i32
    %c0_i32_1 = arith.constant 0 : i32
    return %c0_i32, %c0_i32_0 : i32, i32
  }
  func.func @transform_5(%arg0: i32) -> (i32, i32, i32) {
    %c0_i32 = arith.constant 0 : i32
    %c0_i32_0 = arith.constant 0 : i32
    %c0_i32_1 = arith.constant 0 : i32
    %c0_i32_2 = arith.constant 0 : i32
    return %c0_i32, %c0_i32_0, %c0_i32_1 : i32, i32, i32
  }
  func.func @transform_6(%arg0: i32) -> (i32, i32) {
    %c0_i32 = arith.constant 0 : i32
    %c0_i32_0 = arith.constant 0 : i32
    %c0_i32_1 = arith.constant 0 : i32
    return %c0_i32, %c0_i32_0 : i32, i32
  }
  func.func @transform_7(%arg0: i32) -> (i32, i32) {
    %c0_i32 = arith.constant 0 : i32
    %c0_i32_0 = arith.constant 0 : i32
    %c0_i32_1 = arith.constant 0 : i32
    return %c0_i32, %c0_i32_0 : i32, i32
  }
  func.func @transform_8(%arg0: i32) -> (i32, i32) {
    %c0_i32 = arith.constant 0 : i32
    %c0_i32_0 = arith.constant 0 : i32
    %c0_i32_1 = arith.constant 0 : i32
    return %c0_i32, %c0_i32_0 : i32, i32
  }
  func.func @transform_9(%arg0: i32) -> (i32, i32) {
    %c0_i32 = arith.constant 0 : i32
    %c0_i32_0 = arith.constant 0 : i32
    %c0_i32_1 = arith.constant 0 : i32
    return %c0_i32, %c0_i32_0 : i32, i32
  }
  func.func @transform_10(%arg0: i32) -> (i32, i32) {
    %c0_i32 = arith.constant 0 : i32
    %c0_i32_0 = arith.constant 0 : i32
    %c0_i32_1 = arith.constant 0 : i32
    return %c0_i32, %c0_i32_0 : i32, i32
  }
  func.func @transform_11(%arg0: i32) -> (i32, i32) {
    %c0_i32 = arith.constant 0 : i32
    %c0_i32_0 = arith.constant 0 : i32
    return %arg0, %c0_i32 : i32, i32
  }
}

</mosaic_0001>

<bundles_post_ra>
// kernel: tpu_custom_call.1
= control target key start
LH: loop header
LB: loop body
LE: loop exit
PB: predicated region body
PF: predicated region fallthrough
CT: control target
= control target key end

     0   :  { %16 = vsyncpa [#allocation3], 0  ;;  %s17063_s0 = inlined_call_operand.vmem [shape: f32[2,28,28], index: 0, kind: input, shape index: {}]   ;;  %s17064_s1 = inlined_call_operand.hbm [shape: f32[3,28,312], index: 1, kind: input, shape index: {}]   ;;  %s17065_s2 = inlined_call_operand.hbm [shape: f32[1,312], index: 2, kind: input, shape index: {}]   ;;  %s17066_s3 = inlined_call_operand.hbm [shape: f32[6,312,504], index: 3, kind: input, shape index: {}]   ;;  %s17067_s4 = inlined_call_operand.hbm [shape: f32[1,504], index: 4, kind: input, shape index: {}]   ;;  %s17068_s5 = inlined_call_operand.vmem [shape: f32[6,240,160], index: 5, kind: input, shape index: {}]   ;;  %s17069_s6 = inlined_call_operand.hbm [shape: f32[1,160], index: 6, kind: input, shape index: {}]   ;;  %s17070_s7 = inlined_call_operand.vmem [shape: f32[128,200], index: 7, kind: input, shape index: {}]   ;;  %s17071_s8 = inlined_call_operand.hbm [shape: f32[1,200], index: 8, kind: input, shape index: {}]   ;;  %s17072_s9 = inlined_call_operand.vmem [shape: f32[200,10], index: 9, kind: input, shape index: {}]   ;;  %s17073_s10 = inlined_call_operand.hbm [shape: f32[1,10], index: 10, kind: input, shape index: {}]   ;;  %s17074_s11 = inlined_call_operand.hbm [shape: f32[2,10], index: 11, kind: output, shape index: {}]  }
   0x1   :  { %17 = vsyncpa [#allocation6], 0 }
   0x2   :  { %18 = vsyncpa [#allocation9], 0 }
   0x3   :  { %19 = vsyncpa [#allocation12], 0 }
   0x4   :  { %20 = vsyncpa [#allocation4], 0  ;;  %s11679_s17 = smov [#allocation5]   ;;  %s11680_s19 = smov [#allocation8]  }
   0x5   :  { %s41_s18 = sshll.u32 %s11679_s17, 4  ;;  %s63_s20 = sshll.u32 %s11680_s19, 4  ;;  %s42_s18 = int_to_ptr.vmem [resolvable:$true] %s41_s18  ;;  %s64_s20 = int_to_ptr.vmem [resolvable:$true] %s63_s20 }
   0x6   :  { %s11517_s21 = scalar_lea.vmem %s42_s18, 48  ;;  %s11521_s22 = scalar_lea.vmem %s42_s18, 64 }
   0x7   :  { %p11518_p0 = scmp.ne.s32.totalorder %s42_s18, %s11517_s21  ;;  %p11522_p1 = scmp.lt.s32.totalorder %s42_s18, %s42_s18 }
   0x8   :  { %p11523_p2 = scmp.lt.s32.totalorder %s11521_s22, %s11517_s21 }
   0xa   :  { %p11524_p3 = por %p11523_p2, %p11522_p1 }
   0xc   :  { %p11525_p4 = pnand %p11524_p3, %p11518_p0 }
   0xe   :  { %11528 = shalt.err (!%p11525_p4)
}
   0xf   :  { %44 = dma.hbm_to_vmem [thread:$0]  %s17065_s2, 48, %s42_s18, [#allocation6]  }
  0x10   :  { %s11537_s25 = scalar_lea.vmem %s64_s20, 64  ;;  %p11542_p6 = scmp.lt.s32.totalorder %s64_s20, %s64_s20 }
  0x11   :  { %p11538_p5 = scmp.ne.s32.totalorder %s64_s20, %s11537_s25  ;;  %p11543_p7 = scmp.lt.s32.totalorder %s11537_s25, %s11537_s25 }
  0x13   :  { %p11544_p8 = por %p11543_p7, %p11542_p6 }
  0x15   :  { %p11545_p9 = pnand %p11544_p8, %p11538_p5 }
  0x17   :  { %11548 = shalt.err (!%p11545_p9)
}
  0x18   :  { %66 = dma.hbm_to_vmem [thread:$0]  %s17067_s4, 64, %s64_s20, [#allocation9]  }
  0x19   :  { %s11681_s28 = smov [#allocation11]   ;;  %s11682_s30 = smov [#allocation2]  }
  0x1a   :  { %s87_s29 = sshll.u32 %s11681_s28, 4  ;;  %s28_s12 = sshll.u32 %s11682_s30, 4  ;;  %s88_s29 = int_to_ptr.vmem [resolvable:$true] %s87_s29  ;;  %s29_s12 = int_to_ptr.vmem [resolvable:$true] %s28_s12 }
  0x1b   :  { %s11557_s13 = scalar_lea.vmem %s88_s29, 32  ;;  %p11562_p11 = scmp.lt.s32.totalorder %s88_s29, %s88_s29 }
  0x1c   :  { %p11558_p10 = scmp.ne.s32.totalorder %s88_s29, %s11557_s13  ;;  %p11563_p12 = scmp.lt.s32.totalorder %s11557_s13, %s11557_s13 }
  0x1e   :  { %p11564_p13 = por %p11563_p12, %p11562_p11 }
  0x20   :  { %p11565_p0 = pnand %p11564_p13, %p11558_p10 }
  0x22   :  { %11568 = shalt.err (!%p11565_p0)
}
  0x23   :  { %90 = dma.hbm_to_vmem [thread:$0]  %s17071_s8, 32, %s88_s29, [#allocation12]  }
  0x24   :  { %s11577_s15 = scalar_lea.vmem %s29_s12, 4608  ;;  %p11582_p2 = scmp.lt.s32.totalorder %s29_s12, %s29_s12 }
  0x25   :  { %p11578_p1 = scmp.ne.s32.totalorder %s29_s12, %s11577_s15  ;;  %p11583_p3 = scmp.lt.s32.totalorder %s11577_s15, %s11577_s15 }
  0x27   :  { %p11584_p4 = por %p11583_p3, %p11582_p2 }
  0x29   :  { %p11585_p5 = pnand %p11584_p4, %p11578_p1 }
  0x2b   :  { %11588 = shalt.err (!%p11585_p5)
}
  0x2c   :  { %s11683_s4 = smov 384   ;;  %s11684_s16 = smov 24  }
  0x2d   :  { %34 = dma.hbm_to_vmem [thread:$0]  %s17064_s1, 4608, %s29_s12, [#allocation3], %s11683_s4, %s11683_s4, %s11684_s16  }
  0x2e   :  { %s11685_s19 = smov [#allocation7]  }
  0x2f   :  { %s50_s20 = sshll.u32 %s11685_s19, 4  ;;  %s51_s20 = int_to_ptr.vmem [resolvable:$true] %s50_s20 }
  0x30   :  { %s11597_s21 = scalar_lea.vmem %s51_s20, 119808  ;;  %p11602_p7 = scmp.lt.s32.totalorder %s51_s20, %s51_s20 }
  0x31   :  { %p11598_p6 = scmp.ne.s32.totalorder %s51_s20, %s11597_s21  ;;  %p11603_p8 = scmp.lt.s32.totalorder %s11597_s21, %s11597_s21 }
  0x33   :  { %p11604_p9 = por %p11603_p8, %p11602_p7 }
  0x35   :  { %p11605_p10 = pnand %p11604_p9, %p11598_p6 }
  0x37   :  { %11608 = shalt.err (!%p11605_p10)
}
  0x38   :  { %s11686_s8 = smov 512   ;;  %s11687_s22 = smov 32  }
  0x39   :  { %56 = dma.hbm_to_vmem [thread:$0]  %s17066_s3, 119808, %s51_s20, [#allocation6], %s11686_s8, %s11686_s8, %s11687_s22  }
  0x3a   :  { %s11688_s25 = smov [#allocation10]   ;;  %s11689_s1 = smov [#allocation13]  }
  0x3b   :  { %s75_s26 = sshll.u32 %s11688_s25, 4  ;;  %s99_s27 = sshll.u32 %s11689_s1, 4  ;;  %s76_s26 = int_to_ptr.vmem [resolvable:$true] %s75_s26  ;;  %s100_s27 = int_to_ptr.vmem [resolvable:$true] %s99_s27 }
  0x3c   :  { %s11617_s28 = scalar_lea.vmem %s76_s26, 32  ;;  %p11622_p12 = scmp.lt.s32.totalorder %s76_s26, %s76_s26 }
  0x3d   :  { %p11618_p11 = scmp.ne.s32.totalorder %s76_s26, %s11617_s28  ;;  %p11623_p13 = scmp.lt.s32.totalorder %s11617_s28, %s11617_s28 }
  0x3f   :  { %p11624_p0 = por %p11623_p13, %p11622_p12 }
  0x41   :  { %p11625_p1 = pnand %p11624_p0, %p11618_p11 }
  0x43   :  { %11628 = shalt.err (!%p11625_p1)
}
  0x44   :  { %78 = dma.hbm_to_vmem [thread:$0]  %s17069_s6, 32, %s76_s26, [#allocation9]  }
  0x45   :  { %s11637_s12 = scalar_lea.vmem %s100_s27, 16  ;;  %s11641_s3 = scalar_lea.vmem %s100_s27, 32 }
  0x46   :  { %p11638_p2 = scmp.ne.s32.totalorder %s100_s27, %s11637_s12  ;;  %p11642_p3 = scmp.lt.s32.totalorder %s100_s27, %s100_s27 }
  0x47   :  { %p11643_p4 = scmp.lt.s32.totalorder %s11641_s3, %s11637_s12 }
  0x49   :  { %p11644_p5 = por %p11643_p4, %p11642_p3 }
  0x4b   :  { %p11645_p6 = pnand %p11644_p5, %p11638_p2 }
  0x4d   :  { %11648 = shalt.err (!%p11645_p6)
}
  0x4e   :  { %102 = dma.hbm_to_vmem [thread:$0]  %s17073_s10, 16, %s100_s27, [#allocation12]  }
  0x4f   :  { %11669 = dma.done.wait [#allocation3], 4608  }
  0x50   :  { %11670 = vsyncadd [#allocation3], 4294962688 }
  0x51   :  { %11671 = dma.done.wait [#allocation6], 119856  }
  0x52   :  { %11672 = vsyncadd [#allocation6], 4294847440 }
  0x53   :  { %11673 = dma.done.wait [#allocation9], 96  }
  0x54   :  { %11674 = vsyncadd [#allocation9], 4294967200 }
  0x55   :  { %11675 = dma.done.wait [#allocation12], 48  }
  0x56   :  { %11676 = vsyncadd [#allocation12], 4294967248  ;;  %v144_v0 = vlaneseq  ;;  %v17076_v1 = vmov 0.0   ;;  %vm11691_vm0 = vmmov 0   ;;  %v11692_v2 = vmov 1983009808  }
  0x57   :  { %11464 = vmatprep.subr.mxu1 %v17076_v1  ;;  %569 = vmatprep.mubr.f32.mxu0 %v17076_v1  ;;  %v142_v3 = vunpack.c.l.s4 %v11692_v2  ;;  %vm495_vm1 = vcmask 1043456   ;;  %vm270_vm2 = vcmask 1040384   ;;  %vm271_vm3 = vcmask 1042434   ;;  %v368_v6 = vld [vmem:[#allocation2 + $0xb0] sm:$0xf]  ;;  %v365_v9 = vld [vmem:[#allocation2 + $0x98] sm:$0xff] }
  0x58   :  { %11391 = vmatprep.mubr.msk.f32.mxu1 %vm11691_vm0, %v17076_v1  ;;  %v11792_v5 = vshrl.u32 %v144_v0, 7  ;;  %v367_v7 = vld [vmem:[#allocation2 + $0xa8] sm:$0xf]  ;;  %v11794_v8 = vld [vmem:[#allocation2 + $0xb8] sm:$0xf]  ;;  %10891 = vmatprep.subr.msk.mxu0 %vm495_vm1, %v368_v6  ;;  %v364_v10 = vld [vmem:[#allocation2 + $0x90] sm:$0xff] }
  0x59   :  { %v143_v4 = vunpack.c.0.s8 %v142_v3  ;;  %11468 = vmatpush3.msk.msra.mxu1 %vm495_vm1, %v11794_v8  ;;  %v11799_v11 = vld [vmem:[#allocation2 + $0xa0] sm:$0xff]  ;;  %10892 = vmatpush1.msk.msra.mxu0 %vm495_vm1, %v367_v7  ;;  %v11806_v14 = vld [vmem:[#allocation2 + $0x88] sm:$0xff]  ;;  %vm11810_vm4 = vmor %vm270_vm2, %vm271_vm3  ;;  %vm273_vm5 = vcmask 1044484   ;;  %vm275_vm7 = vcmask 1046534   ;;  %vm480_vm9 = vcmask 228352   ;;  %s11695_s1 = smov 104  }
  0x5a   :  { %17196 = vst [vmem:[#allocation20_spill] sm:$0xff] %v11792_v5  ;;  %11465 = vmatprep.subr.mxu1 %v17076_v1  ;;  %v362_v13 = vld [vmem:[#allocation2 + $0x80] sm:$0xff]  ;;  %531 = vmatprep.subr.mxu0 %v365_v9  ;;  %v361_v16 = vld [vmem:[#allocation2 + $0x78] sm:$0xff]  ;;  %v359_v17 = vld [vmem:[#allocation2 + $0x68] sm:$0xff]  ;;  %vm2593_vm10 = vcmask 457728   ;;  %vm7939_vm11 = vcmask 1041408  }
  0x5b   :  { %v11802_v12 = vsub.s32 %v143_v4, %v11792_v5  ;;  %11469 = vmatpush3.msra.mxu1 %v11799_v11  ;;  %v11815_v18 = vld [vmem:[#allocation2 + $0x70] sm:$0xff]  ;;  %532 = vmatpush1.msra.mxu0 %v364_v10  ;;  %v124_v19 = vld [vmem:[%s17063_s0] sm:$0xff]  ;;  %v125_v20 = vld [vmem:[%s17063_s0 + $0x8] sm:$0xff]  ;;  %vm8521_vm12 = vcmask 1041409   ;;  %vm8524_vm13 = vcmask 1043459   ;;  %vm8527_vm14 = vcmask 1045509  }
  0x5c   :  { %11466 = vmatprep.subr.mxu1 %v17076_v1  ;;  %v126_v21 = vld [vmem:[%s17063_s0 + $0x10] sm:$0xff]  ;;  %533 = vmatprep.subr.mxu0 %v362_v13  ;;  %v358_v22 = vld [vmem:[#allocation2 + $0x60] sm:$0xff]  ;;  %v140_v23 = vcombine.high %v124_v19, %v124_v19  ;;  %vm11837_vm6 = vmor %vm11810_vm4, %vm273_vm5  ;;  %v157_v31 = vcombine.high %v125_v20, %v125_v20  ;;  %vm8530_vm15 = vcmask 1047559   ;;  %s11696_s27 = smov 80   ;;  %s11697_s28 = smov 8   ;;  %vm8783_vm2 = vcmask 392192  }
  0x5d   :  { %11470 = vmatpush3.msra.mxu1 %v11806_v14  ;;  %v11829_v24 = vrot.slane %v124_v19, %v11802_v12  ;;  %v11832_v25 = vrot.slane %v125_v20, %v11802_v12  ;;  %v11844_v27 = vld.sshfl [vmem:[%s17063_s0 + $0x18] sm:$0x33 pattern:$0x76325410]  ;;  %534 = vmatpush1.msra.mxu0 %v361_v16  ;;  %v174_v28 = vcombine.high %v126_v21, %v126_v21  ;;  %vm11864_vm8 = vmor %vm11837_vm6, %vm275_vm7  ;;  %v128_v7 = vld [vmem:[%s17063_s0 + $0x20] sm:$0xff]  ;;  %s11698_s29 = smov 88  }
  0x5e   :  { %11467 = vmatprep.subr.mxu1 %v17076_v1  ;;  %v11848_v29 = vrot.slane %v126_v21, %v11802_v12  ;;  %v312_v30 = vrot.slane %v11844_v27, 7  ;;  %535 = vmatprep.subr.mxu0 %v359_v17  ;;  %v11853_v32 = vrot.slane %v140_v23, %v11802_v12  ;;  %v11877_v40 = vrot.slane %v157_v31, %v11802_v12  ;;  %s11699_s30 = smov 112   ;;  %s11700_s12 = smov 64  }
  0x5f   :  { %11471 = vmatpush3.msra.mxu1 %v11815_v18  ;;  %v11857_v33 = vcombine.high %v11829_v24, %v11829_v24  ;;  %v10889_v34 = vrot.slane %v11829_v24, 9  ;;  %v288_v35 = vrot.slane %v11832_v25, 7  ;;  %536 = vmatpush1.msra.mxu0 %v358_v22  ;;  %v11869_v37 = vrot.slane %v174_v28, %v11802_v12  ;;  %s11701_s2 = smov 40   ;;  %s11702_s23 = smov 16  }
  0x60   :  { %v11873_v38 = vcombine.high %v11848_v29, %v11848_v29  ;;  %v300_v39 = vrot.slane %v11848_v29, 7  ;;  %11406 = vmatprep.subr.mxu1 %v17076_v1  ;;  %v11882_v41 = vcombine.high %v11853_v32, %v11853_v32  ;;  %v282_v43 = vrot.slane %v11853_v32, 7  ;;  %11377 = vmatprep.subr.mxu0 %v17076_v1 }
  0x61   :  { %v279_v42 = vrot.slane %v11857_v33, 7  ;;  %v11889_v44 = vcombine.high %v11832_v25, %v11832_v25  ;;  %v11893_v45 = vcombine.high %v11869_v37, %v11869_v37  ;;  %v306_v48 = vrot.slane %v11869_v37, 7 }
  0x62   :  { %v302_v46 = vrot.slane %v300_v39, 2  ;;  %v303_v47 = vrot.slane %v11873_v38, 7  ;;  %v284_v51 = vrot.slane %v282_v43, 2  ;;  %v285_v52 = vrot.slane %v11882_v41, 7 }
  0x63   :  { %v280_v49 = vsel %vm11864_vm8, %v10889_v34, %v279_v42  ;;  %v281_v50 = vrot.slane %v279_v42, 2  ;;  %v308_v55 = vrot.slane %v306_v48, 2  ;;  %v309_v56 = vrot.slane %v11893_v45, 7 }
  0x64   :  { %v304_v53 = vsel %vm11864_vm8, %v302_v46, %v303_v47  ;;  %v305_v54 = vrot.slane %v303_v47, 2  ;;  %v286_v58 = vsel %vm11864_vm8, %v284_v51, %v285_v52  ;;  %v287_v59 = vrot.slane %v285_v52, 2  ;;  %v129_v52 = vld [vmem:[%s17063_s0 + $0x28] sm:$0xff] }
  0x65   :  { %v283_v57 = vsel %vm11864_vm8, %v281_v50, %v282_v43  ;;  %v11909_v60 = vcombine.high %v11877_v40, %v11877_v40  ;;  %v310_v63 = vsel %vm11864_vm8, %v308_v55, %v309_v56  ;;  %v311_v0 = vrot.slane %v309_v56, 2 }
  0x66   :  { %v370_v61 = vcombine.low %v280_v49, %v283_v57  ;;  %v307_v62 = vsel %vm11864_vm8, %v305_v54, %v306_v48  ;;  %v289_v2 = vsel %vm11864_vm8, %v287_v59, %v288_v35  ;;  %v290_v4 = vrot.slane %v288_v35, 2  ;;  %v267_v57 = vld [vmem:[#allocation2 + $0x58] sm:$0xf] }
  0x67   :  { %v404_v3 = vcombine.low %v304_v53, %v307_v62  ;;  %v291_v6 = vrot.slane %v11889_v44, 7  ;;  %v371_v9 = vcombine.low %v286_v58, %v289_v2  ;;  %v313_v13 = vsel %vm11864_vm8, %v311_v0, %v312_v30  ;;  %v11961_v53 = vld.sshfl [vmem:[%s17063_s0 + $0x38] sm:$0x33 pattern:$0x76325410]  ;;  %v130_v0 = vld [vmem:[%s17063_s0 + $0x30] sm:$0xff] }
  0x68   :  { %v378_v10 = vrot.slane %v370_v61, %v11802_v12  ;;  %v294_v15 = vrot.slane %v11877_v40, 7  ;;  %v405_v16 = vcombine.low %v310_v63, %v313_v13  ;;  %v297_v23 = vrot.slane %v11909_v60, 7  ;;  %v264_v2 = vld [vmem:[#allocation2 + $0x40] sm:$0xff]  ;;  %s11694_s0 = smov 56  }
  0x69   :  { %v412_v17 = vrot.slane %v404_v3, %v11802_v12  ;;  %v292_v19 = vsel %vm11864_vm8, %v290_v4, %v291_v6  ;;  %v293_v20 = vrot.slane %v291_v6, 2  ;;  %v385_v21 = vrot.slane %v371_v9, %v11802_v12 }
  0x6a   :  { %v296_v22 = vrot.slane %v294_v15, 2  ;;  %v198_v26 = vcombine.high %v128_v7, %v128_v7  ;;  %v419_v28 = vrot.slane %v405_v16, %v11802_v12  ;;  %v11936_v34 = vrot.slane %v128_v7, %v11802_v12 }
  0x6b   :  { %v295_v31 = vsel %vm11864_vm8, %v293_v20, %v294_v15  ;;  %v268_v35 = vcombine.high %v11844_v27, %v11844_v27  ;;  %v11940_v42 = vcombine.low %v378_v10, %v385_v21  ;;  %v299_v46 = vrot.slane %v297_v23, 2 }
  0x6c   :  { %v298_v43 = vsel %vm11864_vm8, %v296_v22, %v297_v23  ;;  %v387_v47 = vcombine.low %v292_v19, %v295_v31  ;;  %v11944_v48 = vcombine.low %v412_v17, %v419_v28  ;;  %v11947_v49 = vrot.slane %v198_v26, %v11802_v12  ;;  %v261_v17 = vld [vmem:[#allocation2 + $0x28] sm:$0xff]  ;;  %v258_v31 = vld [vmem:[#allocation2 + $0x10] sm:$0xff] }
  0x6d   :  { %v11951_v50 = vcombine.high %v11936_v34, %v11936_v34  ;;  %v314_v51 = vrot.slane %v312_v30, 2  ;;  %10893 = vmatmul.mubr.msk.f32.vlgmr.msra.gmra.mxu0 %vm480_vm9, %v11940_v42  ;;  %v301_v54 = vsel %vm11864_vm8, %v299_v46, %v300_v39  ;;  %v315_v56 = vrot.slane %v268_v35, 7 }
  0x6e   :  { %v395_v55 = vrot.slane %v387_v47, %v11802_v12  ;;  %v10890_v30 = vrot.slane %v11936_v34, 9  ;;  %11392 = vmatmul.mubr.msk.f32.vlgmr.msra.gmra.mxu1 %vm480_vm9, %v11944_v48  ;;  %11378 = vmatpush3.msk.msra.mxu0 %vm495_vm1, %v11794_v8  ;;  %v388_v58 = vcombine.low %v298_v43, %v301_v54  ;;  %v11975_v59 = vcombine.high %v11947_v49, %v11947_v49 }
  0x6f   :  { %v319_v61 = vrot.slane %v11951_v50, 7  ;;  %v322_v39 = vrot.slane %v11947_v49, 7  ;;  %575 = vmatprep.mubr.f32.mxu0 %v17076_v1  ;;  %11394 = vmatprep.mubr.msk.f32.mxu1 %vm11691_vm0, %v17076_v1  ;;  %v316_v62 = vsel %vm11864_vm8, %v314_v51, %v315_v56  ;;  %v215_v63 = vcombine.high %v129_v52, %v129_v52 }
  0x70   :  { %v11985_v8 = vrot.slane %v129_v52, %v11802_v12  ;;  %v352_v3 = vrot.slane %v11961_v53, 7  ;;  %v402_v4 = vrot.slane %v388_v58, %v11802_v12  ;;  %11379 = vmatprep.subr.mxu0 %v17076_v1  ;;  %11407 = vmatpush3.msk.msra.mxu1 %vm495_vm1, %v267_v57  ;;  %v325_v10 = vrot.slane %v11975_v59, 7 }
  0x71   :  { %v320_v6 = vsel %vm11864_vm8, %v10890_v30, %v319_v61  ;;  %v321_v7 = vrot.slane %v319_v61, 2  ;;  %v324_v9 = vrot.slane %v322_v39, 2  ;;  %11380 = vmatpush3.msra.mxu0 %v11799_v11  ;;  %v11999_v15 = vrot.slane %v215_v63, %v11802_v12  ;;  %11408 = vmatprep.subr.mxu1 %v17076_v1 }
  0x72   :  { %v421_v13 = vcombine.low %v316_v62, %v320_v6  ;;  %v12003_v16 = vcombine.high %v11985_v8, %v11985_v8  ;;  %v12006_v19 = vcombine.low %v395_v55, %v402_v4  ;;  %v328_v21 = vrot.slane %v11985_v8, 7  ;;  %11381 = vmatprep.subr.mxu0 %v17076_v1  ;;  %11409 = vmatpush3.msra.mxu1 %v264_v2  ;;  %v266_v55 = vld [vmem:[#allocation2 + $0x50] sm:$0xf] }
  0x73   :  { %v323_v20 = vsel %vm11864_vm8, %v321_v7, %v322_v39  ;;  %v232_v22 = vcombine.high %v130_v0, %v130_v0  ;;  %v326_v11 = vsel %vm11864_vm8, %v324_v9, %v325_v10  ;;  %v12017_v26 = vcombine.high %v11999_v15, %v11999_v15  ;;  %11382 = vmatpush3.msra.mxu0 %v11806_v14 }
  0x74   :  { %v429_v23 = vrot.slane %v421_v13, %v11802_v12  ;;  %v327_v28 = vrot.slane %v325_v10, 2  ;;  %11410 = vmatprep.subr.mxu1 %v17076_v1  ;;  %10894 = vmatmul.mubr.msk.f32.gmra.mxu0 %vm480_vm9, %v12006_v19  ;;  %v422_v35 = vcombine.low %v323_v20, %v326_v11  ;;  %v330_v43 = vrot.slane %v328_v21, 2 }
  0x75   :  { %v331_v46 = vrot.slane %v12003_v16, 7  ;;  %v334_v47 = vrot.slane %v11999_v15, 7  ;;  %11411 = vmatpush3.msra.mxu1 %v261_v17  ;;  %581 = vmatprep.mubr.f32.mxu0 %v17076_v1  ;;  %v337_v14 = vrot.slane %v12017_v26, 7  ;;  %v12030_v52 = vrot.slane %v130_v0, %v11802_v12 }
  0x76   :  { %v329_v51 = vsel %vm11864_vm8, %v327_v28, %v328_v21  ;;  %v12033_v54 = vrot.slane %v232_v22, %v11802_v12  ;;  %11412 = vmatprep.subr.mxu1 %v17076_v1  ;;  %v436_v56 = vrot.slane %v422_v35, %v11802_v12  ;;  %11383 = vmatprep.subr.mxu0 %v17076_v1  ;;  %vm8803_vm4 = vcmask 130048  }
  0x77   :  { %v332_v30 = vsel %vm11864_vm8, %v330_v43, %v331_v46  ;;  %v333_v57 = vrot.slane %v331_v46, 2  ;;  %v336_v58 = vrot.slane %v334_v47, 2  ;;  %11413 = vmatpush3.msra.mxu1 %v258_v31  ;;  %v12042_v39 = vcombine.high %v12030_v52, %v12030_v52  ;;  %11384 = vmatpush3.msra.mxu0 %v11815_v18 }
  0x78   :  { %v438_v61 = vcombine.low %v329_v51, %v332_v30  ;;  %v12046_v62 = vcombine.high %v12033_v54, %v12033_v54  ;;  %v339_v63 = vrot.slane %v337_v14, 2  ;;  %11435 = vmatprep.subr.mxu1 %v17076_v1  ;;  %v437_v0 = vcombine.low %v429_v23, %v436_v56  ;;  %10895 = vmatmul.mubr.msk.f32.gmra.mxu0 %vm480_vm9, %v11944_v48 }
  0x79   :  { %v335_v2 = vsel %vm11864_vm8, %v333_v57, %v334_v47  ;;  %v338_v4 = vsel %vm11864_vm8, %v336_v58, %v337_v14  ;;  %v340_v6 = vrot.slane %v12030_v52, 7  ;;  %10908 = vmatprep.subr.msk.mxu0 %vm495_vm1, %v266_v55  ;;  %587 = vmatprep.mubr.f32.mxu0 %v17076_v1  ;;  %v343_v18 = vrot.slane %v12042_v39, 7 }
  0x7a   :  { %v439_v7 = vcombine.low %v335_v2, %v338_v4  ;;  %v446_v9 = vrot.slane %v438_v61, %v11802_v12  ;;  %v346_v10 = vrot.slane %v12033_v54, 7  ;;  %11395 = vmatmul.mubr.msk.f32.gmra.mxu1 %vm480_vm9, %v437_v0  ;;  %v349_v17 = vrot.slane %v12046_v62, 7 }
  0x7b   :  { %v341_v48 = vsel %vm11864_vm8, %v339_v63, %v340_v6  ;;  %v342_v13 = vrot.slane %v340_v6, 2  ;;  %v12068_v20 = vcombine.high %v11961_v53, %v11961_v53  ;;  %11397 = vmatprep.mubr.msk.f32.mxu1 %vm11691_vm0, %v17076_v1  ;;  %v345_v22 = vrot.slane %v343_v18, 2 }
  0x7c   :  { %v453_v21 = vrot.slane %v439_v7, %v11802_v12  ;;  %v348_v11 = vrot.slane %v346_v10, 2  ;;  %v354_v23 = vrot.slane %v352_v3, 2  ;;  %10896 = vmatmul.mubr.msk.f32.gmra.mxu0 %vm480_vm9, %v437_v0  ;;  %v351_v31 = vrot.slane %v349_v17, 2 }
  0x7d   :  { %v344_v28 = vsel %vm11864_vm8, %v342_v13, %v343_v18  ;;  %v355_v35 = vrot.slane %v12068_v20, 7  ;;  %v347_v46 = vsel %vm11864_vm8, %v345_v22, %v346_v10  ;;  %593 = vmatprep.mubr.f32.mxu0 %v17076_v1  ;;  %v712_v57 = vcombine.low %v11829_v24, %v11857_v33 }
  0x7e   :  { %v454_v43 = vcombine.low %v446_v9, %v453_v21  ;;  %v350_v47 = vsel %vm11864_vm8, %v348_v11, %v349_v17  ;;  %v455_v51 = vcombine.low %v341_v48, %v344_v28  ;;  %v353_v55 = vsel %vm11864_vm8, %v351_v31, %v352_v3  ;;  %v263_v28 = vld [vmem:[#allocation2 + $0x38] sm:$0xff] }
  0x7f   :  { %v456_v14 = vcombine.low %v347_v46, %v350_v47  ;;  %v356_v56 = vsel %vm11864_vm8, %v354_v23, %v355_v35  ;;  %v713_v58 = vcombine.low %v11853_v32, %v11882_v41  ;;  %v729_v63 = vcombine.low %v11832_v25, %v11889_v44 }
  0x80   :  { %11398 = vmatmul.mubr.msk.f32.gmra.mxu1 %vm480_vm9, %v454_v43  ;;  %v463_v30 = vrot.slane %v455_v51, %v11802_v12  ;;  %10897 = vmatmul.mubr.msk.f32.gmra.mxu0 %vm480_vm9, %v454_v43  ;;  %v472_v3 = vcombine.low %v353_v55, %v356_v56  ;;  %v720_v0 = vrot.slane %v712_v57, %v11802_v12  ;;  %v259_v51 = vld [vmem:[#allocation2 + $0x18] sm:$0xff]  ;;  %vm8793_vm6 = vcmask 785408  }
  0x81   :  { %11400 = vmatprep.mubr.msk.f32.mxu1 %vm11691_vm0, %v17076_v1  ;;  %v470_v61 = vrot.slane %v456_v14, %v11802_v12  ;;  %599 = vmatprep.mubr.f32.mxu0 %v17076_v1  ;;  %v727_v24 = vrot.slane %v713_v58, %v11802_v12  ;;  %v730_v4 = vcombine.low %v11877_v40, %v11909_v60  ;;  %v257_v58 = vld [vmem:[#allocation2 + $0x8] sm:$0xff]  ;;  %vm8798_vm8 = vcmask 982016  }
  0x82   :  { %v479_v2 = vrot.slane %v472_v3, %v11802_v12  ;;  %v746_v6 = vcombine.low %v11848_v29, %v11873_v38  ;;  %v747_v7 = vcombine.low %v11869_v37, %v11893_v45  ;;  %v737_v9 = vrot.slane %v729_v63, %v11802_v12  ;;  %v1063_v63 = vld [vmem:[#allocation2 + $0x110] sm:$0xf] }
  0x83   :  { %v471_v36 = vcombine.low %v463_v30, %v470_v61  ;;  %v12118_v18 = vcombine.low %v720_v0, %v727_v24  ;;  %v1065_v10 = vcombine.low %v11857_v33, %v11853_v32  ;;  %v1066_v48 = vcombine.low %v11882_v41, %v11832_v25  ;;  %v256_v61 = vld [vmem:[#allocation2] sm:$0xff]  ;;  %v1062_v0 = vld [vmem:[#allocation2 + $0x108] sm:$0xf] }
  0x84   :  { %v1082_v13 = vcombine.low %v11889_v44, %v11877_v40  ;;  %v744_v17 = vrot.slane %v730_v4, %v11802_v12  ;;  %v754_v21 = vrot.slane %v746_v6, %v11802_v12  ;;  %v763_v22 = vcombine.low %v11844_v27, %v11936_v34  ;;  %v265_v40 = vld [vmem:[#allocation2 + $0x48] sm:$0xf]  ;;  %v1061_v4 = vld [vmem:[#allocation2 + $0x100] sm:$0xff]  ;;  %v1060_v6 = vld [vmem:[#allocation2 + $0xf8] sm:$0xff] }
  0x85   :  { %11401 = vmatmul.mubr.msk.f32.gmra.mxu1 %vm480_vm9, %v471_v36  ;;  %10898 = vmatmul.mubr.msk.f32.gmra.mxu0 %vm480_vm9, %v471_v36  ;;  %v761_v25 = vrot.slane %v747_v7, %v11802_v12  ;;  %v1073_v32 = vrot.slane %v1065_v10, %v11802_v12  ;;  %v1080_v33 = vrot.slane %v1066_v48, %v11802_v12  ;;  %v1059_v7 = vld [vmem:[#allocation2 + $0xf0] sm:$0xff] }
  0x86   :  { %11403 = vmatprep.mubr.msk.f32.mxu1 %vm11691_vm0, %v17076_v1  ;;  %605 = vmatprep.mubr.f32.mxu0 %v17076_v1  ;;  %v764_v41 = vcombine.low %v11951_v50, %v11947_v49  ;;  %v1083_v44 = vcombine.low %v11909_v60, %v11848_v29  ;;  %v1090_v11 = vrot.slane %v1082_v13, %v11802_v12  ;;  %v1057_v13 = vld [vmem:[#allocation2 + $0xe0] sm:$0xff] }
  0x87   :  { %v1099_v23 = vcombine.low %v11873_v38, %v11869_v37  ;;  %v12146_v31 = vcombine.low %v1073_v32, %v1080_v33  ;;  %v1100_v35 = vcombine.low %v11893_v45, %v11844_v27  ;;  %v10925_v43 = vcombine.high %v11844_v27, %v11936_v34  ;;  %v262_v37 = vld [vmem:[#allocation2 + $0x30] sm:$0xff]  ;;  %v1064_v38 = vld [vmem:[#allocation2 + $0x118] sm:$0xf]  ;;  %v1053_v32 = vld [vmem:[#allocation2 + $0xc0] sm:$0xff] }
  0x88   :  { %v1117_v50 = vcombine.low %v11947_v49, %v11975_v59  ;;  %v745_v29 = vcombine.low %v737_v9, %v744_v17  ;;  %v1097_v60 = vrot.slane %v1083_v44, %v11802_v12  ;;  %v780_v49 = vcombine.low %v11975_v59, %v11985_v8  ;;  %v1058_v17 = vld [vmem:[#allocation2 + $0xe8] sm:$0xff]  ;;  %v1055_v33 = vld [vmem:[#allocation2 + $0xd0] sm:$0xff] }
  0x89   :  { %11404 = vmatmul.mubr.msk.f32.gmra.mxu1 %vm480_vm9, %v479_v2  ;;  %10899 = vmatmul.mubr.msk.f32.gmra.mxu0 %vm480_vm9, %v479_v2  ;;  %v1107_v46 = vrot.slane %v1099_v23, %v11802_v12  ;;  %v1114_v27 = vrot.slane %v1100_v35, %v11802_v12  ;;  %v1124_v45 = vrot.slane %v10925_v43, %v11802_v12  ;;  %v2119_v35 = vld [vmem:[#allocation7 + $0x688] sm:$0xff]  ;;  %v2118_v43 = vld [vmem:[#allocation7 + $0x680] sm:$0xff] }
  0x8a   :  { %11414 = vmatprep.mubr.msk.f32.mxu1 %vm11691_vm0, %v17076_v1  ;;  %11385 = vmatprep.mubr.msk.f32.mxu0 %vm11691_vm0, %v17076_v1  ;;  %v1131_v34 = vrot.slane %v1117_v50, %v11802_v12  ;;  %v12170_v47 = vcombine.low %v1090_v11, %v1097_v60  ;;  %v781_v14 = vcombine.low %v12003_v16, %v11999_v15  ;;  %v2115_v50 = vld [vmem:[#allocation7 + $0x668] sm:$0xff] }
  0x8b   :  { %v12175_v55 = vcombine.low %v1107_v46, %v1114_v27  ;;  %v762_v30 = vcombine.low %v754_v21, %v761_v25  ;;  %v771_v59 = vrot.slane %v763_v22, %v11802_v12  ;;  %v778_v57 = vrot.slane %v764_v41, %v11802_v12  ;;  %v1054_v25 = vld [vmem:[#allocation2 + $0xc8] sm:$0xff] }
  0x8c   :  { %v12177_v56 = vcombine.low %v1124_v45, %v1131_v34  ;;  %v788_v3 = vrot.slane %v780_v49, %v11802_v12  ;;  %v795_v36 = vrot.slane %v781_v14, %v11802_v12  ;;  %v797_v24 = vcombine.low %v12017_v26, %v12030_v52  ;;  %v2107_v60 = vld [vmem:[#allocation7 + $0x628] sm:$0xff]  ;;  %v2106_v46 = vld [vmem:[#allocation7 + $0x620] sm:$0xff] }
  0x8d   :  { %11415 = vmatmul.mubr.msk.f32.vlgmr.msra.gmra.mxu1 %vm480_vm9, %v12118_v18  ;;  %11386 = vmatmul.mubr.msk.f32.vlgmr.msra.gmra.mxu0 %vm480_vm9, %v11940_v42  ;;  %v260_v42 = vld [vmem:[#allocation2 + $0x20] sm:$0xff]  ;;  %v798_v2 = vcombine.low %v12042_v39, %v12033_v54  ;;  %v814_v22 = vcombine.low %v12046_v62, %v11961_v53  ;;  %v1133_v41 = vcombine.low %v11985_v8, %v12003_v16  ;;  %v2103_v27 = vld [vmem:[#allocation7 + $0x608] sm:$0xff] }
  0x8e   :  { %11417 = vmatprep.mubr.msk.f32.mxu1 %vm11691_vm0, %v17076_v1  ;;  %10909 = vmatpush1.msk.msra.mxu0 %vm495_vm1, %v265_v40  ;;  %v796_v9 = vcombine.low %v788_v3, %v795_v36  ;;  %v805_v10 = vrot.slane %v797_v24, %v11802_v12  ;;  %v1134_v44 = vcombine.low %v11999_v15, %v12017_v26  ;;  %v2102_v45 = vld [vmem:[#allocation7 + $0x600] sm:$0xff]  ;;  %v2099_v34 = vld [vmem:[#allocation7 + $0x5e8] sm:$0xff] }
  0x8f   :  { %871 = vmatprep.subr.mxu0 %v263_v28  ;;  %11388 = vmatprep.mubr.msk.f32.mxu0 %vm11691_vm0, %v17076_v1  ;;  %v812_v48 = vrot.slane %v798_v2, %v11802_v12  ;;  %v821_v40 = vrot.slane %v814_v22, %v11802_v12  ;;  %v1141_v11 = vrot.slane %v1133_v41, %v11802_v12  ;;  %v2095_v49 = vld [vmem:[#allocation7 + $0x5c8] sm:$0xff]  ;;  %v2090_v14 = vld [vmem:[#allocation7 + $0x5a0] sm:$0xff] }
  0x90   :  { %872 = vmatpush1.msra.mxu0 %v262_v37  ;;  %11436 = vmatpush3.msk.msra.mxu1 %vm495_vm1, %v1064_v38  ;;  %v1148_v23 = vrot.slane %v1134_v44, %v11802_v12  ;;  %v1150_v8 = vcombine.low %v12030_v52, %v12042_v39  ;;  %v1151_v15 = vcombine.low %v12033_v54, %v12046_v62  ;;  %v2126_v62 = vld [vmem:[#allocation7 + $0x6c0] sm:$0xff]  ;;  %v2111_v37 = vld [vmem:[#allocation7 + $0x648] sm:$0xff] }
  0x91   :  { %11418 = vmatmul.mubr.msk.f32.gmra.mxu1 %vm480_vm9, %v745_v29  ;;  %11389 = vmatmul.mubr.msk.f32.gmra.mxu0 %vm480_vm9, %v12006_v19  ;;  %v779_v19 = vcombine.low %v771_v59, %v778_v57  ;;  %v813_v21 = vcombine.low %v805_v10, %v812_v48  ;;  %v1167_v54 = vcombine.low %v11961_v53, %v12068_v20  ;;  %v2127_v53 = vld [vmem:[#allocation7 + $0x6c8] sm:$0xff]  ;;  %v2110_v38 = vld [vmem:[#allocation7 + $0x640] sm:$0xff] }
  0x92   :  { %11420 = vmatprep.mubr.msk.f32.mxu1 %vm11691_vm0, %v17076_v1  ;;  %873 = vmatprep.subr.mxu0 %v260_v42  ;;  %v1149_v16 = vcombine.low %v1141_v11, %v1148_v23  ;;  %v1158_v26 = vrot.slane %v1150_v8, %v11802_v12  ;;  %v1165_v28 = vrot.slane %v1151_v15, %v11802_v12  ;;  %v2123_v20 = vld [vmem:[#allocation7 + $0x6a8] sm:$0xff]  ;;  %v2098_v42 = vld [vmem:[#allocation7 + $0x5e0] sm:$0xff] }
  0x93   :  { %874 = vmatpush1.msra.mxu0 %v259_v51  ;;  %909 = vmatprep.mubr.f32.mxu0 %v17076_v1  ;;  %v1174_v39 = vrot.slane %v1167_v54, %v11802_v12  ;;  %v2091_v51 = vld [vmem:[#allocation7 + $0x5a8] sm:$0xff]  ;;  %v2082_v59 = vld [vmem:[#allocation7 + $0x560] sm:$0xff] }
  0x94   :  { %875 = vmatprep.subr.mxu0 %v257_v58  ;;  %11437 = vmatprep.subr.mxu1 %v17076_v1  ;;  %v1166_v52 = vcombine.low %v1158_v26, %v1165_v28  ;;  %v2079_v57 = vld [vmem:[#allocation7 + $0x548] sm:$0xff]  ;;  %v2078_v58 = vld [vmem:[#allocation7 + $0x540] sm:$0xff] }
  0x95   :  { %11421 = vmatmul.mubr.msk.f32.gmra.mxu1 %vm480_vm9, %v762_v30  ;;  %876 = vmatpush1.msra.mxu0 %v256_v61  ;;  %v2075_v61 = vld [vmem:[#allocation7 + $0x528] sm:$0xff]  ;;  %v2074_v3 = vld [vmem:[#allocation7 + $0x520] sm:$0xff] }
  0x96   :  { %11423 = vmatprep.mubr.msk.f32.mxu1 %vm11691_vm0, %v17076_v1  ;;  %10910 = vmatmul.mubr.msk.f32.vlgmr.msra.gmra.mxu0 %vm480_vm9, %v12118_v18  ;;  %v1056_v18 = vld [vmem:[#allocation2 + $0xd8] sm:$0xff]  ;;  %v2071_v36 = vld [vmem:[#allocation7 + $0x508] sm:$0xff]  ;;  %v2190_v2 = vld [vmem:[#allocation7 + $0x8c0] sm:$0xff] }
  0x97   :  { %10926 = vmatprep.subr.msk.mxu0 %vm495_vm1, %v1063_v63  ;;  %915 = vmatprep.mubr.f32.mxu0 %v17076_v1  ;;  %v2070_v63 = vld [vmem:[#allocation7 + $0x500] sm:$0xff]  ;;  %v2191_v24 = vld [vmem:[#allocation7 + $0x8c8] sm:$0xff] }
  0x98   :  { %10927 = vmatpush1.msk.msra.mxu0 %vm495_vm1, %v1062_v0  ;;  %11438 = vmatpush3.msra.mxu1 %v1061_v4  ;;  %v2066_v0 = vld [vmem:[#allocation7 + $0x4e0] sm:$0xff]  ;;  %v2187_v4 = vld [vmem:[#allocation7 + $0x8a8] sm:$0xff]  ;;  %vm8778_vm1 = vcmask 195584  }
  0x99   :  { %11424 = vmatmul.mubr.msk.f32.gmra.mxu1 %vm480_vm9, %v779_v19  ;;  %1224 = vmatprep.subr.mxu0 %v1060_v6  ;;  %v2186_v6 = vld [vmem:[#allocation7 + $0x8a0] sm:$0xff]  ;;  %v2179_v10 = vld [vmem:[#allocation7 + $0x868] sm:$0xff] }
  0x9a   :  { %11426 = vmatprep.mubr.msk.f32.mxu1 %vm11691_vm0, %v17076_v1  ;;  %10911 = vmatmul.mubr.msk.f32.gmra.mxu0 %vm480_vm9, %v745_v29  ;;  %v2114_v29 = vld [vmem:[#allocation7 + $0x660] sm:$0xff]  ;;  %v2171_v22 = vld [vmem:[#allocation7 + $0x828] sm:$0xff] }
  0x9b   :  { %921 = vmatprep.mubr.f32.mxu0 %v17076_v1  ;;  %1225 = vmatpush1.msra.mxu0 %v1059_v7  ;;  %v2183_v7 = vld [vmem:[#allocation7 + $0x888] sm:$0xff]  ;;  %v2178_v48 = vld [vmem:[#allocation7 + $0x860] sm:$0xff] }
  0x9c   :  { %11439 = vmatprep.subr.mxu1 %v17076_v1  ;;  %1226 = vmatprep.subr.mxu0 %v1057_v13  ;;  %v2175_v13 = vld [vmem:[#allocation7 + $0x848] sm:$0xff]  ;;  %v2162_v44 = vld [vmem:[#allocation7 + $0x7e0] sm:$0xff] }
  0x9d   :  { %11427 = vmatmul.mubr.msk.f32.gmra.mxu1 %vm480_vm9, %v796_v9  ;;  %1227 = vmatpush1.msra.mxu0 %v1056_v18  ;;  %v2219_v18 = vld [vmem:[#allocation7 + $0x9a8] sm:$0xff]  ;;  %v2214_v11 = vld [vmem:[#allocation7 + $0x980] sm:$0xff] }
  0x9e   :  { %11429 = vmatprep.mubr.msk.f32.mxu1 %vm11691_vm0, %v17076_v1  ;;  %10912 = vmatmul.mubr.msk.f32.gmra.mxu0 %vm480_vm9, %v762_v30  ;;  %v2083_v30 = vld [vmem:[#allocation7 + $0x568] sm:$0xff]  ;;  %v2158_v8 = vld [vmem:[#allocation7 + $0x7c0] sm:$0xff] }
  0x9f   :  { %11440 = vmatpush3.msra.mxu1 %v1058_v17  ;;  %927 = vmatprep.mubr.f32.mxu0 %v17076_v1  ;;  %v2218_v17 = vld [vmem:[#allocation7 + $0x9a0] sm:$0xff]  ;;  %v2163_v41 = vld [vmem:[#allocation7 + $0x7e8] sm:$0xff] }
  0xa0   :  { %11441 = vmatprep.subr.mxu1 %v17076_v1  ;;  %1228 = vmatprep.subr.mxu0 %v1054_v25  ;;  %v2215_v25 = vld [vmem:[#allocation7 + $0x988] sm:$0xff]  ;;  %v2150_v54 = vld [vmem:[#allocation7 + $0x780] sm:$0xff] }
  0xa1   :  { %11430 = vmatmul.mubr.msk.f32.gmra.mxu1 %vm480_vm9, %v813_v21  ;;  %1229 = vmatpush1.msra.mxu0 %v1053_v32  ;;  %v2170_v32 = vld [vmem:[#allocation7 + $0x820] sm:$0xff]  ;;  %v2159_v23 = vld [vmem:[#allocation7 + $0x7c8] sm:$0xff] }
  0xa2   :  { %11432 = vmatprep.mubr.msk.f32.mxu1 %vm11691_vm0, %v17076_v1  ;;  %11442 = vmatpush3.msra.mxu1 %v1055_v33  ;;  %v2167_v33 = vld [vmem:[#allocation7 + $0x808] sm:$0xff] }
  0xa3   :  { %10913 = vmatmul.mubr.msk.f32.gmra.mxu0 %vm480_vm9, %v779_v19  ;;  %2606 = vmatprep.subr.mxu0 %v2127_v53  ;;  %v2067_v19 = vld [vmem:[#allocation7 + $0x4e8] sm:$0xff]  ;;  %v2206_v53 = vld [vmem:[#allocation7 + $0x940] sm:$0xff] }
  0xa4   :  { %933 = vmatprep.mubr.f32.mxu0 %v17076_v1  ;;  %2725 = vmatprep.subr.mxu1 %v2219_v18  ;;  %v2155_v15 = vld [vmem:[#allocation7 + $0x7a8] sm:$0xff] }
  0xa5   :  { %11433 = vmatmul.mubr.msk.f32.gmra.mxu1 %vm480_vm9, %v821_v40  ;;  %v2211_v26 = vld [vmem:[#allocation7 + $0x968] sm:$0xff] }
  0xa6   :  { %11443 = vmatprep.mubr.msk.f32.mxu1 %vm11691_vm0, %v17076_v1  ;;  %v2151_v28 = vld [vmem:[#allocation7 + $0x788] sm:$0xff] }
  0xa7   :  { %10914 = vmatmul.mubr.msk.f32.gmra.mxu0 %vm480_vm9, %v796_v9  ;;  %v2182_v9 = vld [vmem:[#allocation7 + $0x880] sm:$0xff] }
  0xa8   :  { %939 = vmatprep.mubr.f32.mxu0 %v17076_v1 }
  0xa9   :  { %11444 = vmatmul.mubr.msk.f32.vlgmr.msra.gmra.mxu1 %vm480_vm9, %v12146_v31 }
  0xaa   :  { %11446 = vmatprep.mubr.msk.f32.mxu1 %vm11691_vm0, %v17076_v1  ;;  %2726 = vmatpush1.msra.mxu1 %v2218_v17 }
  0xab   :  { %10915 = vmatmul.mubr.msk.f32.gmra.mxu0 %vm480_vm9, %v813_v21  ;;  %v2174_v21 = vld [vmem:[#allocation7 + $0x840] sm:$0xff]  ;;  %2727 = vmatprep.subr.mxu1 %v2215_v25 }
  0xac   :  { %945 = vmatprep.mubr.f32.mxu0 %v17076_v1  ;;  %2728 = vmatpush1.msra.mxu1 %v2214_v11 }
  0xad   :  { %11447 = vmatmul.mubr.msk.f32.gmra.mxu1 %vm480_vm9, %v12170_v47  ;;  %2729 = vmatprep.subr.mxu1 %v2211_v26 }
  0xae   :  { %11449 = vmatprep.mubr.msk.f32.mxu1 %vm11691_vm0, %v17076_v1 }
  0xaf   :  { %10916 = vmatmul.mubr.msk.f32.gmra.mxu0 %vm480_vm9, %v821_v40  ;;  %v2166_v40 = vld [vmem:[#allocation7 + $0x800] sm:$0xff] }
  0xb0   :  { %1262 = vmatprep.mubr.f32.mxu0 %v17076_v1 }
  0xb1   :  { %11450 = vmatmul.mubr.msk.f32.gmra.mxu1 %vm480_vm9, %v12175_v55 }
  0xb2   :  { %11452 = vmatprep.mubr.msk.f32.mxu1 %vm11691_vm0, %v17076_v1 }
  0xb3   :  { %10928 = vmatmul.mubr.msk.f32.vlgmr.msra.gmra.mxu0 %vm480_vm9, %v12146_v31  ;;  %v2122_v31 = vld [vmem:[#allocation7 + $0x6a0] sm:$0xff] }
  0xb4   :  { %1268 = vmatprep.mubr.f32.mxu0 %v17076_v1  ;;  %2607 = vmatpush1.msra.mxu0 %v2126_v62  ;;  %v2203_v62 = vld [vmem:[#allocation7 + $0x928] sm:$0xff] }
  0xb5   :  { %11453 = vmatmul.mubr.msk.f32.gmra.mxu1 %vm480_vm9, %v12177_v56  ;;  %2608 = vmatprep.subr.mxu0 %v2123_v20  ;;  %v2147_v20 = vld [vmem:[#allocation7 + $0x768] sm:$0xff] }
  0xb6   :  { %11455 = vmatprep.mubr.msk.f32.mxu1 %vm11691_vm0, %v17076_v1  ;;  %2609 = vmatpush1.msra.mxu0 %v2122_v31  ;;  %v2202_v31 = vld [vmem:[#allocation7 + $0x920] sm:$0xff] }
  0xb7   :  { %10929 = vmatmul.mubr.msk.f32.gmra.mxu0 %vm480_vm9, %v12170_v47  ;;  %2610 = vmatprep.subr.mxu0 %v2119_v35  ;;  %v2094_v47 = vld [vmem:[#allocation7 + $0x5c0] sm:$0xff] }
  0xb8   :  { %1274 = vmatprep.mubr.f32.mxu0 %v17076_v1  ;;  %2611 = vmatpush1.msra.mxu0 %v2118_v43  ;;  %v2146_v35 = vld [vmem:[#allocation7 + $0x760] sm:$0xff]  ;;  %v2143_v43 = vld [vmem:[#allocation7 + $0x748] sm:$0xff] }
  0xb9   :  { %11456 = vmatmul.mubr.msk.f32.gmra.mxu1 %vm480_vm9, %v1149_v16  ;;  %2612 = vmatprep.subr.mxu0 %v2115_v50  ;;  %v2142_v50 = vld [vmem:[#allocation7 + $0x740] sm:$0xff] }
  0xba   :  { %11458 = vmatprep.mubr.msk.f32.mxu1 %vm11691_vm0, %v17076_v1  ;;  %2613 = vmatpush1.msra.mxu0 %v2114_v29  ;;  %v2199_v29 = vld [vmem:[#allocation7 + $0x908] sm:$0xff] }
  0xbb   :  { %10930 = vmatmul.mubr.msk.f32.gmra.mxu0 %vm480_vm9, %v12175_v55  ;;  %2614 = vmatprep.subr.mxu0 %v2111_v37  ;;  %v2087_v55 = vld [vmem:[#allocation7 + $0x588] sm:$0xff]  ;;  %v2198_v37 = vld [vmem:[#allocation7 + $0x900] sm:$0xff] }
  0xbc   :  { %1280 = vmatprep.mubr.f32.mxu0 %v17076_v1  ;;  %2615 = vmatpush1.msra.mxu0 %v2110_v38  ;;  %v2139_v38 = vld [vmem:[#allocation7 + $0x728] sm:$0xff] }
  0xbd   :  { %11459 = vmatmul.mubr.msk.f32.gmra.mxu1 %vm480_vm9, %v1166_v52  ;;  %2616 = vmatprep.subr.mxu0 %v2107_v60  ;;  %v2138_v60 = vld [vmem:[#allocation7 + $0x720] sm:$0xff] }
  0xbe   :  { %11461 = vmatprep.mubr.msk.f32.mxu1 %vm11691_vm0, %v17076_v1  ;;  %2617 = vmatpush1.msra.mxu0 %v2106_v46  ;;  %v2195_v46 = vld [vmem:[#allocation7 + $0x8e8] sm:$0xff]  ;;  %vm7961_vm0 = vcmask 975872  }
  0xbf   :  { %10931 = vmatmul.mubr.msk.f32.gmra.mxu0 %vm480_vm9, %v12177_v56  ;;  %2618 = vmatprep.subr.mxu0 %v2103_v27  ;;  %v2086_v56 = vld [vmem:[#allocation7 + $0x580] sm:$0xff]  ;;  %v2135_v27 = vld [vmem:[#allocation7 + $0x708] sm:$0xff] }
  0xc0   :  { %1286 = vmatprep.mubr.f32.mxu0 %v17076_v1  ;;  %2619 = vmatpush1.msra.mxu0 %v2102_v45  ;;  %v2194_v45 = vld [vmem:[#allocation7 + $0x8e0] sm:$0xff] }
  0xc1   :  { %11462 = vmatmul.mubr.msk.f32.gmra.mxu1 %vm480_vm9, %v1174_v39  ;;  %2620 = vmatprep.subr.mxu0 %v2099_v34  ;;  %v2134_v34 = vld [vmem:[#allocation7 + $0x700] sm:$0xff] }
  0xc2   :  { %2771 = vmatprep.mubr.f32.mxu1 %v17076_v1  ;;  %2621 = vmatpush1.msra.mxu0 %v2098_v42  ;;  %v2131_v42 = vld [vmem:[#allocation7 + $0x6e8] sm:$0xff] }
  0xc3   :  { %10932 = vmatmul.mubr.msk.f32.gmra.mxu0 %vm480_vm9, %v1149_v16  ;;  %2622 = vmatprep.subr.mxu0 %v2095_v49  ;;  %v2154_v16 = vld [vmem:[#allocation7 + $0x7a0] sm:$0xff]  ;;  %v2129_v49 = vld [vmem:[#allocation7 + $0x6d8] sm:$0xff] }
  0xc4   :  { %1292 = vmatprep.mubr.f32.mxu0 %v17076_v1  ;;  %2623 = vmatpush1.msra.mxu0 %v2094_v47  ;;  %v2130_v47 = vld [vmem:[#allocation7 + $0x6e0] sm:$0xff] }
  0xc5   :  { %2624 = vmatprep.subr.mxu0 %v2091_v51 }
  0xc6   :  { %2625 = vmatpush1.msra.mxu0 %v2090_v14 }
  0xc7   :  { %10933 = vmatmul.mubr.msk.f32.gmra.mxu0 %vm480_vm9, %v1166_v52  ;;  %2626 = vmatprep.subr.mxu0 %v2087_v55  ;;  %v2210_v52 = vld [vmem:[#allocation7 + $0x960] sm:$0xff] }
  0xc8   :  { %1298 = vmatprep.mubr.f32.mxu0 %v17076_v1  ;;  %2627 = vmatpush1.msra.mxu0 %v2086_v56 }
  0xc9   :  { %2628 = vmatprep.subr.mxu0 %v2083_v30  ;;  %2730 = vmatpush1.msra.mxu1 %v2210_v52 }
  0xca   :  { %2629 = vmatpush1.msra.mxu0 %v2082_v59 }
  0xcb   :  { %10934 = vmatmul.mubr.msk.f32.gmra.mxu0 %vm480_vm9, %v1174_v39  ;;  %2630 = vmatprep.subr.mxu0 %v2079_v57  ;;  %v2207_v39 = vld [vmem:[#allocation7 + $0x948] sm:$0xff]  ;;  %vm8813_vm9 = vcmask 523264  }
  0xcc   :  { %2631 = vmatpush1.msra.mxu0 %v2078_v58  ;;  %2731 = vmatprep.subr.mxu1 %v2207_v39 }
  0xcd   :  { %2632 = vmatprep.subr.mxu0 %v2075_v61  ;;  %2732 = vmatpush1.msra.mxu1 %v2206_v53 }
  0xce   :  { %2633 = vmatpush1.msra.mxu0 %v2074_v3  ;;  %2733 = vmatprep.subr.mxu1 %v2203_v62 }
  0xcf   :  { %2634 = vmatprep.subr.mxu0 %v2071_v36  ;;  %2734 = vmatpush1.msra.mxu1 %v2202_v31 }
  0xd0   :  { %2635 = vmatpush1.msra.mxu0 %v2070_v63  ;;  %2735 = vmatprep.subr.mxu1 %v2199_v29 }
  0xd1   :  { %2636 = vmatprep.subr.mxu0 %v2067_v19  ;;  %2736 = vmatpush1.msra.mxu1 %v2198_v37  ;;  %v2221_v19 = vld [vmem:[#allocation7 + $0x9b8] sm:$0xff] }
  0xd2   :  { %2637 = vmatpush1.msra.mxu0 %v2066_v0  ;;  %2737 = vmatprep.subr.mxu1 %v2195_v46 }
  0xd3   :  { %2638 = vmatprep.subr.mxu0 %v2191_v24  ;;  %2738 = vmatpush1.msra.mxu1 %v2194_v45 }
  0xd4   :  { %2639 = vmatpush2.msra.mxu0 %v2190_v2  ;;  %2808 = vmatprep.subr.mxu1 %v2129_v49  ;;  %v17075_v49 = vsub.s32 2, %v11792_v5 }
  0xd5   :  { %2640 = vmatprep.subr.mxu0 %v2187_v4 }
  0xd6   :  { %2641 = vmatpush2.msra.mxu0 %v2186_v6 }
  0xd7   :  { %2642 = vmatprep.subr.mxu0 %v2183_v7 }
  0xd8   :  { %2643 = vmatpush2.msra.mxu0 %v2182_v9 }
  0xd9   :  { %2644 = vmatprep.subr.mxu0 %v2179_v10 }
  0xda   :  { %2645 = vmatpush2.msra.mxu0 %v2178_v48 }
  0xdb   :  { %2646 = vmatprep.subr.mxu0 %v2175_v13 }
  0xdc   :  { %2647 = vmatpush2.msra.mxu0 %v2174_v21 }
  0xdd   :  { %2648 = vmatprep.subr.mxu0 %v2171_v22 }
  0xde   :  { %2649 = vmatpush2.msra.mxu0 %v2170_v32 }
  0xdf   :  { %2650 = vmatprep.subr.mxu0 %v2167_v33 }
  0xe0   :  { %2651 = vmatpush2.msra.mxu0 %v2166_v40 }
  0xe1   :  { %2652 = vmatprep.subr.mxu0 %v2163_v41 }
  0xe2   :  { %2653 = vmatpush2.msra.mxu0 %v2162_v44 }
  0xe3   :  { %2654 = vmatprep.subr.mxu0 %v2159_v23 }
  0xe4   :  { %2655 = vmatpush2.msra.mxu0 %v2158_v8 }
  0xe5   :  { %2656 = vmatprep.subr.mxu0 %v2155_v15 }
  0xe6   :  { %2657 = vmatpush2.msra.mxu0 %v2154_v16 }
  0xe7   :  { %2658 = vmatprep.subr.mxu0 %v2151_v28 }
  0xe8   :  { %2659 = vmatpush2.msra.mxu0 %v2150_v54 }
  0xe9   :  { %2660 = vmatprep.subr.mxu0 %v2147_v20 }
  0xea   :  { %2661 = vmatpush2.msra.mxu0 %v2146_v35 }
  0xeb   :  { %2662 = vmatprep.subr.mxu0 %v2143_v43 }
  0xec   :  { %2663 = vmatpush2.msra.mxu0 %v2142_v50 }
  0xed   :  { %2664 = vmatprep.subr.mxu0 %v2139_v38 }
  0xee   :  { %2665 = vmatpush2.msra.mxu0 %v2138_v60 }
  0xef   :  { %2666 = vmatprep.subr.mxu0 %v2135_v27 }
  0xf0   :  { %2667 = vmatpush2.msra.mxu0 %v2134_v34 }
  0xf1   :  { %2668 = vmatprep.subr.mxu0 %v2131_v42 }
  0xf2   :  { %2669 = vmatpush2.msra.mxu0 %v2130_v47 }
  0xf3   :  { %2927 = vmatprep.subr.mxu0 %v2221_v19 }
 0x12d   :  { %v12289_v51 = vpop.f32.mrf.mxu0 }
 0x12e   :  { %v688_v14 = vpop.f32.mrf.mxu1 }
 0x12f   :  { %v12291_v55 = vpop.f32.mrf.mxu0 }
 0x130   :  { %v11393_v56 = vpop.f32.mrf.mxu1 }
 0x134   :  { %v12293_v30 = vpop.f32.mrf.mxu0 }
 0x136   :  { %v12295_v59 = vpop.f32.mrf.mxu0 }
 0x138   :  { %v12297_v57 = vpop.f32.mrf.mxu0 }
 0x13a   :  { %v693_v58 = vpop.f32.mrf.mxu1  ;;  %v12299_v61 = vpop.f32.mrf.mxu0 }
 0x13c   :  { %v11396_v3 = vpop.f32.mrf.mxu1  ;;  %v12301_v36 = vpop.f32.mrf.mxu0 }
 0x13e   :  { %v12303_v63 = vpop.f32.mrf.mxu0 }
 0x140   :  { %v698_v0 = vpop.f32.mrf.mxu1  ;;  %v12305_v24 = vpop.f32.mrf.mxu0 }
 0x142   :  { %v11399_v2 = vpop.f32.mrf.mxu1  ;;  %v12307_v4 = vpop.f32.mrf.mxu0 }
 0x143   :  { %v11693_v2 = vmov 1966171168  }
 0x145   :  { %v703_v6 = vpop.f32.mrf.mxu1  ;;  %v12309_v7 = vpop.f32.mrf.mxu0 }
 0x147   :  { %v11402_v9 = vpop.f32.mrf.mxu1  ;;  %v12311_v10 = vpop.f32.mrf.mxu0 }
 0x149   :  { %v708_v48 = vpop.f32.mrf.mxu1  ;;  %v607_v13 = vpop.f32.mrf.mxu0 }
 0x14b   :  { %v11405_v18 = vpop.f32.mrf.mxu1  ;;  %v12313_v17 = vpop.f32.mrf.mxu0 }
 0x14d   :  { %v1018_v21 = vpop.f32.mrf.mxu1  ;;  %v678_v22 = vpop.f32.mrf.mxu0 }
 0x14e   :  { %v1019_v25 = vadd.f32 %v1018_v21, %v678_v22 }
 0x14f   :  { %v11416_v32 = vpop.f32.mrf.mxu1  ;;  %v11387_v33 = vpop.f32.mrf.mxu0 }
 0x150   :  { %v12327_v32 = vsub.s32 0, %v11792_v5  ;;  %v12330_v33 = vsub.s32 1, %v11792_v5 }
 0x151   :  { %v1023_v40 = vpop.f32.mrf.mxu1  ;;  %v683_v41 = vpop.f32.mrf.mxu0 }
 0x152   :  { %v1024_v44 = vadd.f32 %v1023_v40, %v683_v41  ;;  %17203 = vst [vmem:[#allocation21_spill] sm:$0xff] %v12327_v32  ;;  %17204 = vst [vmem:[#allocation22_spill] sm:$0xff] %v12330_v33 }
 0x153   :  { %v11419_v11 = vpop.f32.mrf.mxu1  ;;  %v11390_v23 = vpop.f32.mrf.mxu0 }
 0x155   :  { %v1028_v8 = vpop.f32.mrf.mxu1 }
 0x156   :  { %v1029_v15 = vadd.f32 %v1028_v8, %v688_v14  ;;  %v911_v16 = vpop.f32.mrf.mxu0  ;;  %v1426_v14 = vld [vmem:[#allocation5] sm:$0x7] }
 0x157   :  { %v11422_v26 = vpop.f32.mrf.mxu1 }
 0x158   :  { %v913_v28 = vpop.f32.mrf.mxu0  ;;  %v912_v26 = vadd.f32 %v911_v16, %v12289_v51 }
 0x159   :  { %v1033_v52 = vpop.f32.mrf.mxu1 }
 0x15a   :  { %v1034_v54 = vadd.f32 %v1033_v52, %v693_v58  ;;  %v917_v39 = vpop.f32.mrf.mxu0 }
 0x15b   :  { %v11425_v53 = vpop.f32.mrf.mxu1  ;;  %v918_v51 = vadd.f32 %v917_v39, %v12293_v30 }
 0x15c   :  { %v919_v62 = vpop.f32.mrf.mxu0 }
 0x15d   :  { %v1038_v20 = vpop.f32.mrf.mxu1 }
 0x15e   :  { %v12315_v31 = vadd.f32 %v1038_v20, %v698_v0  ;;  %v923_v35 = vpop.f32.mrf.mxu0  ;;  %v12324_v0 = vrot.slane %v1426_v14, %v17075_v49  ;;  %v12338_v20 = vrot.slane %v1426_v14, %v12327_v32 }
 0x15f   :  { %v11428_v43 = vpop.f32.mrf.mxu1 }
 0x160   :  { %v925_v50 = vpop.f32.mrf.mxu0  ;;  %v12341_v43 = vrot.slane %v1426_v14, %v12330_v33 }
 0x161   :  { %v1043_v29 = vpop.f32.mrf.mxu1  ;;  %v12352_v14 = vadd.f32 %v925_v50, %v12299_v61 }
 0x162   :  { %v12317_v37 = vadd.f32 %v1043_v29, %v703_v6  ;;  %v1734_v6 = vunpack.c.l.s4 %v11693_v2 }
 0x163   :  { %v11431_v38 = vpop.f32.mrf.mxu1  ;;  %v929_v60 = vpop.f32.mrf.mxu0 }
 0x164   :  { %v1735_v41 = vunpack.c.0.s8 %v1734_v6  ;;  %v12355_v2 = vadd.f32 %v929_v60, %v12301_v36 }
 0x165   :  { %v1048_v46 = vpop.f32.mrf.mxu1  ;;  %v931_v27 = vpop.f32.mrf.mxu0 }
 0x166   :  { %v12319_v45 = vadd.f32 %v1048_v46, %v708_v48  ;;  %v12345_v46 = vsub.s32 %v1735_v41, %v11792_v5 }
 0x167   :  { %v11434_v34 = vpop.f32.mrf.mxu1  ;;  %v935_v42 = vpop.f32.mrf.mxu0 }
 0x168   :  { %v914_v34 = vadd.f32 %v913_v28, %v12291_v55  ;;  %v12361_v55 = vadd.f32 %v935_v42, %v12305_v24 }
 0x169   :  { %v1371_v47 = vpop.f32.mrf.mxu1  ;;  %v937_v56 = vpop.f32.mrf.mxu0 }
 0x16a   :  { %v1407_v19 = vadd.f32 %v1371_v47, %v1019_v25 }
 0x16b   :  { %v11445_v58 = vpop.f32.mrf.mxu1  ;;  %v941_v3 = vpop.f32.mrf.mxu0 }
 0x16c   :  { %v1445_v40 = vadd.f32 %v12324_v0, %v1407_v19  ;;  %v924_v19 = vadd.f32 %v923_v35, %v12297_v57  ;;  %v12365_v57 = vadd.f32 %v937_v56, %v12307_v4 }
 0x16d   :  { %v1376_v9 = vpop.f32.mrf.mxu1  ;;  %v943_v18 = vpop.f32.mrf.mxu0 }
 0x16e   :  { %v1410_v48 = vadd.f32 %v1376_v9, %v1024_v44  ;;  %v1466_v29 = vmax.f32 %v1445_v40, 0.0  ;;  %v12358_v9 = vadd.f32 %v931_v27, %v12303_v63  ;;  %v12373_v27 = vadd.f32 %v943_v18, %v12311_v10 }
 0x16f   :  { %v11448_v21 = vpop.f32.mrf.mxu1  ;;  %v947_v22 = vpop.f32.mrf.mxu0 }
 0x170   :  { %v12333_v25 = vadd.f32 %v947_v22, %v607_v13  ;;  %v1448_v11 = vadd.f32 %v12324_v0, %v1410_v48  ;;  %v12377_v56 = vrot.slane %v1466_v29, %v11802_v12 }
 0x171   :  { %v1381_v23 = vpop.f32.mrf.mxu1  ;;  %v949_v8 = vpop.f32.mrf.mxu0 }
 0x172   :  { %v1413_v44 = vadd.f32 %v1381_v23, %v1029_v15  ;;  %v920_v15 = vadd.f32 %v919_v62, %v12295_v59  ;;  %v1469_v16 = vmax.f32 %v1448_v11, 0.0  ;;  %v1508_v62 = vcombine.high %v1466_v29, %v1466_v29 }
 0x173   :  { %v11451_v52 = vpop.f32.mrf.mxu1  ;;  %v1264_v53 = vpop.f32.mrf.mxu0  ;;  %v12382_v23 = vadd.f32 %v949_v8, %v12313_v17 }
 0x174   :  { %v1451_v13 = vadd.f32 %v12324_v0, %v1413_v44  ;;  %v1405_v38 = vadd.f32 %v1264_v53, %v912_v26  ;;  %v1543_v35 = vcombine.high %v1469_v16, %v1469_v16  ;;  %v1536_v41 = vrot.slane %v1508_v62, %v11802_v12 }
 0x175   :  { %v1386_v47 = vpop.f32.mrf.mxu1  ;;  %v1266_v58 = vpop.f32.mrf.mxu0 }
 0x176   :  { %v1416_v6 = vadd.f32 %v1386_v47, %v1034_v54  ;;  %v1443_v59 = vadd.f32 %v12338_v20, %v1405_v38  ;;  %v1406_v28 = vadd.f32 %v1266_v58, %v914_v34  ;;  %v1472_v61 = vmax.f32 %v1451_v13, 0.0 }
 0x177   :  { %v11454_v30 = vpop.f32.mrf.mxu1  ;;  %v1270_v39 = vpop.f32.mrf.mxu0  ;;  %v12369_v54 = vadd.f32 %v941_v3, %v12309_v7  ;;  %v1571_v18 = vrot.slane %v1543_v35, %v11802_v12 }
 0x178   :  { %v1454_v36 = vadd.f32 %v12324_v0, %v1416_v6  ;;  %v1444_v24 = vadd.f32 %v12341_v43, %v1406_v28  ;;  %v1408_v50 = vadd.f32 %v1270_v39, %v918_v51  ;;  %v1464_v21 = vmax.f32 %v1443_v59, 0.0 }
 0x179   :  { %v1391_v63 = vpop.f32.mrf.mxu1  ;;  %v1272_v60 = vpop.f32.mrf.mxu0  ;;  %v1578_v11 = vcombine.high %v1472_v61, %v1472_v61  ;;  %v12389_v51 = vrot.slane %v1472_v61, %v11802_v12 }
 0x17a   :  { %v1475_v42 = vmax.f32 %v1454_v36, 0.0  ;;  %v1419_v48 = vadd.f32 %v1391_v63, %v12315_v31  ;;  %v1409_v4 = vadd.f32 %v1272_v60, %v920_v15  ;;  %v1465_v22 = vmax.f32 %v1444_v24, 0.0 }
 0x17b   :  { %v11457_v40 = vpop.f32.mrf.mxu1  ;;  %v1446_v7 = vadd.f32 %v12338_v20, %v1408_v50  ;;  %v1276_v3 = vpop.f32.mrf.mxu0  ;;  %v1564_v31 = vrot.slane %v1469_v16, %v11802_v12  ;;  %v12396_v58 = vrot.slane %v1578_v11, %v11802_v12 }
 0x17c   :  { %v1447_v10 = vadd.f32 %v12341_v43, %v1409_v4  ;;  %v1506_v26 = vcombine.low %v1464_v21, %v1465_v22  ;;  %v1507_v44 = vcombine.high %v1464_v21, %v1465_v22  ;;  %v1613_v29 = vcombine.high %v1475_v42, %v1475_v42 }
 0x17d   :  { %v1396_v52 = vpop.f32.mrf.mxu1  ;;  %v1278_v53 = vpop.f32.mrf.mxu0  ;;  %v1457_v13 = vadd.f32 %v12324_v0, %v1419_v48  ;;  %v1467_v38 = vmax.f32 %v1446_v7, 0.0  ;;  %v1411_v16 = vadd.f32 %v1276_v3, %v924_v19  ;;  %17205 = vst [vmem:[#allocation23_spill] sm:$0xff] %v12396_v58  ;;  %v12399_v6 = vrot.slane %v1475_v42, %v11802_v12 }
 0x17e   :  { %v1468_v34 = vmax.f32 %v1447_v10, 0.0  ;;  %v12392_v17 = vrot.slane %v1506_v26, %v11802_v12  ;;  %v1522_v8 = vrot.slane %v1507_v44, %v11802_v12  ;;  %v1422_v30 = vadd.f32 %v1396_v52, %v12317_v37 }
 0x17f   :  { %v11460_v15 = vpop.f32.mrf.mxu1  ;;  %v1282_v47 = vpop.f32.mrf.mxu0  ;;  %17206 = vst [vmem:[#allocation24_spill] sm:$0xff] %v12399_v6  ;;  %v12407_v35 = vrot.slane %v1613_v29, %v11802_v12  ;;  %v1478_v63 = vmax.f32 %v1457_v13, 0.0  ;;  %v1449_v48 = vadd.f32 %v12338_v20, %v1411_v16  ;;  %v1412_v3 = vadd.f32 %v1278_v53, %v12352_v14 }
 0x180   :  { %v1541_v59 = vcombine.low %v1467_v38, %v1468_v34  ;;  %v1537_v28 = vcombine.low %v12392_v17, %v12377_v56  ;;  %v1538_v39 = vcombine.high %v12392_v17, %v12377_v56  ;;  %v1539_v62 = vcombine.low %v1522_v8, %v1536_v41 }
 0x181   :  { %v1540_v61 = vcombine.high %v1522_v8, %v1536_v41  ;;  %v1401_v36 = vpop.f32.mrf.mxu1  ;;  %v1284_v19 = vpop.f32.mrf.mxu0  ;;  %v1542_v24 = vcombine.high %v1467_v38, %v1468_v34  ;;  %v1460_v22 = vadd.f32 %v12324_v0, %v1422_v30  ;;  %v1648_v44 = vcombine.high %v1478_v63, %v1478_v63 }
 0x182   :  { %v1550_v50 = vrot.slane %v1541_v59, %v11802_v12  ;;  %v12411_v37 = vrot.slane %v1538_v39, %v12345_v46  ;;  %v12414_v60 = vrot.slane %v1539_v62, %v12345_v46  ;;  %v1425_v62 = vadd.f32 %v1401_v36, %v12319_v45 }
 0x183   :  { %v12417_v42 = vrot.slane %v1540_v61, %v12345_v46  ;;  %v1288_v4 = vpop.f32.mrf.mxu0  ;;  %v11463_v21 = vpop.f32.mrf.mxu1  ;;  %v1557_v40 = vrot.slane %v1542_v24, %v11802_v12  ;;  %v12458_v30 = vmax.f32 %v1460_v22, 0.0  ;;  %v1450_v36 = vadd.f32 %v12341_v43, %v1412_v3 }
 0x184   :  { %v1572_v7 = vcombine.low %v1550_v50, %v1564_v31  ;;  %v12425_v41 = vcombine.high %v12411_v37, %v12411_v37  ;;  %v12429_v11 = vcombine.high %v12414_v60, %v12414_v60  ;;  %v1573_v26 = vcombine.high %v1550_v50, %v1564_v31 }
 0x185   :  { %v12433_v10 = vcombine.high %v12417_v42, %v12417_v42  ;;  %v1574_v52 = vcombine.low %v1557_v40, %v1571_v18  ;;  %v1575_v29 = vcombine.high %v1557_v40, %v1571_v18  ;;  %v1290_v14 = vpop.f32.mrf.mxu0  ;;  %v12483_v45 = vadd.f32 %v12324_v0, %v1425_v62 }
 0x186   :  { %v12436_v13 = vrot.slane %v1572_v7, %v12345_v46  ;;  %v2223_v53 = vcombine.low %v12425_v41, %v12414_v60  ;;  %v2224_v38 = vcombine.low %v12429_v11, %v12417_v42  ;;  %v12453_v15 = vrot.slane %v1573_v26, %v12345_v46 }
 0x187   :  { %v12456_v16 = vrot.slane %v1574_v52, %v12345_v46  ;;  %v12461_v59 = vrot.slane %v1575_v29, %v12345_v46  ;;  %v1294_v22 = vpop.f32.mrf.mxu0  ;;  %v1414_v7 = vadd.f32 %v1282_v47, %v12355_v2  ;;  %v1470_v62 = vmax.f32 %v1449_v48, 0.0 }
 0x188   :  { %v12450_v18 = vcombine.high %v12436_v13, %v12436_v13  ;;  %v2225_v39 = vcombine.low %v12433_v10, %v12436_v13  ;;  %v12468_v61 = vcombine.high %v12453_v15, %v12453_v15  ;;  %v1471_v21 = vmax.f32 %v1450_v36, 0.0 }
 0x189   :  { %v12472_v24 = vcombine.high %v12456_v16, %v12456_v16  ;;  %v12480_v40 = vcombine.high %v12461_v59, %v12461_v59  ;;  %v1452_v3 = vadd.f32 %v12338_v20, %v1414_v7  ;;  %v12499_v2 = vrot.slane %v1478_v63, %v11802_v12  ;;  %v1296_v29 = vpop.f32.mrf.mxu0 }
 0x18a   :  { %v1415_v47 = vadd.f32 %v1284_v19, %v12358_v9  ;;  %v1417_v31 = vadd.f32 %v1288_v4, %v12361_v55  ;;  %v1418_v8 = vadd.f32 %v1290_v14, %v12365_v57  ;;  %v1676_v34 = vrot.slane %v1648_v44, %v11802_v12 }
 0x18b   :  { %v12509_v48 = vrot.slane %v1537_v28, %v12345_v46  ;;  %v1576_v36 = vcombine.low %v1470_v62, %v1471_v21  ;;  %v1577_v7 = vcombine.high %v1470_v62, %v1471_v21  ;;  %v1683_v63 = vcombine.high %v12458_v30, %v12458_v30  ;;  %v1300_v62 = vpop.f32.mrf.mxu0 }
 0x18c   :  { %v1453_v9 = vadd.f32 %v12341_v43, %v1415_v47  ;;  %v1455_v55 = vadd.f32 %v12338_v20, %v1417_v31  ;;  %v1456_v57 = vadd.f32 %v12341_v43, %v1418_v8  ;;  %v1473_v44 = vmax.f32 %v1452_v3, 0.0 }
 0x18d   :  { %v1585_v19 = vrot.slane %v1576_v36, %v11802_v12  ;;  %v12518_v4 = vrot.slane %v1577_v7, %v11802_v12  ;;  %v1420_v56 = vadd.f32 %v1294_v22, %v12369_v54  ;;  %v1421_v21 = vadd.f32 %v1296_v29, %v12373_v27 }
 0x18e   :  { %v1474_v17 = vmax.f32 %v1453_v9, 0.0  ;;  %v1476_v28 = vmax.f32 %v1455_v55, 0.0  ;;  %v1477_v14 = vmax.f32 %v1456_v57, 0.0  ;;  %v12629_v26 = vcombine.high %v12509_v48, %v12509_v48 }
 0x18f   :  { %17207 = vst [vmem:[#allocation25_spill] sm:$0xff] %v12518_v4  ;;  %v1607_v47 = vcombine.low %v1585_v19, %v12389_v51  ;;  %v1608_v31 = vcombine.high %v1585_v19, %v12389_v51  ;;  %v1609_v8 = vcombine.low %v12518_v4, %v12396_v58  ;;  %v1458_v29 = vadd.f32 %v12338_v20, %v1420_v56  ;;  %v2120_v58 = vld [vmem:[#allocation7 + $0x690] sm:$0xff] }
 0x190   :  { %v1611_v7 = vcombine.low %v1473_v44, %v1474_v17  ;;  %v1612_v3 = vcombine.high %v1473_v44, %v1474_v17  ;;  %v1646_v0 = vcombine.low %v1476_v28, %v1477_v14  ;;  %v1647_v54 = vcombine.high %v1476_v28, %v1477_v14 }
 0x191   :  { %v12529_v22 = vrot.slane %v1607_v47, %v12345_v46  ;;  %v12532_v27 = vrot.slane %v1608_v31, %v12345_v46  ;;  %v1423_v51 = vadd.f32 %v1300_v62, %v12333_v25  ;;  %v1459_v56 = vadd.f32 %v12341_v43, %v1421_v21 }
 0x192   :  { %v12537_v9 = vrot.slane %v1611_v7, %v11802_v12  ;;  %v1627_v55 = vrot.slane %v1612_v3, %v11802_v12  ;;  %v1655_v57 = vrot.slane %v1646_v0, %v11802_v12  ;;  %v1662_v19 = vrot.slane %v1647_v54, %v11802_v12 }
 0x193   :  { %v12544_v44 = vcombine.high %v12529_v22, %v12529_v22  ;;  %v12548_v17 = vcombine.high %v12532_v27, %v12532_v27  ;;  %v1704_v3 = vrot.slane %v12458_v30, %v11802_v12  ;;  %v1711_v54 = vrot.slane %v1683_v63, %v11802_v12  ;;  %v1302_v63 = vpop.f32.mrf.mxu0 }
 0x194   :  { %17208 = vst [vmem:[#allocation26_spill] sm:$0xff] %v12537_v9  ;;  %v1643_v0 = vcombine.high %v12537_v9, %v12399_v6  ;;  %v1644_v14 = vcombine.low %v1627_v55, %v12407_v35  ;;  %v1645_v62 = vcombine.high %v1627_v55, %v12407_v35  ;;  %v1677_v21 = vcombine.low %v1655_v57, %v12499_v2 }
 0x195   :  { %v1484_v28 = vmax.f32 %v12483_v45, 0.0  ;;  %v1678_v55 = vcombine.high %v1655_v57, %v12499_v2  ;;  %v1679_v36 = vcombine.low %v1662_v19, %v1676_v34  ;;  %v1680_v49 = vcombine.high %v1662_v19, %v1676_v34 }
 0x196   :  { %v12571_v35 = vrot.slane %v1645_v62, %v12345_v46  ;;  %v1850_v31 = vrot.slane %v1677_v21, %v12345_v46  ;;  %v1479_v47 = vmax.f32 %v1458_v29, 0.0  ;;  %v1480_v1 = vmax.f32 %v1459_v56, 0.0 }
 0x197   :  { %v1461_v30 = vadd.f32 %v12338_v20, %v1423_v51  ;;  %v12583_v45 = vrot.slane %v1678_v55, %v12345_v46  ;;  %v12586_v2 = vrot.slane %v1679_v36, %v12345_v46  ;;  %v12589_v34 = vrot.slane %v1680_v49, %v12345_v46 }
 0x198   :  { %v12577_v7 = vcombine.high %v12571_v35, %v12571_v35  ;;  %v12580_v25 = vcombine.high %v1850_v31, %v1850_v31  ;;  %v12592_v57 = vrot.slane %v1484_v28, %v11802_v12  ;;  %v1681_v19 = vcombine.low %v1479_v47, %v1480_v1 }
 0x199   :  { %v1682_v56 = vcombine.high %v1479_v47, %v1480_v1  ;;  %v12596_v20 = vrot.slane %v1609_v8, %v12345_v46  ;;  %v12600_v51 = vcombine.high %v12583_v45, %v12583_v45  ;;  %v12604_v36 = vcombine.high %v12586_v2, %v12586_v2 }
 0x19a   :  { %17209 = vst [vmem:[#allocation27_spill] sm:$0xff] %v12592_v57  ;;  %v3212_v29 = vcombine.low %v12577_v7, %v1850_v31  ;;  %v1424_v49 = vadd.f32 %v1302_v63, %v12382_v23  ;;  %v12608_v28 = vrot.slane %v1643_v0, %v12345_v46  ;;  %v1690_v1 = vrot.slane %v1681_v19, %v11802_v12  ;;  %v2220_v57 = vld [vmem:[#allocation7 + $0x9b0] sm:$0xff] }
 0x19b   :  { %v1697_v8 = vrot.slane %v1682_v56, %v11802_v12  ;;  %v12615_v47 = vrot.slane %v1644_v14, %v12345_v46  ;;  %v12619_v21 = vcombine.high %v12589_v34, %v12589_v34  ;;  %v2424_v55 = vcombine.low %v1850_v31, %v12580_v25 }
 0x19c   :  { %v1482_v23 = vmax.f32 %v1461_v30, 0.0  ;;  %v1712_v62 = vcombine.low %v1690_v1, %v1704_v3  ;;  %v1713_v19 = vcombine.high %v1690_v1, %v1704_v3  ;;  %v1462_v14 = vadd.f32 %v12341_v43, %v1424_v49 }
 0x19d   :  { %v1714_v52 = vcombine.low %v1697_v8, %v1711_v54  ;;  %v1715_v56 = vcombine.high %v1697_v8, %v1711_v54  ;;  %v12632_v50 = vrot.slane %v3212_v29, %v12345_v46  ;;  %v12644_v3 = vrot.slane %v2223_v53, %v12345_v46 }
 0x19e   :  { %v12635_v31 = vrot.slane %v1712_v62, %v12345_v46  ;;  %v12638_v30 = vrot.slane %v1713_v19, %v12345_v46  ;;  %v1483_v29 = vmax.f32 %v1462_v14, 0.0  ;;  %v2222_v49 = vcombine.low %v12629_v26, %v12411_v37 }
 0x19f   :  { %17210 = vst [vmem:[#allocation28_spill] sm:$0xff] %v12632_v50  ;;  %17211 = vst [vmem:[#allocation29_spill] sm:$0xff] %v12644_v3  ;;  %v12647_v43 = vrot.slane %v1714_v52, %v12345_v46  ;;  %v12650_v54 = vrot.slane %v1715_v56, %v12345_v46  ;;  %v12668_v52 = vrot.slane %v2225_v39, %v12345_v46 }
 0x1a0   :  { %v12656_v62 = vcombine.high %v12635_v31, %v12635_v31  ;;  %v12660_v1 = vcombine.high %v12638_v30, %v12638_v30  ;;  %v1716_v56 = vcombine.low %v1482_v23, %v1483_v29  ;;  %v2232_v14 = vrot.slane %v2222_v49, %v12345_v46 }
 0x1a1   :  { %17212 = vst [vmem:[#allocation30_spill] sm:$0xff] %v12650_v54  ;;  %17213 = vst [vmem:[#allocation31_spill] sm:$0xff] %v12668_v52  ;;  %v12674_v19 = vcombine.high %v12647_v43, %v12647_v43  ;;  %v12687_v0 = vrot.slane %v2224_v38, %v12345_v46  ;;  %v12690_v8 = vrot.slane %v2424_v55, %v12345_v46 }
 0x1a2   :  { %v12694_v23 = vcombine.high %v12650_v54, %v12650_v54  ;;  %v12699_v49 = vrot.slane %v1716_v56, %v11802_v12  ;;  %v2254_v39 = vcombine.low %v2232_v14, %v12644_v3  ;;  %v2255_v53 = vcombine.high %v2232_v14, %v12644_v3  ;;  %v2128_v3 = vld [vmem:[#allocation7 + $0x6d0] sm:$0xff] }
 0x1a3   :  { %17214 = vst [vmem:[#allocation32_spill] sm:$0xff] %v12687_v0  ;;  %17215 = vst [vmem:[#allocation33_spill] sm:$0xff] %v12690_v8  ;;  %v2256_v38 = vcombine.low %v12687_v0, %v12668_v52  ;;  %v2257_v55 = vcombine.high %v12687_v0, %v12668_v52  ;;  %v17220_v56 = vcombine.low %v12450_v18, %v12453_v15 }
 0x1a4   :  { %17216 = vst [vmem:[#allocation34_spill] sm:$0xff] %v12694_v23  ;;  %17217 = vst [vmem:[#allocation35_spill] sm:$0xff] %v12699_v49  ;;  %v2264_v14 = vrot.slane %v2254_v39, %v12345_v46  ;;  %v2271_v29 = vrot.slane %v2255_v53, %v12345_v46  ;;  %v2557_v5 = vcombine.low %v12650_v54, %v12694_v23  ;;  %v17230_v49 = vmov 0.0  }
 0x1a5   :  { %v12718_v33 = vrot.slane %v2256_v38, %v12345_v46  ;;  %v12721_v32 = vrot.slane %v2257_v55, %v12345_v46  ;;  %v12731_v12 = vrot.slane %v17220_v56, %v12345_v46  ;;  %v17222_v53 = vcombine.low %v12468_v61, %v12456_v16  ;;  %v2125_v56 = vld [vmem:[#allocation7 + $0x6b8] sm:$0xff] }
 0x1a6   :  { %v17225_v52 = vcombine.low %v12472_v24, %v12461_v59  ;;  %v17227_v38 = vcombine.low %v12480_v40, %v12529_v22  ;;  %v12778_v9 = vrot.slane %v2557_v5, %v12345_v46 }
 0x1a7   :  { %17218 = vst [vmem:[#allocation36_spill] sm:$0xff] %v12718_v33  ;;  %17219 = vst [vmem:[#allocation37_spill] sm:$0xff] %v12721_v32  ;;  %v12737_v39 = vrot.slane %v17222_v53, %v12345_v46  ;;  %v12742_v55 = vcombine.high %v2264_v14, %v12718_v33  ;;  %v12745_v63 = vcombine.low %v2271_v29, %v12721_v32 }
 0x1a8   :  { %17221 = vst [vmem:[#allocation38_spill] sm:$0xff] %v12731_v12  ;;  %v12748_v0 = vcombine.low %v2264_v14, %v12718_v33  ;;  %v12754_v53 = vrot.slane %v17225_v52, %v12345_v46  ;;  %v12760_v6 = vrot.slane %v17227_v38, %v12345_v46  ;;  %v2124_v33 = vld [vmem:[#allocation7 + $0x6b0] sm:$0xff]  ;;  %v12771_v52 = vcombine.high %v12615_v47, %v12615_v47 }
 0x1a9   :  { %17223 = vst [vmem:[#allocation39_spill] sm:$0xff] %v12737_v39  ;;  %v2322_v29 = vcombine.high %v12731_v12, %v12737_v39  ;;  %v2321_v14 = vcombine.low %v12731_v12, %v12737_v39  ;;  %2670 = vmatprep.mubr.f32.mxu0 %v12745_v63  ;;  %10944 = vmatmul.mubr.msk.f32.vlgmr.msra.gmra.mxu1 %vm2593_vm10, %v12742_v55  ;;  %17229 = vst [vmem:[#allocation43_spill] sm:$0xff] %v12778_v9  ;;  %v2121_v39 = vld [vmem:[#allocation7 + $0x698] sm:$0xff] }
 0x1aa   :  { %17224 = vst [vmem:[#allocation40_spill] sm:$0xff] %v12748_v0  ;;  %17226 = vst [vmem:[#allocation41_spill] sm:$0xff] %v12754_v53  ;;  %v2357_v38 = vcombine.low %v12548_v17, %v12596_v20  ;;  %v10943_v32 = vcombine.high %v12596_v20, %v12608_v28  ;;  %2809 = vmatpush1.msra.mxu1 %v2128_v3  ;;  %2671 = vmatmul.mubr.f32.vlgmr.msra.gmra.mxu0 %v12748_v0 }
 0x1ab   :  { %17228 = vst [vmem:[#allocation42_spill] sm:$0xff] %v12760_v6  ;;  %v2324_v12 = vcombine.high %v12754_v53, %v12760_v6  ;;  %v2323_v23 = vcombine.low %v12754_v53, %v12760_v6  ;;  %2810 = vmatprep.subr.mxu1 %v2125_v56  ;;  %2777 = vmatprep.mubr.f32.mxu1 %v17230_v49  ;;  %v2117_v6 = vld [vmem:[#allocation7 + $0x678] sm:$0xff] }
 0x1ac   :  { %v12787_v54 = vrot.slane %v2322_v29, %v12345_v46  ;;  %v2359_v5 = vcombine.low %v12615_v47, %v12771_v52  ;;  %v17232_v3 = vcombine.low %v12544_v44, %v12532_v27  ;;  %2811 = vmatpush1.msra.mxu1 %v2124_v33  ;;  %v12801_v56 = vrot.slane %v2321_v14, %v12345_v46 }
 0x1ad   :  { %v12798_v53 = vrot.slane %v2324_v12, %v12345_v46  ;;  %v12804_v29 = vrot.slane %v2323_v23, %v12345_v46  ;;  %v12807_v4 = vrot.slane %v2357_v38, %v12345_v46  ;;  %2812 = vmatprep.subr.mxu1 %v2121_v39  ;;  %v2380_v50 = vrot.slane %v10943_v32, %v12345_v46  ;;  %v2116_v32 = vld [vmem:[#allocation7 + $0x670] sm:$0xff]  ;;  %v2113_v38 = vld [vmem:[#allocation7 + $0x658] sm:$0xff] }
 0x1ae   :  { %17231 = vst [vmem:[#allocation44_spill] sm:$0xff] %v12787_v54  ;;  %v12795_v0 = vrot.slane %v17232_v3, %v12345_v46  ;;  %17235 = vst [vmem:[#allocation47_spill] sm:$0xff] %v12801_v56  ;;  %v2387_v3 = vrot.slane %v2359_v5, %v12345_v46  ;;  %2928 = vmatpush1.msra.mxu0 %v2220_v57  ;;  %2813 = vmatpush1.msra.mxu1 %v2120_v58  ;;  %v2112_v58 = vld [vmem:[#allocation7 + $0x650] sm:$0xff] }
 0x1af   :  { %17234 = vst [vmem:[#allocation46_spill] sm:$0xff] %v12798_v53  ;;  %17236 = vst [vmem:[#allocation48_spill] sm:$0xff] %v12804_v29  ;;  %v12815_v12 = vcombine.low %v12787_v54, %v12798_v53  ;;  %v12819_v23 = vcombine.high %v12801_v56, %v12804_v29  ;;  %v12823_v39 = vcombine.low %v12801_v56, %v12804_v29  ;;  %2814 = vmatprep.subr.mxu1 %v2117_v6  ;;  %v2109_v54 = vld [vmem:[#allocation7 + $0x638] sm:$0xff] }
 0x1b0   :  { %17233 = vst [vmem:[#allocation45_spill] sm:$0xff] %v12795_v0  ;;  %17237 = vst [vmem:[#allocation49_spill] sm:$0xff] %v12807_v4  ;;  %v2389_v14 = vcombine.high %v12795_v0, %v12807_v4  ;;  %v2391_v57 = vcombine.high %v2380_v50, %v2387_v3  ;;  %v2388_v5 = vcombine.low %v12795_v0, %v12807_v4  ;;  %2815 = vmatpush1.msra.mxu1 %v2116_v32 }
 0x1b1   :  { %17238 = vst [vmem:[#allocation50_spill] sm:$0xff] %v12815_v12  ;;  %17239 = vst [vmem:[#allocation51_spill] sm:$0xff] %v12823_v39  ;;  %v2390_v33 = vcombine.low %v2380_v50, %v2387_v3  ;;  %v2423_v53 = vcombine.low %v12571_v35, %v12577_v7  ;;  %2676 = vmatprep.mubr.f32.mxu0 %v12815_v12  ;;  %10945 = vmatmul.mubr.msk.f32.gmra.mxu1 %vm2593_vm10, %v12819_v23  ;;  %v2217_v3 = vld [vmem:[#allocation7 + $0x998] sm:$0xff] }
 0x1b2   :  { %v12835_v29 = vrot.slane %v2389_v14, %v12345_v46  ;;  %v17241_v6 = vcombine.low %v12583_v45, %v12600_v51  ;;  %v17243_v50 = vcombine.low %v12586_v2, %v12604_v36  ;;  %2677 = vmatmul.mubr.f32.gmra.mxu0 %v12823_v39  ;;  %v2419_v14 = vrot.slane %v2391_v57, %v12345_v46 }
 0x1b3   :  { %v12852_v0 = vrot.slane %v2388_v5, %v12345_v46  ;;  %v2412_v4 = vrot.slane %v2390_v33, %v12345_v46  ;;  %2816 = vmatprep.subr.mxu1 %v2113_v38  ;;  %2783 = vmatprep.mubr.f32.mxu1 %v17230_v49  ;;  %v2108_v33 = vld [vmem:[#allocation7 + $0x630] sm:$0xff] }
 0x1b4   :  { %17240 = vst [vmem:[#allocation52_spill] sm:$0xff] %v12835_v29  ;;  %v12841_v56 = vrot.slane %v17241_v6, %v12345_v46  ;;  %v12847_v7 = vrot.slane %v17243_v50, %v12345_v46  ;;  %v12857_v6 = vrot.slane %v2423_v53, %v12345_v46  ;;  %2817 = vmatpush1.msra.mxu1 %v2112_v58  ;;  %v2105_v53 = vld [vmem:[#allocation7 + $0x618] sm:$0xff] }
 0x1b5   :  { %17245 = vst [vmem:[#allocation55_spill] sm:$0xff] %v12852_v0  ;;  %v12864_v57 = vcombine.low %v12835_v29, %v2419_v14  ;;  %v12867_v5 = vcombine.high %v12852_v0, %v2412_v4  ;;  %v12870_v38 = vcombine.low %v12852_v0, %v2412_v4  ;;  %2929 = vmatprep.subr.mxu0 %v2217_v3  ;;  %v2104_v4 = vld [vmem:[#allocation7 + $0x610] sm:$0xff] }
 0x1b6   :  { %17242 = vst [vmem:[#allocation53_spill] sm:$0xff] %v12841_v56  ;;  %17244 = vst [vmem:[#allocation54_spill] sm:$0xff] %v12847_v7  ;;  %v2458_v50 = vcombine.high %v12841_v56, %v12847_v7  ;;  %v2457_v32 = vcombine.low %v12841_v56, %v12847_v7  ;;  %2818 = vmatprep.subr.mxu1 %v2109_v54  ;;  %v2456_v39 = vcombine.high %v12857_v6, %v12690_v8  ;;  %v2216_v54 = vld [vmem:[#allocation7 + $0x990] sm:$0xff]  ;;  %v2101_v56 = vld [vmem:[#allocation7 + $0x5f8] sm:$0xff] }
 0x1b7   :  { %17246 = vst [vmem:[#allocation56_spill] sm:$0xff] %v12857_v6  ;;  %17247 = vst [vmem:[#allocation57_spill] sm:$0xff] %v12864_v57  ;;  %v2455_v58 = vcombine.low %v12857_v6, %v12690_v8  ;;  %2682 = vmatprep.mubr.f32.mxu0 %v12864_v57  ;;  %10946 = vmatmul.mubr.msk.f32.gmra.mxu1 %vm2593_vm10, %v12867_v5  ;;  %v17252_v3 = vcombine.low %v12589_v34, %v12619_v21  ;;  %v2213_v57 = vld [vmem:[#allocation7 + $0x978] sm:$0xff] }
 0x1b8   :  { %17248 = vst [vmem:[#allocation58_spill] sm:$0xff] %v12867_v5  ;;  %17249 = vst [vmem:[#allocation59_spill] sm:$0xff] %v12870_v38  ;;  %v12875_v12 = vrot.slane %v2458_v50, %v12345_v46  ;;  %v12880_v14 = vrot.slane %v2457_v32, %v12345_v46  ;;  %v17254_v50 = vcombine.low %v12635_v31, %v12656_v62  ;;  %2819 = vmatpush1.msra.mxu1 %v2108_v33  ;;  %v2097_v5 = vld [vmem:[#allocation7 + $0x5d8] sm:$0xff] }
 0x1b9   :  { %v12889_v0 = vrot.slane %v17252_v3, %v12345_v46  ;;  %v17256_v32 = vcombine.low %v12638_v30, %v12660_v1  ;;  %2683 = vmatmul.mubr.f32.gmra.mxu0 %v12870_v38  ;;  %v2472_v8 = vrot.slane %v2456_v39, %v12345_v46  ;;  %v2465_v3 = vrot.slane %v2455_v58, %v12345_v46 }
 0x1ba   :  { %17250 = vst [vmem:[#allocation60_spill] sm:$0xff] %v12875_v12  ;;  %17251 = vst [vmem:[#allocation61_spill] sm:$0xff] %v12880_v14  ;;  %v12895_v29 = vrot.slane %v17254_v50, %v12345_v46  ;;  %v17258_v50 = vcombine.low %v12647_v43, %v12674_v19  ;;  %2820 = vmatprep.subr.mxu1 %v2105_v53  ;;  %2789 = vmatprep.mubr.f32.mxu1 %v17230_v49 }
 0x1bb   :  { %17253 = vst [vmem:[#allocation62_spill] sm:$0xff] %v12889_v0  ;;  %v12901_v7 = vrot.slane %v17256_v32, %v12345_v46  ;;  %v2565_v39 = vcombine.high %v12778_v9, %v12778_v9  ;;  %2821 = vmatpush1.msra.mxu1 %v2104_v4  ;;  %v12920_v58 = vcombine.low %v2472_v8, %v12875_v12  ;;  %v2096_v4 = vld [vmem:[#allocation7 + $0x5d0] sm:$0xff] }
 0x1bc   :  { %17255 = vst [vmem:[#allocation63_spill] sm:$0xff] %v12895_v29  ;;  %v12910_v6 = vrot.slane %v17258_v50, %v12345_v46  ;;  %v2523_v33 = vcombine.high %v12889_v0, %v12895_v29  ;;  %v2522_v32 = vcombine.low %v12889_v0, %v12895_v29  ;;  %v12923_v38 = vcombine.high %v2465_v3, %v12880_v14  ;;  %v2100_v50 = vld [vmem:[#allocation7 + $0x5f0] sm:$0xff] }
 0x1bd   :  { %17257 = vst [vmem:[#allocation64_spill] sm:$0xff] %v12901_v7  ;;  %v12926_v53 = vcombine.low %v2465_v3, %v12880_v14  ;;  %2930 = vmatpush1.msra.mxu0 %v2216_v54  ;;  %2822 = vmatprep.subr.mxu1 %v2101_v56  ;;  %v2212_v3 = vld [vmem:[#allocation7 + $0x970] sm:$0xff]  ;;  %v12946_v54 = vrot.slane %v12778_v9, %v12345_v46 }
 0x1be   :  { %17259 = vst [vmem:[#allocation65_spill] sm:$0xff] %v12910_v6  ;;  %2931 = vmatprep.subr.mxu0 %v2213_v57  ;;  %v2525_v29 = vcombine.high %v12901_v7, %v12910_v6  ;;  %v12931_v0 = vrot.slane %v2523_v33, %v12345_v46  ;;  %v2524_v8 = vcombine.low %v12901_v7, %v12910_v6  ;;  %v2093_v33 = vld [vmem:[#allocation7 + $0x5b8] sm:$0xff]  ;;  %v2076_v7 = vld [vmem:[#allocation7 + $0x530] sm:$0xff] }
 0x1bf   :  { %2688 = vmatprep.mubr.f32.mxu0 %v12920_v58  ;;  %10947 = vmatmul.mubr.msk.f32.gmra.mxu1 %vm2593_vm10, %v12923_v38  ;;  %v12939_v56 = vrot.slane %v2522_v32, %v12345_v46  ;;  %v12942_v57 = vrot.slane %v2565_v39, %v12345_v46  ;;  %v2209_v6 = vld [vmem:[#allocation7 + $0x958] sm:$0xff]  ;;  %v3010_v32 = vcombine.low %v12509_v48, %v12629_v26 }
 0x1c0   :  { %17260 = vst [vmem:[#allocation66_spill] sm:$0xff] %v12931_v0  ;;  %2823 = vmatpush1.msra.mxu1 %v2100_v50  ;;  %2689 = vmatmul.mubr.f32.gmra.mxu0 %v12926_v53  ;;  %v12950_v14 = vrot.slane %v2525_v29, %v12345_v46  ;;  %v12953_v12 = vrot.slane %v2524_v8, %v12345_v46 }
 0x1c1   :  { %17261 = vst [vmem:[#allocation67_spill] sm:$0xff] %v12939_v56  ;;  %2824 = vmatprep.subr.mxu1 %v2097_v5  ;;  %2795 = vmatprep.mubr.f32.mxu1 %v17230_v49  ;;  %v12960_v39 = vcombine.high %v12946_v54, %v12946_v54  ;;  %v17264_v50 = vcombine.low %v12411_v37, %v12425_v41  ;;  %v2092_v5 = vld [vmem:[#allocation7 + $0x5b0] sm:$0xff] }
 0x1c2   :  { %17262 = vst [vmem:[#allocation68_spill] sm:$0xff] %v12950_v14  ;;  %17263 = vst [vmem:[#allocation69_spill] sm:$0xff] %v12953_v12  ;;  %v17265_v8 = vcombine.low %v12414_v60, %v12429_v11  ;;  %2825 = vmatpush1.msra.mxu1 %v2096_v4  ;;  %2932 = vmatpush1.msra.mxu0 %v2212_v3  ;;  %v12976_v26 = vcombine.low %v12931_v0, %v12950_v14  ;;  %v2089_v60 = vld [vmem:[#allocation7 + $0x598] sm:$0xff]  ;;  %v2208_v41 = vld [vmem:[#allocation7 + $0x950] sm:$0xff] }
 0x1c3   :  { %v12966_v29 = vrot.slane %v17264_v50, %v12345_v46  ;;  %v12980_v48 = vcombine.high %v12939_v56, %v12953_v12  ;;  %v12984_v37 = vcombine.low %v12939_v56, %v12953_v12  ;;  %2826 = vmatprep.subr.mxu1 %v2093_v33  ;;  %2933 = vmatprep.subr.mxu0 %v2209_v6  ;;  %v2088_v6 = vld [vmem:[#allocation7 + $0x590] sm:$0xff]  ;;  %v2077_v14 = vld [vmem:[#allocation7 + $0x538] sm:$0xff] }
 0x1c4   :  { %v12972_v9 = vrot.slane %v17265_v8, %v12345_v46  ;;  %v3020_v11 = vrot.slane %v3010_v32, %v12345_v46  ;;  %v17266_v4 = vcombine.low %v12417_v42, %v12433_v10  ;;  %v17267_v50 = vcombine.low %v12436_v13, %v12450_v18  ;;  %2694 = vmatprep.mubr.f32.mxu0 %v12976_v26  ;;  %v2196_v0 = vld [vmem:[#allocation7 + $0x8f0] sm:$0xff] }
 0x1c5   :  { %10948 = vmatmul.mubr.msk.f32.gmra.mxu1 %vm2593_vm10, %v12980_v48  ;;  %v17268_v33 = vcombine.low %v12453_v15, %v12468_v61  ;;  %v17269_v42 = vcombine.low %v12456_v16, %v12472_v24  ;;  %v17270_v13 = vcombine.low %v12461_v59, %v12480_v40  ;;  %2695 = vmatmul.mubr.f32.gmra.mxu0 %v12984_v37  ;;  %v2085_v16 = vld [vmem:[#allocation7 + $0x578] sm:$0xff]  ;;  %v2204_v24 = vld [vmem:[#allocation7 + $0x930] sm:$0xff] }
 0x1c6   :  { %v12991_v3 = vrot.slane %v17266_v4, %v12345_v46  ;;  %v12997_v8 = vrot.slane %v17267_v50, %v12345_v46  ;;  %2827 = vmatpush1.msra.mxu1 %v2092_v5  ;;  %v2205_v4 = vld [vmem:[#allocation7 + $0x938] sm:$0xff]  ;;  %v3042_v15 = vcombine.low %v3020_v11, %v12966_v29  ;;  %v3043_v61 = vcombine.high %v3020_v11, %v12966_v29 }
 0x1c7   :  { %v13006_v32 = vrot.slane %v17268_v33, %v12345_v46  ;;  %v13012_v10 = vrot.slane %v17269_v42, %v12345_v46  ;;  %v13018_v18 = vrot.slane %v17270_v13, %v12345_v46  ;;  %2828 = vmatprep.subr.mxu1 %v2089_v60  ;;  %2934 = vmatpush1.msra.mxu0 %v2208_v41  ;;  %v2201_v11 = vld [vmem:[#allocation7 + $0x918] sm:$0xff]  ;;  %v2084_v42 = vld [vmem:[#allocation7 + $0x570] sm:$0xff] }
 0x1c8   :  { %v3044_v50 = vcombine.low %v12972_v9, %v12991_v3  ;;  %v3045_v59 = vcombine.high %v12972_v9, %v12991_v3  ;;  %2700 = vmatprep.mubr.f32.mxu0 %v12942_v57  ;;  %2829 = vmatpush1.msra.mxu1 %v2088_v6  ;;  %v3052_v33 = vrot.slane %v3042_v15, %v12345_v46  ;;  %v2081_v15 = vld [vmem:[#allocation7 + $0x558] sm:$0xff] }
 0x1c9   :  { %v3110_v40 = vcombine.high %v12997_v8, %v13006_v32  ;;  %v3112_v5 = vcombine.high %v13012_v10, %v13018_v18  ;;  %v3059_v60 = vrot.slane %v3043_v61, %v12345_v46  ;;  %2935 = vmatprep.subr.mxu0 %v2205_v4  ;;  %2801 = vmatprep.mubr.f32.mxu1 %v17230_v49 }
 0x1ca   :  { %v13035_v41 = vrot.slane %v3044_v50, %v12345_v46  ;;  %v13039_v13 = vrot.slane %v3045_v59, %v12345_v46  ;;  %2830 = vmatprep.subr.mxu1 %v2085_v16  ;;  %2936 = vmatpush1.msra.mxu0 %v2204_v24  ;;  %v3109_v50 = vcombine.low %v12997_v8, %v13006_v32  ;;  %v2200_v59 = vld [vmem:[#allocation7 + $0x910] sm:$0xff] }
 0x1cb   :  { %v13042_v12 = vrot.slane %v3110_v40, %v12345_v46  ;;  %v13045_v6 = vrot.slane %v3112_v5, %v12345_v46  ;;  %10949 = vmatmul.mubr.msk.f32.gmra.mxu1 %vm2593_vm10, %v12960_v39  ;;  %2937 = vmatprep.subr.mxu0 %v2201_v11  ;;  %v2080_v40 = vld [vmem:[#allocation7 + $0x550] sm:$0xff]  ;;  %v3111_v24 = vcombine.low %v13012_v10, %v13018_v18 }
 0x1cc   :  { %v13048_v61 = vcombine.high %v3052_v33, %v13035_v41  ;;  %v13051_v4 = vcombine.low %v3052_v33, %v13035_v41  ;;  %v13058_v5 = vcombine.low %v3059_v60, %v13039_v13  ;;  %2831 = vmatpush1.msra.mxu1 %v2084_v42  ;;  %2701 = vmatmul.mubr.f32.gmra.mxu0 %v12946_v54  ;;  %v2197_v33 = vld [vmem:[#allocation7 + $0x8f8] sm:$0xff] }
 0x1cd   :  { %v13062_v16 = vcombine.low %v13042_v12, %v13045_v6  ;;  %v13068_v56 = vrot.slane %v3109_v50, %v12345_v46  ;;  %v1827_v11 = vcombine.high %v12608_v28, %v12608_v28  ;;  %v3146_v60 = vcombine.low %v12596_v20, %v12608_v28  ;;  %2832 = vmatprep.subr.mxu1 %v2081_v15  ;;  %v1968_v28 = vld [vmem:[#allocation7 + $0x1e8] sm:$0xff] }
 0x1ce   :  { %17271 = vst [vmem:[#allocation70_spill] sm:$0xff] %v13048_v61  ;;  %17272 = vst [vmem:[#allocation71_spill] sm:$0xff] %v13051_v4  ;;  %2872 = vmatprep.mubr.f32.mxu1 %v12745_v63  ;;  %v13076_v42 = vrot.slane %v3111_v24, %v12345_v46  ;;  %v17275_v4 = vcombine.low %v12532_v27, %v12548_v17  ;;  %2938 = vmatpush1.msra.mxu0 %v2200_v59  ;;  %v2072_v59 = vld [vmem:[#allocation7 + $0x510] sm:$0xff] }
 0x1cf   :  { %17273 = vst [vmem:[#allocation72_spill] sm:$0xff] %v13062_v16  ;;  %v17274_v16 = vcombine.low %v12529_v22, %v12544_v44  ;;  %2833 = vmatpush1.msra.mxu1 %v2080_v40  ;;  %v13092_v63 = vcombine.high %v13035_v41, %v13068_v56  ;;  %v3147_v15 = vcombine.low %v1827_v11, %v12615_v47  ;;  %v2073_v22 = vld [vmem:[#allocation7 + $0x518] sm:$0xff]  ;;  %v1964_v11 = vld [vmem:[#allocation7 + $0x1c8] sm:$0xff] }
 0x1d0   :  { %v13088_v61 = vrot.slane %v17275_v4, %v12345_v46  ;;  %v3168_v24 = vrot.slane %v3146_v60, %v12345_v46  ;;  %2939 = vmatprep.subr.mxu0 %v2197_v33  ;;  %2834 = vmatprep.subr.mxu1 %v2077_v14  ;;  %v13098_v44 = vcombine.high %v13068_v56, %v13076_v42  ;;  %v1967_v4 = vld [vmem:[#allocation7 + $0x1e0] sm:$0xff]  ;;  %v2069_v60 = vld [vmem:[#allocation7 + $0x4f8] sm:$0xff] }
 0x1d1   :  { %v13082_v50 = vrot.slane %v17274_v16, %v12345_v46  ;;  %17276 = vst [vmem:[#allocation73_spill] sm:$0xff] %v13092_v63  ;;  %v13102_v27 = vcombine.low %v13068_v56, %v13076_v42  ;;  %2940 = vmatpush1.msra.mxu0 %v2196_v0  ;;  %2835 = vmatpush1.msra.mxu1 %v2076_v7  ;;  %v2068_v63 = vld [vmem:[#allocation7 + $0x4f0] sm:$0xff] }
 0x1d2   :  { %17277 = vst [vmem:[#allocation74_spill] sm:$0xff] %v13098_v44  ;;  %v3175_v40 = vrot.slane %v3147_v15, %v12345_v46  ;;  %v17279_v16 = vcombine.low %v12771_v52, %v12571_v35  ;;  %2973 = vmatprep.mubr.f32.mxu0 %v17230_v49  ;;  %3393 = vmatprep.subr.mxu0 %v1968_v28  ;;  %v1963_v28 = vld [vmem:[#allocation7 + $0x1c0] sm:$0xff] }
 0x1d3   :  { %17278 = vst [vmem:[#allocation75_spill] sm:$0xff] %v13102_v27  ;;  %v3177_v17 = vcombine.high %v13082_v50, %v13088_v61  ;;  %v3176_v14 = vcombine.low %v13082_v50, %v13088_v61  ;;  %v17280_v7 = vcombine.low %v12580_v25, %v12583_v45  ;;  %v17281_v52 = vcombine.low %v12600_v51, %v12586_v2  ;;  %v1960_v25 = vld [vmem:[#allocation7 + $0x1a8] sm:$0xff] }
 0x1d4   :  { %v13113_v33 = vrot.slane %v17279_v16, %v12345_v46  ;;  %2836 = vmatprep.subr.mxu1 %v2073_v22  ;;  %10950 = vmatmul.mubr.msk.f32.vlgmr.msra.gmra.mxu0 %vm2593_vm10, %v12742_v55  ;;  %v3178_v27 = vcombine.low %v3168_v24, %v3175_v40  ;;  %v17282_v45 = vld [vmem:[#allocation28_spill] sm:$0xff]  ;;  %v2193_v55 = vld [vmem:[#allocation7 + $0x8d8] sm:$0xff] }
 0x1d5   :  { %v13117_v0 = vrot.slane %v3177_v17, %v12345_v46  ;;  %v13123_v15 = vrot.slane %v17280_v7, %v12345_v46  ;;  %v13129_v16 = vrot.slane %v17281_v52, %v12345_v46  ;;  %v3179_v17 = vcombine.high %v3168_v24, %v3175_v40  ;;  %3394 = vmatpush1.msra.mxu0 %v1967_v4  ;;  %v2192_v40 = vld [vmem:[#allocation7 + $0x8d0] sm:$0xff] }
 0x1d6   :  { %v13134_v44 = vrot.slane %v3176_v14, %v12345_v46  ;;  %2837 = vmatpush1.msra.mxu1 %v2072_v59  ;;  %v3244_v7 = vcombine.high %v13113_v33, %v17282_v45  ;;  %v3243_v51 = vcombine.low %v13113_v33, %v17282_v45  ;;  %3395 = vmatprep.subr.mxu0 %v1964_v11  ;;  %v1959_v59 = vld [vmem:[#allocation7 + $0x1a0] sm:$0xff] }
 0x1d7   :  { %v3246_v2 = vcombine.high %v13123_v15, %v13129_v16  ;;  %2838 = vmatprep.subr.mxu1 %v2069_v60  ;;  %v3207_v24 = vrot.slane %v3179_v17, %v12345_v46  ;;  %v3200_v22 = vrot.slane %v3178_v27, %v12345_v46  ;;  %v3245_v4 = vcombine.low %v13123_v15, %v13129_v16  ;;  %v1956_v60 = vld [vmem:[#allocation7 + $0x188] sm:$0xff]  ;;  %v2189_v17 = vld [vmem:[#allocation7 + $0x8b8] sm:$0xff] }
 0x1d8   :  { %3396 = vmatpush1.msra.mxu0 %v1963_v28  ;;  %2839 = vmatpush1.msra.mxu1 %v2068_v63  ;;  %v3260_v14 = vrot.slane %v3244_v7, %v12345_v46  ;;  %v3253_v11 = vrot.slane %v3243_v51, %v12345_v46  ;;  %v1955_v7 = vld [vmem:[#allocation7 + $0x180] sm:$0xff] }
 0x1d9   :  { %v13148_v52 = vrot.slane %v3246_v2, %v12345_v46  ;;  %2979 = vmatprep.mubr.f32.mxu0 %v17230_v49  ;;  %3397 = vmatprep.subr.mxu0 %v1960_v25  ;;  %v13153_v27 = vcombine.low %v13117_v0, %v3207_v24  ;;  %v13156_v28 = vcombine.high %v13134_v44, %v3200_v22  ;;  %v2188_v2 = vld [vmem:[#allocation7 + $0x8b0] sm:$0xff] }
 0x1da   :  { %v13159_v63 = vcombine.low %v13134_v44, %v3200_v22  ;;  %2840 = vmatprep.subr.mxu1 %v2193_v55  ;;  %10951 = vmatmul.mubr.msk.f32.gmra.mxu0 %vm2593_vm10, %v12819_v23  ;;  %v13167_v25 = vrot.slane %v3245_v4, %v12345_v46  ;;  %v17287_v24 = vcombine.low %v12604_v36, %v12589_v34  ;;  %v1952_v55 = vld [vmem:[#allocation7 + $0x168] sm:$0xff] }
 0x1db   :  { %17283 = vst [vmem:[#allocation28_spill] sm:$0xff] %v13153_v27  ;;  %17284 = vst [vmem:[#allocation76_spill] sm:$0xff] %v13156_v28  ;;  %v13164_v51 = vcombine.low %v3260_v14, %v13148_v52  ;;  %3398 = vmatpush1.msra.mxu0 %v1959_v59  ;;  %2841 = vmatpush2.msra.mxu1 %v2192_v40  ;;  %v17288_v23 = vcombine.low %v12619_v21, %v12635_v31  ;;  %v2185_v59 = vld [vmem:[#allocation7 + $0x898] sm:$0xff]  ;;  %v1951_v31 = vld [vmem:[#allocation7 + $0x160] sm:$0xff] }
 0x1dc   :  { %17285 = vst [vmem:[#allocation77_spill] sm:$0xff] %v13159_v63  ;;  %v13173_v28 = vrot.slane %v17287_v24, %v12345_v46  ;;  %v17289_v4 = vcombine.low %v12656_v62, %v12638_v30  ;;  %v17290_v34 = vcombine.low %v12660_v1, %v12647_v43  ;;  %3399 = vmatprep.subr.mxu0 %v1956_v60  ;;  %v2184_v30 = vld [vmem:[#allocation7 + $0x890] sm:$0xff] }
 0x1dd   :  { %17286 = vst [vmem:[#allocation78_spill] sm:$0xff] %v13164_v51  ;;  %v13179_v22 = vrot.slane %v17288_v23, %v12345_v46  ;;  %2842 = vmatprep.subr.mxu1 %v2189_v17  ;;  %v13194_v40 = vcombine.high %v3253_v11, %v13167_v25  ;;  %v13197_v21 = vcombine.low %v3253_v11, %v13167_v25  ;;  %v17293_v60 = vld [vmem:[#allocation25_spill] sm:$0xff]  ;;  %v17294_v17 = vld [vmem:[#allocation23_spill] sm:$0xff] }
 0x1de   :  { %v13185_v14 = vrot.slane %v17289_v4, %v12345_v46  ;;  %v13191_v36 = vrot.slane %v17290_v34, %v12345_v46  ;;  %3400 = vmatpush1.msra.mxu0 %v1955_v7  ;;  %2843 = vmatpush2.msra.mxu1 %v2188_v2  ;;  %v17295_v24 = vcombine.high %v17293_v60, %v17294_v17  ;;  %v1948_v11 = vld [vmem:[#allocation7 + $0x148] sm:$0xff]  ;;  %v2181_v7 = vld [vmem:[#allocation7 + $0x878] sm:$0xff]  ;;  %v1947_v60 = vld [vmem:[#allocation7 + $0x140] sm:$0xff] }
 0x1df   :  { %17291 = vst [vmem:[#allocation79_spill] sm:$0xff] %v13194_v40  ;;  %17292 = vst [vmem:[#allocation80_spill] sm:$0xff] %v13197_v21  ;;  %v3311_v62 = vcombine.high %v13173_v28, %v13179_v22  ;;  %v3310_v1 = vcombine.low %v13173_v28, %v13179_v22  ;;  %2985 = vmatprep.mubr.f32.mxu0 %v17230_v49  ;;  %3401 = vmatprep.subr.mxu0 %v1952_v55  ;;  %v17296_v4 = vld [vmem:[#allocation30_spill] sm:$0xff]  ;;  %v2180_v17 = vld [vmem:[#allocation7 + $0x870] sm:$0xff] }
 0x1e0   :  { %v3313_v43 = vcombine.high %v13185_v14, %v13191_v36  ;;  %v13209_v23 = vrot.slane %v17295_v24, %v12345_v46  ;;  %v3312_v2 = vcombine.low %v13185_v14, %v13191_v36  ;;  %v17297_v34 = vcombine.low %v12674_v19, %v17296_v4  ;;  %2844 = vmatprep.subr.mxu1 %v2185_v59  ;;  %v17298_v40 = vld [vmem:[#allocation58_spill] sm:$0xff]  ;;  %v1944_v51 = vld [vmem:[#allocation7 + $0x128] sm:$0xff] }
 0x1e1   :  { %10952 = vmatmul.mubr.msk.f32.gmra.mxu0 %vm2593_vm10, %v17298_v40  ;;  %v13223_v24 = vrot.slane %v3311_v62, %v12345_v46  ;;  %2845 = vmatpush2.msra.mxu1 %v2184_v30  ;;  %v13229_v63 = vrot.slane %v3310_v1, %v12345_v46  ;;  %v3969_v59 = vcombine.high %v12966_v29, %v12972_v9  ;;  %v2177_v40 = vld [vmem:[#allocation7 + $0x858] sm:$0xff]  ;;  %v2176_v1 = vld [vmem:[#allocation7 + $0x850] sm:$0xff]  ;;  %v1940_v4 = vld [vmem:[#allocation7 + $0x108] sm:$0xff] }
 0x1e2   :  { %v13218_v21 = vrot.slane %v17297_v34, %v12345_v46  ;;  %v13226_v55 = vrot.slane %v3313_v43, %v12345_v46  ;;  %3402 = vmatpush1.msra.mxu0 %v1951_v31  ;;  %v13232_v19 = vrot.slane %v3312_v2, %v12345_v46  ;;  %2846 = vmatprep.subr.mxu1 %v2181_v7  ;;  %v1943_v43 = vld [vmem:[#allocation7 + $0x120] sm:$0xff]  ;;  %v2173_v34 = vld [vmem:[#allocation7 + $0x838] sm:$0xff] }
 0x1e3   :  { %3403 = vmatprep.subr.mxu0 %v1948_v11  ;;  %v3971_v31 = vcombine.high %v12991_v3, %v12997_v8  ;;  %v3968_v30 = vcombine.low %v12966_v29, %v12972_v9  ;;  %2847 = vmatpush2.msra.mxu1 %v2180_v17  ;;  %v3985_v7 = vrot.slane %v3969_v59, %v12345_v46  ;;  %v1939_v17 = vld [vmem:[#allocation7 + $0x100] sm:$0xff] }
 0x1e4   :  { %v13238_v62 = vcombine.low %v13223_v24, %v13226_v55  ;;  %3404 = vmatpush1.msra.mxu0 %v1947_v60  ;;  %v13246_v2 = vcombine.high %v13229_v63, %v13232_v19  ;;  %v13250_v11 = vcombine.low %v13229_v63, %v13232_v19  ;;  %2991 = vmatprep.mubr.f32.mxu0 %v17230_v49 }
 0x1e5   :  { %3405 = vmatprep.subr.mxu0 %v1944_v51  ;;  %v3999_v9 = vrot.slane %v3971_v31, %v12345_v46  ;;  %v3970_v29 = vcombine.low %v12991_v3, %v12997_v8  ;;  %v3978_v60 = vrot.slane %v3968_v30, %v12345_v46  ;;  %2848 = vmatprep.subr.mxu1 %v2177_v40  ;;  %v1936_v3 = vld [vmem:[#allocation7 + $0xe8] sm:$0xff]  ;;  %v2169_v30 = vld [vmem:[#allocation7 + $0x818] sm:$0xff] }
 0x1e6   :  { %17299 = vst [vmem:[#allocation25_spill] sm:$0xff] %v13238_v62  ;;  %17300 = vst [vmem:[#allocation23_spill] sm:$0xff] %v13246_v2  ;;  %10953 = vmatmul.mubr.msk.f32.gmra.mxu0 %vm2593_vm10, %v12923_v38  ;;  %v4004_v59 = vcombine.high %v13006_v32, %v13012_v10  ;;  %v4006_v51 = vcombine.high %v13018_v18, %v13082_v50  ;;  %v4003_v31 = vcombine.low %v13006_v32, %v13012_v10  ;;  %v1935_v32 = vld [vmem:[#allocation7 + $0xe0] sm:$0xff]  ;;  %v2168_v10 = vld [vmem:[#allocation7 + $0x810] sm:$0xff] }
 0x1e7   :  { %17301 = vst [vmem:[#allocation30_spill] sm:$0xff] %v13250_v11  ;;  %v2172_v11 = vld [vmem:[#allocation7 + $0x830] sm:$0xff]  ;;  %3406 = vmatpush1.msra.mxu0 %v1943_v43  ;;  %2849 = vmatpush2.msra.mxu1 %v2176_v1  ;;  %v13266_v8 = vcombine.low %v3985_v7, %v3999_v9  ;;  %v3992_v40 = vrot.slane %v3970_v29, %v12345_v46  ;;  %v1931_v9 = vld [vmem:[#allocation7 + $0xc0] sm:$0xff] }
 0x1e8   :  { %v4005_v38 = vcombine.low %v13018_v18, %v13082_v50  ;;  %3407 = vmatprep.subr.mxu0 %v1940_v4  ;;  %2850 = vmatprep.subr.mxu1 %v2173_v34  ;;  %v4020_v2 = vrot.slane %v4004_v59, %v12345_v46  ;;  %v4034_v62 = vrot.slane %v4006_v51, %v12345_v46  ;;  %v1932_v18 = vld [vmem:[#allocation7 + $0xc8] sm:$0xff]  ;;  %v2165_v50 = vld [vmem:[#allocation7 + $0x7f8] sm:$0xff]  ;;  %v2164_v29 = vld [vmem:[#allocation7 + $0x7f0] sm:$0xff] }
 0x1e9   :  { %v4013_v27 = vrot.slane %v4003_v31, %v12345_v46  ;;  %3408 = vmatpush1.msra.mxu0 %v1939_v17  ;;  %2851 = vmatpush2.msra.mxu1 %v2172_v11  ;;  %v13274_v43 = vcombine.high %v3978_v60, %v3992_v40  ;;  %v13276_v1 = vcombine.low %v3978_v60, %v3992_v40  ;;  %v2161_v31 = vld [vmem:[#allocation7 + $0x7d8] sm:$0xff] }
 0x1ea   :  { %v4027_v7 = vrot.slane %v4005_v38, %v12345_v46  ;;  %2997 = vmatprep.mubr.f32.mxu0 %v17230_v49  ;;  %3409 = vmatprep.subr.mxu0 %v1936_v3  ;;  %v13280_v4 = vcombine.low %v4020_v2, %v4034_v62  ;;  %v13284_v34 = vcombine.high %v12596_v20, %v12596_v20  ;;  %v1928_v2 = vld [vmem:[#allocation7 + $0xa8] sm:$0xff]  ;;  %v1927_v38 = vld [vmem:[#allocation7 + $0xa0] sm:$0xff] }
 0x1eb   :  { %v4039_v11 = vcombine.low %v13209_v23, %v12615_v47  ;;  %2852 = vmatprep.subr.mxu1 %v2169_v30  ;;  %10954 = vmatmul.mubr.msk.f32.gmra.mxu0 %vm2593_vm10, %v12980_v48  ;;  %v4090_v62 = vcombine.high %v17282_v45, %v13123_v15  ;;  %v4092_v48 = vcombine.high %v13129_v16, %v13173_v28 }
 0x1ec   :  { %v13290_v60 = vcombine.high %v4013_v27, %v4027_v7  ;;  %v13292_v17 = vcombine.low %v4013_v27, %v4027_v7  ;;  %3410 = vmatpush1.msra.mxu0 %v1935_v32  ;;  %2853 = vmatpush2.msra.mxu1 %v2168_v10  ;;  %v4038_v59 = vcombine.low %v12596_v20, %v13284_v34  ;;  %v2160_v20 = vld [vmem:[#allocation7 + $0x7d0] sm:$0xff]  ;;  %v1924_v7 = vld [vmem:[#allocation7 + $0x88] sm:$0xff] }
 0x1ed   :  { %v4053_v51 = vrot.slane %v4039_v11, %v12345_v46  ;;  %3411 = vmatprep.subr.mxu0 %v1932_v18  ;;  %2854 = vmatprep.subr.mxu1 %v2165_v50  ;;  %v4106_v27 = vrot.slane %v4090_v62, %v12345_v46  ;;  %v4089_v3 = vcombine.low %v17282_v45, %v13123_v15  ;;  %v1923_v50 = vld [vmem:[#allocation7 + $0x80] sm:$0xff]  ;;  %v1920_v62 = vld [vmem:[#allocation7 + $0x68] sm:$0xff] }
 0x1ee   :  { %v4091_v40 = vcombine.low %v13129_v16, %v13173_v28  ;;  %3412 = vmatpush1.msra.mxu0 %v1931_v9  ;;  %2855 = vmatpush2.msra.mxu1 %v2164_v29  ;;  %v13307_v30 = vrot.slane %v4038_v59, %v12345_v46  ;;  %v4120_v15 = vrot.slane %v4092_v48, %v12345_v46  ;;  %v2157_v28 = vld [vmem:[#allocation7 + $0x7b8] sm:$0xff]  ;;  %v2156_v29 = vld [vmem:[#allocation7 + $0x7b0] sm:$0xff]  ;;  %v1919_v48 = vld [vmem:[#allocation7 + $0x60] sm:$0xff] }
 0x1ef   :  { %v4057_v32 = vcombine.high %v4053_v51, %v13113_v33  ;;  %v4056_v10 = vcombine.low %v4053_v51, %v13113_v33  ;;  %3003 = vmatprep.mubr.f32.mxu0 %v17230_v49  ;;  %3413 = vmatprep.subr.mxu0 %v1928_v2  ;;  %v4099_v18 = vrot.slane %v4089_v3, %v12345_v46 }
 0x1f0   :  { %v4113_v16 = vrot.slane %v4091_v40, %v12345_v46  ;;  %2856 = vmatprep.subr.mxu1 %v2161_v31  ;;  %10955 = vmatmul.mubr.msk.f32.gmra.mxu0 %vm2593_vm10, %v12960_v39  ;;  %v4055_v11 = vcombine.high %v13088_v61, %v13307_v30  ;;  %v4054_v9 = vcombine.low %v13088_v61, %v13307_v30  ;;  %v2153_v39 = vld [vmem:[#allocation7 + $0x798] sm:$0xff]  ;;  %v2152_v40 = vld [vmem:[#allocation7 + $0x790] sm:$0xff] }
 0x1f1   :  { %v4085_v33 = vrot.slane %v4057_v32, %v12345_v46  ;;  %3414 = vmatpush1.msra.mxu0 %v1927_v38  ;;  %2857 = vmatpush2.msra.mxu1 %v2160_v20  ;;  %v4078_v2 = vrot.slane %v4056_v10, %v12345_v46  ;;  %v13323_v59 = vcombine.low %v4106_v27, %v4120_v15  ;;  %v1916_v38 = vld [vmem:[#allocation7 + $0x48] sm:$0xff]  ;;  %v2149_v10 = vld [vmem:[#allocation7 + $0x778] sm:$0xff] }
 0x1f2   :  { %v13325_v51 = vcombine.high %v4099_v18, %v4113_v16  ;;  %3415 = vmatprep.subr.mxu0 %v1924_v7  ;;  %3457 = vmatprep.mubr.f32.mxu0 %v13058_v5  ;;  %v4071_v31 = vrot.slane %v4055_v11, %v12345_v46  ;;  %v4064_v3 = vrot.slane %v4054_v9, %v12345_v46  ;;  %v1915_v7 = vld [vmem:[#allocation7 + $0x40] sm:$0xff] }
 0x1f3   :  { %v13330_v61 = vcombine.low %v4099_v18, %v4113_v16  ;;  %2858 = vmatprep.subr.mxu1 %v2157_v28  ;;  %3416 = vmatpush1.msra.mxu0 %v1923_v50  ;;  %v4125_v27 = vcombine.high %v13179_v22, %v13185_v14  ;;  %v4127_v20 = vcombine.high %v13191_v36, %v13218_v21  ;;  %v2148_v28 = vld [vmem:[#allocation7 + $0x770] sm:$0xff]  ;;  %v1912_v50 = vld [vmem:[#allocation7 + $0x28] sm:$0xff] }
 0x1f4   :  { %v4124_v32 = vcombine.low %v13179_v22, %v13185_v14  ;;  %2859 = vmatpush2.msra.mxu1 %v2156_v29  ;;  %3417 = vmatprep.subr.mxu0 %v1920_v62  ;;  %v13338_v15 = vcombine.low %v4071_v31, %v4085_v33  ;;  %v13340_v18 = vcombine.high %v4064_v3, %v4078_v2  ;;  %v2145_v14 = vld [vmem:[#allocation7 + $0x758] sm:$0xff]  ;;  %v1911_v33 = vld [vmem:[#allocation7 + $0x20] sm:$0xff]  ;;  %v2144_v62 = vld [vmem:[#allocation7 + $0x750] sm:$0xff] }
 0x1f5   :  { %v13342_v16 = vcombine.low %v4064_v3, %v4078_v2  ;;  %2860 = vmatprep.subr.mxu1 %v2153_v39  ;;  %3418 = vmatpush1.msra.mxu0 %v1919_v48  ;;  %v4141_v11 = vrot.slane %v4125_v27, %v12345_v46  ;;  %v4155_v9 = vrot.slane %v4127_v20, %v12345_v46  ;;  %v1908_v2 = vld [vmem:[#allocation7 + $0x8] sm:$0xff]  ;;  %v2141_v31 = vld [vmem:[#allocation7 + $0x738] sm:$0xff]  ;;  %v1907_v3 = vld [vmem:[#allocation7] sm:$0xff] }
 0x1f6   :  { %v4126_v22 = vcombine.low %v13191_v36, %v13218_v21  ;;  %2861 = vmatpush2.msra.mxu1 %v2152_v40  ;;  %3419 = vmatprep.subr.mxu0 %v1916_v38  ;;  %v4134_v29 = vrot.slane %v4124_v32, %v12345_v46  ;;  %v2140_v36 = vld [vmem:[#allocation7 + $0x730] sm:$0xff]  ;;  %v2032_v40 = vld [vmem:[#allocation7 + $0x3e8] sm:$0xff]  ;;  %v2137_v20 = vld [vmem:[#allocation7 + $0x718] sm:$0xff] }
 0x1f7   :  { %2862 = vmatprep.subr.mxu1 %v2149_v10  ;;  %3420 = vmatpush1.msra.mxu0 %v1915_v7  ;;  %v13349_v39 = vcombine.low %v4141_v11, %v4155_v9  ;;  %v2031_v32 = vld [vmem:[#allocation7 + $0x3e0] sm:$0xff]  ;;  %v2136_v10 = vld [vmem:[#allocation7 + $0x710] sm:$0xff]  ;;  %v2028_v7 = vld [vmem:[#allocation7 + $0x3c8] sm:$0xff] }
 0x1f8   :  { %v4148_v48 = vrot.slane %v4126_v22, %v12345_v46  ;;  %2863 = vmatpush2.msra.mxu1 %v2148_v28  ;;  %3421 = vmatprep.subr.mxu0 %v1912_v50  ;;  %v2133_v28 = vld [vmem:[#allocation7 + $0x6f8] sm:$0xff]  ;;  %v2027_v50 = vld [vmem:[#allocation7 + $0x3c0] sm:$0xff]  ;;  %v2132_v11 = vld [vmem:[#allocation7 + $0x6f0] sm:$0xff] }
 0x1f9   :  { %2864 = vmatprep.subr.mxu1 %v2145_v14  ;;  %3422 = vmatpush1.msra.mxu0 %v1911_v33  ;;  %v2024_v9 = vld [vmem:[#allocation7 + $0x3a8] sm:$0xff]  ;;  %v2023_v22 = vld [vmem:[#allocation7 + $0x3a0] sm:$0xff]  ;;  %v4864_v33 = vcombine.low %v13284_v34, %v13209_v23 }
 0x1fa   :  { %v13352_v38 = vcombine.high %v4134_v29, %v4148_v48  ;;  %v13354_v27 = vcombine.low %v4134_v29, %v4148_v48  ;;  %2865 = vmatpush2.msra.mxu1 %v2144_v62  ;;  %3423 = vmatprep.subr.mxu0 %v1908_v2  ;;  %v2060_v14 = vld [vmem:[#allocation7 + $0x4c8] sm:$0xff]  ;;  %v2059_v62 = vld [vmem:[#allocation7 + $0x4c0] sm:$0xff]  ;;  %v10980_v2 = vcombine.high %v13209_v23, %v12615_v47 }
 0x1fb   :  { %2866 = vmatprep.subr.mxu1 %v2141_v31  ;;  %3424 = vmatpush1.msra.mxu0 %v1907_v3  ;;  %v2020_v29 = vld [vmem:[#allocation7 + $0x388] sm:$0xff]  ;;  %v2019_v31 = vld [vmem:[#allocation7 + $0x380] sm:$0xff] }
 0x1fc   :  { %17302 = vst [vmem:[#allocation58_spill] sm:$0xff] %v13352_v38  ;;  %17303 = vst [vmem:[#allocation81_spill] sm:$0xff] %v13354_v27  ;;  %2867 = vmatpush2.msra.mxu1 %v2140_v36  ;;  %3425 = vmatprep.subr.mxu0 %v2032_v40  ;;  %v17304_v48 = vld [vmem:[#allocation40_spill] sm:$0xff]  ;;  %v13362_v36 = vrot.slane %v4864_v33, %v12345_v46  ;;  %v17305_v40 = vld [vmem:[#allocation50_spill] sm:$0xff]  ;;  %v4879_v34 = vrot.slane %v10980_v2, %v12345_v46 }
 0x1fd   :  { %2868 = vmatprep.subr.mxu1 %v2137_v20  ;;  %3426 = vmatpush2.msra.mxu0 %v2031_v32  ;;  %v2056_v3 = vld [vmem:[#allocation7 + $0x4a8] sm:$0xff]  ;;  %v2015_v32 = vld [vmem:[#allocation7 + $0x360] sm:$0xff]  ;;  %v17309_v2 = vld [vmem:[#allocation57_spill] sm:$0xff] }
 0x1fe   :  { %2869 = vmatpush2.msra.mxu1 %v2136_v10  ;;  %3427 = vmatprep.subr.mxu0 %v2028_v7  ;;  %v2016_v20 = vld [vmem:[#allocation7 + $0x368] sm:$0xff]  ;;  %v17306_v10 = vld [vmem:[#allocation49_spill] sm:$0xff]  ;;  %v2011_v33 = vld [vmem:[#allocation7 + $0x340] sm:$0xff] }
 0x1ff   :  { %2870 = vmatprep.subr.mxu1 %v2133_v28  ;;  %3428 = vmatpush2.msra.mxu0 %v2027_v50  ;;  %v4881_v47 = vcombine.high %v17306_v10, %v13362_v36  ;;  %v4880_v7 = vcombine.low %v17306_v10, %v13362_v36  ;;  %v2012_v28 = vld [vmem:[#allocation7 + $0x348] sm:$0xff]  ;;  %v2055_v50 = vld [vmem:[#allocation7 + $0x4a0] sm:$0xff] }
 0x200   :  { %2871 = vmatpush2.msra.mxu1 %v2132_v11  ;;  %3429 = vmatprep.subr.mxu0 %v2024_v9  ;;  %v17307_v11 = vld [vmem:[#allocation56_spill] sm:$0xff]  ;;  %v17310_v10 = vld [vmem:[#allocation35_spill] sm:$0xff] }
 0x201   :  { %2873 = vmatmul.mubr.f32.vlgmr.msra.gmra.mxu1 %v17304_v48  ;;  %3430 = vmatpush2.msra.mxu0 %v2023_v22  ;;  %v4882_v9 = vcombine.low %v4879_v34, %v17307_v11  ;;  %v4883_v22 = vcombine.high %v4879_v34, %v17307_v11  ;;  %v2008_v48 = vld [vmem:[#allocation7 + $0x328] sm:$0xff]  ;;  %v2003_v27 = vld [vmem:[#allocation7 + $0x300] sm:$0xff] }
 0x202   :  { %3512 = vmatprep.subr.mxu1 %v2060_v14  ;;  %2878 = vmatprep.mubr.f32.mxu1 %v17305_v40  ;;  %v17308_v14 = vld [vmem:[#allocation51_spill] sm:$0xff] }
 0x203   :  { %3431 = vmatprep.subr.mxu0 %v2020_v29  ;;  %3513 = vmatpush1.msra.mxu1 %v2059_v62  ;;  %v2052_v29 = vld [vmem:[#allocation7 + $0x488] sm:$0xff]  ;;  %v4897_v62 = vrot.slane %v4881_v47, %v12345_v46  ;;  %v4904_v40 = vrot.slane %v4882_v9, %v12345_v46  ;;  %v2051_v47 = vld [vmem:[#allocation7 + $0x480] sm:$0xff] }
 0x204   :  { %3432 = vmatpush2.msra.mxu0 %v2019_v31  ;;  %3514 = vmatprep.subr.mxu1 %v2056_v3  ;;  %v4911_v31 = vrot.slane %v4883_v22, %v12345_v46  ;;  %v4890_v3 = vrot.slane %v4880_v7, %v12345_v46  ;;  %v17311_v34 = vld [vmem:[#allocation27_spill] sm:$0xff] }
 0x205   :  { %3433 = vmatprep.subr.mxu0 %v2016_v20  ;;  %2879 = vmatmul.mubr.f32.gmra.mxu1 %v17308_v14  ;;  %v17312_v20 = vcombine.low %v17310_v10, %v17311_v34  ;;  %v2007_v14 = vld [vmem:[#allocation7 + $0x320] sm:$0xff]  ;;  %v2048_v38 = vld [vmem:[#allocation7 + $0x468] sm:$0xff] }
 0x206   :  { %3434 = vmatpush2.msra.mxu0 %v2015_v32  ;;  %2884 = vmatprep.mubr.f32.mxu1 %v17309_v2  ;;  %v2004_v32 = vld [vmem:[#allocation7 + $0x308] sm:$0xff]  ;;  %v13384_v2 = vcombine.low %v4897_v62, %v4911_v31  ;;  %v13386_v22 = vcombine.high %v4890_v3, %v4904_v40  ;;  %v13388_v7 = vcombine.low %v4890_v3, %v4904_v40 }
 0x207   :  { %v13382_v11 = vrot.slane %v17312_v20, %v12345_v46  ;;  %3435 = vmatprep.subr.mxu0 %v2012_v28  ;;  %3515 = vmatpush1.msra.mxu1 %v2055_v50  ;;  %v17313_v9 = vld [vmem:[#allocation59_spill] sm:$0xff]  ;;  %v17316_v3 = vld [vmem:[#allocation24_spill] sm:$0xff] }
 0x208   :  { %3436 = vmatpush2.msra.mxu0 %v2011_v33  ;;  %3516 = vmatprep.subr.mxu1 %v2052_v29  ;;  %v2000_v28 = vld [vmem:[#allocation7 + $0x2e8] sm:$0xff]  ;;  %v1999_v50 = vld [vmem:[#allocation7 + $0x2e0] sm:$0xff] }
 0x209   :  { %3437 = vmatprep.subr.mxu0 %v2008_v48  ;;  %2885 = vmatmul.mubr.f32.gmra.mxu1 %v17313_v9  ;;  %v2047_v33 = vld [vmem:[#allocation7 + $0x460] sm:$0xff]  ;;  %v1996_v31 = vld [vmem:[#allocation7 + $0x2c8] sm:$0xff] }
 0x20a   :  { %3438 = vmatpush2.msra.mxu0 %v2007_v14  ;;  %3517 = vmatpush1.msra.mxu1 %v2051_v47  ;;  %v17314_v29 = vld [vmem:[#allocation34_spill] sm:$0xff]  ;;  %v13403_v47 = vcombine.low %v13039_v13, %v13042_v12  ;;  %v13419_v12 = vcombine.high %v13076_v42, %v13134_v44  ;;  %v13431_v13 = vcombine.high %v13209_v23, %v13209_v23 }
 0x20b   :  { %2890 = vmatprep.mubr.f32.mxu1 %v12920_v58  ;;  %3439 = vmatprep.subr.mxu0 %v2004_v32  ;;  %v4159_v62 = vcombine.low %v17314_v29, %v13382_v11  ;;  %v17315_v48 = vld [vmem:[#allocation26_spill] sm:$0xff]  ;;  %v2044_v58 = vld [vmem:[#allocation7 + $0x448] sm:$0xff] }
 0x20c   :  { %3440 = vmatpush2.msra.mxu0 %v2003_v27  ;;  %3518 = vmatprep.subr.mxu1 %v2048_v38  ;;  %v17317_v40 = vcombine.low %v17315_v48, %v17316_v3  ;;  %v1995_v14 = vld [vmem:[#allocation7 + $0x2c0] sm:$0xff]  ;;  %v13407_v27 = vcombine.low %v13035_v41, %v13068_v56  ;;  %v1992_v38 = vld [vmem:[#allocation7 + $0x2a8] sm:$0xff]  ;;  %v13423_v56 = vcombine.high %v13382_v11, %v13382_v11 }
 0x20d   :  { %3441 = vmatprep.subr.mxu0 %v2000_v28  ;;  %2891 = vmatmul.mubr.f32.gmra.mxu1 %v12926_v53  ;;  %v2043_v32 = vld [vmem:[#allocation7 + $0x440] sm:$0xff]  ;;  %v13411_v53 = vrot.slane %v4159_v62, %v12345_v46  ;;  %v13415_v28 = vcombine.low %v13045_v6, %v13117_v0  ;;  %v13427_v41 = vcombine.low %v13076_v42, %v13134_v44  ;;  %v1984_v44 = vld [vmem:[#allocation7 + $0x268] sm:$0xff] }
 0x20e   :  { %v13398_v20 = vrot.slane %v17317_v40, %v12345_v46  ;;  %3442 = vmatpush2.msra.mxu0 %v1999_v50  ;;  %3519 = vmatpush1.msra.mxu1 %v2047_v33  ;;  %v1991_v9 = vld [vmem:[#allocation7 + $0x2a0] sm:$0xff]  ;;  %v17318_v6 = vcombine.high %v17310_v10, %v17311_v34  ;;  %v2040_v33 = vld [vmem:[#allocation7 + $0x428] sm:$0xff]  ;;  %v13443_v42 = vcombine.low %v13148_v52, %v13223_v24 }
 0x20f   :  { %2896 = vmatprep.mubr.f32.mxu1 %v12976_v26  ;;  %3443 = vmatprep.subr.mxu0 %v1996_v31  ;;  %v1988_v26 = vld [vmem:[#allocation7 + $0x288] sm:$0xff]  ;;  %v1987_v50 = vld [vmem:[#allocation7 + $0x280] sm:$0xff]  ;;  %v5638_v10 = vcombine.low %v13209_v23, %v13431_v13  ;;  %v13450_v34 = vcombine.high %v13167_v25, %v13229_v63  ;;  %v13454_v31 = vcombine.low %v13167_v25, %v13229_v63  ;;  %v2053_v63 = vld [vmem:[#allocation7 + $0x490] sm:$0xff] }
 0x210   :  { %3444 = vmatpush2.msra.mxu0 %v1995_v14  ;;  %3520 = vmatprep.subr.mxu1 %v2044_v58  ;;  %v13437_v0 = vrot.slane %v17318_v6, %v12345_v46  ;;  %v5639_v29 = vcombine.low %v13398_v20, %v12571_v35  ;;  %v2039_v62 = vld [vmem:[#allocation7 + $0x420] sm:$0xff]  ;;  %v5693_v24 = vcombine.high %v13218_v21, %v13411_v53  ;;  %v1980_v48 = vld [vmem:[#allocation7 + $0x248] sm:$0xff] }
 0x211   :  { %3445 = vmatprep.subr.mxu0 %v1992_v38  ;;  %3521 = vmatpush1.msra.mxu1 %v2043_v32  ;;  %17319 = vst [vmem:[#allocation40_spill] sm:$0xff] %v13454_v31  ;;  %v1983_v52 = vld [vmem:[#allocation7 + $0x260] sm:$0xff]  ;;  %v5692_v23 = vcombine.low %v13218_v21, %v13411_v53  ;;  %v2036_v3 = vld [vmem:[#allocation7 + $0x408] sm:$0xff]  ;;  %v5646_v40 = vrot.slane %v5638_v10, %v12345_v46  ;;  %v1917_v31 = vld [vmem:[#allocation7 + $0x50] sm:$0xff] }
 0x212   :  { %2897 = vmatmul.mubr.f32.gmra.mxu1 %v12984_v37  ;;  %3446 = vmatpush2.msra.mxu0 %v1991_v9  ;;  %v5653_v37 = vrot.slane %v5639_v29, %v12345_v46  ;;  %v2035_v25 = vld [vmem:[#allocation7 + $0x400] sm:$0xff]  ;;  %v5707_v38 = vrot.slane %v5693_v24, %v12345_v46  ;;  %v1976_v32 = vld [vmem:[#allocation7 + $0x228] sm:$0xff] }
 0x213   :  { %2902 = vmatprep.mubr.f32.mxu1 %v12942_v57  ;;  %3447 = vmatprep.subr.mxu0 %v1988_v26  ;;  %v1979_v57 = vld [vmem:[#allocation7 + $0x240] sm:$0xff]  ;;  %v5654_v9 = vcombine.low %v13307_v30, %v5646_v40  ;;  %v5655_v26 = vcombine.high %v13307_v30, %v5646_v40  ;;  %v5700_v6 = vrot.slane %v5692_v23, %v12345_v46 }
 0x214   :  { %3448 = vmatpush2.msra.mxu0 %v1987_v50  ;;  %3522 = vmatprep.subr.mxu1 %v2040_v33  ;;  %v5656_v14 = vcombine.low %v5653_v37, %v17282_v45  ;;  %v5657_v58 = vcombine.high %v5653_v37, %v17282_v45  ;;  %v1970_v50 = vld [vmem:[#allocation7 + $0x1f8] sm:$0xff]  ;;  %v1975_v33 = vld [vmem:[#allocation7 + $0x220] sm:$0xff] }
 0x215   :  { %3449 = vmatprep.subr.mxu0 %v1984_v44  ;;  %3523 = vmatpush1.msra.mxu1 %v2039_v62  ;;  %v13475_v44 = vcombine.low %v13226_v55, %v5707_v38  ;;  %v5671_v62 = vrot.slane %v5655_v26, %v12345_v46  ;;  %v5664_v30 = vrot.slane %v5654_v9, %v12345_v46  ;;  %v1971_v37 = vld [vmem:[#allocation7 + $0x200] sm:$0xff]  ;;  %v1966_v55 = vld [vmem:[#allocation7 + $0x1d8] sm:$0xff]  ;;  %v17325_v26 = vld [vmem:[#allocation72_spill] sm:$0xff] }
 0x216   :  { %2903 = vmatmul.mubr.f32.gmra.mxu1 %v12946_v54  ;;  %3450 = vmatpush2.msra.mxu0 %v1983_v52  ;;  %v5685_v29 = vrot.slane %v5657_v58, %v12345_v46  ;;  %v5678_v45 = vrot.slane %v5656_v14, %v12345_v46  ;;  %v1972_v54 = vld [vmem:[#allocation7 + $0x208] sm:$0xff]  ;;  %v13480_v10 = vcombine.high %v13232_v19, %v5700_v6  ;;  %v1969_v52 = vld [vmem:[#allocation7 + $0x1f0] sm:$0xff]  ;;  %v17323_v40 = vld [vmem:[#allocation70_spill] sm:$0xff] }
 0x217   :  { %3451 = vmatprep.subr.mxu0 %v1980_v48  ;;  %3524 = vmatprep.subr.mxu1 %v2036_v3  ;;  %17320 = vst [vmem:[#allocation50_spill] sm:$0xff] %v13475_v44  ;;  %v13484_v24 = vcombine.low %v13232_v19, %v5700_v6  ;;  %v6352_v19 = vcombine.low %v13431_v13, %v13398_v20  ;;  %v17324_v14 = vld [vmem:[#allocation71_spill] sm:$0xff]  ;;  %v2062_v58 = vld [vmem:[#allocation7 + $0x4d8] sm:$0xff]  ;;  %v2037_v44 = vld [vmem:[#allocation7 + $0x410] sm:$0xff] }
 0x218   :  { %3452 = vmatpush2.msra.mxu0 %v1979_v57  ;;  %3525 = vmatpush1.msra.mxu1 %v2035_v25  ;;  %17321 = vst [vmem:[#allocation49_spill] sm:$0xff] %v13480_v10  ;;  %v13486_v23 = vcombine.low %v5671_v62, %v5685_v29  ;;  %v13488_v48 = vcombine.high %v5664_v30, %v5678_v45  ;;  %v1965_v57 = vld [vmem:[#allocation7 + $0x1d0] sm:$0xff]  ;;  %v1962_v25 = vld [vmem:[#allocation7 + $0x1b8] sm:$0xff] }
 0x219   :  { %3453 = vmatprep.subr.mxu0 %v1976_v32  ;;  %3558 = vmatprep.mubr.f32.mxu1 %v17230_v49  ;;  %17322 = vst [vmem:[#allocation56_spill] sm:$0xff] %v13484_v24  ;;  %v13490_v3 = vcombine.low %v5664_v30, %v5678_v45  ;;  %v11005_v38 = vcombine.high %v13398_v20, %v12571_v35  ;;  %v1961_v32 = vld [vmem:[#allocation7 + $0x1b0] sm:$0xff]  ;;  %v1958_v6 = vld [vmem:[#allocation7 + $0x198] sm:$0xff]  ;;  %v17327_v20 = vld [vmem:[#allocation75_spill] sm:$0xff] }
 0x21a   :  { %3595 = vmatprep.subr.mxu1 %v1970_v50  ;;  %3454 = vmatpush2.msra.mxu0 %v1975_v33  ;;  %v6360_v9 = vrot.slane %v6352_v19, %v12345_v46  ;;  %v17326_v13 = vld [vmem:[#allocation74_spill] sm:$0xff]  ;;  %v1957_v33 = vld [vmem:[#allocation7 + $0x190] sm:$0xff] }
 0x21b   :  { %10956 = vmatmul.mubr.msk.f32.vlgmr.msra.gmra.mxu1 %vm2593_vm10, %v17323_v40  ;;  %3455 = vmatprep.subr.mxu0 %v1972_v54  ;;  %v6367_v50 = vrot.slane %v11005_v38, %v12345_v46  ;;  %v1954_v45 = vld [vmem:[#allocation7 + $0x178] sm:$0xff]  ;;  %v1949_v38 = vld [vmem:[#allocation7 + $0x150] sm:$0xff] }
 0x21c   :  { %3596 = vmatpush1.msra.mxu1 %v1969_v52  ;;  %3456 = vmatpush2.msra.mxu0 %v1971_v37  ;;  %v6368_v29 = vcombine.low %v13362_v36, %v6360_v9  ;;  %v6369_v35 = vcombine.high %v13362_v36, %v6360_v9  ;;  %v17328_v54 = vld [vmem:[#allocation33_spill] sm:$0xff] }
 0x21d   :  { %3597 = vmatprep.subr.mxu1 %v1966_v55  ;;  %3458 = vmatmul.mubr.f32.vlgmr.msra.gmra.mxu0 %v17324_v14  ;;  %v6370_v62 = vcombine.low %v6367_v50, %v17328_v54  ;;  %v6371_v30 = vcombine.high %v6367_v50, %v17328_v54  ;;  %v1953_v52 = vld [vmem:[#allocation7 + $0x170] sm:$0xff]  ;;  %v1946_v9 = vld [vmem:[#allocation7 + $0x138] sm:$0xff] }
 0x21e   :  { %3598 = vmatpush1.msra.mxu1 %v1965_v57  ;;  %3564 = vmatprep.mubr.f32.mxu1 %v17230_v49  ;;  %v6385_v37 = vrot.slane %v6369_v35, %v12345_v46  ;;  %v17329_v55 = vld [vmem:[#allocation28_spill] sm:$0xff]  ;;  %v1950_v57 = vld [vmem:[#allocation7 + $0x158] sm:$0xff] }
 0x21f   :  { %3599 = vmatprep.subr.mxu1 %v1962_v25  ;;  %3463 = vmatprep.mubr.f32.mxu0 %v17325_v26  ;;  %v6399_v36 = vrot.slane %v6371_v30, %v12345_v46  ;;  %v6378_v25 = vrot.slane %v6368_v29, %v12345_v46  ;;  %v6392_v19 = vrot.slane %v6370_v62, %v12345_v46  ;;  %v1945_v29 = vld [vmem:[#allocation7 + $0x130] sm:$0xff]  ;;  %v1942_v62 = vld [vmem:[#allocation7 + $0x118] sm:$0xff] }
 0x220   :  { %10957 = vmatmul.mubr.msk.f32.gmra.mxu1 %vm2593_vm10, %v17326_v13  ;;  %3714 = vmatprep.subr.mxu0 %v2062_v58  ;;  %v17330_v58 = vld [vmem:[#allocation76_spill] sm:$0xff]  ;;  %v2058_v30 = vld [vmem:[#allocation7 + $0x4b8] sm:$0xff] }
 0x221   :  { %3600 = vmatpush1.msra.mxu1 %v1961_v32  ;;  %3464 = vmatmul.mubr.f32.gmra.mxu0 %v17327_v20  ;;  %v17331_v32 = vld [vmem:[#allocation77_spill] sm:$0xff]  ;;  %v13521_v50 = vcombine.high %v6378_v25, %v6392_v19 }
 0x222   :  { %3601 = vmatprep.subr.mxu1 %v1958_v6  ;;  %3570 = vmatprep.mubr.f32.mxu1 %v17230_v49  ;;  %v13519_v6 = vcombine.low %v6385_v37, %v6399_v36  ;;  %v2061_v35 = vld [vmem:[#allocation7 + $0x4d0] sm:$0xff]  ;;  %v1938_v36 = vld [vmem:[#allocation7 + $0xf8] sm:$0xff] }
 0x223   :  { %3602 = vmatpush1.msra.mxu1 %v1957_v33  ;;  %3469 = vmatprep.mubr.f32.mxu0 %v17329_v55  ;;  %17333 = vst [vmem:[#allocation57_spill] sm:$0xff] %v13521_v50  ;;  %v13523_v33 = vcombine.low %v6378_v25, %v6392_v19  ;;  %v1941_v37 = vld [vmem:[#allocation7 + $0x110] sm:$0xff]  ;;  %v2054_v19 = vld [vmem:[#allocation7 + $0x498] sm:$0xff] }
 0x224   :  { %3603 = vmatprep.subr.mxu1 %v1954_v45  ;;  %10958 = vmatmul.mubr.msk.f32.gmra.mxu1 %vm2593_vm10, %v17330_v58  ;;  %17332 = vst [vmem:[#allocation51_spill] sm:$0xff] %v13519_v6  ;;  %v17335_v45 = vld [vmem:[#allocation78_spill] sm:$0xff]  ;;  %v17337_v25 = vld [vmem:[#allocation80_spill] sm:$0xff] }
 0x225   :  { %3604 = vmatpush1.msra.mxu1 %v1953_v52  ;;  %3470 = vmatmul.mubr.f32.gmra.mxu0 %v17331_v32  ;;  %17334 = vst [vmem:[#allocation35_spill] sm:$0xff] %v13523_v33  ;;  %v17336_v52 = vld [vmem:[#allocation79_spill] sm:$0xff]  ;;  %v1934_v33 = vld [vmem:[#allocation7 + $0xd8] sm:$0xff] }
 0x226   :  { %3605 = vmatprep.subr.mxu1 %v1950_v57  ;;  %3576 = vmatprep.mubr.f32.mxu1 %v17230_v49  ;;  %v2057_v57 = vld [vmem:[#allocation7 + $0x4b0] sm:$0xff]  ;;  %v2050_v50 = vld [vmem:[#allocation7 + $0x478] sm:$0xff] }
 0x227   :  { %3606 = vmatpush1.msra.mxu1 %v1949_v38  ;;  %3475 = vmatprep.mubr.f32.mxu0 %v17335_v45  ;;  %v1937_v38 = vld [vmem:[#allocation7 + $0xf0] sm:$0xff]  ;;  %v2046_v24 = vld [vmem:[#allocation7 + $0x458] sm:$0xff] }
 0x228   :  { %3607 = vmatprep.subr.mxu1 %v1946_v9  ;;  %10959 = vmatmul.mubr.msk.f32.gmra.mxu1 %vm2593_vm10, %v17336_v52  ;;  %v17338_v9 = vld [vmem:[#allocation25_spill] sm:$0xff] }
 0x229   :  { %3608 = vmatpush1.msra.mxu1 %v1945_v29  ;;  %3715 = vmatpush1.msra.mxu0 %v2061_v35  ;;  %v3353_v29 = vcombine.high %v13218_v21, %v13218_v21  ;;  %v17339_v35 = vld [vmem:[#allocation23_spill] sm:$0xff]  ;;  %v1918_v10 = vld [vmem:[#allocation7 + $0x58] sm:$0xff] }
 0x22a   :  { %3609 = vmatprep.subr.mxu1 %v1942_v62  ;;  %3716 = vmatprep.subr.mxu0 %v2058_v30  ;;  %v1933_v62 = vld [vmem:[#allocation7 + $0xd0] sm:$0xff]  ;;  %v13538_v30 = vrot.slane %v13218_v21, %v12345_v46 }
 0x22b   :  { %3610 = vmatpush1.msra.mxu1 %v1941_v37  ;;  %3476 = vmatmul.mubr.f32.gmra.mxu0 %v17337_v25  ;;  %v1930_v37 = vld [vmem:[#allocation7 + $0xb8] sm:$0xff]  ;;  %v13542_v6 = vrot.slane %v3353_v29, %v12345_v46 }
 0x22c   :  { %3582 = vmatprep.mubr.f32.mxu1 %v17230_v49  ;;  %3611 = vmatprep.subr.mxu1 %v1938_v36  ;;  %v2049_v36 = vld [vmem:[#allocation7 + $0x470] sm:$0xff]  ;;  %v13547_v21 = vcombine.high %v13538_v30, %v13538_v30  ;;  %v1922_v29 = vld [vmem:[#allocation7 + $0x78] sm:$0xff] }
 0x22d   :  { %3717 = vmatpush1.msra.mxu0 %v2057_v57  ;;  %3481 = vmatprep.mubr.f32.mxu0 %v17338_v9  ;;  %v17340_v57 = vld [vmem:[#allocation30_spill] sm:$0xff] }
 0x22e   :  { %10960 = vmatmul.mubr.msk.f32.gmra.mxu1 %vm2593_vm10, %v17339_v35  ;;  %3718 = vmatprep.subr.mxu0 %v2054_v19  ;;  %v1929_v19 = vld [vmem:[#allocation7 + $0xb0] sm:$0xff] }
 0x22f   :  { %3612 = vmatpush1.msra.mxu1 %v1937_v38  ;;  %3719 = vmatpush1.msra.mxu0 %v2053_v63  ;;  %v1926_v63 = vld [vmem:[#allocation7 + $0x98] sm:$0xff] }
 0x230   :  { %3613 = vmatprep.subr.mxu1 %v1934_v33  ;;  %3720 = vmatprep.subr.mxu0 %v2050_v50  ;;  %v2045_v50 = vld [vmem:[#allocation7 + $0x450] sm:$0xff]  ;;  %v2042_v38 = vld [vmem:[#allocation7 + $0x438] sm:$0xff] }
 0x231   :  { %3614 = vmatpush1.msra.mxu1 %v1933_v62  ;;  %3482 = vmatmul.mubr.f32.gmra.mxu0 %v17340_v57  ;;  %v1925_v33 = vld [vmem:[#allocation7 + $0x90] sm:$0xff] }
 0x232   :  { %3588 = vmatprep.mubr.f32.mxu1 %v17230_v49  ;;  %3615 = vmatprep.subr.mxu1 %v1930_v37  ;;  %v2041_v62 = vld [vmem:[#allocation7 + $0x430] sm:$0xff] }
 0x233   :  { %3721 = vmatpush1.msra.mxu0 %v2049_v36  ;;  %3487 = vmatprep.mubr.f32.mxu0 %v13542_v6  ;;  %v1921_v37 = vld [vmem:[#allocation7 + $0x70] sm:$0xff]  ;;  %v2038_v36 = vld [vmem:[#allocation7 + $0x418] sm:$0xff] }
 0x234   :  { %10961 = vmatmul.mubr.msk.f32.gmra.mxu1 %vm2593_vm10, %v13547_v21  ;;  %3722 = vmatprep.subr.mxu0 %v2046_v24  ;;  %v3873_v24 = vld [vmem:[#allocation7 + $0xba8] sm:$0xff] }
 0x235   :  { %3616 = vmatpush1.msra.mxu1 %v1929_v19  ;;  %3659 = vmatprep.mubr.f32.mxu1 %v13058_v5  ;;  %v1914_v5 = vld [vmem:[#allocation7 + $0x38] sm:$0xff]  ;;  %v3872_v19 = vld [vmem:[#allocation7 + $0xba0] sm:$0xff] }
 0x236   :  { %3617 = vmatprep.subr.mxu1 %v1926_v63  ;;  %3723 = vmatpush1.msra.mxu0 %v2045_v50  ;;  %v1913_v63 = vld [vmem:[#allocation7 + $0x30] sm:$0xff]  ;;  %v3869_v50 = vld [vmem:[#allocation7 + $0xb88] sm:$0xff] }
 0x237   :  { %3618 = vmatpush1.msra.mxu1 %v1925_v33  ;;  %3724 = vmatprep.subr.mxu0 %v2042_v38  ;;  %v1910_v33 = vld [vmem:[#allocation7 + $0x18] sm:$0xff]  ;;  %v3868_v38 = vld [vmem:[#allocation7 + $0xb80] sm:$0xff] }
 0x238   :  { %3488 = vmatmul.mubr.f32.gmra.mxu0 %v13538_v30  ;;  %3619 = vmatprep.subr.mxu1 %v1922_v29  ;;  %v1909_v29 = vld [vmem:[#allocation7 + $0x10] sm:$0xff] }
 0x239   :  { %3725 = vmatpush1.msra.mxu0 %v2041_v62  ;;  %3620 = vmatpush1.msra.mxu1 %v1921_v37  ;;  %v3865_v62 = vld [vmem:[#allocation7 + $0xb68] sm:$0xff] }
 0x23a   :  { %3726 = vmatprep.subr.mxu0 %v2038_v36  ;;  %3621 = vmatprep.subr.mxu1 %v1918_v10  ;;  %v2033_v10 = vld [vmem:[#allocation7 + $0x3f0] sm:$0xff]  ;;  %v3861_v37 = vld [vmem:[#allocation7 + $0xb48] sm:$0xff]  ;;  %v2030_v36 = vld [vmem:[#allocation7 + $0x3d8] sm:$0xff] }
 0x23b   :  { %3727 = vmatpush1.msra.mxu0 %v2037_v44  ;;  %3622 = vmatpush1.msra.mxu1 %v1917_v31  ;;  %v2034_v44 = vld [vmem:[#allocation7 + $0x3f8] sm:$0xff]  ;;  %v3864_v31 = vld [vmem:[#allocation7 + $0xb60] sm:$0xff] }
 0x23c   :  { %3760 = vmatprep.mubr.f32.mxu0 %v17230_v49  ;;  %4207 = vmatprep.subr.mxu0 %v3873_v24  ;;  %v2029_v24 = vld [vmem:[#allocation7 + $0x3d0] sm:$0xff] }
 0x23d   :  { %3623 = vmatprep.subr.mxu1 %v1914_v5  ;;  %10962 = vmatmul.mubr.msk.f32.vlgmr.msra.gmra.mxu0 %vm2593_vm10, %v17323_v40  ;;  %v3860_v40 = vld [vmem:[#allocation7 + $0xb40] sm:$0xff]  ;;  %v3857_v5 = vld [vmem:[#allocation7 + $0xb28] sm:$0xff] }
 0x23e   :  { %4208 = vmatpush1.msra.mxu0 %v3872_v19  ;;  %3624 = vmatpush1.msra.mxu1 %v1913_v63  ;;  %v2026_v19 = vld [vmem:[#allocation7 + $0x3b8] sm:$0xff]  ;;  %v3856_v63 = vld [vmem:[#allocation7 + $0xb20] sm:$0xff] }
 0x23f   :  { %4209 = vmatprep.subr.mxu0 %v3869_v50  ;;  %3625 = vmatprep.subr.mxu1 %v1910_v33  ;;  %v2025_v50 = vld [vmem:[#allocation7 + $0x3b0] sm:$0xff]  ;;  %v3853_v33 = vld [vmem:[#allocation7 + $0xb08] sm:$0xff] }
 0x240   :  { %4210 = vmatpush1.msra.mxu0 %v3868_v38  ;;  %3626 = vmatpush1.msra.mxu1 %v1909_v29  ;;  %v2022_v38 = vld [vmem:[#allocation7 + $0x398] sm:$0xff]  ;;  %v2021_v29 = vld [vmem:[#allocation7 + $0x390] sm:$0xff] }
 0x241   :  { %3766 = vmatprep.mubr.f32.mxu0 %v17230_v49  ;;  %4211 = vmatprep.subr.mxu0 %v3865_v62  ;;  %v3849_v62 = vld [vmem:[#allocation7 + $0xae8] sm:$0xff] }
 0x242   :  { %3627 = vmatprep.subr.mxu1 %v2034_v44  ;;  %10963 = vmatmul.mubr.msk.f32.gmra.mxu0 %vm2593_vm10, %v17326_v13  ;;  %v3852_v13 = vld [vmem:[#allocation7 + $0xb00] sm:$0xff]  ;;  %v2018_v44 = vld [vmem:[#allocation7 + $0x378] sm:$0xff] }
 0x243   :  { %4212 = vmatpush1.msra.mxu0 %v3864_v31  ;;  %3628 = vmatpush2.msra.mxu1 %v2033_v10  ;;  %v3848_v31 = vld [vmem:[#allocation7 + $0xae0] sm:$0xff]  ;;  %v2017_v10 = vld [vmem:[#allocation7 + $0x370] sm:$0xff] }
 0x244   :  { %4213 = vmatprep.subr.mxu0 %v3861_v37  ;;  %3629 = vmatprep.subr.mxu1 %v2030_v36  ;;  %v3845_v37 = vld [vmem:[#allocation7 + $0xac8] sm:$0xff]  ;;  %v2014_v36 = vld [vmem:[#allocation7 + $0x358] sm:$0xff] }
 0x245   :  { %4214 = vmatpush1.msra.mxu0 %v3860_v40  ;;  %3630 = vmatpush2.msra.mxu1 %v2029_v24  ;;  %v2013_v40 = vld [vmem:[#allocation7 + $0x350] sm:$0xff]  ;;  %v3841_v24 = vld [vmem:[#allocation7 + $0xaa8] sm:$0xff] }
 0x246   :  { %3772 = vmatprep.mubr.f32.mxu0 %v17230_v49  ;;  %4215 = vmatprep.subr.mxu0 %v3857_v5  ;;  %v2010_v5 = vld [vmem:[#allocation7 + $0x338] sm:$0xff] }
 0x247   :  { %3631 = vmatprep.subr.mxu1 %v2026_v19  ;;  %10964 = vmatmul.mubr.msk.f32.gmra.mxu0 %vm2593_vm10, %v17330_v58  ;;  %v3844_v58 = vld [vmem:[#allocation7 + $0xac0] sm:$0xff] }
 0x248   :  { %4216 = vmatpush1.msra.mxu0 %v3856_v63  ;;  %3632 = vmatpush2.msra.mxu1 %v2025_v50  ;;  %v3840_v19 = vld [vmem:[#allocation7 + $0xaa0] sm:$0xff]  ;;  %v2009_v63 = vld [vmem:[#allocation7 + $0x330] sm:$0xff]  ;;  %v3837_v50 = vld [vmem:[#allocation7 + $0xa88] sm:$0xff] }
 0x249   :  { %4217 = vmatprep.subr.mxu0 %v3853_v33  ;;  %3633 = vmatprep.subr.mxu1 %v2022_v38  ;;  %v2006_v33 = vld [vmem:[#allocation7 + $0x318] sm:$0xff]  ;;  %v2005_v38 = vld [vmem:[#allocation7 + $0x310] sm:$0xff] }
 0x24a   :  { %4218 = vmatpush1.msra.mxu0 %v3852_v13  ;;  %3634 = vmatpush2.msra.mxu1 %v2021_v29  ;;  %v3833_v13 = vld [vmem:[#allocation7 + $0xa68] sm:$0xff]  ;;  %v2002_v29 = vld [vmem:[#allocation7 + $0x2f8] sm:$0xff] }
 0x24b   :  { %3778 = vmatprep.mubr.f32.mxu0 %v17230_v49  ;;  %4219 = vmatprep.subr.mxu0 %v3849_v62  ;;  %v3832_v62 = vld [vmem:[#allocation7 + $0xa60] sm:$0xff] }
 0x24c   :  { %3635 = vmatprep.subr.mxu1 %v2018_v44  ;;  %10965 = vmatmul.mubr.msk.f32.gmra.mxu0 %vm2593_vm10, %v17336_v52  ;;  %v3836_v52 = vld [vmem:[#allocation7 + $0xa80] sm:$0xff]  ;;  %v2001_v44 = vld [vmem:[#allocation7 + $0x2f0] sm:$0xff] }
 0x24d   :  { %4220 = vmatpush1.msra.mxu0 %v3848_v31  ;;  %3636 = vmatpush2.msra.mxu1 %v2017_v10  ;;  %v3829_v31 = vld [vmem:[#allocation7 + $0xa48] sm:$0xff]  ;;  %v3828_v10 = vld [vmem:[#allocation7 + $0xa40] sm:$0xff] }
 0x24e   :  { %4221 = vmatprep.subr.mxu0 %v3845_v37  ;;  %3637 = vmatprep.subr.mxu1 %v2014_v36  ;;  %v1997_v37 = vld [vmem:[#allocation7 + $0x2d0] sm:$0xff]  ;;  %v3825_v36 = vld [vmem:[#allocation7 + $0xa28] sm:$0xff] }
 0x24f   :  { %4222 = vmatpush1.msra.mxu0 %v3844_v58  ;;  %3638 = vmatpush2.msra.mxu1 %v2013_v40  ;;  %v1994_v58 = vld [vmem:[#allocation7 + $0x2b8] sm:$0xff]  ;;  %v3824_v40 = vld [vmem:[#allocation7 + $0xa20] sm:$0xff] }
 0x250   :  { %3784 = vmatprep.mubr.f32.mxu0 %v17230_v49  ;;  %4223 = vmatprep.subr.mxu0 %v3841_v24  ;;  %v1993_v24 = vld [vmem:[#allocation7 + $0x2b0] sm:$0xff] }
 0x251   :  { %3639 = vmatprep.subr.mxu1 %v2010_v5  ;;  %10966 = vmatmul.mubr.msk.f32.gmra.mxu0 %vm2593_vm10, %v17339_v35  ;;  %v1998_v35 = vld [vmem:[#allocation7 + $0x2d8] sm:$0xff]  ;;  %v3821_v5 = vld [vmem:[#allocation7 + $0xa08] sm:$0xff] }
 0x252   :  { %4224 = vmatpush1.msra.mxu0 %v3840_v19  ;;  %3640 = vmatpush2.msra.mxu1 %v2009_v63  ;;  %v1990_v19 = vld [vmem:[#allocation7 + $0x298] sm:$0xff]  ;;  %v3820_v63 = vld [vmem:[#allocation7 + $0xa00] sm:$0xff] }
 0x253   :  { %4225 = vmatprep.subr.mxu0 %v3837_v50  ;;  %3641 = vmatprep.subr.mxu1 %v2006_v33  ;;  %v3817_v50 = vld [vmem:[#allocation7 + $0x9e8] sm:$0xff]  ;;  %v1986_v33 = vld [vmem:[#allocation7 + $0x278] sm:$0xff] }
 0x254   :  { %4226 = vmatpush1.msra.mxu0 %v3836_v52  ;;  %3642 = vmatpush2.msra.mxu1 %v2005_v38  ;;  %v3816_v52 = vld [vmem:[#allocation7 + $0x9e0] sm:$0xff]  ;;  %v1985_v38 = vld [vmem:[#allocation7 + $0x270] sm:$0xff] }
 0x255   :  { %3790 = vmatprep.mubr.f32.mxu0 %v17230_v49  ;;  %4227 = vmatprep.subr.mxu0 %v3833_v13  ;;  %v3813_v13 = vld [vmem:[#allocation7 + $0x9c8] sm:$0xff] }
 0x256   :  { %3643 = vmatprep.subr.mxu1 %v2002_v29  ;;  %10967 = vmatmul.mubr.msk.f32.gmra.mxu0 %vm2593_vm10, %v13547_v21  ;;  %v1989_v21 = vld [vmem:[#allocation7 + $0x290] sm:$0xff]  ;;  %v1982_v29 = vld [vmem:[#allocation7 + $0x258] sm:$0xff] }
 0x257   :  { %4228 = vmatpush1.msra.mxu0 %v3832_v62  ;;  %3644 = vmatpush2.msra.mxu1 %v2001_v44  ;;  %v3812_v62 = vld [vmem:[#allocation7 + $0x9c0] sm:$0xff]  ;;  %v1981_v44 = vld [vmem:[#allocation7 + $0x250] sm:$0xff] }
 0x258   :  { %4229 = vmatprep.subr.mxu0 %v3829_v31  ;;  %4271 = vmatprep.mubr.f32.mxu0 %v13266_v8  ;;  %v3937_v31 = vld [vmem:[#allocation7 + $0xda8] sm:$0xff] }
 0x259   :  { %3645 = vmatprep.subr.mxu1 %v1998_v35  ;;  %4230 = vmatpush1.msra.mxu0 %v3828_v10  ;;  %v1978_v35 = vld [vmem:[#allocation7 + $0x238] sm:$0xff]  ;;  %v3936_v10 = vld [vmem:[#allocation7 + $0xda0] sm:$0xff] }
 0x25a   :  { %3646 = vmatpush2.msra.mxu1 %v1997_v37  ;;  %4231 = vmatprep.subr.mxu0 %v3825_v36  ;;  %v1977_v37 = vld [vmem:[#allocation7 + $0x230] sm:$0xff]  ;;  %v3933_v36 = vld [vmem:[#allocation7 + $0xd88] sm:$0xff] }
 0x25b   :  { %3647 = vmatprep.subr.mxu1 %v1994_v58  ;;  %4232 = vmatpush1.msra.mxu0 %v3824_v40  ;;  %v1974_v58 = vld [vmem:[#allocation7 + $0x218] sm:$0xff]  ;;  %v3932_v40 = vld [vmem:[#allocation7 + $0xd80] sm:$0xff] }
 0x25c   :  { %3648 = vmatpush2.msra.mxu1 %v1993_v24  ;;  %4233 = vmatprep.subr.mxu0 %v3821_v5  ;;  %v1973_v24 = vld [vmem:[#allocation7 + $0x210] sm:$0xff]  ;;  %v3929_v5 = vld [vmem:[#allocation7 + $0xd68] sm:$0xff] }
 0x25d   :  { %3649 = vmatprep.subr.mxu1 %v1990_v19  ;;  %4234 = vmatpush1.msra.mxu0 %v3820_v63  ;;  %v3928_v19 = vld [vmem:[#allocation7 + $0xd60] sm:$0xff]  ;;  %v3965_v63 = vld [vmem:[#allocation7 + $0xe88] sm:$0xff] }
 0x25e   :  { %3650 = vmatpush2.msra.mxu1 %v1989_v21  ;;  %4235 = vmatprep.subr.mxu0 %v3817_v50  ;;  %v3925_v21 = vld [vmem:[#allocation7 + $0xd48] sm:$0xff]  ;;  %v3964_v50 = vld [vmem:[#allocation7 + $0xe80] sm:$0xff] }
 0x25f   :  { %3651 = vmatprep.subr.mxu1 %v1986_v33  ;;  %4236 = vmatpush1.msra.mxu0 %v3816_v52  ;;  %v3924_v33 = vld [vmem:[#allocation7 + $0xd40] sm:$0xff]  ;;  %v3961_v52 = vld [vmem:[#allocation7 + $0xe68] sm:$0xff] }
 0x260   :  { %3652 = vmatpush2.msra.mxu1 %v1985_v38  ;;  %4237 = vmatprep.subr.mxu0 %v3813_v13  ;;  %v3921_v38 = vld [vmem:[#allocation7 + $0xd28] sm:$0xff]  ;;  %v3920_v13 = vld [vmem:[#allocation7 + $0xd20] sm:$0xff] }
 0x261   :  { %3653 = vmatprep.subr.mxu1 %v1982_v29  ;;  %4238 = vmatpush1.msra.mxu0 %v3812_v62  ;;  %v3917_v29 = vld [vmem:[#allocation7 + $0xd08] sm:$0xff]  ;;  %v3960_v62 = vld [vmem:[#allocation7 + $0xe60] sm:$0xff] }
 0x262   :  { %3654 = vmatpush2.msra.mxu1 %v1981_v44  ;;  %4239 = vmatprep.subr.mxu0 %v3937_v31  ;;  %v3916_v44 = vld [vmem:[#allocation7 + $0xd00] sm:$0xff]  ;;  %v3957_v31 = vld [vmem:[#allocation7 + $0xe48] sm:$0xff] }
 0x263   :  { %3655 = vmatprep.subr.mxu1 %v1978_v35  ;;  %4240 = vmatpush2.msra.mxu0 %v3936_v10  ;;  %v3956_v35 = vld [vmem:[#allocation7 + $0xe40] sm:$0xff]  ;;  %v3909_v10 = vld [vmem:[#allocation7 + $0xcc8] sm:$0xff] }
 0x264   :  { %3656 = vmatpush2.msra.mxu1 %v1977_v37  ;;  %4241 = vmatprep.subr.mxu0 %v3933_v36  ;;  %v3908_v37 = vld [vmem:[#allocation7 + $0xcc0] sm:$0xff]  ;;  %v3953_v36 = vld [vmem:[#allocation7 + $0xe28] sm:$0xff] }
 0x265   :  { %3657 = vmatprep.subr.mxu1 %v1974_v58  ;;  %4242 = vmatpush2.msra.mxu0 %v3932_v40  ;;  %v3952_v58 = vld [vmem:[#allocation7 + $0xe20] sm:$0xff]  ;;  %v3901_v40 = vld [vmem:[#allocation7 + $0xc88] sm:$0xff] }
 0x266   :  { %3658 = vmatpush2.msra.mxu1 %v1973_v24  ;;  %4243 = vmatprep.subr.mxu0 %v3929_v5  ;;  %v3900_v24 = vld [vmem:[#allocation7 + $0xc80] sm:$0xff]  ;;  %v3949_v5 = vld [vmem:[#allocation7 + $0xe08] sm:$0xff] }
 0x267   :  { %3660 = vmatmul.mubr.f32.vlgmr.msra.gmra.mxu1 %v17324_v14  ;;  %4244 = vmatpush2.msra.mxu0 %v3928_v19  ;;  %v3913_v14 = vld [vmem:[#allocation7 + $0xce8] sm:$0xff]  ;;  %v3948_v19 = vld [vmem:[#allocation7 + $0xe00] sm:$0xff] }
 0x268   :  { %4326 = vmatprep.subr.mxu1 %v3965_v63  ;;  %3665 = vmatprep.mubr.f32.mxu1 %v17325_v26  ;;  %v3912_v26 = vld [vmem:[#allocation7 + $0xce0] sm:$0xff] }
 0x269   :  { %4245 = vmatprep.subr.mxu0 %v3925_v21  ;;  %4327 = vmatpush1.msra.mxu1 %v3964_v50  ;;  %v2773_v63 = vpop.f32.mrf.mxu1  ;;  %v3893_v50 = vld [vmem:[#allocation7 + $0xc48] sm:$0xff] }
 0x26a   :  { %4246 = vmatpush2.msra.mxu0 %v3924_v33  ;;  %4328 = vmatprep.subr.mxu1 %v3961_v52  ;;  %v2672_v21 = vpop.f32.mrf.mxu0  ;;  %v3945_v52 = vld [vmem:[#allocation7 + $0xde8] sm:$0xff] }
 0x26b   :  { %4247 = vmatprep.subr.mxu0 %v3921_v38  ;;  %3666 = vmatmul.mubr.f32.gmra.mxu1 %v17327_v20  ;;  %v3905_v20 = vld [vmem:[#allocation7 + $0xca8] sm:$0xff]  ;;  %v13581_v33 = vadd.f32 %v2773_v63, %v2672_v21  ;;  %v13583_v38 = vpop.f32.mrf.mxu1  ;;  %v3867_v63 = vld [vmem:[#allocation7 + $0xb78] sm:$0xff] }
 0x26c   :  { %4248 = vmatpush2.msra.mxu0 %v3920_v13  ;;  %3671 = vmatprep.mubr.f32.mxu1 %v17329_v55  ;;  %v3904_v55 = vld [vmem:[#allocation7 + $0xca0] sm:$0xff]  ;;  %v3889_v13 = vld [vmem:[#allocation7 + $0xc28] sm:$0xff] }
 0x26d   :  { %4249 = vmatprep.subr.mxu0 %v3917_v29  ;;  %4329 = vmatpush1.msra.mxu1 %v3960_v62  ;;  %v3944_v29 = vld [vmem:[#allocation7 + $0xde0] sm:$0xff] }
 0x26e   :  { %4250 = vmatpush2.msra.mxu0 %v3916_v44  ;;  %4330 = vmatprep.subr.mxu1 %v3957_v31  ;;  %v3888_v62 = vld [vmem:[#allocation7 + $0xc20] sm:$0xff]  ;;  %v3885_v44 = vld [vmem:[#allocation7 + $0xc08] sm:$0xff] }
 0x26f   :  { %4251 = vmatprep.subr.mxu0 %v3913_v14  ;;  %3672 = vmatmul.mubr.f32.gmra.mxu1 %v17331_v32  ;;  %v3897_v32 = vld [vmem:[#allocation7 + $0xc68] sm:$0xff]  ;;  %v3884_v14 = vld [vmem:[#allocation7 + $0xc00] sm:$0xff] }
 0x270   :  { %4252 = vmatpush2.msra.mxu0 %v3912_v26  ;;  %4331 = vmatpush1.msra.mxu1 %v3956_v35  ;;  %v3941_v31 = vld [vmem:[#allocation7 + $0xdc8] sm:$0xff]  ;;  %v3940_v26 = vld [vmem:[#allocation7 + $0xdc0] sm:$0xff] }
 0x271   :  { %3677 = vmatprep.mubr.f32.mxu1 %v17335_v45  ;;  %4253 = vmatprep.subr.mxu0 %v3909_v10  ;;  %v3896_v45 = vld [vmem:[#allocation7 + $0xc60] sm:$0xff]  ;;  %v2779_v35 = vpop.f32.mrf.mxu1 }
 0x272   :  { %4254 = vmatpush2.msra.mxu0 %v3908_v37  ;;  %4332 = vmatprep.subr.mxu1 %v3953_v36  ;;  %v3875_v37 = vld [vmem:[#allocation7 + $0xbb8] sm:$0xff] }
 0x273   :  { %4255 = vmatprep.subr.mxu0 %v3905_v20  ;;  %3678 = vmatmul.mubr.f32.gmra.mxu1 %v17337_v25  ;;  %v3892_v25 = vld [vmem:[#allocation7 + $0xc40] sm:$0xff]  ;;  %v3877_v20 = vld [vmem:[#allocation7 + $0xbc8] sm:$0xff] }
 0x274   :  { %4256 = vmatpush2.msra.mxu0 %v3904_v55  ;;  %4333 = vmatpush1.msra.mxu1 %v3952_v58  ;;  %v13592_v55 = vpop.f32.mrf.mxu1  ;;  %v3874_v58 = vld [vmem:[#allocation7 + $0xbb0] sm:$0xff] }
 0x275   :  { %3683 = vmatprep.mubr.f32.mxu1 %v17338_v9  ;;  %4257 = vmatprep.subr.mxu0 %v3901_v40  ;;  %v13586_v9 = vpop.f32.mrf.mxu0  ;;  %17341 = vst [vmem:[#allocation27_spill] sm:$0xff] %v13592_v55  ;;  %v3876_v40 = vld [vmem:[#allocation7 + $0xbc0] sm:$0xff] }
 0x276   :  { %4258 = vmatpush2.msra.mxu0 %v3900_v24  ;;  %4334 = vmatprep.subr.mxu1 %v3949_v5  ;;  %v3871_v24 = vld [vmem:[#allocation7 + $0xb98] sm:$0xff]  ;;  %v4642_v55 = vld [vmem:[#allocation7 + $0xec0] sm:$0xff] }
 0x277   :  { %4259 = vmatprep.subr.mxu0 %v3897_v32  ;;  %4335 = vmatpush1.msra.mxu1 %v3948_v19  ;;  %v2678_v10 = vpop.f32.mrf.mxu0  ;;  %v2785_v5 = vpop.f32.mrf.mxu1  ;;  %v3870_v32 = vld [vmem:[#allocation7 + $0xb90] sm:$0xff] }
 0x278   :  { %3684 = vmatmul.mubr.f32.gmra.mxu1 %v17340_v57  ;;  %4260 = vmatpush2.msra.mxu0 %v3896_v45  ;;  %v3881_v57 = vld [vmem:[#allocation7 + $0xbe8] sm:$0xff]  ;;  %v13590_v36 = vadd.f32 %v2779_v35, %v2678_v10  ;;  %v3858_v35 = vld [vmem:[#allocation7 + $0xb30] sm:$0xff]  ;;  %v3855_v10 = vld [vmem:[#allocation7 + $0xb18] sm:$0xff] }
 0x279   :  { %3689 = vmatprep.mubr.f32.mxu1 %v13542_v6  ;;  %4261 = vmatprep.subr.mxu0 %v3893_v50  ;;  %v3880_v6 = vld [vmem:[#allocation7 + $0xbe0] sm:$0xff]  ;;  %v13601_v21 = vpop.f32.mrf.mxu1  ;;  %v3967_v50 = vld [vmem:[#allocation7 + $0xe98] sm:$0xff] }
 0x27a   :  { %4262 = vmatpush2.msra.mxu0 %v3892_v25  ;;  %4336 = vmatprep.subr.mxu1 %v3945_v52  ;;  %17343 = vst [vmem:[#allocation34_spill] sm:$0xff] %v13601_v21  ;;  %v3866_v52 = vld [vmem:[#allocation7 + $0xb70] sm:$0xff] }
 0x27b   :  { %4263 = vmatprep.subr.mxu0 %v3889_v13  ;;  %4337 = vmatpush1.msra.mxu1 %v3944_v29  ;;  %v3863_v13 = vld [vmem:[#allocation7 + $0xb58] sm:$0xff] }
 0x27c   :  { %3690 = vmatmul.mubr.f32.gmra.mxu1 %v13538_v30  ;;  %4264 = vmatpush2.msra.mxu0 %v3888_v62  ;;  %v13595_v30 = vpop.f32.mrf.mxu0  ;;  %v3862_v62 = vld [vmem:[#allocation7 + $0xb50] sm:$0xff] }
 0x27d   :  { %4265 = vmatprep.subr.mxu0 %v3885_v44  ;;  %4338 = vmatprep.subr.mxu1 %v3941_v31  ;;  %17342 = vst [vmem:[#allocation59_spill] sm:$0xff] %v13595_v30  ;;  %v3859_v31 = vld [vmem:[#allocation7 + $0xb38] sm:$0xff] }
 0x27e   :  { %4266 = vmatpush2.msra.mxu0 %v3884_v14  ;;  %4339 = vmatpush1.msra.mxu1 %v3940_v26  ;;  %v2684_v19 = vpop.f32.mrf.mxu0 }
 0x27f   :  { %4267 = vmatprep.subr.mxu0 %v3881_v57  ;;  %4372 = vmatprep.mubr.f32.mxu1 %v17230_v49  ;;  %v13599_v45 = vadd.f32 %v2785_v5, %v2684_v19  ;;  %v2791_v29 = vpop.f32.mrf.mxu1  ;;  %v3847_v19 = vld [vmem:[#allocation7 + $0xad8] sm:$0xff] }
 0x280   :  { %4409 = vmatprep.subr.mxu1 %v3875_v37  ;;  %4268 = vmatpush2.msra.mxu0 %v3880_v6  ;;  %v13604_v25 = vpop.f32.mrf.mxu0  ;;  %v3854_v37 = vld [vmem:[#allocation7 + $0xb10] sm:$0xff] }
 0x281   :  { %10968 = vmatmul.mubr.msk.f32.vlgmr.msra.gmra.mxu1 %vm2593_vm10, %v13274_v43  ;;  %4269 = vmatprep.subr.mxu0 %v3877_v20  ;;  %17344 = vst [vmem:[#allocation26_spill] sm:$0xff] %v13604_v25  ;;  %v13613_v26 = vpop.f32.mrf.mxu1  ;;  %v3851_v20 = vld [vmem:[#allocation7 + $0xaf8] sm:$0xff] }
 0x282   :  { %4410 = vmatpush1.msra.mxu1 %v3874_v58  ;;  %4270 = vmatpush2.msra.mxu0 %v3876_v40  ;;  %v2690_v44 = vpop.f32.mrf.mxu0  ;;  %17345 = vst [vmem:[#allocation24_spill] sm:$0xff] %v13613_v26  ;;  %v3850_v40 = vld [vmem:[#allocation7 + $0xaf0] sm:$0xff]  ;;  %v4658_v26 = vld [vmem:[#allocation7 + $0xf40] sm:$0xff]  ;;  %v3891_v25 = vld [vmem:[#allocation7 + $0xc38] sm:$0xff] }
 0x283   :  { %4411 = vmatprep.subr.mxu1 %v3871_v24  ;;  %4272 = vmatmul.mubr.f32.vlgmr.msra.gmra.mxu0 %v13276_v1  ;;  %v13611_v14 = vadd.f32 %v2791_v29, %v2690_v44  ;;  %v3966_v24 = vld [vmem:[#allocation7 + $0xe90] sm:$0xff]  ;;  %v3959_v44 = vld [vmem:[#allocation7 + $0xe58] sm:$0xff] }
 0x284   :  { %4412 = vmatpush1.msra.mxu1 %v3870_v32  ;;  %4378 = vmatprep.mubr.f32.mxu1 %v17230_v49  ;;  %v13616_v57 = vpop.f32.mrf.mxu0  ;;  %v3962_v29 = vld [vmem:[#allocation7 + $0xe70] sm:$0xff] }
 0x285   :  { %4413 = vmatprep.subr.mxu1 %v3867_v63  ;;  %4277 = vmatprep.mubr.f32.mxu0 %v13280_v4  ;;  %17346 = vst [vmem:[#allocation70_spill] sm:$0xff] %v13616_v57  ;;  %v2797_v6 = vpop.f32.mrf.mxu1  ;;  %v3963_v63 = vld [vmem:[#allocation7 + $0xe78] sm:$0xff]  ;;  %v3906_v57 = vld [vmem:[#allocation7 + $0xcb0] sm:$0xff] }
 0x286   :  { %10969 = vmatmul.mubr.msk.f32.gmra.mxu1 %vm2593_vm10, %v13290_v60  ;;  %4528 = vmatprep.subr.mxu0 %v3967_v50  ;;  %v2696_v58 = vpop.f32.mrf.mxu0 }
 0x287   :  { %4414 = vmatpush1.msra.mxu1 %v3866_v52  ;;  %4278 = vmatmul.mubr.f32.gmra.mxu0 %v13292_v17  ;;  %v13623_v5 = vadd.f32 %v2797_v6, %v2696_v58  ;;  %v13625_v32 = vpop.f32.mrf.mxu1  ;;  %v3846_v52 = vld [vmem:[#allocation7 + $0xad0] sm:$0xff]  ;;  %v3839_v6 = vld [vmem:[#allocation7 + $0xa98] sm:$0xff]  ;;  %v4167_v58 = vcombine.high %v13411_v53, %v13411_v53 }
 0x288   :  { %4415 = vmatprep.subr.mxu1 %v3863_v13  ;;  %4384 = vmatprep.mubr.f32.mxu1 %v17230_v49  ;;  %17347 = vst [vmem:[#allocation71_spill] sm:$0xff] %v13625_v32  ;;  %v13628_v50 = vpop.f32.mrf.mxu0  ;;  %v3843_v13 = vld [vmem:[#allocation7 + $0xab8] sm:$0xff]  ;;  %v3942_v32 = vld [vmem:[#allocation7 + $0xdd0] sm:$0xff] }
 0x289   :  { %4416 = vmatpush1.msra.mxu1 %v3862_v62  ;;  %4283 = vmatprep.mubr.f32.mxu0 %v13338_v15  ;;  %17348 = vst [vmem:[#allocation72_spill] sm:$0xff] %v13628_v50  ;;  %v3822_v50 = vld [vmem:[#allocation7 + $0xa10] sm:$0xff] }
 0x28a   :  { %4417 = vmatprep.subr.mxu1 %v3859_v31  ;;  %10970 = vmatmul.mubr.msk.f32.gmra.mxu1 %vm2593_vm10, %v13340_v18 }
 0x28b   :  { %4418 = vmatpush1.msra.mxu1 %v3858_v35  ;;  %4284 = vmatmul.mubr.f32.gmra.mxu0 %v13342_v16  ;;  %v2803_v62 = vpop.f32.mrf.mxu1  ;;  %v3842_v35 = vld [vmem:[#allocation7 + $0xab0] sm:$0xff] }
 0x28c   :  { %4419 = vmatprep.subr.mxu1 %v3855_v10  ;;  %4390 = vmatprep.mubr.f32.mxu1 %v17230_v49  ;;  %v2702_v31 = vpop.f32.mrf.mxu0  ;;  %v3958_v10 = vld [vmem:[#allocation7 + $0xe50] sm:$0xff] }
 0x28d   :  { %4420 = vmatpush1.msra.mxu1 %v3854_v37  ;;  %4289 = vmatprep.mubr.f32.mxu0 %v13323_v59  ;;  %v13634_v37 = vadd.f32 %v2803_v62, %v2702_v31  ;;  %v3951_v62 = vld [vmem:[#allocation7 + $0xe18] sm:$0xff] }
 0x28e   :  { %4421 = vmatprep.subr.mxu1 %v3851_v20  ;;  %10971 = vmatmul.mubr.msk.f32.gmra.mxu1 %vm2593_vm10, %v13325_v51  ;;  %v3955_v20 = vld [vmem:[#allocation7 + $0xe38] sm:$0xff] }
 0x28f   :  { %4422 = vmatpush1.msra.mxu1 %v3850_v40  ;;  %4529 = vmatpush1.msra.mxu0 %v3966_v24  ;;  %v17349_v40 = vld [vmem:[#allocation58_spill] sm:$0xff]  ;;  %v3838_v24 = vld [vmem:[#allocation7 + $0xa90] sm:$0xff] }
 0x290   :  { %4423 = vmatprep.subr.mxu1 %v3847_v19  ;;  %4530 = vmatprep.subr.mxu0 %v3963_v63  ;;  %v13643_v19 = vrot.slane %v13411_v53, %v12345_v46  ;;  %v3835_v63 = vld [vmem:[#allocation7 + $0xa78] sm:$0xff] }
 0x291   :  { %4424 = vmatpush1.msra.mxu1 %v3846_v52  ;;  %4290 = vmatmul.mubr.f32.gmra.mxu0 %v13330_v61  ;;  %v3954_v52 = vld [vmem:[#allocation7 + $0xe30] sm:$0xff]  ;;  %v3831_v31 = vld [vmem:[#allocation7 + $0xa58] sm:$0xff] }
 0x292   :  { %4396 = vmatprep.mubr.f32.mxu1 %v17230_v49  ;;  %4425 = vmatprep.subr.mxu1 %v3843_v13  ;;  %v17350_v13 = vld [vmem:[#allocation81_spill] sm:$0xff]  ;;  %v13652_v53 = vcombine.high %v13643_v19, %v13643_v19 }
 0x293   :  { %4531 = vmatpush1.msra.mxu0 %v3962_v29  ;;  %4295 = vmatprep.mubr.f32.mxu0 %v13349_v39  ;;  %v13647_v29 = vrot.slane %v4167_v58, %v12345_v46  ;;  %v3946_v58 = vld [vmem:[#allocation7 + $0xdf0] sm:$0xff] }
 0x294   :  { %10972 = vmatmul.mubr.msk.f32.gmra.mxu1 %vm2593_vm10, %v17349_v40  ;;  %4532 = vmatprep.subr.mxu0 %v3959_v44  ;;  %v3834_v44 = vld [vmem:[#allocation7 + $0xa70] sm:$0xff] }
 0x295   :  { %4426 = vmatpush1.msra.mxu1 %v3842_v35  ;;  %4533 = vmatpush1.msra.mxu0 %v3958_v10  ;;  %v3950_v35 = vld [vmem:[#allocation7 + $0xe10] sm:$0xff] }
 0x296   :  { %4427 = vmatprep.subr.mxu1 %v3839_v6  ;;  %4534 = vmatprep.subr.mxu0 %v3955_v20  ;;  %v3830_v10 = vld [vmem:[#allocation7 + $0xa50] sm:$0xff]  ;;  %v3947_v6 = vld [vmem:[#allocation7 + $0xdf8] sm:$0xff] }
 0x297   :  { %4428 = vmatpush1.msra.mxu1 %v3838_v24  ;;  %4296 = vmatmul.mubr.f32.gmra.mxu0 %v17350_v13  ;;  %v3827_v20 = vld [vmem:[#allocation7 + $0xa38] sm:$0xff]  ;;  %v3826_v24 = vld [vmem:[#allocation7 + $0xa30] sm:$0xff] }
 0x298   :  { %4402 = vmatprep.mubr.f32.mxu1 %v17230_v49  ;;  %4429 = vmatprep.subr.mxu1 %v3835_v63  ;;  %v3943_v63 = vld [vmem:[#allocation7 + $0xdd8] sm:$0xff] }
 0x299   :  { %4535 = vmatpush1.msra.mxu0 %v3954_v52  ;;  %4301 = vmatprep.mubr.f32.mxu0 %v13647_v29  ;;  %v3823_v52 = vld [vmem:[#allocation7 + $0xa18] sm:$0xff] }
 0x29a   :  { %10973 = vmatmul.mubr.msk.f32.gmra.mxu1 %vm2593_vm10, %v13652_v53  ;;  %4536 = vmatprep.subr.mxu0 %v3951_v62  ;;  %v4699_v62 = vld [vmem:[#allocation7 + $0x1088] sm:$0xff] }
 0x29b   :  { %4430 = vmatpush1.msra.mxu1 %v3834_v44  ;;  %4473 = vmatprep.mubr.f32.mxu1 %v13266_v8  ;;  %v3819_v8 = vld [vmem:[#allocation7 + $0x9f8] sm:$0xff]  ;;  %v4698_v44 = vld [vmem:[#allocation7 + $0x1080] sm:$0xff] }
 0x29c   :  { %4431 = vmatprep.subr.mxu1 %v3831_v31  ;;  %4537 = vmatpush1.msra.mxu0 %v3950_v35  ;;  %v3818_v31 = vld [vmem:[#allocation7 + $0x9f0] sm:$0xff]  ;;  %v4695_v35 = vld [vmem:[#allocation7 + $0x1068] sm:$0xff] }
 0x29d   :  { %4432 = vmatpush1.msra.mxu1 %v3830_v10  ;;  %4538 = vmatprep.subr.mxu0 %v3947_v6  ;;  %v3815_v10 = vld [vmem:[#allocation7 + $0x9d8] sm:$0xff]  ;;  %v4694_v6 = vld [vmem:[#allocation7 + $0x1060] sm:$0xff] }
 0x29e   :  { %4302 = vmatmul.mubr.f32.gmra.mxu0 %v13643_v19  ;;  %4433 = vmatprep.subr.mxu1 %v3827_v20  ;;  %v3814_v20 = vld [vmem:[#allocation7 + $0x9d0] sm:$0xff] }
 0x29f   :  { %4539 = vmatpush1.msra.mxu0 %v3946_v58  ;;  %4434 = vmatpush1.msra.mxu1 %v3826_v24  ;;  %v4691_v58 = vld [vmem:[#allocation7 + $0x1048] sm:$0xff]  ;;  %v3938_v24 = vld [vmem:[#allocation7 + $0xdb0] sm:$0xff] }
 0x2a0   :  { %4540 = vmatprep.subr.mxu0 %v3943_v63  ;;  %4435 = vmatprep.subr.mxu1 %v3823_v52  ;;  %v4687_v63 = vld [vmem:[#allocation7 + $0x1028] sm:$0xff]  ;;  %v3935_v52 = vld [vmem:[#allocation7 + $0xd98] sm:$0xff] }
 0x2a1   :  { %4541 = vmatpush1.msra.mxu0 %v3942_v32  ;;  %4436 = vmatpush1.msra.mxu1 %v3822_v50  ;;  %v3939_v32 = vld [vmem:[#allocation7 + $0xdb8] sm:$0xff]  ;;  %v4690_v50 = vld [vmem:[#allocation7 + $0x1040] sm:$0xff] }
 0x2a2   :  { %4574 = vmatprep.mubr.f32.mxu0 %v17230_v49  ;;  %5033 = vmatprep.subr.mxu0 %v4699_v62  ;;  %v3934_v62 = vld [vmem:[#allocation7 + $0xd90] sm:$0xff] }
 0x2a3   :  { %4437 = vmatprep.subr.mxu1 %v3819_v8  ;;  %10974 = vmatmul.mubr.msk.f32.vlgmr.msra.gmra.mxu0 %vm2593_vm10, %v13274_v43  ;;  %v4686_v43 = vld [vmem:[#allocation7 + $0x1020] sm:$0xff]  ;;  %v4683_v8 = vld [vmem:[#allocation7 + $0x1008] sm:$0xff] }
 0x2a4   :  { %5034 = vmatpush1.msra.mxu0 %v4698_v44  ;;  %4438 = vmatpush1.msra.mxu1 %v3818_v31  ;;  %v3931_v44 = vld [vmem:[#allocation7 + $0xd78] sm:$0xff]  ;;  %v13665_v31 = vpop.f32.mrf.mxu0 }
 0x2a5   :  { %5035 = vmatprep.subr.mxu0 %v4695_v35  ;;  %4439 = vmatprep.subr.mxu1 %v3815_v10  ;;  %17351 = vst [vmem:[#allocation74_spill] sm:$0xff] %v13665_v31  ;;  %v4682_v35 = vld [vmem:[#allocation7 + $0x1000] sm:$0xff]  ;;  %v3930_v10 = vld [vmem:[#allocation7 + $0xd70] sm:$0xff] }
 0x2a6   :  { %5036 = vmatpush1.msra.mxu0 %v4694_v6  ;;  %4440 = vmatpush1.msra.mxu1 %v3814_v20  ;;  %v4679_v6 = vld [vmem:[#allocation7 + $0xfe8] sm:$0xff]  ;;  %v3927_v20 = vld [vmem:[#allocation7 + $0xd58] sm:$0xff] }
 0x2a7   :  { %4580 = vmatprep.mubr.f32.mxu0 %v17230_v49  ;;  %5037 = vmatprep.subr.mxu0 %v4691_v58  ;;  %v3926_v58 = vld [vmem:[#allocation7 + $0xd50] sm:$0xff] }
 0x2a8   :  { %4441 = vmatprep.subr.mxu1 %v3939_v32  ;;  %10975 = vmatmul.mubr.msk.f32.gmra.mxu0 %vm2593_vm10, %v13290_v60  ;;  %v4678_v60 = vld [vmem:[#allocation7 + $0xfe0] sm:$0xff]  ;;  %v4675_v32 = vld [vmem:[#allocation7 + $0xfc8] sm:$0xff] }
 0x2a9   :  { %5038 = vmatpush1.msra.mxu0 %v4690_v50  ;;  %4442 = vmatpush2.msra.mxu1 %v3938_v24  ;;  %v13670_v50 = vpop.f32.mrf.mxu0  ;;  %v3923_v24 = vld [vmem:[#allocation7 + $0xd38] sm:$0xff]  ;;  %v17355_v31 = vld [vmem:[#allocation32_spill] sm:$0xff] }
 0x2aa   :  { %5039 = vmatprep.subr.mxu0 %v4687_v63  ;;  %4443 = vmatprep.subr.mxu1 %v3935_v52  ;;  %v4674_v63 = vld [vmem:[#allocation7 + $0xfc0] sm:$0xff]  ;;  %v3922_v52 = vld [vmem:[#allocation7 + $0xd30] sm:$0xff] }
 0x2ab   :  { %5040 = vmatpush1.msra.mxu0 %v4686_v43  ;;  %4444 = vmatpush2.msra.mxu1 %v3934_v62  ;;  %v4671_v43 = vld [vmem:[#allocation7 + $0xfa8] sm:$0xff]  ;;  %v3919_v62 = vld [vmem:[#allocation7 + $0xd18] sm:$0xff] }
 0x2ac   :  { %4586 = vmatprep.mubr.f32.mxu0 %v17230_v49  ;;  %5041 = vmatprep.subr.mxu0 %v4683_v8  ;;  %v3918_v8 = vld [vmem:[#allocation7 + $0xd10] sm:$0xff] }
 0x2ad   :  { %4445 = vmatprep.subr.mxu1 %v3931_v44  ;;  %10976 = vmatmul.mubr.msk.f32.gmra.mxu0 %vm2593_vm10, %v13340_v18  ;;  %v4670_v18 = vld [vmem:[#allocation7 + $0xfa0] sm:$0xff]  ;;  %v13675_v44 = vpop.f32.mrf.mxu0 }
 0x2ae   :  { %5042 = vmatpush1.msra.mxu0 %v4682_v35  ;;  %4446 = vmatpush2.msra.mxu1 %v3930_v10  ;;  %17352 = vst [vmem:[#allocation75_spill] sm:$0xff] %v13675_v44  ;;  %v4667_v35 = vld [vmem:[#allocation7 + $0xf88] sm:$0xff]  ;;  %v3915_v10 = vld [vmem:[#allocation7 + $0xcf8] sm:$0xff] }
 0x2af   :  { %5043 = vmatprep.subr.mxu0 %v4679_v6  ;;  %4447 = vmatprep.subr.mxu1 %v3927_v20  ;;  %v17353_v6 = vld [vmem:[#allocation38_spill] sm:$0xff]  ;;  %v17354_v20 = vld [vmem:[#allocation31_spill] sm:$0xff]  ;;  %v17356_v44 = vld [vmem:[#allocation29_spill] sm:$0xff] }
 0x2b0   :  { %5044 = vmatpush1.msra.mxu0 %v4678_v60  ;;  %4448 = vmatpush2.msra.mxu1 %v3926_v58  ;;  %v4797_v60 = vcombine.high %v17354_v20, %v17353_v6  ;;  %v4666_v58 = vld [vmem:[#allocation7 + $0xf80] sm:$0xff] }
 0x2b1   :  { %4592 = vmatprep.mubr.f32.mxu0 %v17230_v49  ;;  %5045 = vmatprep.subr.mxu0 %v4675_v32  ;;  %v3914_v32 = vld [vmem:[#allocation7 + $0xcf0] sm:$0xff] }
 0x2b2   :  { %4449 = vmatprep.subr.mxu1 %v3923_v24  ;;  %10977 = vmatmul.mubr.msk.f32.gmra.mxu0 %vm2593_vm10, %v13325_v51  ;;  %v4663_v51 = vld [vmem:[#allocation7 + $0xf68] sm:$0xff]  ;;  %v3911_v24 = vld [vmem:[#allocation7 + $0xcd8] sm:$0xff] }
 0x2b3   :  { %5046 = vmatpush1.msra.mxu0 %v4674_v63  ;;  %4450 = vmatpush2.msra.mxu1 %v3922_v52  ;;  %v4795_v63 = vcombine.high %v17356_v44, %v17355_v31  ;;  %v13682_v52 = vpop.f32.mrf.mxu0 }
 0x2b4   :  { %5047 = vmatprep.subr.mxu0 %v4671_v43  ;;  %4451 = vmatprep.subr.mxu1 %v3919_v62  ;;  %v4662_v43 = vld [vmem:[#allocation7 + $0xf60] sm:$0xff]  ;;  %v3910_v62 = vld [vmem:[#allocation7 + $0xcd0] sm:$0xff] }
 0x2b5   :  { %5048 = vmatpush1.msra.mxu0 %v4670_v18  ;;  %4452 = vmatpush2.msra.mxu1 %v3918_v8  ;;  %v4659_v18 = vld [vmem:[#allocation7 + $0xf48] sm:$0xff]  ;;  %v4825_v8 = vrot.slane %v4797_v60, %v12345_v46  ;;  %v4811_v21 = vrot.slane %v4795_v63, %v12345_v46  ;;  %v3899_v63 = vld [vmem:[#allocation7 + $0xc78] sm:$0xff] }
 0x2b6   :  { %4598 = vmatprep.mubr.f32.mxu0 %v17230_v49  ;;  %5049 = vmatprep.subr.mxu0 %v4667_v35  ;;  %v3907_v35 = vld [vmem:[#allocation7 + $0xcb8] sm:$0xff] }
 0x2b7   :  { %4453 = vmatprep.subr.mxu1 %v3915_v10  ;;  %10978 = vmatmul.mubr.msk.f32.gmra.mxu0 %vm2593_vm10, %v17349_v40  ;;  %v13688_v10 = vpop.f32.mrf.mxu0  ;;  %v4655_v40 = vld [vmem:[#allocation7 + $0xf28] sm:$0xff]  ;;  %v13693_v60 = vcombine.low %v4811_v21, %v4825_v8  ;;  %v3895_v21 = vld [vmem:[#allocation7 + $0xc58] sm:$0xff]  ;;  %v4646_v8 = vld [vmem:[#allocation7 + $0xee0] sm:$0xff] }
 0x2b8   :  { %5050 = vmatpush1.msra.mxu0 %v4666_v58  ;;  %4454 = vmatpush2.msra.mxu1 %v3914_v32  ;;  %17357 = vst [vmem:[#allocation33_spill] sm:$0xff] %v13688_v10  ;;  %v3903_v58 = vld [vmem:[#allocation7 + $0xc98] sm:$0xff]  ;;  %v4654_v32 = vld [vmem:[#allocation7 + $0xf20] sm:$0xff] }
 0x2b9   :  { %5051 = vmatprep.subr.mxu0 %v4663_v51  ;;  %4455 = vmatprep.subr.mxu1 %v3911_v24  ;;  %v3902_v51 = vld [vmem:[#allocation7 + $0xc90] sm:$0xff]  ;;  %v4651_v24 = vld [vmem:[#allocation7 + $0xf08] sm:$0xff] }
 0x2ba   :  { %5052 = vmatpush1.msra.mxu0 %v4662_v43  ;;  %4456 = vmatpush2.msra.mxu1 %v3910_v62  ;;  %v4650_v43 = vld [vmem:[#allocation7 + $0xf00] sm:$0xff]  ;;  %v2987_v62 = vpop.f32.mrf.mxu0 }
 0x2bb   :  { %4604 = vmatprep.mubr.f32.mxu0 %v17230_v49  ;;  %5053 = vmatprep.subr.mxu0 %v4659_v18  ;;  %v13696_v18 = vpop.f32.mrf.mxu1 }
 0x2bc   :  { %4457 = vmatprep.subr.mxu1 %v3907_v35  ;;  %10979 = vmatmul.mubr.msk.f32.gmra.mxu0 %vm2593_vm10, %v13652_v53  ;;  %17358 = vst [vmem:[#allocation28_spill] sm:$0xff] %v13696_v18  ;;  %v3898_v35 = vld [vmem:[#allocation7 + $0xc70] sm:$0xff]  ;;  %v4647_v53 = vld [vmem:[#allocation7 + $0xee8] sm:$0xff]  ;;  %v13698_v10 = vpop.f32.mrf.mxu0 }
 0x2bd   :  { %5054 = vmatpush1.msra.mxu0 %v4658_v26  ;;  %4458 = vmatpush2.msra.mxu1 %v3906_v57  ;;  %v3894_v26 = vld [vmem:[#allocation7 + $0xc50] sm:$0xff]  ;;  %v4643_v57 = vld [vmem:[#allocation7 + $0xec8] sm:$0xff]  ;;  %17359 = vst [vmem:[#allocation76_spill] sm:$0xff] %v13698_v10 }
 0x2be   :  { %5055 = vmatprep.subr.mxu0 %v4655_v40  ;;  %5097 = vmatprep.mubr.f32.mxu0 %v13693_v60  ;;  %v2993_v18 = vpop.f32.mrf.mxu0 }
 0x2bf   :  { %4459 = vmatprep.subr.mxu1 %v3903_v58  ;;  %5056 = vmatpush1.msra.mxu0 %v4654_v32  ;;  %v3890_v32 = vld [vmem:[#allocation7 + $0xc30] sm:$0xff] }
 0x2c0   :  { %4460 = vmatpush2.msra.mxu1 %v3902_v51  ;;  %5057 = vmatprep.subr.mxu0 %v4651_v24  ;;  %v4639_v51 = vld [vmem:[#allocation7 + $0xea8] sm:$0xff]  ;;  %v13710_v30 = vpop.f32.mrf.mxu0 }
 0x2c1   :  { %4461 = vmatprep.subr.mxu1 %v3899_v63  ;;  %5058 = vmatpush1.msra.mxu0 %v4650_v43  ;;  %v2874_v40 = vpop.f32.mrf.mxu1  ;;  %v3887_v63 = vld [vmem:[#allocation7 + $0xc18] sm:$0xff]  ;;  %v4638_v43 = vld [vmem:[#allocation7 + $0xea0] sm:$0xff]  ;;  %17362 = vst [vmem:[#allocation79_spill] sm:$0xff] %v13710_v30 }
 0x2c2   :  { %4462 = vmatpush2.msra.mxu1 %v3898_v35  ;;  %5059 = vmatprep.subr.mxu0 %v4647_v53  ;;  %v13701_v58 = vadd.f32 %v13670_v50, %v2874_v40  ;;  %v3886_v35 = vld [vmem:[#allocation7 + $0xc10] sm:$0xff]  ;;  %v4763_v53 = vld [vmem:[#allocation7 + $0x1288] sm:$0xff]  ;;  %v3883_v50 = vld [vmem:[#allocation7 + $0xbf8] sm:$0xff] }
 0x2c3   :  { %4463 = vmatprep.subr.mxu1 %v3895_v21  ;;  %5060 = vmatpush1.msra.mxu0 %v4646_v8  ;;  %v13703_v24 = vpop.f32.mrf.mxu1  ;;  %v4762_v40 = vld [vmem:[#allocation7 + $0x1280] sm:$0xff]  ;;  %v3882_v8 = vld [vmem:[#allocation7 + $0xbf0] sm:$0xff] }
 0x2c4   :  { %17360 = vst [vmem:[#allocation77_spill] sm:$0xff] %v13703_v24  ;;  %4464 = vmatpush2.msra.mxu1 %v3894_v26  ;;  %5061 = vmatprep.subr.mxu0 %v4643_v57  ;;  %v4759_v26 = vld [vmem:[#allocation7 + $0x1268] sm:$0xff] }
 0x2c5   :  { %4465 = vmatprep.subr.mxu1 %v3891_v25  ;;  %5062 = vmatpush1.msra.mxu0 %v4642_v55  ;;  %v2880_v10 = vpop.f32.mrf.mxu1  ;;  %v3879_v55 = vld [vmem:[#allocation7 + $0xbd8] sm:$0xff]  ;;  %v4758_v25 = vld [vmem:[#allocation7 + $0x1260] sm:$0xff] }
 0x2c6   :  { %4466 = vmatpush2.msra.mxu1 %v3890_v32  ;;  %5063 = vmatprep.subr.mxu0 %v4639_v51  ;;  %v13706_v21 = vadd.f32 %v13682_v52, %v2880_v10  ;;  %v3878_v32 = vld [vmem:[#allocation7 + $0xbd0] sm:$0xff]  ;;  %v4755_v51 = vld [vmem:[#allocation7 + $0x1248] sm:$0xff]  ;;  %v4754_v52 = vld [vmem:[#allocation7 + $0x1240] sm:$0xff] }
 0x2c7   :  { %4467 = vmatprep.subr.mxu1 %v3887_v63  ;;  %5064 = vmatpush1.msra.mxu0 %v4638_v43  ;;  %v13708_v57 = vpop.f32.mrf.mxu1  ;;  %v4791_v63 = vld [vmem:[#allocation7 + $0x1368] sm:$0xff] }
 0x2c8   :  { %17361 = vst [vmem:[#allocation78_spill] sm:$0xff] %v13708_v57  ;;  %4468 = vmatpush2.msra.mxu1 %v3886_v35  ;;  %5065 = vmatprep.subr.mxu0 %v4763_v53  ;;  %v4751_v35 = vld [vmem:[#allocation7 + $0x1228] sm:$0xff]  ;;  %v4790_v53 = vld [vmem:[#allocation7 + $0x1360] sm:$0xff] }
 0x2c9   :  { %4469 = vmatprep.subr.mxu1 %v3883_v50  ;;  %5066 = vmatpush2.msra.mxu0 %v4762_v40  ;;  %v2886_v24 = vpop.f32.mrf.mxu1  ;;  %v4750_v50 = vld [vmem:[#allocation7 + $0x1220] sm:$0xff]  ;;  %v4787_v40 = vld [vmem:[#allocation7 + $0x1348] sm:$0xff] }
 0x2ca   :  { %4470 = vmatpush2.msra.mxu1 %v3882_v8  ;;  %5067 = vmatprep.subr.mxu0 %v4759_v26  ;;  %v13712_v10 = vadd.f32 %v2987_v62, %v2886_v24  ;;  %v2999_v8 = vpop.f32.mrf.mxu0  ;;  %v4747_v62 = vld [vmem:[#allocation7 + $0x1208] sm:$0xff]  ;;  %v4746_v26 = vld [vmem:[#allocation7 + $0x1200] sm:$0xff] }
 0x2cb   :  { %4471 = vmatprep.subr.mxu1 %v3879_v55  ;;  %5068 = vmatpush2.msra.mxu0 %v4758_v25  ;;  %v13714_v43 = vpop.f32.mrf.mxu1  ;;  %v4743_v25 = vld [vmem:[#allocation7 + $0x11e8] sm:$0xff] }
 0x2cc   :  { %17363 = vst [vmem:[#allocation80_spill] sm:$0xff] %v13714_v43  ;;  %4472 = vmatpush2.msra.mxu1 %v3878_v32  ;;  %5069 = vmatprep.subr.mxu0 %v4755_v51  ;;  %v4742_v32 = vld [vmem:[#allocation7 + $0x11e0] sm:$0xff]  ;;  %v4783_v51 = vld [vmem:[#allocation7 + $0x1328] sm:$0xff] }
 0x2cd   :  { %4474 = vmatmul.mubr.f32.vlgmr.msra.gmra.mxu1 %v13276_v1  ;;  %5070 = vmatpush2.msra.mxu0 %v4754_v52  ;;  %v2892_v30 = vpop.f32.mrf.mxu1  ;;  %v4786_v1 = vld [vmem:[#allocation7 + $0x1340] sm:$0xff]  ;;  %v13723_v52 = vpop.f32.mrf.mxu0 }
 0x2ce   :  { %5152 = vmatprep.subr.mxu1 %v4791_v63  ;;  %4479 = vmatprep.mubr.f32.mxu1 %v13280_v4  ;;  %v13718_v24 = vadd.f32 %v2993_v18, %v2892_v30  ;;  %17365 = vst [vmem:[#allocation23_spill] sm:$0xff] %v13723_v52  ;;  %v4739_v4 = vld [vmem:[#allocation7 + $0x11c8] sm:$0xff]  ;;  %v4738_v18 = vld [vmem:[#allocation7 + $0x11c0] sm:$0xff] }
 0x2cf   :  { %5071 = vmatprep.subr.mxu0 %v4751_v35  ;;  %5153 = vmatpush1.msra.mxu1 %v4790_v53  ;;  %v13720_v55 = vpop.f32.mrf.mxu1  ;;  %v4782_v63 = vld [vmem:[#allocation7 + $0x1320] sm:$0xff]  ;;  %v4735_v53 = vld [vmem:[#allocation7 + $0x11a8] sm:$0xff] }
 0x2d0   :  { %17364 = vst [vmem:[#allocation25_spill] sm:$0xff] %v13720_v55  ;;  %5072 = vmatpush2.msra.mxu0 %v4750_v50  ;;  %5154 = vmatprep.subr.mxu1 %v4787_v40  ;;  %v4779_v40 = vld [vmem:[#allocation7 + $0x1308] sm:$0xff] }
 0x2d1   :  { %5073 = vmatprep.subr.mxu0 %v4747_v62  ;;  %4480 = vmatmul.mubr.f32.gmra.mxu1 %v13292_v17  ;;  %v4734_v17 = vld [vmem:[#allocation7 + $0x11a0] sm:$0xff]  ;;  %v3005_v62 = vpop.f32.mrf.mxu0 }
 0x2d2   :  { %5074 = vmatpush2.msra.mxu0 %v4746_v26  ;;  %4485 = vmatprep.mubr.f32.mxu1 %v13338_v15  ;;  %v2898_v30 = vpop.f32.mrf.mxu1  ;;  %v4731_v15 = vld [vmem:[#allocation7 + $0x1188] sm:$0xff] }
 0x2d3   :  { %5075 = vmatprep.subr.mxu0 %v4743_v25  ;;  %5155 = vmatpush1.msra.mxu1 %v4786_v1  ;;  %v13726_v35 = vadd.f32 %v2999_v8, %v2898_v30  ;;  %v4730_v8 = vld [vmem:[#allocation7 + $0x1180] sm:$0xff]  ;;  %v4723_v30 = vld [vmem:[#allocation7 + $0x1148] sm:$0xff] }
 0x2d4   :  { %5076 = vmatpush2.msra.mxu0 %v4742_v32  ;;  %5156 = vmatprep.subr.mxu1 %v4783_v51  ;;  %v13728_v50 = vpop.f32.mrf.mxu1  ;;  %v4778_v25 = vld [vmem:[#allocation7 + $0x1300] sm:$0xff]  ;;  %v4727_v32 = vld [vmem:[#allocation7 + $0x1168] sm:$0xff] }
 0x2d5   :  { %17366 = vst [vmem:[#allocation30_spill] sm:$0xff] %v13728_v50  ;;  %5077 = vmatprep.subr.mxu0 %v4739_v4  ;;  %4486 = vmatmul.mubr.f32.gmra.mxu1 %v13342_v16  ;;  %v4726_v16 = vld [vmem:[#allocation7 + $0x1160] sm:$0xff]  ;;  %v4775_v4 = vld [vmem:[#allocation7 + $0x12e8] sm:$0xff] }
 0x2d6   :  { %5078 = vmatpush2.msra.mxu0 %v4738_v18  ;;  %5157 = vmatpush1.msra.mxu1 %v4782_v63  ;;  %v2904_v26 = vpop.f32.mrf.mxu1  ;;  %v4774_v18 = vld [vmem:[#allocation7 + $0x12e0] sm:$0xff] }
 0x2d7   :  { %4491 = vmatprep.mubr.f32.mxu1 %v13323_v59  ;;  %5079 = vmatprep.subr.mxu0 %v4735_v53  ;;  %v13732_v1 = vadd.f32 %v3005_v62, %v2904_v26  ;;  %v13737_v59 = vpop.f32.mrf.mxu0  ;;  %v4722_v63 = vld [vmem:[#allocation7 + $0x1140] sm:$0xff]  ;;  %v4796_v62 = vcombine.low %v17354_v20, %v17353_v6  ;;  %v4711_v6 = vld [vmem:[#allocation7 + $0x10e8] sm:$0xff] }
 0x2d8   :  { %5080 = vmatpush2.msra.mxu0 %v4734_v17  ;;  %5158 = vmatprep.subr.mxu1 %v4779_v40  ;;  %v13734_v51 = vpop.f32.mrf.mxu1  ;;  %v4719_v17 = vld [vmem:[#allocation7 + $0x1128] sm:$0xff]  ;;  %v4718_v40 = vld [vmem:[#allocation7 + $0x1120] sm:$0xff] }
 0x2d9   :  { %5081 = vmatprep.subr.mxu0 %v4731_v15  ;;  %4492 = vmatmul.mubr.f32.gmra.mxu1 %v13330_v61  ;;  %v4771_v61 = vld [vmem:[#allocation7 + $0x12c8] sm:$0xff] }
 0x2da   :  { %5082 = vmatpush2.msra.mxu0 %v4730_v8  ;;  %5159 = vmatpush1.msra.mxu1 %v4778_v25  ;;  %v4770_v8 = vld [vmem:[#allocation7 + $0x12c0] sm:$0xff]  ;;  %v4767_v20 = vld [vmem:[#allocation7 + $0x12a8] sm:$0xff] }
 0x2db   :  { %4497 = vmatprep.mubr.f32.mxu1 %v13349_v39  ;;  %5083 = vmatprep.subr.mxu0 %v4727_v32  ;;  %v3560_v53 = vpop.f32.mrf.mxu1  ;;  %v4715_v39 = vld [vmem:[#allocation7 + $0x1108] sm:$0xff]  ;;  %v4714_v32 = vld [vmem:[#allocation7 + $0x1100] sm:$0xff] }
 0x2dc   :  { %5084 = vmatpush2.msra.mxu0 %v4726_v16  ;;  %5160 = vmatprep.subr.mxu1 %v4775_v4  ;;  %v4794_v16 = vcombine.low %v17356_v44, %v17355_v31  ;;  %v4707_v31 = vld [vmem:[#allocation7 + $0x10c8] sm:$0xff] }
 0x2dd   :  { %5085 = vmatprep.subr.mxu0 %v4723_v30  ;;  %5161 = vmatpush1.msra.mxu1 %v4774_v18  ;;  %v13742_v15 = vpop.f32.mrf.mxu1  ;;  %v3459_v26 = vpop.f32.mrf.mxu0  ;;  %v4710_v18 = vld [vmem:[#allocation7 + $0x10e0] sm:$0xff] }
 0x2de   :  { %17367 = vst [vmem:[#allocation58_spill] sm:$0xff] %v13742_v15  ;;  %4498 = vmatmul.mubr.f32.gmra.mxu1 %v17350_v13  ;;  %5086 = vmatpush2.msra.mxu0 %v4722_v63  ;;  %v3460_v25 = vadd.f32 %v3459_v26, %v13581_v33  ;;  %v4766_v33 = vld [vmem:[#allocation7 + $0x12a0] sm:$0xff]  ;;  %v17368_v63 = vld [vmem:[#allocation45_spill] sm:$0xff] }
 0x2df   :  { %4503 = vmatprep.mubr.f32.mxu1 %v13647_v29  ;;  %5087 = vmatprep.subr.mxu0 %v4719_v17  ;;  %v13749_v4 = vpop.f32.mrf.mxu0  ;;  %v4818_v29 = vrot.slane %v4796_v62, %v12345_v46  ;;  %v17369_v17 = vld [vmem:[#allocation42_spill] sm:$0xff]  ;;  %v4804_v62 = vrot.slane %v4794_v16, %v12345_v46  ;;  %v4700_v16 = vld [vmem:[#allocation7 + $0x1090] sm:$0xff] }
 0x2e0   :  { %5088 = vmatpush2.msra.mxu0 %v4718_v40  ;;  %5162 = vmatprep.subr.mxu1 %v4771_v61  ;;  %v13751_v30 = vadd.f32 %v3560_v53, %v3460_v25  ;;  %v3566_v13 = vpop.f32.mrf.mxu1  ;;  %v4832_v26 = vcombine.high %v17369_v17, %v17368_v63  ;;  %v4831_v44 = vcombine.low %v17369_v17, %v17368_v63  ;;  %v4701_v61 = vld [vmem:[#allocation7 + $0x1098] sm:$0xff]  ;;  %v17372_v25 = vld [vmem:[#allocation39_spill] sm:$0xff] }
 0x2e1   :  { %5089 = vmatprep.subr.mxu0 %v4715_v39  ;;  %5163 = vmatpush1.msra.mxu1 %v4770_v8  ;;  %v3465_v52 = vpop.f32.mrf.mxu0  ;;  %v4706_v39 = vld [vmem:[#allocation7 + $0x10c0] sm:$0xff]  ;;  %v17371_v8 = vld [vmem:[#allocation41_spill] sm:$0xff] }
 0x2e2   :  { %4504 = vmatmul.mubr.f32.gmra.mxu1 %v13643_v19  ;;  %5090 = vmatpush2.msra.mxu0 %v4714_v32  ;;  %v13759_v53 = vpop.f32.mrf.mxu1  ;;  %v3466_v40 = vadd.f32 %v3465_v52, %v13590_v36  ;;  %v4830_v50 = vcombine.high %v17372_v25, %v17371_v8  ;;  %v4703_v19 = vld [vmem:[#allocation7 + $0x10a8] sm:$0xff]  ;;  %v4829_v32 = vcombine.low %v17372_v25, %v17371_v8  ;;  %v17376_v25 = vld [vmem:[#allocation53_spill] sm:$0xff] }
 0x2e3   :  { %17370 = vst [vmem:[#allocation81_spill] sm:$0xff] %v13759_v53  ;;  %5091 = vmatprep.subr.mxu0 %v4711_v6  ;;  %5164 = vmatprep.subr.mxu1 %v4767_v20  ;;  %v13765_v55 = vpop.f32.mrf.mxu0  ;;  %v13772_v52 = vcombine.high %v4804_v62, %v4818_v29  ;;  %v4702_v6 = vld [vmem:[#allocation7 + $0x10a0] sm:$0xff]  ;;  %v4860_v20 = vrot.slane %v4832_v26, %v12345_v46  ;;  %v4676_v53 = vld [vmem:[#allocation7 + $0xfd0] sm:$0xff] }
 0x2e4   :  { %17373 = vst [vmem:[#allocation38_spill] sm:$0xff] %v13765_v55  ;;  %5092 = vmatpush2.msra.mxu0 %v4710_v18  ;;  %5165 = vmatpush1.msra.mxu1 %v4766_v33  ;;  %v13769_v63 = vadd.f32 %v3566_v13, %v3466_v40  ;;  %v3572_v36 = vpop.f32.mrf.mxu1  ;;  %v4697_v18 = vld [vmem:[#allocation7 + $0x1078] sm:$0xff]  ;;  %v4853_v33 = vrot.slane %v4831_v44, %v12345_v46 }
 0x2e5   :  { %5093 = vmatprep.subr.mxu0 %v4707_v31  ;;  %5198 = vmatprep.mubr.f32.mxu1 %v17230_v49  ;;  %v3471_v17 = vpop.f32.mrf.mxu0  ;;  %v4696_v31 = vld [vmem:[#allocation7 + $0x1070] sm:$0xff]  ;;  %v13781_v40 = vcombine.low %v4804_v62, %v4818_v29  ;;  %v4846_v8 = vrot.slane %v4830_v50, %v12345_v46  ;;  %v4839_v44 = vrot.slane %v4829_v32, %v12345_v46  ;;  %v17377_v62 = vld [vmem:[#allocation62_spill] sm:$0xff] }
 0x2e6   :  { %5235 = vmatprep.subr.mxu1 %v4701_v61  ;;  %5094 = vmatpush2.msra.mxu0 %v4706_v39  ;;  %v13776_v43 = vpop.f32.mrf.mxu1  ;;  %v3472_v13 = vadd.f32 %v3471_v17, %v13599_v45  ;;  %v4693_v61 = vld [vmem:[#allocation7 + $0x1058] sm:$0xff]  ;;  %v4916_v29 = vcombine.high %v17328_v54, %v17376_v25  ;;  %v4692_v32 = vld [vmem:[#allocation7 + $0x1050] sm:$0xff] }
 0x2e7   :  { %17374 = vst [vmem:[#allocation31_spill] sm:$0xff] %v13776_v43  ;;  %10981 = vmatmul.mubr.msk.f32.vlgmr.msra.gmra.mxu1 %vm2593_vm10, %v13772_v52  ;;  %5095 = vmatprep.subr.mxu0 %v4703_v19  ;;  %v13784_v26 = vpop.f32.mrf.mxu0  ;;  %v13790_v45 = vcombine.low %v4846_v8, %v4860_v20  ;;  %v17378_v19 = vld [vmem:[#allocation54_spill] sm:$0xff] }
 0x2e8   :  { %17375 = vst [vmem:[#allocation32_spill] sm:$0xff] %v13784_v26  ;;  %5236 = vmatpush1.msra.mxu1 %v4700_v16  ;;  %5096 = vmatpush2.msra.mxu0 %v4702_v6  ;;  %v13787_v39 = vadd.f32 %v3572_v36, %v3472_v13  ;;  %v4918_v50 = vcombine.high %v17378_v19, %v17377_v62  ;;  %v4793_v17 = vld [vmem:[#allocation7 + $0x1378] sm:$0xff]  ;;  %v3578_v20 = vpop.f32.mrf.mxu1 }
 0x2e9   :  { %5237 = vmatprep.subr.mxu1 %v4697_v18  ;;  %5098 = vmatmul.mubr.f32.vlgmr.msra.gmra.mxu0 %v13781_v40  ;;  %v13797_v16 = vcombine.high %v4839_v44, %v4853_v33  ;;  %v4915_v36 = vcombine.low %v17328_v54, %v17376_v25  ;;  %v4917_v6 = vcombine.low %v17378_v19, %v17377_v62  ;;  %v4689_v18 = vld [vmem:[#allocation7 + $0x1038] sm:$0xff] }
 0x2ea   :  { %5238 = vmatpush1.msra.mxu1 %v4696_v31  ;;  %5204 = vmatprep.mubr.f32.mxu1 %v17230_v49  ;;  %v13804_v13 = vcombine.low %v4839_v44, %v4853_v33  ;;  %v4688_v31 = vld [vmem:[#allocation7 + $0x1030] sm:$0xff]  ;;  %v4685_v54 = vld [vmem:[#allocation7 + $0x1018] sm:$0xff]  ;;  %v4932_v25 = vrot.slane %v4916_v29, %v12345_v46 }
 0x2eb   :  { %5239 = vmatprep.subr.mxu1 %v4693_v61  ;;  %5103 = vmatprep.mubr.f32.mxu0 %v13790_v45  ;;  %v3477_v8 = vpop.f32.mrf.mxu0  ;;  %v4946_v61 = vrot.slane %v4918_v50, %v12345_v46  ;;  %v4684_v33 = vld [vmem:[#allocation7 + $0x1010] sm:$0xff]  ;;  %v4925_v44 = vrot.slane %v4915_v36, %v12345_v46  ;;  %v4939_v19 = vrot.slane %v4917_v6, %v12345_v46  ;;  %v4681_v29 = vld [vmem:[#allocation7 + $0xff8] sm:$0xff]  ;;  %v17382_v50 = vld [vmem:[#allocation63_spill] sm:$0xff] }
 0x2ec   :  { %10982 = vmatmul.mubr.msk.f32.gmra.mxu1 %vm2593_vm10, %v13797_v16  ;;  %5354 = vmatprep.subr.mxu0 %v4793_v17  ;;  %v3478_v57 = vadd.f32 %v3477_v8, %v13611_v14  ;;  %v13817_v17 = vpop.f32.mrf.mxu1  ;;  %v4680_v36 = vld [vmem:[#allocation7 + $0xff0] sm:$0xff] }
 0x2ed   :  { %5240 = vmatpush1.msra.mxu1 %v4692_v32  ;;  %5104 = vmatmul.mubr.f32.gmra.mxu0 %v13804_v13  ;;  %v13812_v62 = vpop.f32.mrf.mxu0  ;;  %17380 = vst [vmem:[#allocation45_spill] sm:$0xff] %v13817_v17  ;;  %v17381_v32 = vld [vmem:[#allocation64_spill] sm:$0xff]  ;;  %v4985_v17 = vcombine.low %v13382_v11, %v13423_v56  ;;  %v13838_v26 = vcombine.high %v4925_v44, %v4939_v19 }
 0x2ee   :  { %17379 = vst [vmem:[#allocation29_spill] sm:$0xff] %v13812_v62  ;;  %5241 = vmatprep.subr.mxu1 %v4689_v18  ;;  %5210 = vmatprep.mubr.f32.mxu1 %v17230_v49  ;;  %v13819_v14 = vadd.f32 %v3578_v20, %v3478_v57  ;;  %v4951_v8 = vcombine.high %v17382_v50, %v17381_v32  ;;  %v17383_v62 = vld [vmem:[#allocation43_spill] sm:$0xff]  ;;  %v17384_v18 = vld [vmem:[#allocation65_spill] sm:$0xff] }
 0x2ef   :  { %5242 = vmatpush1.msra.mxu1 %v4688_v31  ;;  %5109 = vmatprep.mubr.f32.mxu0 %v13384_v2  ;;  %v4953_v43 = vcombine.high %v17384_v18, %v17383_v62  ;;  %v4950_v6 = vcombine.low %v17382_v50, %v17381_v32  ;;  %v4952_v57 = vcombine.low %v17384_v18, %v17383_v62  ;;  %v4677_v20 = vld [vmem:[#allocation7 + $0xfd8] sm:$0xff]  ;;  %v4792_v32 = vld [vmem:[#allocation7 + $0x1370] sm:$0xff]  ;;  %v3584_v50 = vpop.f32.mrf.mxu1 }
 0x2f0   :  { %5243 = vmatprep.subr.mxu1 %v4685_v54  ;;  %10983 = vmatmul.mubr.msk.f32.gmra.mxu1 %vm2593_vm10, %v13386_v22  ;;  %v13833_v31 = vcombine.low %v4932_v25, %v4946_v61  ;;  %v4789_v25 = vld [vmem:[#allocation7 + $0x1358] sm:$0xff]  ;;  %v4967_v61 = vrot.slane %v4951_v8, %v12345_v46 }
 0x2f1   :  { %5244 = vmatpush1.msra.mxu1 %v4684_v33  ;;  %5110 = vmatmul.mubr.f32.gmra.mxu0 %v13388_v7  ;;  %v3483_v54 = vpop.f32.mrf.mxu0  ;;  %v4673_v33 = vld [vmem:[#allocation7 + $0xfb8] sm:$0xff]  ;;  %v4981_v11 = vrot.slane %v4953_v43, %v12345_v46  ;;  %v4960_v62 = vrot.slane %v4950_v6, %v12345_v46  ;;  %v4974_v15 = vrot.slane %v4952_v57, %v12345_v46 }
 0x2f2   :  { %5245 = vmatprep.subr.mxu1 %v4681_v29  ;;  %5216 = vmatprep.mubr.f32.mxu1 %v17230_v49  ;;  %v3484_v18 = vadd.f32 %v3483_v54, %v13623_v5  ;;  %v4672_v29 = vld [vmem:[#allocation7 + $0xfb0] sm:$0xff]  ;;  %v4669_v8 = vld [vmem:[#allocation7 + $0xf98] sm:$0xff]  ;;  %v13855_v43 = vrot.slane %v4985_v17, %v12345_v46  ;;  %v13857_v54 = vpop.f32.mrf.mxu1 }
 0x2f3   :  { %5246 = vmatpush1.msra.mxu1 %v4680_v36  ;;  %5115 = vmatprep.mubr.f32.mxu0 %v13833_v31  ;;  %v13850_v5 = vpop.f32.mrf.mxu0  ;;  %v13852_v36 = vcombine.low %v4925_v44, %v4939_v19  ;;  %17386 = vst [vmem:[#allocation41_spill] sm:$0xff] %v13857_v54  ;;  %v13860_v6 = vcombine.low %v4967_v61, %v4981_v11  ;;  %v4785_v57 = vld [vmem:[#allocation7 + $0x1338] sm:$0xff]  ;;  %v4668_v44 = vld [vmem:[#allocation7 + $0xf90] sm:$0xff] }
 0x2f4   :  { %5247 = vmatprep.subr.mxu1 %v4677_v20  ;;  %10984 = vmatmul.mubr.msk.f32.gmra.mxu1 %vm2593_vm10, %v13838_v26  ;;  %v13848_v55 = vadd.f32 %v3584_v50, %v3484_v18  ;;  %17385 = vst [vmem:[#allocation42_spill] sm:$0xff] %v13855_v43  ;;  %v4788_v20 = vld [vmem:[#allocation7 + $0x1350] sm:$0xff]  ;;  %v4781_v50 = vld [vmem:[#allocation7 + $0x1318] sm:$0xff]  ;;  %v4993_v18 = vcombine.high %v13855_v43, %v13855_v43  ;;  %v3590_v11 = vpop.f32.mrf.mxu1 }
 0x2f5   :  { %5248 = vmatpush1.msra.mxu1 %v4676_v53  ;;  %5355 = vmatpush1.msra.mxu0 %v4792_v32  ;;  %v13863_v53 = vcombine.high %v4960_v62, %v4974_v15  ;;  %v4784_v19 = vld [vmem:[#allocation7 + $0x1330] sm:$0xff]  ;;  %v4665_v32 = vld [vmem:[#allocation7 + $0xf78] sm:$0xff]  ;;  %v13873_v61 = vrot.slane %v13855_v43, %v12345_v46 }
 0x2f6   :  { %5249 = vmatprep.subr.mxu1 %v4673_v33  ;;  %5356 = vmatprep.subr.mxu0 %v4789_v25  ;;  %v4664_v25 = vld [vmem:[#allocation7 + $0xf70] sm:$0xff] }
 0x2f7   :  { %5250 = vmatpush1.msra.mxu1 %v4672_v29  ;;  %5116 = vmatmul.mubr.f32.gmra.mxu0 %v13852_v36  ;;  %v13875_v29 = vcombine.low %v4960_v62, %v4974_v15  ;;  %v13886_v15 = vcombine.high %v13873_v61, %v13873_v61  ;;  %v4660_v62 = vld [vmem:[#allocation7 + $0xf50] sm:$0xff] }
 0x2f8   :  { %5222 = vmatprep.mubr.f32.mxu1 %v17230_v49  ;;  %5251 = vmatprep.subr.mxu1 %v4669_v8  ;;  %v3489_v17 = vpop.f32.mrf.mxu0  ;;  %v4661_v8 = vld [vmem:[#allocation7 + $0xf58] sm:$0xff]  ;;  %v4648_v54 = vld [vmem:[#allocation7 + $0xef0] sm:$0xff] }
 0x2f9   :  { %5357 = vmatpush1.msra.mxu0 %v4788_v20  ;;  %5121 = vmatprep.mubr.f32.mxu0 %v13860_v6  ;;  %v3490_v33 = vadd.f32 %v3489_v17, %v13634_v37  ;;  %v4780_v37 = vld [vmem:[#allocation7 + $0x1310] sm:$0xff]  ;;  %v4777_v17 = vld [vmem:[#allocation7 + $0x12f8] sm:$0xff] }
 0x2fa   :  { %10985 = vmatmul.mubr.msk.f32.gmra.mxu1 %vm2593_vm10, %v13863_v53  ;;  %5358 = vmatprep.subr.mxu0 %v4785_v57  ;;  %v13881_v57 = vrot.slane %v4993_v18, %v12345_v46  ;;  %v4653_v18 = vld [vmem:[#allocation7 + $0xf18] sm:$0xff] }
 0x2fb   :  { %5252 = vmatpush1.msra.mxu1 %v4668_v44  ;;  %5359 = vmatpush1.msra.mxu0 %v4784_v19  ;;  %v13877_v20 = vadd.f32 %v3590_v11, %v3490_v33  ;;  %v4657_v44 = vld [vmem:[#allocation7 + $0xf38] sm:$0xff]  ;;  %v4776_v19 = vld [vmem:[#allocation7 + $0x12f0] sm:$0xff] }
 0x2fc   :  { %5253 = vmatprep.subr.mxu1 %v4665_v32  ;;  %5360 = vmatprep.subr.mxu0 %v4781_v50  ;;  %v4656_v32 = vld [vmem:[#allocation7 + $0xf30] sm:$0xff]  ;;  %v4773_v50 = vld [vmem:[#allocation7 + $0x12d8] sm:$0xff] }
 0x2fd   :  { %5254 = vmatpush1.msra.mxu1 %v4664_v25  ;;  %5122 = vmatmul.mubr.f32.gmra.mxu0 %v13875_v29  ;;  %v4772_v33 = vld [vmem:[#allocation7 + $0x12d0] sm:$0xff]  ;;  %v4769_v11 = vld [vmem:[#allocation7 + $0x12b8] sm:$0xff] }
 0x2fe   :  { %5228 = vmatprep.mubr.f32.mxu1 %v17230_v49  ;;  %5255 = vmatprep.subr.mxu1 %v4661_v8  ;;  %v4652_v25 = vld [vmem:[#allocation7 + $0xf10] sm:$0xff]  ;;  %v4649_v8 = vld [vmem:[#allocation7 + $0xef8] sm:$0xff] }
 0x2ff   :  { %5361 = vmatpush1.msra.mxu0 %v4780_v37  ;;  %5127 = vmatprep.mubr.f32.mxu0 %v13881_v57  ;;  %v4768_v37 = vld [vmem:[#allocation7 + $0x12b0] sm:$0xff] }
 0x300   :  { %10986 = vmatmul.mubr.msk.f32.gmra.mxu1 %vm2593_vm10, %v13886_v15  ;;  %5362 = vmatprep.subr.mxu0 %v4777_v17  ;;  %v5537_v17 = vld [vmem:[#allocation7 + $0x1568] sm:$0xff] }
 0x301   :  { %5256 = vmatpush1.msra.mxu1 %v4660_v62  ;;  %5299 = vmatprep.mubr.f32.mxu1 %v13693_v60  ;;  %v4645_v60 = vld [vmem:[#allocation7 + $0xed8] sm:$0xff]  ;;  %v5536_v62 = vld [vmem:[#allocation7 + $0x1560] sm:$0xff] }
 0x302   :  { %5257 = vmatprep.subr.mxu1 %v4657_v44  ;;  %5363 = vmatpush1.msra.mxu0 %v4776_v19  ;;  %v4644_v44 = vld [vmem:[#allocation7 + $0xed0] sm:$0xff]  ;;  %v5533_v19 = vld [vmem:[#allocation7 + $0x1548] sm:$0xff] }
 0x303   :  { %5258 = vmatpush1.msra.mxu1 %v4656_v32  ;;  %5364 = vmatprep.subr.mxu0 %v4773_v50  ;;  %v4641_v32 = vld [vmem:[#allocation7 + $0xeb8] sm:$0xff]  ;;  %v5532_v50 = vld [vmem:[#allocation7 + $0x1540] sm:$0xff] }
 0x304   :  { %5128 = vmatmul.mubr.f32.gmra.mxu0 %v13873_v61  ;;  %5259 = vmatprep.subr.mxu1 %v4653_v18  ;;  %v4640_v18 = vld [vmem:[#allocation7 + $0xeb0] sm:$0xff] }
 0x305   :  { %5365 = vmatpush1.msra.mxu0 %v4772_v33  ;;  %5260 = vmatpush1.msra.mxu1 %v4652_v25  ;;  %v5529_v33 = vld [vmem:[#allocation7 + $0x1528] sm:$0xff]  ;;  %v4765_v25 = vld [vmem:[#allocation7 + $0x1298] sm:$0xff] }
 0x306   :  { %5366 = vmatprep.subr.mxu0 %v4769_v11  ;;  %5261 = vmatprep.subr.mxu1 %v4649_v8  ;;  %v4764_v11 = vld [vmem:[#allocation7 + $0x1290] sm:$0xff]  ;;  %v5525_v8 = vld [vmem:[#allocation7 + $0x1508] sm:$0xff] }
 0x307   :  { %5367 = vmatpush1.msra.mxu0 %v4768_v37  ;;  %5262 = vmatpush1.msra.mxu1 %v4648_v54  ;;  %v5528_v54 = vld [vmem:[#allocation7 + $0x1520] sm:$0xff]  ;;  %v4761_v37 = vld [vmem:[#allocation7 + $0x1278] sm:$0xff] }
 0x308   :  { %5400 = vmatprep.mubr.f32.mxu0 %v17230_v49  ;;  %5759 = vmatprep.subr.mxu0 %v5537_v17  ;;  %v4760_v17 = vld [vmem:[#allocation7 + $0x1270] sm:$0xff] }
 0x309   :  { %5263 = vmatprep.subr.mxu1 %v4645_v60  ;;  %10987 = vmatmul.mubr.msk.f32.vlgmr.msra.gmra.mxu0 %vm2593_vm10, %v13772_v52  ;;  %v5524_v52 = vld [vmem:[#allocation7 + $0x1500] sm:$0xff]  ;;  %v5521_v60 = vld [vmem:[#allocation7 + $0x14e8] sm:$0xff] }
 0x30a   :  { %5760 = vmatpush1.msra.mxu0 %v5536_v62  ;;  %5264 = vmatpush1.msra.mxu1 %v4644_v44  ;;  %v4757_v62 = vld [vmem:[#allocation7 + $0x1258] sm:$0xff]  ;;  %v13899_v44 = vpop.f32.mrf.mxu0 }
 0x30b   :  { %5761 = vmatprep.subr.mxu0 %v5533_v19  ;;  %5265 = vmatprep.subr.mxu1 %v4641_v32  ;;  %17387 = vst [vmem:[#allocation39_spill] sm:$0xff] %v13899_v44  ;;  %v5520_v19 = vld [vmem:[#allocation7 + $0x14e0] sm:$0xff]  ;;  %v4756_v32 = vld [vmem:[#allocation7 + $0x1250] sm:$0xff] }
 0x30c   :  { %5762 = vmatpush1.msra.mxu0 %v5532_v50  ;;  %5266 = vmatpush1.msra.mxu1 %v4640_v18  ;;  %v5517_v50 = vld [vmem:[#allocation7 + $0x14c8] sm:$0xff]  ;;  %v4753_v18 = vld [vmem:[#allocation7 + $0x1238] sm:$0xff]  ;;  %v5480_v44 = vld [vmem:[#allocation7 + $0x13a0] sm:$0xff] }
 0x30d   :  { %5406 = vmatprep.mubr.f32.mxu0 %v17230_v49  ;;  %5763 = vmatprep.subr.mxu0 %v5529_v33  ;;  %v4752_v33 = vld [vmem:[#allocation7 + $0x1230] sm:$0xff] }
 0x30e   :  { %5267 = vmatprep.subr.mxu1 %v4765_v25  ;;  %10988 = vmatmul.mubr.msk.f32.gmra.mxu0 %vm2593_vm10, %v13797_v16  ;;  %v5516_v16 = vld [vmem:[#allocation7 + $0x14c0] sm:$0xff]  ;;  %v5513_v25 = vld [vmem:[#allocation7 + $0x14a8] sm:$0xff] }
 0x30f   :  { %5764 = vmatpush1.msra.mxu0 %v5528_v54  ;;  %5268 = vmatpush2.msra.mxu1 %v4764_v11  ;;  %v13904_v54 = vpop.f32.mrf.mxu0  ;;  %v4749_v11 = vld [vmem:[#allocation7 + $0x1218] sm:$0xff] }
 0x310   :  { %5765 = vmatprep.subr.mxu0 %v5525_v8  ;;  %5269 = vmatprep.subr.mxu1 %v4761_v37  ;;  %v5512_v8 = vld [vmem:[#allocation7 + $0x14a0] sm:$0xff]  ;;  %v4748_v37 = vld [vmem:[#allocation7 + $0x1210] sm:$0xff] }
 0x311   :  { %5766 = vmatpush1.msra.mxu0 %v5524_v52  ;;  %5270 = vmatpush2.msra.mxu1 %v4760_v17  ;;  %v5509_v52 = vld [vmem:[#allocation7 + $0x1488] sm:$0xff]  ;;  %v4745_v17 = vld [vmem:[#allocation7 + $0x11f8] sm:$0xff] }
 0x312   :  { %5412 = vmatprep.mubr.f32.mxu0 %v17230_v49  ;;  %5767 = vmatprep.subr.mxu0 %v5521_v60  ;;  %v4744_v60 = vld [vmem:[#allocation7 + $0x11f0] sm:$0xff] }
 0x313   :  { %5271 = vmatprep.subr.mxu1 %v4757_v62  ;;  %10989 = vmatmul.mubr.msk.f32.gmra.mxu0 %vm2593_vm10, %v13386_v22  ;;  %v5508_v22 = vld [vmem:[#allocation7 + $0x1480] sm:$0xff]  ;;  %v13909_v62 = vpop.f32.mrf.mxu0 }
 0x314   :  { %5768 = vmatpush1.msra.mxu0 %v5520_v19  ;;  %5272 = vmatpush2.msra.mxu1 %v4756_v32  ;;  %17388 = vst [vmem:[#allocation53_spill] sm:$0xff] %v13909_v62  ;;  %v5505_v19 = vld [vmem:[#allocation7 + $0x1468] sm:$0xff]  ;;  %v4741_v32 = vld [vmem:[#allocation7 + $0x11d8] sm:$0xff] }
 0x315   :  { %5769 = vmatprep.subr.mxu0 %v5517_v50  ;;  %5273 = vmatprep.subr.mxu1 %v4753_v18  ;;  %v5504_v50 = vld [vmem:[#allocation7 + $0x1460] sm:$0xff]  ;;  %v4740_v18 = vld [vmem:[#allocation7 + $0x11d0] sm:$0xff]  ;;  %v4717_v62 = vld [vmem:[#allocation7 + $0x1118] sm:$0xff] }
 0x316   :  { %5770 = vmatpush1.msra.mxu0 %v5516_v16  ;;  %5274 = vmatpush2.msra.mxu1 %v4752_v33  ;;  %v5501_v16 = vld [vmem:[#allocation7 + $0x1448] sm:$0xff]  ;;  %v4737_v33 = vld [vmem:[#allocation7 + $0x11b8] sm:$0xff] }
 0x317   :  { %5418 = vmatprep.mubr.f32.mxu0 %v17230_v49  ;;  %5771 = vmatprep.subr.mxu0 %v5513_v25  ;;  %v5500_v25 = vld [vmem:[#allocation7 + $0x1440] sm:$0xff] }
 0x318   :  { %5275 = vmatprep.subr.mxu1 %v4749_v11  ;;  %10990 = vmatmul.mubr.msk.f32.gmra.mxu0 %vm2593_vm10, %v13838_v26  ;;  %v13912_v26 = vpop.f32.mrf.mxu0  ;;  %v4736_v11 = vld [vmem:[#allocation7 + $0x11b0] sm:$0xff] }
 0x319   :  { %5772 = vmatpush1.msra.mxu0 %v5512_v8  ;;  %5276 = vmatpush2.msra.mxu1 %v4748_v37  ;;  %v5497_v8 = vld [vmem:[#allocation7 + $0x1428] sm:$0xff]  ;;  %v4733_v37 = vld [vmem:[#allocation7 + $0x1198] sm:$0xff] }
 0x31a   :  { %5773 = vmatprep.subr.mxu0 %v5509_v52  ;;  %5277 = vmatprep.subr.mxu1 %v4745_v17  ;;  %v5496_v52 = vld [vmem:[#allocation7 + $0x1420] sm:$0xff]  ;;  %v4732_v17 = vld [vmem:[#allocation7 + $0x1190] sm:$0xff] }
 0x31b   :  { %5774 = vmatpush1.msra.mxu0 %v5508_v22  ;;  %5278 = vmatpush2.msra.mxu1 %v4744_v60  ;;  %v13916_v22 = vpop.f32.mrf.mxu0  ;;  %v5493_v60 = vld [vmem:[#allocation7 + $0x1408] sm:$0xff] }
 0x31c   :  { %5424 = vmatprep.mubr.f32.mxu0 %v17230_v49  ;;  %5775 = vmatprep.subr.mxu0 %v5505_v19  ;;  %17389 = vst [vmem:[#allocation62_spill] sm:$0xff] %v13916_v22  ;;  %v5492_v19 = vld [vmem:[#allocation7 + $0x1400] sm:$0xff] }
 0x31d   :  { %5279 = vmatprep.subr.mxu1 %v4741_v32  ;;  %10991 = vmatmul.mubr.msk.f32.gmra.mxu0 %vm2593_vm10, %v13863_v53  ;;  %v4729_v53 = vld [vmem:[#allocation7 + $0x1178] sm:$0xff]  ;;  %v4728_v32 = vld [vmem:[#allocation7 + $0x1170] sm:$0xff] }
 0x31e   :  { %5776 = vmatpush1.msra.mxu0 %v5504_v50  ;;  %5280 = vmatpush2.msra.mxu1 %v4740_v18  ;;  %v5489_v50 = vld [vmem:[#allocation7 + $0x13e8] sm:$0xff]  ;;  %v4725_v18 = vld [vmem:[#allocation7 + $0x1158] sm:$0xff] }
 0x31f   :  { %5777 = vmatprep.subr.mxu0 %v5501_v16  ;;  %5281 = vmatprep.subr.mxu1 %v4737_v33  ;;  %v5488_v16 = vld [vmem:[#allocation7 + $0x13e0] sm:$0xff]  ;;  %v13922_v33 = vpop.f32.mrf.mxu0 }
 0x320   :  { %5778 = vmatpush1.msra.mxu0 %v5500_v25  ;;  %5282 = vmatpush2.msra.mxu1 %v4736_v11  ;;  %v13924_v25 = vpop.f32.mrf.mxu1  ;;  %v4724_v11 = vld [vmem:[#allocation7 + $0x1150] sm:$0xff] }
 0x321   :  { %5430 = vmatprep.mubr.f32.mxu0 %v17230_v49  ;;  %5779 = vmatprep.subr.mxu0 %v5497_v8  ;;  %17390 = vst [vmem:[#allocation54_spill] sm:$0xff] %v13924_v25  ;;  %v5485_v8 = vld [vmem:[#allocation7 + $0x13c8] sm:$0xff]  ;;  %v13926_v22 = vpop.f32.mrf.mxu0 }
 0x322   :  { %5283 = vmatprep.subr.mxu1 %v4733_v37  ;;  %10992 = vmatmul.mubr.msk.f32.gmra.mxu0 %vm2593_vm10, %v13886_v15  ;;  %v4721_v15 = vld [vmem:[#allocation7 + $0x1138] sm:$0xff]  ;;  %v5484_v37 = vld [vmem:[#allocation7 + $0x13c0] sm:$0xff]  ;;  %17391 = vst [vmem:[#allocation64_spill] sm:$0xff] %v13926_v22 }
 0x323   :  { %5780 = vmatpush1.msra.mxu0 %v5496_v52  ;;  %5284 = vmatpush2.msra.mxu1 %v4732_v17  ;;  %v4720_v52 = vld [vmem:[#allocation7 + $0x1130] sm:$0xff]  ;;  %v5481_v17 = vld [vmem:[#allocation7 + $0x13a8] sm:$0xff] }
 0x324   :  { %5781 = vmatprep.subr.mxu0 %v5493_v60  ;;  %5823 = vmatprep.mubr.f32.mxu0 %v13403_v47 }
 0x325   :  { %5285 = vmatprep.subr.mxu1 %v4729_v53  ;;  %5782 = vmatpush1.msra.mxu0 %v5492_v19  ;;  %v4716_v19 = vld [vmem:[#allocation7 + $0x1110] sm:$0xff] }
 0x326   :  { %5286 = vmatpush2.msra.mxu1 %v4728_v32  ;;  %5783 = vmatprep.subr.mxu0 %v5489_v50  ;;  %v5477_v32 = vld [vmem:[#allocation7 + $0x1388] sm:$0xff] }
 0x327   :  { %5287 = vmatprep.subr.mxu1 %v4725_v18  ;;  %5784 = vmatpush1.msra.mxu0 %v5488_v16  ;;  %v3661_v60 = vpop.f32.mrf.mxu1  ;;  %v4713_v18 = vld [vmem:[#allocation7 + $0x10f8] sm:$0xff]  ;;  %v5476_v16 = vld [vmem:[#allocation7 + $0x1380] sm:$0xff] }
 0x328   :  { %5288 = vmatpush2.msra.mxu1 %v4724_v11  ;;  %5785 = vmatprep.subr.mxu0 %v5485_v8  ;;  %v3662_v53 = vadd.f32 %v3661_v60, %v13701_v58  ;;  %v4712_v11 = vld [vmem:[#allocation7 + $0x10f0] sm:$0xff]  ;;  %v5601_v8 = vld [vmem:[#allocation7 + $0x1768] sm:$0xff]  ;;  %v3780_v58 = vpop.f32.mrf.mxu0 }
 0x329   :  { %5289 = vmatprep.subr.mxu1 %v4721_v15  ;;  %5786 = vmatpush1.msra.mxu0 %v5484_v37  ;;  %v13929_v50 = vpop.f32.mrf.mxu1  ;;  %v4709_v15 = vld [vmem:[#allocation7 + $0x10d8] sm:$0xff]  ;;  %v5600_v37 = vld [vmem:[#allocation7 + $0x1760] sm:$0xff] }
 0x32a   :  { %17392 = vst [vmem:[#allocation63_spill] sm:$0xff] %v13929_v50  ;;  %5290 = vmatpush2.msra.mxu1 %v4720_v52  ;;  %5787 = vmatprep.subr.mxu0 %v5481_v17  ;;  %v13932_v25 = vadd.f32 %v13904_v54, %v3662_v53  ;;  %v4708_v52 = vld [vmem:[#allocation7 + $0x10d0] sm:$0xff]  ;;  %v5597_v17 = vld [vmem:[#allocation7 + $0x1748] sm:$0xff]  ;;  %v4705_v54 = vld [vmem:[#allocation7 + $0x10b8] sm:$0xff]  ;;  %v13940_v43 = vpop.f32.mrf.mxu0 }
 0x32b   :  { %5291 = vmatprep.subr.mxu1 %v4717_v62  ;;  %5788 = vmatpush1.msra.mxu0 %v5480_v44  ;;  %v3667_v22 = vpop.f32.mrf.mxu1  ;;  %v5596_v44 = vld [vmem:[#allocation7 + $0x1740] sm:$0xff]  ;;  %v4704_v53 = vld [vmem:[#allocation7 + $0x10b0] sm:$0xff]  ;;  %17393 = vst [vmem:[#allocation65_spill] sm:$0xff] %v13940_v43  ;;  %v5551_v43 = vld [vmem:[#allocation7 + $0x15d8] sm:$0xff] }
 0x32c   :  { %5292 = vmatpush2.msra.mxu1 %v4716_v19  ;;  %5789 = vmatprep.subr.mxu0 %v5477_v32  ;;  %v3668_v60 = vadd.f32 %v3667_v22, %v13706_v21  ;;  %v5593_v19 = vld [vmem:[#allocation7 + $0x1728] sm:$0xff]  ;;  %v5592_v21 = vld [vmem:[#allocation7 + $0x1720] sm:$0xff] }
 0x32d   :  { %5293 = vmatprep.subr.mxu1 %v4713_v18  ;;  %5790 = vmatpush1.msra.mxu0 %v5476_v16  ;;  %v13935_v50 = vpop.f32.mrf.mxu1  ;;  %v5629_v18 = vld [vmem:[#allocation7 + $0x1848] sm:$0xff] }
 0x32e   :  { %5294 = vmatpush2.msra.mxu1 %v4712_v11  ;;  %5791 = vmatprep.subr.mxu0 %v5601_v8  ;;  %v13938_v62 = vadd.f32 %v13912_v26, %v3668_v60  ;;  %v5589_v26 = vld [vmem:[#allocation7 + $0x1708] sm:$0xff]  ;;  %v5628_v11 = vld [vmem:[#allocation7 + $0x1840] sm:$0xff] }
 0x32f   :  { %5295 = vmatprep.subr.mxu1 %v4709_v15  ;;  %5792 = vmatpush2.msra.mxu0 %v5600_v37  ;;  %v3673_v32 = vpop.f32.mrf.mxu1  ;;  %v5588_v15 = vld [vmem:[#allocation7 + $0x1700] sm:$0xff]  ;;  %v5625_v37 = vld [vmem:[#allocation7 + $0x1828] sm:$0xff] }
 0x330   :  { %5296 = vmatpush2.msra.mxu1 %v4708_v52  ;;  %5793 = vmatprep.subr.mxu0 %v5597_v17  ;;  %v3674_v22 = vadd.f32 %v3673_v32, %v13712_v10  ;;  %v3786_v52 = vpop.f32.mrf.mxu0  ;;  %v5585_v10 = vld [vmem:[#allocation7 + $0x16e8] sm:$0xff] }
 0x331   :  { %5297 = vmatprep.subr.mxu1 %v4705_v54  ;;  %5794 = vmatpush2.msra.mxu0 %v5596_v44  ;;  %v13943_v16 = vpop.f32.mrf.mxu1  ;;  %v5584_v54 = vld [vmem:[#allocation7 + $0x16e0] sm:$0xff]  ;;  %v5621_v32 = vld [vmem:[#allocation7 + $0x1808] sm:$0xff] }
 0x332   :  { %5298 = vmatpush2.msra.mxu1 %v4704_v53  ;;  %5795 = vmatprep.subr.mxu0 %v5593_v19  ;;  %v13946_v8 = vadd.f32 %v13922_v33, %v3674_v22  ;;  %v5581_v33 = vld [vmem:[#allocation7 + $0x16c8] sm:$0xff]  ;;  %v5580_v19 = vld [vmem:[#allocation7 + $0x16c0] sm:$0xff] }
 0x333   :  { %5300 = vmatmul.mubr.f32.vlgmr.msra.gmra.mxu1 %v13781_v40  ;;  %5796 = vmatpush2.msra.mxu0 %v5592_v21  ;;  %v3679_v60 = vpop.f32.mrf.mxu1  ;;  %v5624_v40 = vld [vmem:[#allocation7 + $0x1820] sm:$0xff] }
 0x334   :  { %5878 = vmatprep.subr.mxu1 %v5629_v18  ;;  %5305 = vmatprep.mubr.f32.mxu1 %v13790_v45  ;;  %v3680_v17 = vadd.f32 %v3679_v60, %v13718_v24  ;;  %v13956_v45 = vpop.f32.mrf.mxu0  ;;  %v5577_v24 = vld [vmem:[#allocation7 + $0x16a8] sm:$0xff]  ;;  %v5576_v22 = vld [vmem:[#allocation7 + $0x16a0] sm:$0xff] }
 0x335   :  { %5797 = vmatprep.subr.mxu0 %v5589_v26  ;;  %5879 = vmatpush1.msra.mxu1 %v5628_v11  ;;  %v13951_v44 = vpop.f32.mrf.mxu1  ;;  %17395 = vst [vmem:[#allocation83_spill] sm:$0xff] %v13956_v45  ;;  %v5620_v18 = vld [vmem:[#allocation7 + $0x1800] sm:$0xff]  ;;  %v5569_v60 = vld [vmem:[#allocation7 + $0x1668] sm:$0xff] }
 0x336   :  { %17394 = vst [vmem:[#allocation82_spill] sm:$0xff] %v13951_v44  ;;  %5798 = vmatpush2.msra.mxu0 %v5588_v15  ;;  %5880 = vmatprep.subr.mxu1 %v5625_v37  ;;  %v13953_v53 = vadd.f32 %v3780_v58, %v3680_v17  ;;  %v5573_v58 = vld [vmem:[#allocation7 + $0x1688] sm:$0xff]  ;;  %v5568_v17 = vld [vmem:[#allocation7 + $0x1660] sm:$0xff] }
 0x337   :  { %5799 = vmatprep.subr.mxu0 %v5585_v10  ;;  %5306 = vmatmul.mubr.f32.gmra.mxu1 %v13804_v13  ;;  %v5572_v13 = vld [vmem:[#allocation7 + $0x1680] sm:$0xff]  ;;  %v5617_v15 = vld [vmem:[#allocation7 + $0x17e8] sm:$0xff] }
 0x338   :  { %5800 = vmatpush2.msra.mxu0 %v5584_v54  ;;  %5311 = vmatprep.mubr.f32.mxu1 %v13384_v2  ;;  %v3685_v21 = vpop.f32.mrf.mxu1  ;;  %v3792_v2 = vpop.f32.mrf.mxu0  ;;  %v5616_v54 = vld [vmem:[#allocation7 + $0x17e0] sm:$0xff]  ;;  %v6311_v44 = vld [vmem:[#allocation7 + $0x1c28] sm:$0xff] }
 0x339   :  { %5801 = vmatprep.subr.mxu0 %v5581_v33  ;;  %5881 = vmatpush1.msra.mxu1 %v5624_v40  ;;  %v3686_v26 = vadd.f32 %v3685_v21, %v13726_v35  ;;  %v3008_v35 = vadd.f32 %v13737_v59, %v13734_v51  ;;  %v5564_v40 = vld [vmem:[#allocation7 + $0x1640] sm:$0xff]  ;;  %v5561_v59 = vld [vmem:[#allocation7 + $0x1628] sm:$0xff] }
 0x33a   :  { %5802 = vmatpush2.msra.mxu0 %v5580_v19  ;;  %5882 = vmatprep.subr.mxu1 %v5621_v32  ;;  %v13960_v11 = vpop.f32.mrf.mxu1  ;;  %v5613_v19 = vld [vmem:[#allocation7 + $0x17c8] sm:$0xff]  ;;  %v3794_v51 = vpop.f32.mrf.mxu0  ;;  %v6194_v45 = vld [vmem:[#allocation7 + $0x1880] sm:$0xff] }
 0x33b   :  { %17396 = vst [vmem:[#allocation84_spill] sm:$0xff] %v13960_v11  ;;  %5803 = vmatprep.subr.mxu0 %v5577_v24  ;;  %5312 = vmatmul.mubr.f32.gmra.mxu1 %v13388_v7  ;;  %v13963_v37 = vadd.f32 %v3786_v52, %v3686_v26  ;;  %v5565_v7 = vld [vmem:[#allocation7 + $0x1648] sm:$0xff] }
 0x33c   :  { %5804 = vmatpush2.msra.mxu0 %v5576_v22  ;;  %5883 = vmatpush1.msra.mxu1 %v5620_v18  ;;  %v3691_v10 = vpop.f32.mrf.mxu1  ;;  %v5556_v18 = vld [vmem:[#allocation7 + $0x1600] sm:$0xff]  ;;  %v5609_v26 = vld [vmem:[#allocation7 + $0x17a8] sm:$0xff] }
 0x33d   :  { %5317 = vmatprep.mubr.f32.mxu1 %v13833_v31  ;;  %5805 = vmatprep.subr.mxu0 %v5573_v58  ;;  %v3692_v33 = vadd.f32 %v3691_v10, %v13732_v1  ;;  %v5612_v31 = vld [vmem:[#allocation7 + $0x17c0] sm:$0xff] }
 0x33e   :  { %5806 = vmatpush2.msra.mxu0 %v5572_v13  ;;  %5884 = vmatprep.subr.mxu1 %v5617_v15  ;;  %v3693_v52 = vpop.f32.mrf.mxu1  ;;  %v5560_v1 = vld [vmem:[#allocation7 + $0x1620] sm:$0xff]  ;;  %v5553_v15 = vld [vmem:[#allocation7 + $0x15e8] sm:$0xff] }
 0x33f   :  { %5807 = vmatprep.subr.mxu0 %v5569_v60  ;;  %5318 = vmatmul.mubr.f32.gmra.mxu1 %v13852_v36  ;;  %v13970_v32 = vadd.f32 %v3792_v2, %v3692_v33  ;;  %v3694_v24 = vadd.f32 %v3693_v52, %v3008_v35  ;;  %v5557_v36 = vld [vmem:[#allocation7 + $0x1608] sm:$0xff]  ;;  %v5608_v2 = vld [vmem:[#allocation7 + $0x17a0] sm:$0xff] }
 0x340   :  { %5808 = vmatpush2.msra.mxu0 %v5568_v17  ;;  %5885 = vmatpush1.msra.mxu1 %v5616_v54  ;;  %v5552_v60 = vld [vmem:[#allocation7 + $0x15e0] sm:$0xff]  ;;  %v5549_v35 = vld [vmem:[#allocation7 + $0x15c8] sm:$0xff] }
 0x341   :  { %5323 = vmatprep.mubr.f32.mxu1 %v13860_v6  ;;  %5809 = vmatprep.subr.mxu0 %v5565_v7  ;;  %v13973_v21 = vadd.f32 %v3794_v51, %v3694_v24  ;;  %v4374_v22 = vpop.f32.mrf.mxu1  ;;  %v5605_v17 = vld [vmem:[#allocation7 + $0x1788] sm:$0xff]  ;;  %v5604_v52 = vld [vmem:[#allocation7 + $0x1780] sm:$0xff]  ;;  %v5539_v51 = vld [vmem:[#allocation7 + $0x1578] sm:$0xff] }
 0x342   :  { %5810 = vmatpush2.msra.mxu0 %v5564_v40  ;;  %5886 = vmatprep.subr.mxu1 %v5613_v19 }
 0x343   :  { %5811 = vmatprep.subr.mxu0 %v5561_v59  ;;  %5887 = vmatpush1.msra.mxu1 %v5612_v31  ;;  %v4376_v58 = vpop.f32.mrf.mxu1  ;;  %v4273_v13 = vpop.f32.mrf.mxu0  ;;  %v5544_v59 = vld [vmem:[#allocation7 + $0x15a0] sm:$0xff]  ;;  %v5541_v31 = vld [vmem:[#allocation7 + $0x1588] sm:$0xff] }
 0x344   :  { %5324 = vmatmul.mubr.f32.gmra.mxu1 %v13875_v29  ;;  %5812 = vmatpush2.msra.mxu0 %v5560_v1  ;;  %v4375_v6 = vadd.f32 %v4374_v22, %v4273_v13  ;;  %v5548_v29 = vld [vmem:[#allocation7 + $0x15c0] sm:$0xff] }
 0x345   :  { %5329 = vmatprep.mubr.f32.mxu1 %v13881_v57  ;;  %5813 = vmatprep.subr.mxu0 %v5557_v36  ;;  %v4275_v10 = vpop.f32.mrf.mxu0  ;;  %v5545_v57 = vld [vmem:[#allocation7 + $0x15a8] sm:$0xff] }
 0x346   :  { %5814 = vmatpush2.msra.mxu0 %v5556_v18  ;;  %5888 = vmatprep.subr.mxu1 %v5609_v26  ;;  %v13978_v54 = vadd.f32 %v4375_v6, %v13751_v30  ;;  %v4380_v33 = vpop.f32.mrf.mxu1  ;;  %v13980_v7 = vadd.f32 %v4376_v58, %v4275_v10  ;;  %v5540_v18 = vld [vmem:[#allocation7 + $0x1580] sm:$0xff]  ;;  %v5535_v58 = vld [vmem:[#allocation7 + $0x1558] sm:$0xff] }
 0x347   :  { %5815 = vmatprep.subr.mxu0 %v5553_v15  ;;  %5889 = vmatpush1.msra.mxu1 %v5608_v2  ;;  %v4279_v40 = vpop.f32.mrf.mxu0  ;;  %v17397_v2 = vld [vmem:[#allocation73_spill] sm:$0xff] }
 0x348   :  { %5330 = vmatmul.mubr.f32.gmra.mxu1 %v13873_v61  ;;  %5816 = vmatpush2.msra.mxu0 %v5552_v60  ;;  %v4382_v19 = vpop.f32.mrf.mxu1  ;;  %v4381_v24 = vadd.f32 %v4380_v33, %v4279_v40  ;;  %v5538_v61 = vld [vmem:[#allocation7 + $0x1570] sm:$0xff]  ;;  %v5531_v60 = vld [vmem:[#allocation7 + $0x1538] sm:$0xff] }
 0x349   :  { %5817 = vmatprep.subr.mxu0 %v5549_v35  ;;  %5890 = vmatprep.subr.mxu1 %v5605_v17  ;;  %v4281_v30 = vpop.f32.mrf.mxu0  ;;  %v5631_v33 = vld [vmem:[#allocation7 + $0x1858] sm:$0xff] }
 0x34a   :  { %5818 = vmatpush2.msra.mxu0 %v5548_v29  ;;  %5891 = vmatpush1.msra.mxu1 %v5604_v52  ;;  %v13984_v1 = vadd.f32 %v4381_v24, %v13769_v63  ;;  %v4386_v22 = vpop.f32.mrf.mxu1  ;;  %v13986_v36 = vadd.f32 %v4382_v19, %v4281_v30  ;;  %v5534_v63 = vld [vmem:[#allocation7 + $0x1550] sm:$0xff]  ;;  %v5527_v40 = vld [vmem:[#allocation7 + $0x1518] sm:$0xff] }
 0x34b   :  { %5819 = vmatprep.subr.mxu0 %v5545_v57  ;;  %5924 = vmatprep.mubr.f32.mxu1 %v17230_v49  ;;  %v4285_v26 = vpop.f32.mrf.mxu0  ;;  %v5530_v29 = vld [vmem:[#allocation7 + $0x1530] sm:$0xff]  ;;  %v5523_v24 = vld [vmem:[#allocation7 + $0x14f8] sm:$0xff] }
 0x34c   :  { %5961 = vmatprep.subr.mxu1 %v5539_v51  ;;  %5820 = vmatpush2.msra.mxu0 %v5544_v59  ;;  %v4388_v13 = vpop.f32.mrf.mxu1  ;;  %v4387_v15 = vadd.f32 %v4386_v22, %v4285_v26  ;;  %v5522_v59 = vld [vmem:[#allocation7 + $0x14f0] sm:$0xff]  ;;  %v5515_v26 = vld [vmem:[#allocation7 + $0x14b8] sm:$0xff] }
 0x34d   :  { %10993 = vmatmul.mubr.msk.f32.vlgmr.msra.gmra.mxu1 %vm2593_vm10, %v17397_v2  ;;  %5821 = vmatprep.subr.mxu0 %v5541_v31  ;;  %v4287_v6 = vpop.f32.mrf.mxu0 }
 0x34e   :  { %5962 = vmatpush1.msra.mxu1 %v5538_v61  ;;  %5822 = vmatpush2.msra.mxu0 %v5540_v18  ;;  %v13992_v10 = vadd.f32 %v4387_v15, %v13787_v39  ;;  %v4392_v35 = vpop.f32.mrf.mxu1  ;;  %v13994_v17 = vadd.f32 %v4388_v13, %v4287_v6  ;;  %v5526_v39 = vld [vmem:[#allocation7 + $0x1510] sm:$0xff]  ;;  %v5519_v61 = vld [vmem:[#allocation7 + $0x14d8] sm:$0xff] }
 0x34f   :  { %5963 = vmatprep.subr.mxu1 %v5535_v58  ;;  %5824 = vmatmul.mubr.f32.vlgmr.msra.gmra.mxu0 %v13407_v27  ;;  %v5518_v18 = vld [vmem:[#allocation7 + $0x14d0] sm:$0xff]  ;;  %v5511_v6 = vld [vmem:[#allocation7 + $0x1498] sm:$0xff] }
 0x350   :  { %5964 = vmatpush1.msra.mxu1 %v5534_v63  ;;  %5930 = vmatprep.mubr.f32.mxu1 %v17230_v49  ;;  %v4394_v52 = vpop.f32.mrf.mxu1  ;;  %v5630_v13 = vld [vmem:[#allocation7 + $0x1850] sm:$0xff] }
 0x351   :  { %5965 = vmatprep.subr.mxu1 %v5531_v60  ;;  %5829 = vmatprep.mubr.f32.mxu0 %v13415_v28  ;;  %v4291_v57 = vpop.f32.mrf.mxu0  ;;  %v5627_v60 = vld [vmem:[#allocation7 + $0x1838] sm:$0xff] }
 0x352   :  { %10994 = vmatmul.mubr.msk.f32.gmra.mxu1 %vm2593_vm10, %v13419_v12  ;;  %6080 = vmatprep.subr.mxu0 %v5631_v33  ;;  %v4393_v19 = vadd.f32 %v4392_v35, %v4291_v57  ;;  %v5510_v33 = vld [vmem:[#allocation7 + $0x1490] sm:$0xff]  ;;  %v17398_v57 = vcombine.low %v13423_v56, %v13437_v0  ;;  %v5619_v56 = vld [vmem:[#allocation7 + $0x17f8] sm:$0xff] }
 0x353   :  { %5966 = vmatpush1.msra.mxu1 %v5530_v29  ;;  %5830 = vmatmul.mubr.f32.gmra.mxu0 %v13427_v41  ;;  %v4293_v51 = vpop.f32.mrf.mxu0 }
 0x354   :  { %5967 = vmatprep.subr.mxu1 %v5527_v40  ;;  %5936 = vmatprep.mubr.f32.mxu1 %v17230_v49  ;;  %v14004_v30 = vadd.f32 %v4393_v19, %v13819_v14  ;;  %v4398_v31 = vpop.f32.mrf.mxu1  ;;  %v14006_v22 = vadd.f32 %v4394_v52, %v4293_v51  ;;  %v5514_v14 = vld [vmem:[#allocation7 + $0x14b0] sm:$0xff]  ;;  %v5507_v40 = vld [vmem:[#allocation7 + $0x1478] sm:$0xff] }
 0x355   :  { %5968 = vmatpush1.msra.mxu1 %v5526_v39  ;;  %5835 = vmatprep.mubr.f32.mxu0 %v13486_v23  ;;  %v5718_v39 = vrot.slane %v17398_v57, %v12345_v46  ;;  %v5626_v19 = vld [vmem:[#allocation7 + $0x1830] sm:$0xff] }
 0x356   :  { %5969 = vmatprep.subr.mxu1 %v5523_v24  ;;  %10995 = vmatmul.mubr.msk.f32.gmra.mxu1 %vm2593_vm10, %v13488_v48  ;;  %v4400_v15 = vpop.f32.mrf.mxu1  ;;  %v17399_v51 = vld [vmem:[#allocation40_spill] sm:$0xff] }
 0x357   :  { %5970 = vmatpush1.msra.mxu1 %v5522_v59  ;;  %5836 = vmatmul.mubr.f32.gmra.mxu0 %v13490_v3  ;;  %v4297_v58 = vpop.f32.mrf.mxu0  ;;  %v5623_v59 = vld [vmem:[#allocation7 + $0x1818] sm:$0xff]  ;;  %v5618_v57 = vld [vmem:[#allocation7 + $0x17f0] sm:$0xff] }
 0x358   :  { %5971 = vmatprep.subr.mxu1 %v5519_v61  ;;  %5942 = vmatprep.mubr.f32.mxu1 %v17230_v49  ;;  %v4399_v63 = vadd.f32 %v4398_v31, %v4297_v58  ;;  %v5622_v31 = vld [vmem:[#allocation7 + $0x1810] sm:$0xff]  ;;  %v5719_v58 = vcombine.high %v5718_v39, %v5718_v39 }
 0x359   :  { %5972 = vmatpush1.msra.mxu1 %v5518_v18  ;;  %5841 = vmatprep.mubr.f32.mxu0 %v13443_v42  ;;  %v4299_v35 = vpop.f32.mrf.mxu0  ;;  %v17400_v18 = vld [vmem:[#allocation50_spill] sm:$0xff] }
 0x35a   :  { %5973 = vmatprep.subr.mxu1 %v5515_v26  ;;  %10996 = vmatmul.mubr.msk.f32.gmra.mxu1 %vm2593_vm10, %v13450_v34  ;;  %v14017_v29 = vadd.f32 %v4399_v63, %v13848_v55  ;;  %v14019_v52 = vadd.f32 %v4400_v15, %v4299_v35  ;;  %v4404_v24 = vpop.f32.mrf.mxu1  ;;  %v5506_v55 = vld [vmem:[#allocation7 + $0x1470] sm:$0xff]  ;;  %v5503_v26 = vld [vmem:[#allocation7 + $0x1458] sm:$0xff]  ;;  %v14031_v63 = vrot.slane %v5718_v39, %v12345_v46 }
 0x35b   :  { %5974 = vmatpush1.msra.mxu1 %v5514_v14  ;;  %6081 = vmatpush1.msra.mxu0 %v5630_v13  ;;  %v17401_v13 = vld [vmem:[#allocation49_spill] sm:$0xff] }
 0x35c   :  { %5975 = vmatprep.subr.mxu1 %v5511_v6  ;;  %6082 = vmatprep.subr.mxu0 %v5627_v60  ;;  %v5502_v15 = vld [vmem:[#allocation7 + $0x1450] sm:$0xff]  ;;  %v4406_v6 = vpop.f32.mrf.mxu1  ;;  %v5499_v35 = vld [vmem:[#allocation7 + $0x1438] sm:$0xff] }
 0x35d   :  { %5976 = vmatpush1.msra.mxu1 %v5510_v33  ;;  %5842 = vmatmul.mubr.f32.gmra.mxu0 %v17399_v51  ;;  %v5615_v39 = vld [vmem:[#allocation7 + $0x17d8] sm:$0xff] }
 0x35e   :  { %5948 = vmatprep.mubr.f32.mxu1 %v17230_v49  ;;  %5977 = vmatprep.subr.mxu1 %v5507_v40  ;;  %v4303_v61 = vpop.f32.mrf.mxu0 }
 0x35f   :  { %6083 = vmatpush1.msra.mxu0 %v5626_v19  ;;  %5847 = vmatprep.mubr.f32.mxu0 %v17400_v18  ;;  %v4405_v14 = vadd.f32 %v4404_v24, %v4303_v61  ;;  %v17402_v19 = vld [vmem:[#allocation56_spill] sm:$0xff]  ;;  %v14040_v24 = vrot.slane %v5719_v58, %v12345_v46 }
 0x360   :  { %10997 = vmatmul.mubr.msk.f32.gmra.mxu1 %vm2593_vm10, %v17401_v13  ;;  %6084 = vmatprep.subr.mxu0 %v5623_v59  ;;  %v4305_v60 = vpop.f32.mrf.mxu0  ;;  %v14045_v59 = vcombine.high %v14031_v63, %v14031_v63  ;;  %v5494_v61 = vld [vmem:[#allocation7 + $0x1410] sm:$0xff] }
 0x361   :  { %5978 = vmatpush1.msra.mxu1 %v5506_v55  ;;  %6085 = vmatpush1.msra.mxu0 %v5622_v31  ;;  %v14034_v33 = vadd.f32 %v4405_v14, %v13877_v20  ;;  %v14036_v40 = vadd.f32 %v4406_v6, %v4305_v60  ;;  %v5498_v20 = vld [vmem:[#allocation7 + $0x1430] sm:$0xff]  ;;  %v5495_v55 = vld [vmem:[#allocation7 + $0x1418] sm:$0xff] }
 0x362   :  { %5979 = vmatprep.subr.mxu1 %v5503_v26  ;;  %6086 = vmatprep.subr.mxu0 %v5619_v56  ;;  %v5614_v31 = vld [vmem:[#allocation7 + $0x17d0] sm:$0xff]  ;;  %v5611_v26 = vld [vmem:[#allocation7 + $0x17b8] sm:$0xff] }
 0x363   :  { %5980 = vmatpush1.msra.mxu1 %v5502_v15  ;;  %5848 = vmatmul.mubr.f32.gmra.mxu0 %v17402_v19  ;;  %v5491_v56 = vld [vmem:[#allocation7 + $0x13f8] sm:$0xff]  ;;  %v5610_v58 = vld [vmem:[#allocation7 + $0x17b0] sm:$0xff] }
 0x364   :  { %5954 = vmatprep.mubr.f32.mxu1 %v17230_v49  ;;  %5981 = vmatprep.subr.mxu1 %v5499_v35  ;;  %v5490_v14 = vld [vmem:[#allocation7 + $0x13f0] sm:$0xff]  ;;  %v5607_v15 = vld [vmem:[#allocation7 + $0x1798] sm:$0xff] }
 0x365   :  { %6087 = vmatpush1.msra.mxu0 %v5618_v57  ;;  %5853 = vmatprep.mubr.f32.mxu0 %v14040_v24  ;;  %v5487_v6 = vld [vmem:[#allocation7 + $0x13d8] sm:$0xff]  ;;  %v5606_v60 = vld [vmem:[#allocation7 + $0x1790] sm:$0xff]  ;;  %v6251_v57 = vld [vmem:[#allocation7 + $0x1a48] sm:$0xff] }
 0x366   :  { %10998 = vmatmul.mubr.msk.f32.gmra.mxu1 %vm2593_vm10, %v14045_v59  ;;  %6088 = vmatprep.subr.mxu0 %v5615_v39  ;;  %v5486_v35 = vld [vmem:[#allocation7 + $0x13d0] sm:$0xff]  ;;  %v6250_v39 = vld [vmem:[#allocation7 + $0x1a40] sm:$0xff] }
 0x367   :  { %5982 = vmatpush1.msra.mxu1 %v5498_v20  ;;  %6025 = vmatprep.mubr.f32.mxu1 %v13403_v47  ;;  %v5483_v47 = vld [vmem:[#allocation7 + $0x13b8] sm:$0xff]  ;;  %v5482_v20 = vld [vmem:[#allocation7 + $0x13b0] sm:$0xff] }
 0x368   :  { %5983 = vmatprep.subr.mxu1 %v5495_v55  ;;  %6089 = vmatpush1.msra.mxu0 %v5614_v31  ;;  %v6247_v55 = vld [vmem:[#allocation7 + $0x1a28] sm:$0xff]  ;;  %v5479_v31 = vld [vmem:[#allocation7 + $0x1398] sm:$0xff] }
 0x369   :  { %5984 = vmatpush1.msra.mxu1 %v5494_v61  ;;  %6090 = vmatprep.subr.mxu0 %v5611_v26  ;;  %v6246_v61 = vld [vmem:[#allocation7 + $0x1a20] sm:$0xff]  ;;  %v5478_v26 = vld [vmem:[#allocation7 + $0x1390] sm:$0xff] }
 0x36a   :  { %5854 = vmatmul.mubr.f32.gmra.mxu0 %v14031_v63  ;;  %5985 = vmatprep.subr.mxu1 %v5491_v56  ;;  %v6243_v56 = vld [vmem:[#allocation7 + $0x1a08] sm:$0xff] }
 0x36b   :  { %6091 = vmatpush1.msra.mxu0 %v5610_v58  ;;  %5986 = vmatpush1.msra.mxu1 %v5490_v14  ;;  %v5603_v58 = vld [vmem:[#allocation7 + $0x1778] sm:$0xff]  ;;  %v6242_v14 = vld [vmem:[#allocation7 + $0x1a00] sm:$0xff] }
 0x36c   :  { %6092 = vmatprep.subr.mxu0 %v5607_v15  ;;  %5987 = vmatprep.subr.mxu1 %v5487_v6  ;;  %v5602_v15 = vld [vmem:[#allocation7 + $0x1770] sm:$0xff]  ;;  %v6239_v6 = vld [vmem:[#allocation7 + $0x19e8] sm:$0xff] }
 0x36d   :  { %6093 = vmatpush1.msra.mxu0 %v5606_v60  ;;  %5988 = vmatpush1.msra.mxu1 %v5486_v35  ;;  %v5599_v60 = vld [vmem:[#allocation7 + $0x1758] sm:$0xff]  ;;  %v5598_v35 = vld [vmem:[#allocation7 + $0x1750] sm:$0xff] }
 0x36e   :  { %6126 = vmatprep.mubr.f32.mxu0 %v17230_v49  ;;  %6473 = vmatprep.subr.mxu0 %v6251_v57  ;;  %v6235_v57 = vld [vmem:[#allocation7 + $0x19c8] sm:$0xff] }
 0x36f   :  { %5989 = vmatprep.subr.mxu1 %v5483_v47  ;;  %10999 = vmatmul.mubr.msk.f32.vlgmr.msra.gmra.mxu0 %vm2593_vm10, %v17397_v2  ;;  %v6238_v2 = vld [vmem:[#allocation7 + $0x19e0] sm:$0xff]  ;;  %v5595_v47 = vld [vmem:[#allocation7 + $0x1738] sm:$0xff] }
 0x370   :  { %6474 = vmatpush1.msra.mxu0 %v6250_v39  ;;  %5990 = vmatpush1.msra.mxu1 %v5482_v20  ;;  %v6234_v39 = vld [vmem:[#allocation7 + $0x19c0] sm:$0xff]  ;;  %v5594_v20 = vld [vmem:[#allocation7 + $0x1730] sm:$0xff] }
 0x371   :  { %6475 = vmatprep.subr.mxu0 %v6247_v55  ;;  %5991 = vmatprep.subr.mxu1 %v5479_v31  ;;  %v6231_v55 = vld [vmem:[#allocation7 + $0x19a8] sm:$0xff]  ;;  %v5591_v31 = vld [vmem:[#allocation7 + $0x1718] sm:$0xff] }
 0x372   :  { %6476 = vmatpush1.msra.mxu0 %v6246_v61  ;;  %5992 = vmatpush1.msra.mxu1 %v5478_v26  ;;  %v14059_v61 = vpop.f32.mrf.mxu0  ;;  %v5590_v26 = vld [vmem:[#allocation7 + $0x1710] sm:$0xff] }
 0x373   :  { %6132 = vmatprep.mubr.f32.mxu0 %v17230_v49  ;;  %6477 = vmatprep.subr.mxu0 %v6243_v56  ;;  %v6227_v56 = vld [vmem:[#allocation7 + $0x1988] sm:$0xff] }
 0x374   :  { %5993 = vmatprep.subr.mxu1 %v5603_v58  ;;  %11000 = vmatmul.mubr.msk.f32.gmra.mxu0 %vm2593_vm10, %v13419_v12  ;;  %v6230_v12 = vld [vmem:[#allocation7 + $0x19a0] sm:$0xff]  ;;  %v5587_v58 = vld [vmem:[#allocation7 + $0x16f8] sm:$0xff] }
 0x375   :  { %6478 = vmatpush1.msra.mxu0 %v6242_v14  ;;  %5994 = vmatpush2.msra.mxu1 %v5602_v15  ;;  %v6226_v14 = vld [vmem:[#allocation7 + $0x1980] sm:$0xff]  ;;  %v5586_v15 = vld [vmem:[#allocation7 + $0x16f0] sm:$0xff] }
 0x376   :  { %6479 = vmatprep.subr.mxu0 %v6239_v6  ;;  %5995 = vmatprep.subr.mxu1 %v5599_v60  ;;  %v14063_v6 = vpop.f32.mrf.mxu0  ;;  %v6223_v60 = vld [vmem:[#allocation7 + $0x1968] sm:$0xff] }
 0x377   :  { %6480 = vmatpush1.msra.mxu0 %v6238_v2  ;;  %5996 = vmatpush2.msra.mxu1 %v5598_v35  ;;  %v5583_v2 = vld [vmem:[#allocation7 + $0x16d8] sm:$0xff]  ;;  %v5582_v35 = vld [vmem:[#allocation7 + $0x16d0] sm:$0xff] }
 0x378   :  { %6138 = vmatprep.mubr.f32.mxu0 %v17230_v49  ;;  %6481 = vmatprep.subr.mxu0 %v6235_v57  ;;  %v6219_v57 = vld [vmem:[#allocation7 + $0x1948] sm:$0xff] }
 0x379   :  { %5997 = vmatprep.subr.mxu1 %v5595_v47  ;;  %11001 = vmatmul.mubr.msk.f32.gmra.mxu0 %vm2593_vm10, %v13488_v48  ;;  %v6222_v48 = vld [vmem:[#allocation7 + $0x1960] sm:$0xff]  ;;  %v5579_v47 = vld [vmem:[#allocation7 + $0x16b8] sm:$0xff] }
 0x37a   :  { %6482 = vmatpush1.msra.mxu0 %v6234_v39  ;;  %5998 = vmatpush2.msra.mxu1 %v5594_v20  ;;  %v14068_v39 = vpop.f32.mrf.mxu0  ;;  %v6218_v20 = vld [vmem:[#allocation7 + $0x1940] sm:$0xff] }
 0x37b   :  { %6483 = vmatprep.subr.mxu0 %v6231_v55  ;;  %5999 = vmatprep.subr.mxu1 %v5591_v31  ;;  %v5578_v55 = vld [vmem:[#allocation7 + $0x16b0] sm:$0xff]  ;;  %v6215_v31 = vld [vmem:[#allocation7 + $0x1928] sm:$0xff] }
 0x37c   :  { %6484 = vmatpush1.msra.mxu0 %v6230_v12  ;;  %6000 = vmatpush2.msra.mxu1 %v5590_v26  ;;  %v5575_v12 = vld [vmem:[#allocation7 + $0x1698] sm:$0xff]  ;;  %v5574_v26 = vld [vmem:[#allocation7 + $0x1690] sm:$0xff] }
 0x37d   :  { %6144 = vmatprep.mubr.f32.mxu0 %v17230_v49  ;;  %6485 = vmatprep.subr.mxu0 %v6227_v56  ;;  %v6211_v56 = vld [vmem:[#allocation7 + $0x1908] sm:$0xff] }
 0x37e   :  { %6001 = vmatprep.subr.mxu1 %v5587_v58  ;;  %11002 = vmatmul.mubr.msk.f32.gmra.mxu0 %vm2593_vm10, %v13450_v34  ;;  %v6214_v34 = vld [vmem:[#allocation7 + $0x1920] sm:$0xff]  ;;  %v14073_v58 = vpop.f32.mrf.mxu0 }
 0x37f   :  { %6486 = vmatpush1.msra.mxu0 %v6226_v14  ;;  %6002 = vmatpush2.msra.mxu1 %v5586_v15  ;;  %v5571_v14 = vld [vmem:[#allocation7 + $0x1678] sm:$0xff]  ;;  %v6210_v15 = vld [vmem:[#allocation7 + $0x1900] sm:$0xff] }
 0x380   :  { %6487 = vmatprep.subr.mxu0 %v6223_v60  ;;  %6003 = vmatprep.subr.mxu1 %v5583_v2  ;;  %v5570_v60 = vld [vmem:[#allocation7 + $0x1670] sm:$0xff]  ;;  %v6207_v2 = vld [vmem:[#allocation7 + $0x18e8] sm:$0xff] }
 0x381   :  { %6488 = vmatpush1.msra.mxu0 %v6222_v48  ;;  %6004 = vmatpush2.msra.mxu1 %v5582_v35  ;;  %v17404_v48 = vld [vmem:[#allocation37_spill] sm:$0xff] }
 0x382   :  { %6150 = vmatprep.mubr.f32.mxu0 %v17230_v49  ;;  %6489 = vmatprep.subr.mxu0 %v6219_v57  ;;  %v5567_v57 = vld [vmem:[#allocation7 + $0x1658] sm:$0xff] }
 0x383   :  { %6005 = vmatprep.subr.mxu1 %v5579_v47  ;;  %11003 = vmatmul.mubr.msk.f32.gmra.mxu0 %vm2593_vm10, %v17401_v13  ;;  %v17403_v13 = vld [vmem:[#allocation44_spill] sm:$0xff]  ;;  %v6206_v47 = vld [vmem:[#allocation7 + $0x18e0] sm:$0xff] }
 0x384   :  { %6490 = vmatpush1.msra.mxu0 %v6218_v20  ;;  %6006 = vmatpush2.msra.mxu1 %v5578_v55  ;;  %v14080_v35 = vcombine.low %v17404_v48, %v17403_v13  ;;  %v14082_v20 = vpop.f32.mrf.mxu0  ;;  %v5566_v55 = vld [vmem:[#allocation7 + $0x1650] sm:$0xff] }
 0x385   :  { %6491 = vmatprep.subr.mxu0 %v6215_v31  ;;  %6007 = vmatprep.subr.mxu1 %v5575_v12  ;;  %v6203_v31 = vld [vmem:[#allocation7 + $0x18c8] sm:$0xff]  ;;  %v5563_v12 = vld [vmem:[#allocation7 + $0x1638] sm:$0xff] }
 0x386   :  { %6492 = vmatpush1.msra.mxu0 %v6214_v34  ;;  %6008 = vmatpush2.msra.mxu1 %v5574_v26  ;;  %v6202_v34 = vld [vmem:[#allocation7 + $0x18c0] sm:$0xff]  ;;  %v6199_v26 = vld [vmem:[#allocation7 + $0x18a8] sm:$0xff]  ;;  %v14085_v13 = vpop.f32.mrf.mxu0 }
 0x387   :  { %6156 = vmatprep.mubr.f32.mxu0 %v17230_v49  ;;  %6493 = vmatprep.subr.mxu0 %v6211_v56  ;;  %v5559_v56 = vld [vmem:[#allocation7 + $0x1618] sm:$0xff] }
 0x388   :  { %6009 = vmatprep.subr.mxu1 %v5571_v14  ;;  %11004 = vmatmul.mubr.msk.f32.gmra.mxu0 %vm2593_vm10, %v14045_v59  ;;  %v5562_v59 = vld [vmem:[#allocation7 + $0x1630] sm:$0xff]  ;;  %v6198_v14 = vld [vmem:[#allocation7 + $0x18a0] sm:$0xff]  ;;  %v4594_v11 = vpop.f32.mrf.mxu0 }
 0x389   :  { %6494 = vmatpush1.msra.mxu0 %v6210_v15  ;;  %6010 = vmatpush2.msra.mxu1 %v5570_v60  ;;  %v5558_v15 = vld [vmem:[#allocation7 + $0x1610] sm:$0xff]  ;;  %v6195_v60 = vld [vmem:[#allocation7 + $0x1888] sm:$0xff] }
 0x38a   :  { %6495 = vmatprep.subr.mxu0 %v6207_v2  ;;  %6537 = vmatprep.mubr.f32.mxu0 %v14080_v35  ;;  %v5555_v2 = vld [vmem:[#allocation7 + $0x15f8] sm:$0xff] }
 0x38b   :  { %6011 = vmatprep.subr.mxu1 %v5567_v57  ;;  %6496 = vmatpush1.msra.mxu0 %v6206_v47  ;;  %v5554_v47 = vld [vmem:[#allocation7 + $0x15f0] sm:$0xff] }
 0x38c   :  { %6012 = vmatpush2.msra.mxu1 %v5566_v55  ;;  %6497 = vmatprep.subr.mxu0 %v6203_v31  ;;  %v6191_v55 = vld [vmem:[#allocation7 + $0x1868] sm:$0xff] }
 0x38d   :  { %6013 = vmatprep.subr.mxu1 %v5563_v12  ;;  %6498 = vmatpush1.msra.mxu0 %v6202_v34  ;;  %v4475_v48 = vpop.f32.mrf.mxu1  ;;  %v6190_v12 = vld [vmem:[#allocation7 + $0x1860] sm:$0xff] }
 0x38e   :  { %6014 = vmatpush2.msra.mxu1 %v5562_v59  ;;  %6499 = vmatprep.subr.mxu0 %v6199_v26  ;;  %v4577_v57 = vadd.f32 %v14059_v61, %v4475_v48  ;;  %v5550_v26 = vld [vmem:[#allocation7 + $0x15d0] sm:$0xff]  ;;  %v6315_v61 = vld [vmem:[#allocation7 + $0x1c48] sm:$0xff]  ;;  %v6314_v48 = vld [vmem:[#allocation7 + $0x1c40] sm:$0xff] }
 0x38f   :  { %6015 = vmatprep.subr.mxu1 %v5559_v56  ;;  %6500 = vmatpush1.msra.mxu0 %v6198_v14  ;;  %v4477_v31 = vpop.f32.mrf.mxu1  ;;  %v5547_v14 = vld [vmem:[#allocation7 + $0x15b8] sm:$0xff] }
 0x390   :  { %6016 = vmatpush2.msra.mxu1 %v5558_v15  ;;  %6501 = vmatprep.subr.mxu0 %v6195_v60  ;;  %v14089_v34 = vadd.f32 %v4577_v57, %v13932_v25  ;;  %v14092_v59 = vadd.f32 %v14063_v6, %v4477_v31  ;;  %v5546_v60 = vld [vmem:[#allocation7 + $0x15b0] sm:$0xff]  ;;  %v4596_v6 = vpop.f32.mrf.mxu0  ;;  %v5543_v57 = vld [vmem:[#allocation7 + $0x1598] sm:$0xff]  ;;  %v6306_v31 = vld [vmem:[#allocation7 + $0x1c00] sm:$0xff] }
 0x391   :  { %6017 = vmatprep.subr.mxu1 %v5555_v2  ;;  %6502 = vmatpush1.msra.mxu0 %v6194_v45  ;;  %v4481_v56 = vpop.f32.mrf.mxu1  ;;  %v6310_v2 = vld [vmem:[#allocation7 + $0x1c20] sm:$0xff] }
 0x392   :  { %6018 = vmatpush2.msra.mxu1 %v5554_v47  ;;  %6503 = vmatprep.subr.mxu0 %v6191_v55  ;;  %v4583_v15 = vadd.f32 %v14068_v39, %v4481_v56  ;;  %v5542_v55 = vld [vmem:[#allocation7 + $0x1590] sm:$0xff]  ;;  %v6307_v39 = vld [vmem:[#allocation7 + $0x1c08] sm:$0xff]  ;;  %v4600_v56 = vpop.f32.mrf.mxu0 }
 0x393   :  { %6019 = vmatprep.subr.mxu1 %v5551_v43  ;;  %6504 = vmatpush1.msra.mxu0 %v6190_v12  ;;  %v4483_v25 = vpop.f32.mrf.mxu1 }
 0x394   :  { %6020 = vmatpush2.msra.mxu1 %v5550_v26  ;;  %6505 = vmatprep.subr.mxu0 %v6315_v61  ;;  %v14096_v45 = vadd.f32 %v4583_v15, %v13938_v62  ;;  %v14099_v47 = vadd.f32 %v14073_v58, %v4483_v25  ;;  %v6343_v26 = vld [vmem:[#allocation7 + $0x1d28] sm:$0xff]  ;;  %v6342_v58 = vld [vmem:[#allocation7 + $0x1d20] sm:$0xff] }
 0x395   :  { %6021 = vmatprep.subr.mxu1 %v5547_v14  ;;  %6506 = vmatpush2.msra.mxu0 %v6314_v48  ;;  %v4487_v43 = vpop.f32.mrf.mxu1  ;;  %v6303_v62 = vld [vmem:[#allocation7 + $0x1be8] sm:$0xff] }
 0x396   :  { %6022 = vmatpush2.msra.mxu1 %v5546_v60  ;;  %6507 = vmatprep.subr.mxu0 %v6311_v44  ;;  %v4589_v12 = vadd.f32 %v14082_v20, %v4487_v43  ;;  %v6302_v44 = vld [vmem:[#allocation7 + $0x1be0] sm:$0xff]  ;;  %v6339_v20 = vld [vmem:[#allocation7 + $0x1d08] sm:$0xff] }
 0x397   :  { %6023 = vmatprep.subr.mxu1 %v5543_v57  ;;  %6508 = vmatpush2.msra.mxu0 %v6310_v2  ;;  %v4489_v61 = vpop.f32.mrf.mxu1  ;;  %v6299_v60 = vld [vmem:[#allocation7 + $0x1bc8] sm:$0xff]  ;;  %v6298_v57 = vld [vmem:[#allocation7 + $0x1bc0] sm:$0xff] }
 0x398   :  { %6024 = vmatpush2.msra.mxu1 %v5542_v55  ;;  %6509 = vmatprep.subr.mxu0 %v6307_v39  ;;  %v14103_v14 = vadd.f32 %v4589_v12, %v13946_v8  ;;  %v14106_v48 = vadd.f32 %v14085_v13, %v4489_v61  ;;  %v4602_v8 = vpop.f32.mrf.mxu0  ;;  %v6295_v13 = vld [vmem:[#allocation7 + $0x1ba8] sm:$0xff]  ;;  %v6338_v55 = vld [vmem:[#allocation7 + $0x1d00] sm:$0xff] }
 0x399   :  { %6026 = vmatmul.mubr.f32.vlgmr.msra.gmra.mxu1 %v13407_v27  ;;  %6510 = vmatpush2.msra.mxu0 %v6306_v31  ;;  %v4493_v15 = vpop.f32.mrf.mxu1  ;;  %v6335_v43 = vld [vmem:[#allocation7 + $0x1ce8] sm:$0xff]  ;;  %v6290_v12 = vld [vmem:[#allocation7 + $0x1b80] sm:$0xff] }
 0x39a   :  { %6592 = vmatprep.subr.mxu1 %v6343_v26  ;;  %6031 = vmatprep.mubr.f32.mxu1 %v13415_v28  ;;  %v4595_v25 = vadd.f32 %v4594_v11, %v4493_v15  ;;  %v6294_v28 = vld [vmem:[#allocation7 + $0x1ba0] sm:$0xff]  ;;  %v6291_v11 = vld [vmem:[#allocation7 + $0x1b88] sm:$0xff] }
 0x39b   :  { %6511 = vmatprep.subr.mxu0 %v6303_v62  ;;  %6593 = vmatpush1.msra.mxu1 %v6342_v58  ;;  %v4495_v2 = vpop.f32.mrf.mxu1  ;;  %v6334_v26 = vld [vmem:[#allocation7 + $0x1ce0] sm:$0xff]  ;;  %v4606_v62 = vpop.f32.mrf.mxu0  ;;  %v6331_v58 = vld [vmem:[#allocation7 + $0x1cc8] sm:$0xff] }
 0x39c   :  { %6512 = vmatpush2.msra.mxu0 %v6302_v44  ;;  %6594 = vmatprep.subr.mxu1 %v6339_v20  ;;  %v14111_v27 = vadd.f32 %v4595_v25, %v13953_v53  ;;  %v14113_v39 = vadd.f32 %v4596_v6, %v4495_v2  ;;  %v6287_v53 = vld [vmem:[#allocation7 + $0x1b68] sm:$0xff] }
 0x39d   :  { %6513 = vmatprep.subr.mxu0 %v6299_v60  ;;  %6032 = vmatmul.mubr.f32.gmra.mxu1 %v13427_v41  ;;  %v6286_v41 = vld [vmem:[#allocation7 + $0x1b60] sm:$0xff]  ;;  %v6283_v20 = vld [vmem:[#allocation7 + $0x1b48] sm:$0xff] }
 0x39e   :  { %6514 = vmatpush2.msra.mxu0 %v6298_v57  ;;  %6037 = vmatprep.mubr.f32.mxu1 %v13486_v23  ;;  %v4499_v31 = vpop.f32.mrf.mxu1  ;;  %v6330_v60 = vld [vmem:[#allocation7 + $0x1cc0] sm:$0xff]  ;;  %v4608_v57 = vpop.f32.mrf.mxu0 }
 0x39f   :  { %6515 = vmatprep.subr.mxu0 %v6295_v13  ;;  %6595 = vmatpush1.msra.mxu1 %v6338_v55  ;;  %v4601_v61 = vadd.f32 %v4600_v56, %v4499_v31  ;;  %v6282_v56 = vld [vmem:[#allocation7 + $0x1b40] sm:$0xff]  ;;  %v6327_v13 = vld [vmem:[#allocation7 + $0x1ca8] sm:$0xff] }
 0x3a0   :  { %6516 = vmatpush2.msra.mxu0 %v6294_v28  ;;  %6596 = vmatprep.subr.mxu1 %v6335_v43  ;;  %v4501_v6 = vpop.f32.mrf.mxu1  ;;  %v6275_v43 = vld [vmem:[#allocation7 + $0x1b08] sm:$0xff] }
 0x3a1   :  { %6517 = vmatprep.subr.mxu0 %v6291_v11  ;;  %6038 = vmatmul.mubr.f32.gmra.mxu1 %v13490_v3  ;;  %v14119_v44 = vadd.f32 %v4601_v61, %v13963_v37  ;;  %v14121_v23 = vadd.f32 %v4602_v8, %v4501_v6  ;;  %v2776_v3 = vadd.f32 %v13583_v38, %v13586_v9  ;;  %v6279_v37 = vld [vmem:[#allocation7 + $0x1b28] sm:$0xff]  ;;  %v6278_v8 = vld [vmem:[#allocation7 + $0x1b20] sm:$0xff] }
 0x3a2   :  { %6518 = vmatpush2.msra.mxu0 %v6290_v12  ;;  %6597 = vmatpush1.msra.mxu1 %v6334_v26  ;;  %v4505_v15 = vpop.f32.mrf.mxu1  ;;  %v6326_v38 = vld [vmem:[#allocation7 + $0x1ca0] sm:$0xff] }
 0x3a3   :  { %6043 = vmatprep.mubr.f32.mxu1 %v13443_v42  ;;  %6519 = vmatprep.subr.mxu0 %v6287_v53  ;;  %v4607_v25 = vadd.f32 %v4606_v62, %v4505_v15  ;;  %v3462_v28 = vadd.f32 %v13749_v4, %v2776_v3  ;;  %v17405_v9 = vld [vmem:[#allocation59_spill] sm:$0xff]  ;;  %v17407_v61 = vld [vmem:[#allocation38_spill] sm:$0xff] }
 0x3a4   :  { %6520 = vmatpush2.msra.mxu0 %v6286_v41  ;;  %6598 = vmatprep.subr.mxu1 %v6331_v58  ;;  %v4507_v2 = vpop.f32.mrf.mxu1  ;;  %v17406_v11 = vld [vmem:[#allocation27_spill] sm:$0xff]  ;;  %v17408_v58 = vld [vmem:[#allocation58_spill] sm:$0xff] }
 0x3a5   :  { %6521 = vmatprep.subr.mxu0 %v6283_v20  ;;  %6044 = vmatmul.mubr.f32.gmra.mxu1 %v17399_v51  ;;  %v14128_v55 = vadd.f32 %v4607_v25, %v13970_v32  ;;  %v4609_v42 = vadd.f32 %v4608_v57, %v4507_v2  ;;  %v2782_v31 = vadd.f32 %v17406_v11, %v17405_v9  ;;  %v6274_v12 = vld [vmem:[#allocation7 + $0x1b00] sm:$0xff]  ;;  %v6271_v32 = vld [vmem:[#allocation7 + $0x1ae8] sm:$0xff] }
 0x3a6   :  { %6522 = vmatpush2.msra.mxu0 %v6282_v56  ;;  %6599 = vmatpush1.msra.mxu1 %v6330_v60  ;;  %v6270_v62 = vld [vmem:[#allocation7 + $0x1ae0] sm:$0xff]  ;;  %v6323_v53 = vld [vmem:[#allocation7 + $0x1c88] sm:$0xff]  ;;  %v3563_v20 = vadd.f32 %v17408_v58, %v3462_v28  ;;  %v17411_v28 = vld [vmem:[#allocation81_spill] sm:$0xff] }
 0x3a7   :  { %6049 = vmatprep.mubr.f32.mxu1 %v17400_v18  ;;  %6523 = vmatprep.subr.mxu0 %v6279_v37  ;;  %v14135_v51 = vadd.f32 %v4609_v42, %v13973_v21  ;;  %v5200_v26 = vpop.f32.mrf.mxu1  ;;  %v3468_v4 = vadd.f32 %v17407_v61, %v2782_v31  ;;  %v6267_v18 = vld [vmem:[#allocation7 + $0x1ac8] sm:$0xff]  ;;  %v6322_v21 = vld [vmem:[#allocation7 + $0x1c80] sm:$0xff] }
 0x3a8   :  { %6524 = vmatpush2.msra.mxu0 %v6278_v8  ;;  %6600 = vmatprep.subr.mxu1 %v6327_v13  ;;  %v17409_v56 = vld [vmem:[#allocation26_spill] sm:$0xff]  ;;  %v4612_v37 = vadd.f32 %v13980_v7, %v3563_v20  ;;  %v6263_v2 = vld [vmem:[#allocation7 + $0x1aa8] sm:$0xff] }
 0x3a9   :  { %6525 = vmatprep.subr.mxu0 %v6275_v43  ;;  %6601 = vmatpush1.msra.mxu1 %v6326_v38  ;;  %v5202_v6 = vpop.f32.mrf.mxu1  ;;  %v5099_v41 = vpop.f32.mrf.mxu0  ;;  %v17410_v60 = vld [vmem:[#allocation34_spill] sm:$0xff]  ;;  %v6319_v8 = vld [vmem:[#allocation7 + $0x1c68] sm:$0xff]  ;;  %v3569_v43 = vadd.f32 %v17411_v28, %v3468_v4  ;;  %v6248_v28 = vld [vmem:[#allocation7 + $0x1a30] sm:$0xff] }
 0x3aa   :  { %6050 = vmatmul.mubr.f32.gmra.mxu1 %v17402_v19  ;;  %6526 = vmatpush2.msra.mxu0 %v6274_v12  ;;  %v5201_v15 = vadd.f32 %v5200_v26, %v5099_v41  ;;  %v2788_v25 = vadd.f32 %v17410_v60, %v17409_v56  ;;  %v6266_v3 = vld [vmem:[#allocation7 + $0x1ac0] sm:$0xff]  ;;  %v17412_v11 = vld [vmem:[#allocation32_spill] sm:$0xff] }
 0x3ab   :  { %6055 = vmatprep.mubr.f32.mxu1 %v14040_v24  ;;  %6527 = vmatprep.subr.mxu0 %v6271_v32  ;;  %v5101_v57 = vpop.f32.mrf.mxu0  ;;  %v6262_v38 = vld [vmem:[#allocation7 + $0x1aa0] sm:$0xff]  ;;  %v6259_v7 = vld [vmem:[#allocation7 + $0x1a88] sm:$0xff]  ;;  %v6253_v32 = vld [vmem:[#allocation7 + $0x1a58] sm:$0xff] }
 0x3ac   :  { %6528 = vmatpush2.msra.mxu0 %v6270_v62  ;;  %6602 = vmatprep.subr.mxu1 %v6323_v53  ;;  %v14145_v19 = vadd.f32 %v5201_v15, %v13978_v54  ;;  %v5206_v13 = vpop.f32.mrf.mxu1  ;;  %v5203_v42 = vadd.f32 %v5202_v6, %v5101_v57  ;;  %v6318_v24 = vld [vmem:[#allocation7 + $0x1c60] sm:$0xff]  ;;  %v3474_v31 = vadd.f32 %v17412_v11, %v2788_v25  ;;  %v6255_v53 = vld [vmem:[#allocation7 + $0x1a68] sm:$0xff]  ;;  %v6252_v60 = vld [vmem:[#allocation7 + $0x1a50] sm:$0xff] }
 0x3ad   :  { %6529 = vmatprep.subr.mxu0 %v6267_v18  ;;  %6603 = vmatpush1.msra.mxu1 %v6322_v21  ;;  %v5105_v9 = vpop.f32.mrf.mxu0  ;;  %v6258_v61 = vld [vmem:[#allocation7 + $0x1a80] sm:$0xff]  ;;  %v4616_v62 = vadd.f32 %v13986_v36, %v3569_v43  ;;  %v17414_v20 = vld [vmem:[#allocation36_spill] sm:$0xff] }
 0x3ae   :  { %6056 = vmatmul.mubr.f32.gmra.mxu1 %v14031_v63  ;;  %6530 = vmatpush2.msra.mxu0 %v6266_v3  ;;  %v14150_v12 = vadd.f32 %v5203_v42, %v4612_v37  ;;  %v5208_v26 = vpop.f32.mrf.mxu1  ;;  %v5207_v54 = vadd.f32 %v5206_v13, %v5105_v9  ;;  %v17413_v58 = vld [vmem:[#allocation47_spill] sm:$0xff]  ;;  %v17415_v21 = vld [vmem:[#allocation70_spill] sm:$0xff]  ;;  %v17416_v15 = vld [vmem:[#allocation24_spill] sm:$0xff] }
 0x3af   :  { %6531 = vmatprep.subr.mxu0 %v6263_v2  ;;  %6604 = vmatprep.subr.mxu1 %v6319_v8  ;;  %v5107_v4 = vpop.f32.mrf.mxu0  ;;  %v14158_v18 = vcombine.high %v17414_v20, %v17413_v58  ;;  %v2794_v56 = vadd.f32 %v17416_v15, %v17415_v21  ;;  %v6254_v36 = vld [vmem:[#allocation7 + $0x1a60] sm:$0xff]  ;;  %v17418_v13 = vld [vmem:[#allocation29_spill] sm:$0xff]  ;;  %v14171_v43 = vcombine.low %v17414_v20, %v17413_v58 }
 0x3b0   :  { %6532 = vmatpush2.msra.mxu0 %v6262_v38  ;;  %6605 = vmatpush1.msra.mxu1 %v6318_v24  ;;  %v14154_v6 = vadd.f32 %v5207_v54, %v13984_v1  ;;  %v5212_v63 = vpop.f32.mrf.mxu1  ;;  %v5209_v41 = vadd.f32 %v5208_v26, %v5107_v4  ;;  %v17417_v3 = vld [vmem:[#allocation31_spill] sm:$0xff]  ;;  %v6249_v1 = vld [vmem:[#allocation7 + $0x1a38] sm:$0xff]  ;;  %v17419_v26 = vld [vmem:[#allocation52_spill] sm:$0xff] }
 0x3b1   :  { %6533 = vmatprep.subr.mxu0 %v6259_v7  ;;  %6638 = vmatprep.mubr.f32.mxu1 %v17230_v49  ;;  %v5111_v25 = vpop.f32.mrf.mxu0  ;;  %v3575_v57 = vadd.f32 %v17417_v3, %v3474_v31  ;;  %v3480_v42 = vadd.f32 %v17418_v13, %v2794_v56  ;;  %v6245_v9 = vld [vmem:[#allocation7 + $0x1a18] sm:$0xff]  ;;  %v17422_v4 = vld [vmem:[#allocation48_spill] sm:$0xff]  ;;  %v17424_v58 = vld [vmem:[#allocation71_spill] sm:$0xff]  ;;  %v6188_v56 = vcombine.high %v13437_v0, %v13437_v0 }
 0x3b2   :  { %6675 = vmatprep.subr.mxu1 %v6253_v32  ;;  %6534 = vmatpush2.msra.mxu0 %v6258_v61  ;;  %v14164_v37 = vadd.f32 %v5209_v41, %v4616_v62  ;;  %v5214_v2 = vpop.f32.mrf.mxu1  ;;  %v5213_v8 = vadd.f32 %v5212_v63, %v5111_v25  ;;  %v17420_v54 = vld [vmem:[#allocation46_spill] sm:$0xff]  ;;  %v17423_v41 = vld [vmem:[#allocation72_spill] sm:$0xff]  ;;  %v17427_v13 = vld [vmem:[#allocation43_spill] sm:$0xff] }
 0x3b3   :  { %11006 = vmatmul.mubr.msk.f32.vlgmr.msra.gmra.mxu1 %vm2593_vm10, %v14158_v18  ;;  %6535 = vmatprep.subr.mxu0 %v6255_v53  ;;  %v5113_v38 = vpop.f32.mrf.mxu0  ;;  %v4620_v24 = vadd.f32 %v13994_v17, %v3575_v57  ;;  %v14180_v32 = vcombine.low %v17420_v54, %v17419_v26  ;;  %v6345_v61 = vld [vmem:[#allocation7 + $0x1d38] sm:$0xff]  ;;  %v17421_v17 = vld [vmem:[#allocation55_spill] sm:$0xff]  ;;  %v6244_v53 = vld [vmem:[#allocation7 + $0x1a10] sm:$0xff]  ;;  %v2800_v20 = vadd.f32 %v17424_v58, %v17423_v41 }
 0x3b4   :  { %6676 = vmatpush1.msra.mxu1 %v6252_v60  ;;  %6536 = vmatpush2.msra.mxu0 %v6254_v36  ;;  %v14175_v11 = vadd.f32 %v5213_v8, %v13992_v10  ;;  %v5218_v31 = vpop.f32.mrf.mxu1  ;;  %v5215_v7 = vadd.f32 %v5214_v2, %v5113_v38  ;;  %v14185_v62 = vcombine.high %v17422_v4, %v17421_v17  ;;  %v6241_v21 = vld [vmem:[#allocation7 + $0x19f8] sm:$0xff]  ;;  %v6240_v3 = vld [vmem:[#allocation7 + $0x19f0] sm:$0xff] }
 0x3b5   :  { %6677 = vmatprep.subr.mxu1 %v6249_v1  ;;  %6538 = vmatmul.mubr.f32.vlgmr.msra.gmra.mxu0 %v14171_v43  ;;  %v14194_v15 = vcombine.low %v17422_v4, %v17421_v17  ;;  %v17425_v36 = vld [vmem:[#allocation45_spill] sm:$0xff]  ;;  %v3486_v1 = vadd.f32 %v13850_v5, %v2800_v20  ;;  %v17426_v8 = vld [vmem:[#allocation42_spill] sm:$0xff]  ;;  %v17428_v5 = vld [vmem:[#allocation51_spill] sm:$0xff] }
 0x3b6   :  { %6678 = vmatpush1.msra.mxu1 %v6248_v28  ;;  %6644 = vmatprep.mubr.f32.mxu1 %v17230_v49  ;;  %v14187_v10 = vadd.f32 %v5215_v7, %v4620_v24  ;;  %v5220_v63 = vpop.f32.mrf.mxu1  ;;  %v3581_v25 = vadd.f32 %v17425_v36, %v3480_v42  ;;  %v6237_v2 = vld [vmem:[#allocation7 + $0x19d8] sm:$0xff]  ;;  %v6407_v28 = vcombine.high %v17427_v13, %v17426_v8  ;;  %v6236_v42 = vld [vmem:[#allocation7 + $0x19d0] sm:$0xff]  ;;  %v17433_v20 = vld [vmem:[#allocation67_spill] sm:$0xff] }
 0x3b7   :  { %6679 = vmatprep.subr.mxu1 %v6245_v9  ;;  %6543 = vmatprep.mubr.f32.mxu0 %v14180_v32  ;;  %v5117_v60 = vpop.f32.mrf.mxu0  ;;  %v6233_v26 = vld [vmem:[#allocation7 + $0x19b8] sm:$0xff]  ;;  %v6406_v54 = vcombine.low %v17427_v13, %v17426_v8  ;;  %v6232_v17 = vld [vmem:[#allocation7 + $0x19b0] sm:$0xff] }
 0x3b8   :  { %11007 = vmatmul.mubr.msk.f32.gmra.mxu1 %vm2593_vm10, %v14185_v62  ;;  %6794 = vmatprep.subr.mxu0 %v6345_v61  ;;  %v5219_v57 = vadd.f32 %v5218_v31, %v5117_v60  ;;  %v4624_v24 = vadd.f32 %v14006_v22, %v3581_v25  ;;  %v6425_v61 = vcombine.low %v13437_v0, %v6188_v56  ;;  %v17429_v22 = vld [vmem:[#allocation57_spill] sm:$0xff]  ;;  %v17432_v41 = vld [vmem:[#allocation60_spill] sm:$0xff] }
 0x3b9   :  { %6680 = vmatpush1.msra.mxu1 %v6244_v53  ;;  %6544 = vmatmul.mubr.f32.gmra.mxu0 %v14194_v15  ;;  %v5119_v38 = vpop.f32.mrf.mxu0  ;;  %v6229_v53 = vld [vmem:[#allocation7 + $0x1998] sm:$0xff] }
 0x3ba   :  { %6681 = vmatprep.subr.mxu1 %v6241_v21  ;;  %6650 = vmatprep.mubr.f32.mxu1 %v17230_v49  ;;  %v14208_v9 = vadd.f32 %v5219_v57, %v14004_v30  ;;  %v5224_v31 = vpop.f32.mrf.mxu1  ;;  %v5221_v7 = vadd.f32 %v5220_v63, %v5119_v38  ;;  %v17430_v30 = vld [vmem:[#allocation35_spill] sm:$0xff]  ;;  %v17431_v63 = vld [vmem:[#allocation66_spill] sm:$0xff]  ;;  %v17434_v21 = vld [vmem:[#allocation61_spill] sm:$0xff] }
 0x3bb   :  { %6682 = vmatpush1.msra.mxu1 %v6240_v3  ;;  %6549 = vmatprep.mubr.f32.mxu0 %v17428_v5  ;;  %v14221_v58 = vcombine.low %v17432_v41, %v17431_v63  ;;  %v14225_v60 = vcombine.high %v17434_v21, %v17433_v20  ;;  %v14229_v0 = vcombine.low %v17434_v21, %v17433_v20  ;;  %v17435_v36 = vld [vmem:[#allocation41_spill] sm:$0xff]  ;;  %v17436_v38 = vld [vmem:[#allocation74_spill] sm:$0xff] }
 0x3bc   :  { %6683 = vmatprep.subr.mxu1 %v6237_v2  ;;  %11008 = vmatmul.mubr.msk.f32.gmra.mxu1 %vm2593_vm10, %v17429_v22  ;;  %v14216_v4 = vadd.f32 %v5221_v7, %v4624_v24  ;;  %v3587_v25 = vadd.f32 %v17435_v36, %v3486_v1  ;;  %v6228_v3 = vld [vmem:[#allocation7 + $0x1990] sm:$0xff]  ;;  %v6421_v2 = vrot.slane %v6407_v28, %v12345_v46  ;;  %v5226_v8 = vpop.f32.mrf.mxu1  ;;  %v6225_v7 = vld [vmem:[#allocation7 + $0x1978] sm:$0xff] }
 0x3bd   :  { %6684 = vmatpush1.msra.mxu1 %v6236_v42  ;;  %6550 = vmatmul.mubr.f32.gmra.mxu0 %v17430_v30  ;;  %v5123_v56 = vpop.f32.mrf.mxu0  ;;  %v6344_v57 = vld [vmem:[#allocation7 + $0x1d30] sm:$0xff]  ;;  %v6414_v63 = vrot.slane %v6406_v54, %v12345_v46  ;;  %v6432_v1 = vrot.slane %v6425_v61, %v12345_v46  ;;  %v6341_v54 = vld [vmem:[#allocation7 + $0x1d18] sm:$0xff] }
 0x3be   :  { %6685 = vmatprep.subr.mxu1 %v6233_v26  ;;  %6656 = vmatprep.mubr.f32.mxu1 %v17230_v49  ;;  %v5225_v13 = vadd.f32 %v5224_v31, %v5123_v56  ;;  %v17437_v24 = vld [vmem:[#allocation28_spill] sm:$0xff]  ;;  %v4628_v41 = vadd.f32 %v14019_v52, %v3587_v25  ;;  %v6221_v56 = vld [vmem:[#allocation7 + $0x1958] sm:$0xff] }
 0x3bf   :  { %v2806_v42 = vadd.f32 %v17437_v24, %v17436_v38  ;;  %6686 = vmatpush1.msra.mxu1 %v6232_v17  ;;  %6555 = vmatprep.mubr.f32.mxu0 %v14221_v58  ;;  %v5125_v26 = vpop.f32.mrf.mxu0  ;;  %v6224_v28 = vld [vmem:[#allocation7 + $0x1970] sm:$0xff]  ;;  %v17438_v17 = vld [vmem:[#allocation39_spill] sm:$0xff]  ;;  %v6433_v38 = vcombine.high %v6432_v1, %v6432_v1 }
 0x3c0   :  { %6687 = vmatprep.subr.mxu1 %v6229_v53  ;;  %11009 = vmatmul.mubr.msk.f32.gmra.mxu1 %vm2593_vm10, %v14225_v60  ;;  %v14243_v31 = vadd.f32 %v5225_v13, %v14017_v29  ;;  %v5227_v20 = vadd.f32 %v5226_v8, %v5125_v26  ;;  %v5230_v61 = vpop.f32.mrf.mxu1  ;;  %v17440_v53 = vld [vmem:[#allocation68_spill] sm:$0xff]  ;;  %v17441_v29 = vld [vmem:[#allocation69_spill] sm:$0xff] }
 0x3c1   :  { %v3492_v21 = vadd.f32 %v17438_v17, %v2806_v42  ;;  %6688 = vmatpush1.msra.mxu1 %v6228_v3  ;;  %6795 = vmatpush1.msra.mxu0 %v6344_v57  ;;  %v14251_v36 = vcombine.low %v17440_v53, %v6421_v2  ;;  %v14254_v25 = vcombine.high %v17441_v29, %v6414_v63  ;;  %v6220_v8 = vld [vmem:[#allocation7 + $0x1950] sm:$0xff]  ;;  %v6217_v57 = vld [vmem:[#allocation7 + $0x1938] sm:$0xff] }
 0x3c2   :  { %6689 = vmatprep.subr.mxu1 %v6225_v7  ;;  %6556 = vmatmul.mubr.f32.gmra.mxu0 %v14229_v0  ;;  %v14247_v52 = vadd.f32 %v5227_v20, %v4628_v41  ;;  %v6340_v3 = vld [vmem:[#allocation7 + $0x1d10] sm:$0xff]  ;;  %v6337_v13 = vld [vmem:[#allocation7 + $0x1cf8] sm:$0xff]  ;;  %v14261_v41 = vrot.slane %v6432_v1, %v12345_v46  ;;  %v14264_v20 = vcombine.low %v17441_v29, %v6414_v63  ;;  %v5232_v17 = vpop.f32.mrf.mxu1 }
 0x3c3   :  { %6690 = vmatpush1.msra.mxu1 %v6224_v28  ;;  %6662 = vmatprep.mubr.f32.mxu1 %v17230_v49  ;;  %v17442_v42 = vld [vmem:[#allocation54_spill] sm:$0xff]  ;;  %v6216_v2 = vld [vmem:[#allocation7 + $0x1930] sm:$0xff]  ;;  %v14273_v63 = vrot.slane %v6433_v38, %v12345_v46 }
 0x3c4   :  { %17439 = vst [vmem:[#allocation73_spill] sm:$0xff] %v14247_v52  ;;  %6691 = vmatprep.subr.mxu1 %v6221_v56  ;;  %6796 = vmatprep.subr.mxu0 %v6341_v54  ;;  %v5129_v24 = vpop.f32.mrf.mxu0  ;;  %v3593_v7 = vadd.f32 %v17442_v42, %v3492_v21  ;;  %v6336_v26 = vld [vmem:[#allocation7 + $0x1cf0] sm:$0xff]  ;;  %v6213_v54 = vld [vmem:[#allocation7 + $0x1918] sm:$0xff] }
 0x3c5   :  { %6561 = vmatprep.mubr.f32.mxu0 %v14251_v36  ;;  %11010 = vmatmul.mubr.msk.f32.gmra.mxu1 %vm2593_vm10, %v14254_v25  ;;  %v5231_v28 = vadd.f32 %v5230_v61, %v5129_v24  ;;  %v6333_v53 = vld [vmem:[#allocation7 + $0x1cd8] sm:$0xff]  ;;  %v6212_v1 = vld [vmem:[#allocation7 + $0x1910] sm:$0xff] }
 0x3c6   :  { %6692 = vmatpush1.msra.mxu1 %v6220_v8  ;;  %6797 = vmatpush1.msra.mxu0 %v6340_v3  ;;  %v5131_v56 = vpop.f32.mrf.mxu0  ;;  %v4632_v21 = vadd.f32 %v14036_v40, %v3593_v7  ;;  %v14277_v40 = vcombine.high %v14261_v41, %v14261_v41  ;;  %v6332_v61 = vld [vmem:[#allocation7 + $0x1cd0] sm:$0xff]  ;;  %v6329_v8 = vld [vmem:[#allocation7 + $0x1cb8] sm:$0xff] }
 0x3c7   :  { %6693 = vmatprep.subr.mxu1 %v6217_v57  ;;  %6798 = vmatprep.subr.mxu0 %v6337_v13  ;;  %v14268_v42 = vadd.f32 %v5231_v28, %v14034_v33  ;;  %v5233_v52 = vadd.f32 %v5232_v17, %v5131_v56  ;;  %v6209_v33 = vld [vmem:[#allocation7 + $0x18f8] sm:$0xff]  ;;  %v6208_v3 = vld [vmem:[#allocation7 + $0x18f0] sm:$0xff] }
 0x3c8   :  { %6694 = vmatpush1.msra.mxu1 %v6216_v2  ;;  %6799 = vmatpush1.msra.mxu0 %v6336_v26  ;;  %v6328_v57 = vld [vmem:[#allocation7 + $0x1cb0] sm:$0xff]  ;;  %v6205_v13 = vld [vmem:[#allocation7 + $0x18d8] sm:$0xff] }
 0x3c9   :  { %6562 = vmatmul.mubr.f32.gmra.mxu0 %v14264_v20  ;;  %6668 = vmatprep.mubr.f32.mxu1 %v17230_v49  ;;  %v14279_v29 = vadd.f32 %v5233_v52, %v4632_v21  ;;  %v6325_v38 = vld [vmem:[#allocation7 + $0x1c98] sm:$0xff]  ;;  %v6204_v52 = vld [vmem:[#allocation7 + $0x18d0] sm:$0xff] }
 0x3ca   :  { %6695 = vmatprep.subr.mxu1 %v6213_v54  ;;  %6800 = vmatprep.subr.mxu0 %v6333_v53  ;;  %v6324_v24 = vld [vmem:[#allocation7 + $0x1c90] sm:$0xff]  ;;  %v6201_v7 = vld [vmem:[#allocation7 + $0x18b8] sm:$0xff] }
 0x3cb   :  { %6567 = vmatprep.mubr.f32.mxu0 %v14273_v63  ;;  %11011 = vmatmul.mubr.msk.f32.gmra.mxu1 %vm2593_vm10, %v14277_v40  ;;  %v6321_v2 = vld [vmem:[#allocation7 + $0x1c78] sm:$0xff]  ;;  %v6200_v26 = vld [vmem:[#allocation7 + $0x18b0] sm:$0xff] }
 0x3cc   :  { %6696 = vmatpush1.msra.mxu1 %v6212_v1  ;;  %6801 = vmatpush1.msra.mxu0 %v6332_v61  ;;  %v6320_v28 = vld [vmem:[#allocation7 + $0x1c70] sm:$0xff]  ;;  %v6197_v17 = vld [vmem:[#allocation7 + $0x1898] sm:$0xff] }
 0x3cd   :  { %6697 = vmatprep.subr.mxu1 %v6209_v33  ;;  %6739 = vmatprep.mubr.f32.mxu1 %v14080_v35  ;;  %v6196_v35 = vld [vmem:[#allocation7 + $0x1890] sm:$0xff]  ;;  %v6193_v56 = vld [vmem:[#allocation7 + $0x1878] sm:$0xff] }
 0x3ce   :  { %6802 = vmatprep.subr.mxu0 %v6329_v8  ;;  %6698 = vmatpush1.msra.mxu1 %v6208_v3  ;;  %v6192_v21 = vld [vmem:[#allocation7 + $0x1870] sm:$0xff]  ;;  %v6317_v54 = vld [vmem:[#allocation7 + $0x1c58] sm:$0xff] }
 0x3cf   :  { %6803 = vmatpush1.msra.mxu0 %v6328_v57  ;;  %6699 = vmatprep.subr.mxu1 %v6205_v13  ;;  %v6316_v53 = vld [vmem:[#allocation7 + $0x1c50] sm:$0xff]  ;;  %v6313_v1 = vld [vmem:[#allocation7 + $0x1c38] sm:$0xff] }
 0x3d0   :  { %6568 = vmatmul.mubr.f32.gmra.mxu0 %v14261_v41  ;;  %6804 = vmatprep.subr.mxu0 %v6325_v38  ;;  %v6312_v61 = vld [vmem:[#allocation7 + $0x1c30] sm:$0xff]  ;;  %v6309_v33 = vld [vmem:[#allocation7 + $0x1c18] sm:$0xff] }
 0x3d1   :  { %6700 = vmatpush1.msra.mxu1 %v6204_v52  ;;  %6805 = vmatpush1.msra.mxu0 %v6324_v24  ;;  %v6308_v8 = vld [vmem:[#allocation7 + $0x1c10] sm:$0xff]  ;;  %v6301_v57 = vld [vmem:[#allocation7 + $0x1bd8] sm:$0xff] }
 0x3d2   :  { %6701 = vmatprep.subr.mxu1 %v6201_v7  ;;  %6806 = vmatprep.subr.mxu0 %v6321_v2  ;;  %v6304_v3 = vld [vmem:[#allocation7 + $0x1bf0] sm:$0xff]  ;;  %v6297_v38 = vld [vmem:[#allocation7 + $0x1bb8] sm:$0xff] }
 0x3d3   :  { %6702 = vmatpush1.msra.mxu1 %v6200_v26  ;;  %6807 = vmatpush1.msra.mxu0 %v6320_v28  ;;  %v6300_v13 = vld [vmem:[#allocation7 + $0x1bd0] sm:$0xff]  ;;  %v6293_v24 = vld [vmem:[#allocation7 + $0x1b98] sm:$0xff] }
 0x3d4   :  { %6840 = vmatprep.mubr.f32.mxu0 %v17230_v49  ;;  %6703 = vmatprep.subr.mxu1 %v6197_v17  ;;  %v6296_v52 = vld [vmem:[#allocation7 + $0x1bb0] sm:$0xff]  ;;  %v6289_v2 = vld [vmem:[#allocation7 + $0x1b78] sm:$0xff] }
 0x3d5   :  { %11012 = vmatmul.mubr.msk.f32.vlgmr.msra.gmra.mxu0 %vm2593_vm10, %v14158_v18  ;;  %6704 = vmatpush1.msra.mxu1 %v6196_v35  ;;  %v6305_v18 = vld [vmem:[#allocation7 + $0x1bf8] sm:$0xff]  ;;  %v6288_v26 = vld [vmem:[#allocation7 + $0x1b70] sm:$0xff] }
 0x3d6   :  { %6705 = vmatprep.subr.mxu1 %v6193_v56  ;;  %6846 = vmatprep.mubr.f32.mxu0 %v17230_v49  ;;  %v6285_v28 = vld [vmem:[#allocation7 + $0x1b58] sm:$0xff]  ;;  %v6280_v56 = vld [vmem:[#allocation7 + $0x1b30] sm:$0xff] }
 0x3d7   :  { %6706 = vmatpush1.msra.mxu1 %v6192_v21  ;;  %v6281_v35 = vld [vmem:[#allocation7 + $0x1b38] sm:$0xff] }
 0x3d8   :  { %6707 = vmatprep.subr.mxu1 %v6317_v54  ;;  %v6277_v21 = vld [vmem:[#allocation7 + $0x1b18] sm:$0xff] }
 0x3d9   :  { %11013 = vmatmul.mubr.msk.f32.gmra.mxu0 %vm2593_vm10, %v14185_v62  ;;  %6708 = vmatpush2.msra.mxu1 %v6316_v53  ;;  %v5402_v62 = vpop.f32.mrf.mxu0  ;;  %v6276_v53 = vld [vmem:[#allocation7 + $0x1b10] sm:$0xff] }
 0x3da   :  { %6709 = vmatprep.subr.mxu1 %v6313_v1  ;;  %6852 = vmatprep.mubr.f32.mxu0 %v17230_v49  ;;  %v6272_v1 = vld [vmem:[#allocation7 + $0x1af0] sm:$0xff] }
 0x3db   :  { %6710 = vmatpush2.msra.mxu1 %v6312_v61  ;;  %v5404_v7 = vpop.f32.mrf.mxu0  ;;  %v6269_v61 = vld [vmem:[#allocation7 + $0x1ad8] sm:$0xff] }
 0x3dc   :  { %6711 = vmatprep.subr.mxu1 %v6309_v33  ;;  %v17443_v33 = vld [vmem:[#allocation77_spill] sm:$0xff] }
 0x3dd   :  { %11014 = vmatmul.mubr.msk.f32.gmra.mxu0 %vm2593_vm10, %v17429_v22  ;;  %6712 = vmatpush2.msra.mxu1 %v6308_v8  ;;  %v6292_v22 = vld [vmem:[#allocation7 + $0x1b90] sm:$0xff]  ;;  %v5408_v17 = vpop.f32.mrf.mxu0  ;;  %v17444_v8 = vld [vmem:[#allocation75_spill] sm:$0xff] }
 0x3de   :  { %6713 = vmatprep.subr.mxu1 %v6305_v18  ;;  %6858 = vmatprep.mubr.f32.mxu0 %v17230_v49  ;;  %v2978_v18 = vadd.f32 %v17444_v8, %v17443_v33  ;;  %v17449_v8 = vld [vmem:[#allocation80_spill] sm:$0xff] }
 0x3df   :  { %6714 = vmatpush2.msra.mxu1 %v6304_v3  ;;  %v5410_v54 = vpop.f32.mrf.mxu0 }
 0x3e0   :  { %6715 = vmatprep.subr.mxu1 %v6301_v57  ;;  %v6268_v57 = vld [vmem:[#allocation7 + $0x1ad0] sm:$0xff] }
 0x3e1   :  { %11015 = vmatmul.mubr.msk.f32.gmra.mxu0 %vm2593_vm10, %v14225_v60  ;;  %6716 = vmatpush2.msra.mxu1 %v6300_v13  ;;  %v6284_v60 = vld [vmem:[#allocation7 + $0x1b50] sm:$0xff]  ;;  %v5414_v3 = vpop.f32.mrf.mxu0  ;;  %v6265_v13 = vld [vmem:[#allocation7 + $0x1ab8] sm:$0xff] }
 0x3e2   :  { %6717 = vmatprep.subr.mxu1 %v6297_v38  ;;  %6864 = vmatprep.mubr.f32.mxu0 %v17230_v49 }
 0x3e3   :  { %6718 = vmatpush2.msra.mxu1 %v6296_v52  ;;  %v6264_v52 = vld [vmem:[#allocation7 + $0x1ab0] sm:$0xff] }
 0x3e4   :  { %6719 = vmatprep.subr.mxu1 %v6293_v24  ;;  %v6261_v24 = vld [vmem:[#allocation7 + $0x1a98] sm:$0xff] }
 0x3e5   :  { %11016 = vmatmul.mubr.msk.f32.gmra.mxu0 %vm2593_vm10, %v14254_v25  ;;  %6720 = vmatpush2.msra.mxu1 %v6292_v22  ;;  %v6273_v25 = vld [vmem:[#allocation7 + $0x1af8] sm:$0xff] }
 0x3e6   :  { %6721 = vmatprep.subr.mxu1 %v6289_v2  ;;  %6870 = vmatprep.mubr.f32.mxu0 %v17230_v49  ;;  %v17446_v22 = vld [vmem:[#allocation78_spill] sm:$0xff]  ;;  %v17447_v2 = vld [vmem:[#allocation33_spill] sm:$0xff] }
 0x3e7   :  { %6722 = vmatpush2.msra.mxu1 %v6288_v26  ;;  %v2984_v26 = vadd.f32 %v17447_v2, %v17446_v22  ;;  %v17451_v2 = vld [vmem:[#allocation62_spill] sm:$0xff] }
 0x3e8   :  { %6723 = vmatprep.subr.mxu1 %v6285_v28  ;;  %v5416_v28 = vpop.f32.mrf.mxu0 }
 0x3e9   :  { %11017 = vmatmul.mubr.msk.f32.gmra.mxu0 %vm2593_vm10, %v14277_v40  ;;  %6724 = vmatpush2.msra.mxu1 %v6284_v60  ;;  %v17445_v40 = vld [vmem:[#allocation63_spill] sm:$0xff]  ;;  %v6260_v60 = vld [vmem:[#allocation7 + $0x1a90] sm:$0xff] }
 0x3ea   :  { %6725 = vmatprep.subr.mxu1 %v6281_v35  ;;  %v3664_v38 = vadd.f32 %v17445_v40, %v2978_v18  ;;  %v6257_v35 = vld [vmem:[#allocation7 + $0x1a78] sm:$0xff]  ;;  %v17450_v18 = vld [vmem:[#allocation76_spill] sm:$0xff]  ;;  %v5420_v22 = vpop.f32.mrf.mxu0 }
 0x3eb   :  { %6726 = vmatpush2.msra.mxu1 %v6280_v56 }
 0x3ec   :  { %6727 = vmatprep.subr.mxu1 %v6277_v21  ;;  %v17448_v21 = vld [vmem:[#allocation53_spill] sm:$0xff] }
 0x3ed   :  { %6728 = vmatpush2.msra.mxu1 %v6276_v53  ;;  %v3765_v53 = vadd.f32 %v17448_v21, %v3664_v38 }
 0x3ee   :  { %6729 = vmatprep.subr.mxu1 %v6273_v25  ;;  %v3670_v25 = vadd.f32 %v13935_v50, %v2984_v26 }
 0x3ef   :  { %6730 = vmatpush2.msra.mxu1 %v6272_v1  ;;  %v6256_v1 = vld [vmem:[#allocation7 + $0x1a70] sm:$0xff]  ;;  %v4614_v40 = vadd.f32 %v14092_v59, %v3765_v53 }
 0x3f0   :  { %6731 = vmatprep.subr.mxu1 %v6269_v61  ;;  %v3771_v50 = vadd.f32 %v17451_v2, %v3670_v25 }
 0x3f1   :  { %6732 = vmatpush2.msra.mxu1 %v6268_v57  ;;  %v2990_v57 = vadd.f32 %v17450_v18, %v17449_v8  ;;  %v17456_v18 = vld [vmem:[#allocation30_spill] sm:$0xff] }
 0x3f2   :  { %6733 = vmatprep.subr.mxu1 %v6265_v13 }
 0x3f3   :  { %6734 = vmatpush2.msra.mxu1 %v6264_v52  ;;  %v5301_v56 = vpop.f32.mrf.mxu1 }
 0x3f4   :  { %6735 = vmatprep.subr.mxu1 %v6261_v24  ;;  %v5403_v33 = vadd.f32 %v5402_v62, %v5301_v56  ;;  %v3676_v24 = vadd.f32 %v13943_v16, %v2990_v57  ;;  %v17454_v16 = vld [vmem:[#allocation64_spill] sm:$0xff]  ;;  %v17457_v57 = vld [vmem:[#allocation23_spill] sm:$0xff] }
 0x3f5   :  { %6736 = vmatpush2.msra.mxu1 %v6260_v60  ;;  %v5303_v61 = vpop.f32.mrf.mxu1  ;;  %v17452_v60 = vld [vmem:[#allocation25_spill] sm:$0xff] }
 0x3f6   :  { %6737 = vmatprep.subr.mxu1 %v6257_v35  ;;  %v14315_v13 = vadd.f32 %v5403_v33, %v14089_v34  ;;  %v5405_v52 = vadd.f32 %v5404_v7, %v5303_v61  ;;  %v17453_v35 = vld [vmem:[#allocation79_spill] sm:$0xff]  ;;  %v4618_v34 = vadd.f32 %v14099_v47, %v3771_v50  ;;  %v5422_v7 = vpop.f32.mrf.mxu0 }
 0x3f7   :  { %6738 = vmatpush2.msra.mxu1 %v6256_v1  ;;  %v5307_v38 = vpop.f32.mrf.mxu1  ;;  %v2996_v56 = vadd.f32 %v17453_v35, %v17452_v60  ;;  %v3777_v1 = vadd.f32 %v17454_v16, %v3676_v24  ;;  %v17460_v60 = vld [vmem:[#allocation83_spill] sm:$0xff] }
 0x3f8   :  { %6740 = vmatmul.mubr.f32.vlgmr.msra.gmra.mxu1 %v14171_v43  ;;  %v14320_v62 = vadd.f32 %v5405_v52, %v4614_v40  ;;  %v5409_v26 = vadd.f32 %v5408_v17, %v5307_v38  ;;  %v17455_v43 = vld [vmem:[#allocation82_spill] sm:$0xff]  ;;  %v5426_v8 = vpop.f32.mrf.mxu0  ;;  %v3002_v40 = vadd.f32 %v17457_v57, %v17456_v18  ;;  %v17458_v38 = vld [vmem:[#allocation65_spill] sm:$0xff] }
 0x3f9   :  { %6745 = vmatprep.mubr.f32.mxu1 %v14180_v32  ;;  %v5309_v59 = vpop.f32.mrf.mxu1  ;;  %v3682_v33 = vadd.f32 %v17455_v43, %v2996_v56  ;;  %v4622_v47 = vadd.f32 %v14106_v48, %v3777_v1 }
 0x3fa   :  { %v14327_v21 = vadd.f32 %v5409_v26, %v14096_v45  ;;  %v5411_v53 = vadd.f32 %v5410_v54, %v5309_v59  ;;  %v5428_v24 = vpop.f32.mrf.mxu0 }
 0x3fb   :  { %v5313_v25 = vpop.f32.mrf.mxu1  ;;  %v3783_v2 = vadd.f32 %v17458_v38, %v3682_v33 }
 0x3fc   :  { %6746 = vmatmul.mubr.f32.gmra.mxu1 %v14194_v15  ;;  %v14332_v17 = vadd.f32 %v5411_v53, %v4618_v34  ;;  %v5415_v32 = vadd.f32 %v5414_v3, %v5313_v25  ;;  %v5432_v56 = vpop.f32.mrf.mxu0 }
 0x3fd   :  { %6751 = vmatprep.mubr.f32.mxu1 %v17428_v5  ;;  %v5315_v61 = vpop.f32.mrf.mxu1  ;;  %v17459_v5 = vld [vmem:[#allocation84_spill] sm:$0xff] }
 0x3fe   :  { %v14337_v45 = vadd.f32 %v5415_v32, %v14103_v14  ;;  %v5417_v54 = vadd.f32 %v5416_v28, %v5315_v61  ;;  %v3688_v50 = vadd.f32 %v17459_v5, %v3002_v40  ;;  %v4626_v14 = vadd.f32 %v14113_v39, %v3783_v2  ;;  %v5434_v25 = vpop.f32.mrf.mxu0 }
 0x3ff   :  { %v5319_v52 = vpop.f32.mrf.mxu1 }
 0x400   :  { %6752 = vmatmul.mubr.f32.gmra.mxu1 %v17430_v30  ;;  %v14343_v15 = vadd.f32 %v5417_v54, %v4622_v47  ;;  %v5421_v3 = vadd.f32 %v5420_v22, %v5319_v52  ;;  %v3789_v35 = vadd.f32 %v17460_v60, %v3688_v50 }
 0x401   :  { %6757 = vmatprep.mubr.f32.mxu1 %v14221_v58  ;;  %v5321_v48 = vpop.f32.mrf.mxu1 }
 0x402   :  { %v14349_v28 = vadd.f32 %v5421_v3, %v14111_v27  ;;  %v5423_v26 = vadd.f32 %v5422_v7, %v5321_v48  ;;  %v4630_v34 = vadd.f32 %v14121_v23, %v3789_v35 }
 0x404   :  { %6758 = vmatmul.mubr.f32.gmra.mxu1 %v14229_v0  ;;  %v14352_v59 = vadd.f32 %v5423_v26, %v4626_v14  ;;  %v5325_v30 = vpop.f32.mrf.mxu1 }
 0x405   :  { %6763 = vmatprep.mubr.f32.mxu1 %v14251_v36  ;;  %v5427_v22 = vadd.f32 %v5426_v8, %v5325_v30 }
 0x406   :  { %v5327_v58 = vpop.f32.mrf.mxu1 }
 0x407   :  { %v14358_v39 = vadd.f32 %v5427_v22, %v14119_v44  ;;  %v5429_v27 = vadd.f32 %v5428_v24, %v5327_v58 }
 0x408   :  { %6764 = vmatmul.mubr.f32.gmra.mxu1 %v14264_v20  ;;  %v5331_v7 = vpop.f32.mrf.mxu1 }
 0x409   :  { %6769 = vmatprep.mubr.f32.mxu1 %v14273_v63  ;;  %v14362_v0 = vadd.f32 %v5429_v27, %v4630_v34  ;;  %v5433_v53 = vadd.f32 %v5432_v56, %v5331_v7  ;;  %v17461_v7 = vld [vmem:[#allocation73_spill] sm:$0xff] }
 0x40a   :  { %v5333_v16 = vpop.f32.mrf.mxu1 }
 0x40b   :  { %v14365_v36 = vadd.f32 %v5433_v53, %v14128_v55  ;;  %v5435_v1 = vadd.f32 %v5434_v25, %v5333_v16 }
 0x40c   :  { %6770 = vmatmul.mubr.f32.gmra.mxu1 %v14261_v41 }
 0x40d   :  { %v14369_v44 = vadd.f32 %v5435_v1, %v14135_v51  ;;  %v5926_v23 = vpop.f32.mrf.mxu1 }
 0x40f   :  { %v5928_v43 = vpop.f32.mrf.mxu1  ;;  %v5825_v20 = vpop.f32.mrf.mxu0 }
 0x410   :  { %v5927_v33 = vadd.f32 %v5926_v23, %v5825_v20 }
 0x411   :  { %v5827_v32 = vpop.f32.mrf.mxu0 }
 0x412   :  { %v14372_v63 = vadd.f32 %v5927_v33, %v14145_v19  ;;  %v5932_v61 = vpop.f32.mrf.mxu1  ;;  %v5929_v47 = vadd.f32 %v5928_v43, %v5827_v32 }
 0x413   :  { %v5831_v8 = vpop.f32.mrf.mxu0 }
 0x414   :  { %v14375_v55 = vadd.f32 %v5929_v47, %v14150_v12  ;;  %v5934_v54 = vpop.f32.mrf.mxu1  ;;  %v5933_v18 = vadd.f32 %v5932_v61, %v5831_v8 }
 0x415   :  { %v5833_v41 = vpop.f32.mrf.mxu0 }
 0x416   :  { %v14378_v51 = vadd.f32 %v5933_v18, %v14154_v6  ;;  %v5938_v57 = vpop.f32.mrf.mxu1  ;;  %v5935_v40 = vadd.f32 %v5934_v54, %v5833_v41 }
 0x417   :  { %v5837_v52 = vpop.f32.mrf.mxu0 }
 0x418   :  { %v14381_v38 = vadd.f32 %v5935_v40, %v14164_v37  ;;  %v5940_v19 = vpop.f32.mrf.mxu1  ;;  %v5939_v2 = vadd.f32 %v5938_v57, %v5837_v52 }
 0x419   :  { %v5839_v3 = vpop.f32.mrf.mxu0 }
 0x41a   :  { %v14384_v5 = vadd.f32 %v5939_v2, %v14175_v11  ;;  %v5944_v12 = vpop.f32.mrf.mxu1  ;;  %v5941_v50 = vadd.f32 %v5940_v19, %v5839_v3 }
 0x41c   :  { %v14387_v48 = vadd.f32 %v5941_v50, %v14187_v10  ;;  %v5946_v14 = vpop.f32.mrf.mxu1 }
 0x41d   :  { %v5843_v6 = vpop.f32.mrf.mxu0 }
 0x41e   :  { %v5945_v24 = vadd.f32 %v5944_v12, %v5843_v6 }
 0x41f   :  { %v5845_v26 = vpop.f32.mrf.mxu0 }
 0x420   :  { %v14390_v30 = vadd.f32 %v5945_v24, %v14208_v9  ;;  %v5950_v37 = vpop.f32.mrf.mxu1  ;;  %v5947_v60 = vadd.f32 %v5946_v14, %v5845_v26 }
 0x422   :  { %v14393_v35 = vadd.f32 %v5947_v60, %v14216_v4  ;;  %v5952_v11 = vpop.f32.mrf.mxu1 }
 0x423   :  { %v5849_v22 = vpop.f32.mrf.mxu0 }
 0x424   :  { %v5951_v56 = vadd.f32 %v5950_v37, %v5849_v22 }
 0x425   :  { %v5851_v58 = vpop.f32.mrf.mxu0 }
 0x426   :  { %v14396_v34 = vadd.f32 %v5951_v56, %v14243_v31  ;;  %v5953_v10 = vadd.f32 %v5952_v11, %v5851_v58  ;;  %v5956_v27 = vpop.f32.mrf.mxu1 }
 0x428   :  { %v14399_v53 = vadd.f32 %v5953_v10, %v17461_v7  ;;  %v5958_v16 = vpop.f32.mrf.mxu1 }
 0x42a   :  { %v5855_v25 = vpop.f32.mrf.mxu0 }
 0x42b   :  { %v5957_v9 = vadd.f32 %v5956_v27, %v5855_v25 }
 0x42c   :  { %v5857_v1 = vpop.f32.mrf.mxu0 }
 0x42d   :  { %v14402_v23 = vadd.f32 %v5957_v9, %v14268_v42  ;;  %v5959_v4 = vadd.f32 %v5958_v16, %v5857_v1 }
 0x42f   :  { %v14405_v43 = vadd.f32 %v5959_v4, %v14279_v29  ;;  %v14407_v20 = vpop.f32.mrf.mxu0  ;;  %v14447_v4 = vld [vmem:[#allocation8] sm:$0xf] }
 0x431   :  { %v14409_v31 = vpop.f32.mrf.mxu0 }
 0x434   :  { %v14411_v33 = vpop.f32.mrf.mxu0 }
 0x436   :  { %v14413_v32 = vpop.f32.mrf.mxu0 }
 0x439   :  { %v6140_v61 = vpop.f32.mrf.mxu0 }
 0x43b   :  { %v6142_v47 = vpop.f32.mrf.mxu0 }
 0x43e   :  { %v6146_v42 = vpop.f32.mrf.mxu0 }
 0x440   :  { %v6148_v29 = vpop.f32.mrf.mxu0 }
 0x443   :  { %v6152_v19 = vpop.f32.mrf.mxu0 }
 0x445   :  { %v6154_v24 = vpop.f32.mrf.mxu0 }
 0x448   :  { %v6158_v56 = vpop.f32.mrf.mxu0 }
 0x44a   :  { %v6160_v25 = vpop.f32.mrf.mxu0 }
 0x459   :  { %v14415_v8 = vpop.f32.mrf.mxu1 }
 0x45b   :  { %v14417_v54 = vpop.f32.mrf.mxu1 }
 0x45d   :  { %v14419_v18 = vpop.f32.mrf.mxu1 }
 0x45f   :  { %v14421_v41 = vpop.f32.mrf.mxu1 }
 0x461   :  { %v6039_v57 = vpop.f32.mrf.mxu1 }
 0x462   :  { %v6141_v40 = vadd.f32 %v6140_v61, %v6039_v57 }
 0x463   :  { %v6041_v52 = vpop.f32.mrf.mxu1 }
 0x464   :  { %v14424_v2 = vadd.f32 %v6141_v40, %v14337_v45  ;;  %v6143_v3 = vadd.f32 %v6142_v47, %v6041_v52  ;;  %v17463_v52 = vld [vmem:[#allocation22_spill] sm:$0xff] }
 0x465   :  { %v6045_v12 = vpop.f32.mrf.mxu1 }
 0x466   :  { %v14427_v50 = vadd.f32 %v6143_v3, %v14343_v15  ;;  %v6147_v14 = vadd.f32 %v6146_v42, %v6045_v12  ;;  %v17462_v42 = vld [vmem:[#allocation21_spill] sm:$0xff] }
 0x467   :  { %v6047_v6 = vpop.f32.mrf.mxu1 }
 0x468   :  { %v14430_v26 = vadd.f32 %v6147_v14, %v14349_v28  ;;  %v6149_v37 = vadd.f32 %v6148_v29, %v6047_v6 }
 0x46a   :  { %v14433_v60 = vadd.f32 %v6149_v37, %v14352_v59  ;;  %v6051_v22 = vpop.f32.mrf.mxu1 }
 0x46b   :  { %v6153_v11 = vadd.f32 %v6152_v19, %v6051_v22  ;;  %v14456_v19 = vrot.slane %v14447_v4, %v17463_v52 }
 0x46c   :  { %v6053_v45 = vpop.f32.mrf.mxu1 }
 0x46d   :  { %v14436_v58 = vadd.f32 %v6153_v11, %v14358_v39  ;;  %v6155_v10 = vadd.f32 %v6154_v24, %v6053_v45 }
 0x46e   :  { %v6057_v15 = vpop.f32.mrf.mxu1 }
 0x46f   :  { %v14439_v27 = vadd.f32 %v6155_v10, %v14362_v0  ;;  %v6159_v7 = vadd.f32 %v6158_v56, %v6057_v15  ;;  %v14451_v0 = vrot.slane %v14447_v4, %v17462_v42 }
 0x470   :  { %v6059_v28 = vpop.f32.mrf.mxu1 }
 0x471   :  { %v14442_v9 = vadd.f32 %v6159_v7, %v14365_v36  ;;  %v6161_v59 = vadd.f32 %v6160_v25, %v6059_v28 }
 0x473   :  { %v14445_v16 = vadd.f32 %v6161_v59, %v14369_v44  ;;  %v6640_v1 = vpop.f32.mrf.mxu1 }
 0x475   :  { %v6642_v39 = vpop.f32.mrf.mxu1  ;;  %v6539_v61 = vpop.f32.mrf.mxu0 }
 0x476   :  { %v6641_v47 = vadd.f32 %v6640_v1, %v6539_v61 }
 0x477   :  { %v6541_v29 = vpop.f32.mrf.mxu0 }
 0x478   :  { %v6877_v57 = vadd.f32 %v6641_v47, %v14372_v63  ;;  %v6646_v40 = vpop.f32.mrf.mxu1  ;;  %v6643_v36 = vadd.f32 %v6642_v39, %v6541_v29 }
 0x479   :  { %v6545_v44 = vpop.f32.mrf.mxu0 }
 0x47a   :  { %v6923_v3 = vadd.f32 %v14451_v0, %v6877_v57  ;;  %v6878_v12 = vadd.f32 %v6643_v36, %v14375_v55  ;;  %v6648_v14 = vpop.f32.mrf.mxu1  ;;  %v6647_v6 = vadd.f32 %v6646_v40, %v6545_v44 }
 0x47b   :  { %v6547_v24 = vpop.f32.mrf.mxu0 }
 0x47c   :  { %v6924_v37 = vadd.f32 %v14456_v19, %v6878_v12  ;;  %v6881_v22 = vadd.f32 %v6647_v6, %v14378_v51  ;;  %v6652_v11 = vpop.f32.mrf.mxu1  ;;  %v6649_v63 = vadd.f32 %v6648_v14, %v6547_v24  ;;  %v6947_v56 = vmax.f32 %v6923_v3, 0.0 }
 0x47d   :  { %v6551_v45 = vpop.f32.mrf.mxu0 }
 0x47e   :  { %v6948_v10 = vmax.f32 %v6924_v37, 0.0  ;;  %v6927_v15 = vadd.f32 %v14451_v0, %v6881_v22  ;;  %v6882_v7 = vadd.f32 %v6649_v63, %v14381_v38  ;;  %v6654_v25 = vpop.f32.mrf.mxu1  ;;  %v6653_v28 = vadd.f32 %v6652_v11, %v6551_v45 }
 0x47f   :  { %v6553_v59 = vpop.f32.mrf.mxu0 }
 0x480   :  { %v14464_v55 = vcombine.low %v6947_v56, %v6948_v10  ;;  %v14466_v1 = vcombine.high %v6947_v56, %v6948_v10  ;;  %v6928_v39 = vadd.f32 %v14456_v19, %v6882_v7  ;;  %v6658_v61 = vpop.f32.mrf.mxu1  ;;  %v6885_v51 = vadd.f32 %v6653_v28, %v14384_v5 }
 0x481   :  { %v6655_v47 = vadd.f32 %v6654_v25, %v6553_v59  ;;  %v6951_v29 = vmax.f32 %v6927_v15, 0.0 }
 0x482   :  { %v6952_v57 = vmax.f32 %v6928_v39, 0.0  ;;  %v6660_v40 = vpop.f32.mrf.mxu1  ;;  %v6557_v36 = vpop.f32.mrf.mxu0  ;;  %v6931_v44 = vadd.f32 %v14451_v0, %v6885_v51 }
 0x483   :  { %v6886_v38 = vadd.f32 %v6655_v47, %v14387_v48  ;;  %v6659_v3 = vadd.f32 %v6658_v61, %v6557_v36 }
 0x484   :  { %v14472_v12 = vcombine.low %v6951_v29, %v6952_v57  ;;  %v14474_v14 = vcombine.high %v6951_v29, %v6952_v57  ;;  %v6559_v6 = vpop.f32.mrf.mxu0  ;;  %v6955_v11 = vmax.f32 %v6931_v44, 0.0 }
 0x485   :  { %v6932_v24 = vadd.f32 %v14456_v19, %v6886_v38  ;;  %v6889_v37 = vadd.f32 %v6659_v3, %v14390_v30  ;;  %v6661_v5 = vadd.f32 %v6660_v40, %v6559_v6  ;;  %v6664_v22 = vpop.f32.mrf.mxu1 }
 0x487   :  { %v6956_v63 = vmax.f32 %v6932_v24, 0.0  ;;  %v6935_v56 = vadd.f32 %v14451_v0, %v6889_v37  ;;  %v6890_v45 = vadd.f32 %v6661_v5, %v14393_v35  ;;  %v6666_v25 = vpop.f32.mrf.mxu1 }
 0x489   :  { %v14480_v10 = vcombine.low %v6955_v11, %v6956_v63  ;;  %v14482_v48 = vcombine.high %v6955_v11, %v6956_v63  ;;  %v6936_v15 = vadd.f32 %v14456_v19, %v6890_v45  ;;  %v6563_v7 = vpop.f32.mrf.mxu0  ;;  %v6959_v59 = vmax.f32 %v6935_v56, 0.0 }
 0x48a   :  { %v6665_v28 = vadd.f32 %v6664_v22, %v6563_v7 }
 0x48b   :  { %v6960_v39 = vmax.f32 %v6936_v15, 0.0  ;;  %v6565_v30 = vpop.f32.mrf.mxu0  ;;  %v6670_v57 = vpop.f32.mrf.mxu1 }
 0x48c   :  { %v6893_v61 = vadd.f32 %v6665_v28, %v14396_v34  ;;  %v6667_v51 = vadd.f32 %v6666_v25, %v6565_v30 }
 0x48d   :  { %v14486_v47 = vcombine.low %v6959_v59, %v6960_v39  ;;  %v14488_v29 = vcombine.high %v6959_v59, %v6960_v39  ;;  %v6672_v24 = vpop.f32.mrf.mxu1  ;;  %v6129_v59 = vadd.f32 %v14407_v20, %v14415_v8 }
 0x48e   :  { %v6939_v35 = vadd.f32 %v14451_v0, %v6893_v61  ;;  %v6894_v40 = vadd.f32 %v6667_v51, %v14399_v53  ;;  %v6131_v61 = vadd.f32 %v14409_v31, %v14417_v54  ;;  %v6137_v31 = vadd.f32 %v14413_v32, %v14421_v41 }
 0x48f   :  { %v7005_v32 = vrot.slane %v14464_v55, %v12345_v46  ;;  %v7012_v41 = vrot.slane %v14466_v1, %v12345_v46  ;;  %v14536_v55 = vrot.slane %v14480_v10, %v12345_v46  ;;  %v14540_v1 = vrot.slane %v14482_v48, %v12345_v46 }
 0x490   :  { %v6940_v36 = vadd.f32 %v14456_v19, %v6894_v40  ;;  %v6569_v44 = vpop.f32.mrf.mxu0  ;;  %v6963_v3 = vmax.f32 %v6939_v35, 0.0 }
 0x491   :  { %v6671_v38 = vadd.f32 %v6670_v57, %v6569_v44 }
 0x492   :  { %v6964_v6 = vmax.f32 %v6940_v36, 0.0  ;;  %v6571_v37 = vpop.f32.mrf.mxu0  ;;  %v6166_v36 = vadd.f32 %v6131_v61, %v14320_v62 }
 0x493   :  { %v6897_v34 = vadd.f32 %v6671_v38, %v14402_v23  ;;  %v6673_v5 = vadd.f32 %v6672_v24, %v6571_v37  ;;  %v17464_v23 = vld [vmem:[#allocation20_spill] sm:$0xff]  ;;  %v6170_v37 = vadd.f32 %v6137_v31, %v14332_v17 }
 0x494   :  { %v7267_v22 = vcombine.low %v6963_v3, %v6964_v6  ;;  %v7268_v11 = vcombine.high %v6963_v3, %v6964_v6  ;;  %v6917_v30 = vsub.s32 3, %v17464_v23  ;;  %v17465_v57 = vsub.s32 2, %v17464_v23 }
 0x495   :  { %v6943_v63 = vadd.f32 %v14451_v0, %v6897_v34  ;;  %v6898_v56 = vadd.f32 %v6673_v5, %v14405_v43  ;;  %v6842_v25 = vpop.f32.mrf.mxu0  ;;  %v6165_v43 = vadd.f32 %v6129_v59, %v14315_v13  ;;  %v14532_v5 = vrot.slane %v14474_v14, %v12345_v46 }
 0x496   :  { %v14510_v40 = vrot.slane %v14447_v4, %v17465_v57  ;;  %v14513_v8 = vrot.slane %v14447_v4, %v6917_v30  ;;  %v14553_v30 = vrot.slane %v7267_v22, %v12345_v46  ;;  %v14556_v48 = vrot.slane %v7268_v11, %v12345_v46 }
 0x497   :  { %v6944_v45 = vadd.f32 %v14456_v19, %v6898_v56  ;;  %v6967_v53 = vmax.f32 %v6943_v63, 0.0  ;;  %v6844_v28 = vpop.f32.mrf.mxu0  ;;  %v6135_v19 = vadd.f32 %v14411_v33, %v14419_v18 }
 0x499   :  { %v6968_v15 = vmax.f32 %v6944_v45, 0.0  ;;  %v6848_v39 = vpop.f32.mrf.mxu0  ;;  %v6169_v33 = vadd.f32 %v6135_v19, %v14327_v21  ;;  %v14528_v21 = vrot.slane %v14472_v12, %v12345_v46  ;;  %v14544_v12 = vrot.slane %v14486_v47, %v12345_v46 }
 0x49b   :  { %v14497_v7 = vcombine.low %v6967_v53, %v6968_v15  ;;  %v6850_v51 = vpop.f32.mrf.mxu0 }
 0x49d   :  { %v6854_v18 = vpop.f32.mrf.mxu0 }
 0x49f   :  { %v6856_v17 = vpop.f32.mrf.mxu0 }
 0x4a1   :  { %v6860_v19 = vpop.f32.mrf.mxu0 }
 0x4b8   :  { %v6741_v0 = vpop.f32.mrf.mxu1 }
 0x4b9   :  { %v6843_v35 = vadd.f32 %v6842_v25, %v6741_v0 }
 0x4ba   :  { %v6743_v20 = vpop.f32.mrf.mxu1 }
 0x4bb   :  { %v6879_v13 = vadd.f32 %v6843_v35, %v6165_v43  ;;  %v6845_v54 = vadd.f32 %v6844_v28, %v6743_v20  ;;  %v14549_v28 = vrot.slane %v14488_v29, %v12345_v46 }
 0x4bc   :  { %v6747_v44 = vpop.f32.mrf.mxu1 }
 0x4bd   :  { %v6925_v38 = vadd.f32 %v14510_v40, %v6879_v13  ;;  %v6880_v3 = vadd.f32 %v6845_v54, %v6166_v36  ;;  %v6849_v6 = vadd.f32 %v6848_v39, %v6747_v44 }
 0x4be   :  { %v6749_v24 = vpop.f32.mrf.mxu1 }
 0x4bf   :  { %v6926_v4 = vadd.f32 %v14513_v8, %v6880_v3  ;;  %v6883_v34 = vadd.f32 %v6849_v6, %v6169_v33  ;;  %v6851_v62 = vadd.f32 %v6850_v51, %v6749_v24  ;;  %v6949_v56 = vmax.f32 %v6925_v38, 0.0 }
 0x4c0   :  { %v6753_v63 = vpop.f32.mrf.mxu1 }
 0x4c1   :  { %v6950_v45 = vmax.f32 %v6926_v4, 0.0  ;;  %v6884_v53 = vadd.f32 %v6851_v62, %v6170_v37  ;;  %v6855_v15 = vadd.f32 %v6854_v18, %v6753_v63  ;;  %v6929_v14 = vadd.f32 %v14510_v40, %v6883_v34 }
 0x4c2   :  { %v6755_v25 = vpop.f32.mrf.mxu1 }
 0x4c3   :  { %v6997_v59 = vcombine.low %v6949_v56, %v6950_v45  ;;  %v6998_v39 = vcombine.high %v6949_v56, %v6950_v45  ;;  %v6930_v10 = vadd.f32 %v14513_v8, %v6884_v53  ;;  %v6887_v47 = vadd.f32 %v6855_v15, %v14424_v2 }
 0x4c4   :  { %v6857_v61 = vadd.f32 %v6856_v17, %v6755_v25  ;;  %v6759_v0 = vpop.f32.mrf.mxu1  ;;  %v6953_v57 = vmax.f32 %v6929_v14, 0.0 }
 0x4c5   :  { %v7019_v29 = vrot.slane %v6997_v59, %v12345_v46  ;;  %v7026_v51 = vrot.slane %v6998_v39, %v12345_v46  ;;  %v6954_v35 = vmax.f32 %v6930_v10, 0.0  ;;  %v14564_v22 = vadd.f32 %v14510_v40, %v6887_v47 }
 0x4c6   :  { %v6888_v11 = vadd.f32 %v6857_v61, %v14427_v50  ;;  %v6861_v20 = vadd.f32 %v6860_v19, %v6759_v0 }
 0x4c7   :  { %v7027_v36 = vcombine.low %v7005_v32, %v7019_v29  ;;  %v7028_v2 = vcombine.high %v7005_v32, %v7019_v29  ;;  %v7029_v31 = vcombine.low %v7012_v41, %v7026_v51  ;;  %v7030_v13 = vcombine.high %v7012_v41, %v7026_v51 }
 0x4c8   :  { %v7065_v54 = vcombine.low %v6953_v57, %v6954_v35  ;;  %v7066_v44 = vcombine.high %v6953_v57, %v6954_v35  ;;  %v6957_v33 = vmax.f32 %v14564_v22, 0.0  ;;  %v14569_v18 = vadd.f32 %v14513_v8, %v6888_v11  ;;  %v6761_v57 = vpop.f32.mrf.mxu1 }
 0x4c9   :  { %v7037_v38 = vrot.slane %v7027_v36, %v12345_v46  ;;  %v7044_v3 = vrot.slane %v7029_v31, %v12345_v46  ;;  %v7051_v6 = vrot.slane %v7028_v2, %v12345_v46  ;;  %v7058_v50 = vrot.slane %v7030_v13, %v12345_v46  ;;  %v6862_v31 = vpop.f32.mrf.mxu0 }
 0x4ca   :  { %v7087_v24 = vrot.slane %v7065_v54, %v12345_v46  ;;  %v7094_v37 = vrot.slane %v7066_v44, %v12345_v46  ;;  %v6958_v4 = vmax.f32 %v14569_v18, 0.0  ;;  %v14579_v34 = vadd.f32 %v6861_v20, %v14430_v26 }
 0x4cb   :  { %v7359_v62 = vcombine.low %v7037_v38, %v7051_v6  ;;  %v11018_v32 = vcombine.high %v7037_v38, %v7051_v6  ;;  %v7409_v41 = vcombine.low %v7044_v3, %v7058_v50  ;;  %v11019_v63 = vcombine.high %v7044_v3, %v7058_v50 }
 0x4cc   :  { %v7095_v17 = vcombine.low %v14528_v21, %v7087_v24  ;;  %v7096_v56 = vcombine.high %v14528_v21, %v7087_v24  ;;  %v7097_v45 = vcombine.low %v14532_v5, %v7094_v37  ;;  %v7098_v53 = vcombine.high %v14532_v5, %v7094_v37 }
 0x4cd   :  { %v7366_v15 = vrot.slane %v7359_v62, %v12345_v46  ;;  %v7391_v14 = vrot.slane %v11018_v32, %v12345_v46  ;;  %v7416_v25 = vrot.slane %v7409_v41, %v12345_v46  ;;  %v7441_v26 = vrot.slane %v11019_v63, %v12345_v46  ;;  %v6765_v63 = vpop.f32.mrf.mxu1 }
 0x4ce   :  { %v7105_v59 = vrot.slane %v7095_v17, %v12345_v46  ;;  %v14591_v39 = vrot.slane %v7097_v45, %v12345_v46  ;;  %v7119_v10 = vrot.slane %v7096_v56, %v12345_v46  ;;  %v14595_v21 = vrot.slane %v7098_v53, %v12345_v46 }
 0x4cf   :  { %v7367_v47 = vcombine.high %v7366_v15, %v7366_v15  ;;  %v7374_v5 = vrot.slane %v7366_v15, %v12345_v46  ;;  %v7392_v61 = vcombine.high %v7391_v14, %v7391_v14  ;;  %v7399_v0 = vrot.slane %v7391_v14, %v12345_v46  ;;  %v6866_v15 = vpop.f32.mrf.mxu0 }
 0x4d0   :  { %v7417_v19 = vcombine.high %v7416_v25, %v7416_v25  ;;  %v7424_v29 = vrot.slane %v7416_v25, %v12345_v46  ;;  %v7442_v51 = vcombine.high %v7441_v26, %v7441_v26  ;;  %v14601_v35 = vrot.slane %v7441_v26, %v12345_v46 }
 0x4d1   :  { %v14604_v11 = vrot.slane %v7367_v47, %v12345_v46  ;;  %v7382_v20 = vcombine.high %v7374_v5, %v7374_v5  ;;  %v14607_v36 = vrot.slane %v7392_v61, %v12345_v46  ;;  %v7407_v2 = vcombine.high %v7399_v0, %v7399_v0 }
 0x4d2   :  { %v14610_v13 = vrot.slane %v7417_v19, %v12345_v46  ;;  %v7432_v54 = vcombine.high %v7424_v29, %v7424_v29  ;;  %v14613_v44 = vrot.slane %v7442_v51, %v12345_v46  ;;  %v7940_v50 = vsel %vm7939_vm11, %v7374_v5, -inf }
 0x4d3   :  { %v14624_v24 = vsel %vm7939_vm11, %v14604_v11, -inf  ;;  %v7941_v62 = vrot.slane %v7940_v50, 4  ;;  %v7954_v41 = vsel %vm7939_vm11, %v7382_v20, -inf  ;;  %v7969_v56 = vsel %vm7939_vm11, %v7399_v0, -inf }
 0x4d4   :  { %v7955_v17 = vrot.slane %v7954_v41, 4  ;;  %v14633_v45 = vsel %vm7939_vm11, %v14607_v36, -inf  ;;  %v7983_v53 = vsel %vm7939_vm11, %v7407_v2, -inf  ;;  %v7970_v25 = vrot.slane %v7969_v56, 4 }
 0x4d5   :  { %v14636_v14 = vmax.f32 %v7940_v50, %v7941_v62  ;;  %v7984_v47 = vrot.slane %v7983_v53, 4  ;;  %v7997_v61 = vsel %vm7939_vm11, %v7424_v29, -inf  ;;  %v14643_v19 = vsel %vm7939_vm11, %v7432_v54, -inf  ;;  %v6767_v62 = vpop.f32.mrf.mxu1  ;;  %v6868_v54 = vpop.f32.mrf.mxu0 }
 0x4d6   :  { %v14639_v5 = vmax.f32 %v7954_v41, %v7955_v17  ;;  %v14647_v0 = vsel %vm7939_vm11, %v14601_v35, -inf  ;;  %v14650_v20 = vmax.f32 %v7969_v56, %v7970_v25  ;;  %v7998_v50 = vrot.slane %v7997_v61, 4 }
 0x4d7   :  { %v7943_v51 = vrot.slane %v14636_v14, 2  ;;  %v14652_v2 = vmax.f32 %v7983_v53, %v7984_v47  ;;  %v7459_v29 = vcombine.low %v7105_v59, %v7119_v10  ;;  %v11020_v37 = vcombine.high %v7105_v59, %v7119_v10  ;;  %v6872_v18 = vpop.f32.mrf.mxu0 }
 0x4d8   :  { %v14657_v3 = vmax.f32 %v7997_v61, %v7998_v50  ;;  %v7509_v38 = vcombine.low %v14591_v39, %v14595_v21  ;;  %v11021_v56 = vcombine.high %v14591_v39, %v14595_v21  ;;  %v7133_v59 = vcombine.low %v6957_v33, %v6958_v4 }
 0x4d9   :  { %v14664_v53 = vrot.slane %v7459_v29, %v12345_v46  ;;  %v14667_v25 = vrot.slane %v11020_v37, %v12345_v46  ;;  %v7134_v10 = vcombine.high %v6957_v33, %v6958_v4  ;;  %v6937_v39 = vadd.f32 %v14510_v40, %v14579_v34  ;;  %v6771_v37 = vpop.f32.mrf.mxu1 }
 0x4da   :  { %v14678_v47 = vrot.slane %v7509_v38, %v12345_v46  ;;  %v6863_v21 = vadd.f32 %v6862_v31, %v6761_v57  ;;  %v6867_v61 = vadd.f32 %v6866_v15, %v6765_v63  ;;  %v7155_v4 = vrot.slane %v7133_v59, %v12345_v46 }
 0x4db   :  { %v14686_v29 = vrot.slane %v14664_v53, %v12345_v46  ;;  %v14692_v33 = vrot.slane %v14667_v25, %v12345_v46  ;;  %v7162_v34 = vrot.slane %v7134_v10, %v12345_v46  ;;  %v6961_v57 = vmax.f32 %v6937_v39, 0.0 }
 0x4dc   :  { %v6892_v31 = vadd.f32 %v6863_v21, %v14433_v60  ;;  %v6895_v63 = vadd.f32 %v6867_v61, %v14436_v58  ;;  %v6869_v15 = vadd.f32 %v6868_v54, %v6767_v62  ;;  %v6873_v41 = vadd.f32 %v6872_v18, %v6771_v37 }
 0x4dd   :  { %v7163_v26 = vcombine.low %v14536_v55, %v7155_v4  ;;  %v7164_v32 = vcombine.high %v14536_v55, %v7155_v4  ;;  %v7165_v22 = vcombine.low %v14540_v1, %v7162_v34  ;;  %v7166_v59 = vcombine.high %v14540_v1, %v7162_v34 }
 0x4de   :  { %v6938_v10 = vadd.f32 %v14513_v8, %v6892_v31  ;;  %v6941_v39 = vadd.f32 %v14510_v40, %v6895_v63  ;;  %v6896_v60 = vadd.f32 %v6869_v15, %v14439_v27  ;;  %v6899_v21 = vadd.f32 %v6873_v41, %v14442_v9  ;;  %v6773_v27 = vpop.f32.mrf.mxu1 }
 0x4df   :  { %v14709_v58 = vrot.slane %v7163_v26, %v12345_v46  ;;  %v7180_v62 = vrot.slane %v7165_v22, %v12345_v46  ;;  %v14713_v54 = vrot.slane %v7164_v32, %v12345_v46  ;;  %v7194_v55 = vrot.slane %v7166_v59, %v12345_v46  ;;  %v6874_v32 = vpop.f32.mrf.mxu0 }
 0x4e0   :  { %v6962_v61 = vmax.f32 %v6938_v10, 0.0  ;;  %v6965_v1 = vmax.f32 %v6941_v39, 0.0  ;;  %v6942_v37 = vadd.f32 %v14513_v8, %v6896_v60  ;;  %v14718_v18 = vadd.f32 %v14510_v40, %v6899_v21 }
 0x4e1   :  { %17466 = vst [vmem:[#allocation40_spill] sm:$0xff] %v14709_v58  ;;  %17467 = vst [vmem:[#allocation50_spill] sm:$0xff] %v14713_v54  ;;  %v7196_v4 = vcombine.high %v7180_v62, %v7180_v62  ;;  %v7198_v9 = vcombine.high %v7194_v55, %v7194_v55  ;;  %v6875_v59 = vadd.f32 %v6874_v32, %v6773_v27 }
 0x4e2   :  { %v7201_v22 = vcombine.low %v6961_v57, %v6962_v61  ;;  %v7202_v34 = vcombine.high %v6961_v57, %v6962_v61  ;;  %v6966_v31 = vmax.f32 %v6942_v37, 0.0  ;;  %v14727_v40 = vrot.slane %v14678_v47, %v12345_v46 }
 0x4e3   :  { %v7609_v15 = vcombine.low %v7194_v55, %v7196_v4  ;;  %v14730_v10 = vrot.slane %v11021_v56, %v12345_v46  ;;  %v14736_v61 = vadd.f32 %v6875_v59, %v14445_v16  ;;  %v14745_v56 = vmax.f32 %v14636_v14, %v7943_v51 }
 0x4e4   :  { %v7223_v39 = vrot.slane %v7201_v22, %v12345_v46  ;;  %v7230_v60 = vrot.slane %v7202_v34, %v12345_v46  ;;  %v7269_v21 = vcombine.low %v6965_v1, %v6966_v31  ;;  %v7270_v62 = vcombine.high %v6965_v1, %v6966_v31 }
 0x4e5   :  { %v7616_v57 = vrot.slane %v7609_v15, %v12345_v46  ;;  %v14740_v55 = vrot.slane %v14730_v10, %v12345_v46 }
 0x4e6   :  { %v7231_v37 = vcombine.low %v14544_v12, %v7223_v39  ;;  %v7232_v27 = vcombine.high %v14544_v12, %v7223_v39  ;;  %v7233_v1 = vcombine.low %v14549_v28, %v7230_v60  ;;  %v7234_v4 = vcombine.high %v14549_v28, %v7230_v60 }
 0x4e7   :  { %v7617_v32 = vcombine.high %v7616_v57, %v7616_v57  ;;  %v7624_v16 = vrot.slane %v7616_v57, %v12345_v46  ;;  %v14753_v22 = vrot.slane %v7269_v21, %v12345_v46  ;;  %v14756_v34 = vrot.slane %v7270_v62, %v12345_v46 }
 0x4e8   :  { %v7241_v14 = vrot.slane %v7231_v37, %v12345_v46  ;;  %v7248_v51 = vrot.slane %v7233_v1, %v12345_v46  ;;  %v7255_v31 = vrot.slane %v7232_v27, %v12345_v46  ;;  %v14762_v12 = vrot.slane %v7234_v4, %v12345_v46 }
 0x4e9   :  { %v14765_v28 = vrot.slane %v7617_v32, %v12345_v46  ;;  %v7632_v15 = vcombine.high %v7624_v16, %v7624_v16  ;;  %v8221_v59 = vsel %vm7939_vm11, %v7624_v16, -inf  ;;  %v7299_v39 = vcombine.low %v14553_v30, %v14753_v22 }
 0x4ea   :  { %v8222_v60 = vrot.slane %v8221_v59, 4  ;;  %v7263_v21 = vcombine.high %v7241_v14, %v7241_v14  ;;  %v7264_v62 = vcombine.high %v7248_v51, %v7248_v51  ;;  %v7265_v57 = vcombine.high %v7255_v31, %v7255_v31 }
 0x4eb   :  { %17468 = vst [vmem:[#allocation49_spill] sm:$0xff] %v14765_v28  ;;  %v14774_v27 = vsel %vm7939_vm11, %v14765_v28, -inf  ;;  %v8235_v1 = vsel %vm7939_vm11, %v7632_v15, -inf  ;;  %v7266_v4 = vcombine.high %v14762_v12, %v14762_v12  ;;  %v7634_v26 = vcombine.low %v7198_v9, %v7241_v14 }
 0x4ec   :  { %v14779_v32 = vmax.f32 %v8221_v59, %v8222_v60  ;;  %v8236_v41 = vrot.slane %v8235_v1, 4  ;;  %v7659_v38 = vcombine.low %v7255_v31, %v7263_v21  ;;  %v7684_v50 = vcombine.low %v7265_v57, %v7248_v51 }
 0x4ed   :  { %v7709_v43 = vcombine.low %v14762_v12, %v7264_v62  ;;  %v7300_v37 = vcombine.high %v14553_v30, %v14753_v22  ;;  %v7641_v15 = vrot.slane %v7634_v26, %v12345_v46  ;;  %v7301_v59 = vcombine.low %v14556_v48, %v14756_v34 }
 0x4ee   :  { %v14786_v63 = vmax.f32 %v8235_v1, %v8236_v41  ;;  %v7666_v60 = vrot.slane %v7659_v38, %v12345_v46  ;;  %v7691_v9 = vrot.slane %v7684_v50, %v12345_v46  ;;  %v7302_v51 = vcombine.high %v14556_v48, %v14756_v34 }
 0x4ef   :  { %v14794_v14 = vrot.slane %v7709_v43, %v12345_v46  ;;  %v7642_v30 = vcombine.high %v7641_v15, %v7641_v15  ;;  %v7649_v22 = vrot.slane %v7641_v15, %v12345_v46  ;;  %v7309_v41 = vrot.slane %v7299_v39, %v12345_v46 }
 0x4f0   :  { %v7316_v26 = vrot.slane %v7301_v59, %v12345_v46  ;;  %v7667_v31 = vcombine.high %v7666_v60, %v7666_v60  ;;  %v7674_v12 = vrot.slane %v7666_v60, %v12345_v46  ;;  %v7692_v21 = vcombine.high %v7691_v9, %v7691_v9 }
 0x4f1   :  { %v14803_v38 = vrot.slane %v7691_v9, %v12345_v46  ;;  %v14806_v43 = vrot.slane %v7642_v30, %v12345_v46  ;;  %v7657_v50 = vcombine.high %v7649_v22, %v7649_v22  ;;  %v14812_v34 = vrot.slane %v14794_v14, %v12345_v46 }
 0x4f2   :  { %v14815_v39 = vrot.slane %v7667_v31, %v12345_v46  ;;  %v7682_v62 = vcombine.high %v7674_v12, %v7674_v12  ;;  %v14818_v57 = vrot.slane %v7692_v21, %v12345_v46  ;;  %v8249_v60 = vsel %vm7939_vm11, %v7649_v22, -inf }
 0x4f3   :  { %17469 = vst [vmem:[#allocation56_spill] sm:$0xff] %v14806_v43  ;;  %v14829_v9 = vsel %vm7939_vm11, %v14806_v43, -inf  ;;  %v8250_v31 = vrot.slane %v8249_v60, 4  ;;  %v8263_v16 = vsel %vm7939_vm11, %v7657_v50, -inf  ;;  %v8277_v15 = vsel %vm7939_vm11, %v7674_v12, -inf }
 0x4f4   :  { %17470 = vst [vmem:[#allocation44_spill] sm:$0xff] %v14818_v57  ;;  %v8264_v48 = vrot.slane %v8263_v16, 4  ;;  %v14837_v1 = vsel %vm7939_vm11, %v7682_v62, -inf  ;;  %v14841_v22 = vsel %vm7939_vm11, %v14803_v38, -inf  ;;  %v8278_v17 = vrot.slane %v8277_v15, 4 }
 0x4f5   :  { %v14843_v59 = vmax.f32 %v8249_v60, %v8250_v31  ;;  %v7323_v50 = vrot.slane %v7300_v37, %v12345_v46  ;;  %v7330_v12 = vrot.slane %v7302_v51, %v12345_v46  ;;  %v7331_v62 = vcombine.high %v7309_v41, %v7309_v41 }
 0x4f6   :  { %v14847_v6 = vmax.f32 %v8263_v16, %v8264_v48  ;;  %v14852_v52 = vmax.f32 %v8277_v15, %v8278_v17  ;;  %v7332_v42 = vcombine.high %v7316_v26, %v7316_v26  ;;  %v7734_v49 = vcombine.low %v7266_v4, %v7309_v41 }
 0x4f7   :  { %v7333_v60 = vcombine.high %v7323_v50, %v7323_v50  ;;  %v7334_v31 = vcombine.high %v7330_v12, %v7330_v12  ;;  %v7759_v54 = vcombine.low %v7323_v50, %v7331_v62  ;;  %v6946_v30 = vadd.f32 %v14513_v8, %v14736_v61 }
 0x4f8   :  { %v14857_v16 = vrot.slane %v7734_v49, %v12345_v46  ;;  %v14859_v48 = vcombine.low %v7330_v12, %v7332_v42  ;;  %v7945_v37 = vrot.slane %v14745_v56, 1  ;;  %v17472_v51 = vrot.slane %v14650_v20, 2 }
 0x4f9   :  { %v14866_v15 = vrot.slane %v7759_v54, %v12345_v46  ;;  %v14868_v4 = vcombine.low %v7333_v60, %v7316_v26  ;;  %v6970_v41 = vmax.f32 %v6946_v30, 0.0  ;;  %v8000_v50 = vrot.slane %v14657_v3, 2 }
 0x4fa   :  { %17471 = vst [vmem:[#allocation37_spill] sm:$0xff] %v14859_v48  ;;  %v7973_v17 = vmax.f32 %v14650_v20, %v17472_v51  ;;  %v14875_v42 = vrot.slane %v14857_v16, %v12345_v46  ;;  %v7946_v8 = vmax.f32 %v14745_v56, %v7945_v37  ;;  %v17473_v20 = vmax.f32 %v14718_v18, 0.0 }
 0x4fb   :  { %v8001_v26 = vmax.f32 %v14657_v3, %v8000_v50  ;;  %v17474_v30 = vrot.slane %v14647_v0, 4  ;;  %v8053_v62 = vsel %vm7939_vm11, %v14686_v29, -inf  ;;  %v8081_v49 = vsel %vm7939_vm11, %v14692_v33, -inf }
 0x4fc   :  { %v7974_v61 = vrot.slane %v7973_v17, 1  ;;  %v7336_v54 = vcombine.low %v17473_v20, %v6970_v41  ;;  %v8054_v51 = vrot.slane %v8053_v62, 4  ;;  %v8109_v56 = vsel %vm7939_vm11, %v14727_v40, -inf }
 0x4fd   :  { %v8027_v12 = vmax.f32 %v14647_v0, %v17474_v30  ;;  %v8002_v37 = vrot.slane %v8001_v26, 1  ;;  %v8082_v3 = vrot.slane %v8081_v49, 4  ;;  %v8110_v20 = vrot.slane %v8109_v56, 4 }
 0x4fe   :  { %v7975_v60 = vmax.f32 %v7973_v17, %v7974_v61  ;;  %v7350_v18 = vrot.slane %v7336_v54, %v12345_v46  ;;  %v8055_v50 = vmax.f32 %v8053_v62, %v8054_v51  ;;  %v8137_v0 = vsel %vm7939_vm11, %v14740_v55, -inf }
 0x4ff   :  { %v8028_v41 = vrot.slane %v8027_v12, 2  ;;  %v17475_v17 = vrot.slane %v14497_v7, %v12345_v46  ;;  %v8003_v21 = vmax.f32 %v8001_v26, %v8002_v37  ;;  %v8083_v48 = vmax.f32 %v8081_v49, %v8082_v3 }
 0x500   :  { %v8522_v30 = vsel %vm8521_vm12, %v7975_v60, %v7946_v8  ;;  %v8056_v58 = vrot.slane %v8055_v50, 2  ;;  %v8111_v54 = vmax.f32 %v8109_v56, %v8110_v20  ;;  %v8138_v43 = vrot.slane %v8137_v0, 4 }
 0x501   :  { %v7351_v61 = vcombine.low %v17475_v17, %v7350_v18  ;;  %v8029_v23 = vmax.f32 %v8027_v12, %v8028_v41  ;;  %v17476_v62 = vcombine.high %v14664_v53, %v14664_v53  ;;  %v8084_v60 = vrot.slane %v8083_v48, 2 }
 0x502   :  { %v8523_v57 = vsel %vm271_vm3, %v8003_v21, %v8522_v30  ;;  %v8057_v7 = vmax.f32 %v8055_v50, %v8056_v58  ;;  %v8112_v26 = vrot.slane %v8111_v54, 2  ;;  %v8139_v12 = vmax.f32 %v8137_v0, %v8138_v43 }
 0x503   :  { %v14901_v51 = vrot.slane %v17476_v62, %v12345_v46  ;;  %v7358_v28 = vrot.slane %v7351_v61, %v12345_v46  ;;  %v8030_v8 = vrot.slane %v8029_v23, 1  ;;  %v17477_v49 = vcombine.high %v14667_v25, %v14667_v25 }
 0x504   :  { %v8085_v37 = vmax.f32 %v8083_v48, %v8084_v60  ;;  %v7517_v41 = vcombine.high %v14678_v47, %v14678_v47  ;;  %v8058_v3 = vrot.slane %v8057_v7, 1  ;;  %v8113_v20 = vmax.f32 %v8111_v54, %v8112_v26 }
 0x505   :  { %v14909_v56 = vrot.slane %v17477_v49, %v12345_v46  ;;  %v14911_v18 = vcombine.low %v7334_v31, %v7358_v28  ;;  %v8031_v53 = vmax.f32 %v8029_v23, %v8030_v8  ;;  %v8140_v21 = vrot.slane %v8139_v12, 2 }
 0x506   :  { %v7542_v58 = vcombine.high %v14730_v10, %v14730_v10  ;;  %v8086_v43 = vrot.slane %v8085_v37, 1  ;;  %v14919_v25 = vrot.slane %v7517_v41, %v12345_v46  ;;  %v17478_v28 = vrot.slane %v14624_v24, 4 }
 0x507   :  { %v8525_v50 = vsel %vm8524_vm13, %v8031_v53, %v8523_v57  ;;  %v8059_v31 = vmax.f32 %v8057_v7, %v8058_v3  ;;  %v8114_v48 = vrot.slane %v8113_v20, 1  ;;  %v8141_v0 = vmax.f32 %v8139_v12, %v8140_v21 }
 0x508   :  { %v7949_v23 = vmax.f32 %v14624_v24, %v17478_v28  ;;  %v14925_v47 = vrot.slane %v7542_v58, %v12345_v46  ;;  %v8087_v30 = vmax.f32 %v8085_v37, %v8086_v43  ;;  %v17479_v10 = vrot.slane %v14633_v45, 4 }
 0x509   :  { %v8004_v57 = vsel %vm7939_vm11, %v14610_v13, -inf  ;;  %v8115_v54 = vmax.f32 %v8113_v20, %v8114_v48  ;;  %v8142_v62 = vrot.slane %v8141_v0, 1  ;;  %v8526_v8 = vsel %vm273_vm5, %v8059_v31, %v8525_v50 }
 0x50a   :  { %v7950_v17 = vrot.slane %v7949_v23, 2  ;;  %v7978_v61 = vmax.f32 %v14633_v45, %v17479_v10  ;;  %v8005_v24 = vrot.slane %v8004_v57, 4  ;;  %v8528_v60 = vsel %vm8527_vm14, %v8087_v30, %v8526_v8 }
 0x50b   :  { %v8032_v12 = vsel %vm7939_vm11, %v14613_v44, -inf  ;;  %v8143_v49 = vmax.f32 %v8141_v0, %v8142_v62  ;;  %v8529_v53 = vsel %vm275_vm7, %v8115_v54, %v8528_v60  ;;  %v8060_v20 = vsel %vm7939_vm11, %v14901_v51, -inf }
 0x50c   :  { %v7951_v7 = vmax.f32 %v7949_v23, %v7950_v17  ;;  %v7979_v26 = vrot.slane %v7978_v61, 2  ;;  %v8006_v37 = vmax.f32 %v8004_v57, %v8005_v24  ;;  %v8033_v45 = vrot.slane %v8032_v12, 4 }
 0x50d   :  { %v8088_v21 = vsel %vm7939_vm11, %v14909_v56, -inf  ;;  %v14942_v58 = vsel %vm8530_vm15, %v8143_v49, %v8529_v53  ;;  %v8061_v28 = vrot.slane %v8060_v20, 4  ;;  %v8116_v0 = vsel %vm7939_vm11, %v14919_v25, -inf }
 0x50e   :  { %v7952_v41 = vrot.slane %v7951_v7, 1  ;;  %v7980_v3 = vmax.f32 %v7978_v61, %v7979_v26  ;;  %v8007_v43 = vrot.slane %v8006_v37, 2  ;;  %v8034_v50 = vmax.f32 %v8032_v12, %v8033_v45  ;;  %8823 = vrot.lane.b32.xlu1 %v14942_v58, %s11694_s0  ;;  %8545 = vrot.lane.b32.xlu0 %v14942_v58, %s11695_s1 }
 0x50f   :  { %v8089_v48 = vrot.slane %v8088_v21, 4  ;;  %v8062_v10 = vmax.f32 %v8060_v20, %v8061_v28  ;;  %v8117_v61 = vrot.slane %v8116_v0, 4  ;;  %v8144_v62 = vsel %vm7939_vm11, %v14925_v47, -inf }
 0x510   :  { %v7953_v23 = vmax.f32 %v7951_v7, %v7952_v41  ;;  %v7981_v31 = vrot.slane %v7980_v3, 1  ;;  %v8008_v30 = vmax.f32 %v8006_v37, %v8007_v43  ;;  %v8035_v17 = vrot.slane %v8034_v50, 2 }
 0x511   :  { %v8090_v54 = vmax.f32 %v8088_v21, %v8089_v48  ;;  %v7507_v8 = vcombine.high %v14692_v33, %v14692_v33  ;;  %v8063_v7 = vrot.slane %v8062_v10, 2  ;;  %v8118_v26 = vmax.f32 %v8116_v0, %v8117_v61 }
 0x512   :  { %v7982_v57 = vmax.f32 %v7980_v3, %v7981_v31  ;;  %v8009_v24 = vrot.slane %v8008_v30, 1  ;;  %v8036_v60 = vmax.f32 %v8034_v50, %v8035_v17  ;;  %8557 = vrot.lane.b32.xlu0 %v14942_v58, %s11696_s27  ;;  %v8145_v49 = vrot.slane %v8144_v62, 4 }
 0x513   :  { %v8091_v12 = vrot.slane %v8090_v54, 2  ;;  %v7532_v37 = vcombine.high %v14727_v40, %v14727_v40  ;;  %v8064_v3 = vmax.f32 %v8062_v10, %v8063_v7  ;;  %v8119_v20 = vrot.slane %v8118_v26, 2 }
 0x514   :  { %v8589_v53 = vsel %vm8521_vm12, %v7982_v57, %v7953_v23  ;;  %v8010_v45 = vmax.f32 %v8008_v30, %v8009_v24  ;;  %v8037_v41 = vrot.slane %v8036_v60, 1  ;;  %v8146_v21 = vmax.f32 %v8144_v62, %v8145_v49 }
 0x515   :  { %v8092_v33 = vmax.f32 %v8090_v54, %v8091_v12  ;;  %v7557_v43 = vcombine.high %v14740_v55, %v14740_v55  ;;  %v7957_v50 = vrot.slane %v14639_v5, 2  ;;  %v8065_v31 = vrot.slane %v8064_v3, 1 }
 0x516   :  { %v8038_v28 = vmax.f32 %v8036_v60, %v8037_v41  ;;  %v8120_v48 = vmax.f32 %v8118_v26, %v8119_v20  ;;  %v8590_v0 = vsel %vm271_vm3, %v8010_v45, %v8589_v53  ;;  %v8147_v17 = vrot.slane %v8146_v21, 2 }
 0x517   :  { %v8093_v23 = vrot.slane %v8092_v33, 1  ;;  %v7958_v40 = vmax.f32 %v14639_v5, %v7957_v50  ;;  %v7986_v30 = vrot.slane %v14652_v2, 2  ;;  %v8066_v10 = vmax.f32 %v8064_v3, %v8065_v31 }
 0x518   :  { %v8121_v61 = vrot.slane %v8120_v48, 1  ;;  %v8591_v57 = vsel %vm8524_vm13, %v8038_v28, %v8590_v0  ;;  %v17480_v54 = vrot.slane %v14643_v19, 4  ;;  %v8148_v24 = vmax.f32 %v8146_v21, %v8147_v17 }
 0x519   :  { %v8094_v62 = vmax.f32 %v8092_v33, %v8093_v23  ;;  %v7959_v60 = vrot.slane %v7958_v40, 1  ;;  %v7987_v7 = vmax.f32 %v14652_v2, %v7986_v30  ;;  %v8592_v12 = vsel %vm273_vm5, %v8066_v10, %v8591_v57 }
 0x51a   :  { %v8013_v55 = vmax.f32 %v14643_v19, %v17480_v54  ;;  %v8122_v26 = vmax.f32 %v8120_v48, %v8121_v61  ;;  %v17481_v5 = vcombine.high %v14601_v35, %v14601_v35  ;;  %v8149_v45 = vrot.slane %v8148_v24, 1 }
 0x51b   :  { %v8593_v41 = vsel %vm8527_vm14, %v8094_v62, %v8592_v12  ;;  %v7960_v3 = vmax.f32 %v7958_v40, %v7959_v60  ;;  %v7988_v19 = vrot.slane %v7987_v7, 1  ;;  %v17482_v2 = vcombine.high %v14686_v29, %v14686_v29 }
 0x51c   :  { %v8014_v49 = vrot.slane %v8013_v55, 2  ;;  %v8039_v53 = vsel %vm7939_vm11, %v17481_v5, -inf  ;;  %v8594_v20 = vsel %vm275_vm7, %v8122_v26, %v8593_v41  ;;  %v8150_v28 = vmax.f32 %v8148_v24, %v8149_v45 }
 0x51d   :  { %v8040_v21 = vrot.slane %v8039_v53, 4  ;;  %v8067_v50 = vsel %vm7939_vm11, %v17482_v2, -inf  ;;  %v7989_v31 = vmax.f32 %v7987_v7, %v7988_v19  ;;  %v8095_v48 = vsel %vm7939_vm11, %v7507_v8, -inf }
 0x51e   :  { %v8015_v33 = vmax.f32 %v8013_v55, %v8014_v49  ;;  %v8068_v35 = vrot.slane %v8067_v50, 4  ;;  %v8096_v17 = vrot.slane %v8095_v48, 4  ;;  %v8123_v40 = vsel %vm7939_vm11, %v7532_v37, -inf }
 0x51f   :  { %v8041_v23 = vmax.f32 %v8039_v53, %v8040_v21  ;;  %v14984_v30 = vsel %vm8530_vm15, %v8150_v28, %v8594_v20  ;;  %v8124_v61 = vrot.slane %v8123_v40, 4  ;;  %v8151_v57 = vsel %vm7939_vm11, %v7557_v43, -inf }
 0x520   :  { %v8016_v0 = vrot.slane %v8015_v33, 1  ;;  %v8069_v10 = vmax.f32 %v8067_v50, %v8068_v35  ;;  %8605 = vrot.lane.b32.xlu1 %v14984_v30, %s11694_s0  ;;  %v8097_v55 = vmax.f32 %v8095_v48, %v8096_v17  ;;  %v8152_v62 = vrot.slane %v8151_v57, 4 }
 0x521   :  { %v8042_v54 = vrot.slane %v8041_v23, 2  ;;  %v8125_v24 = vmax.f32 %v8123_v40, %v8124_v61  ;;  %v8649_v60 = vsel %vm8521_vm12, %v7989_v31, %v7960_v3  ;;  %v7458_v37 = vcombine.high %v14613_v44, %v14613_v44 }
 0x522   :  { %v8017_v29 = vmax.f32 %v8015_v33, %v8016_v0  ;;  %v8070_v8 = vrot.slane %v8069_v10, 2  ;;  %v8098_v26 = vrot.slane %v8097_v55, 2  ;;  %v8153_v12 = vmax.f32 %v8151_v57, %v8152_v62 }
 0x523   :  { %v8043_v7 = vmax.f32 %v8041_v23, %v8042_v54  ;;  %v8126_v5 = vrot.slane %v8125_v24, 2  ;;  %v7483_v53 = vcombine.high %v14901_v51, %v14901_v51  ;;  %v7508_v45 = vcombine.high %v14909_v56, %v14909_v56 }
 0x524   :  { %v8650_v49 = vsel %vm271_vm3, %v8017_v29, %v8649_v60  ;;  %v8071_v43 = vmax.f32 %v8069_v10, %v8070_v8  ;;  %v8099_v19 = vmax.f32 %v8097_v55, %v8098_v26  ;;  %v8154_v20 = vrot.slane %v8153_v12, 2  ;;  %8665 = vrot.lane.b32.xlu1 %v14984_v30, %s11697_s28 }
 0x525   :  { %v8044_v41 = vrot.slane %v8043_v7, 1  ;;  %v7533_v44 = vcombine.high %v14919_v25, %v14919_v25  ;;  %v8127_v33 = vmax.f32 %v8125_v24, %v8126_v5  ;;  %v7558_v21 = vcombine.high %v14925_v47, %v14925_v47 }
 0x526   :  { %v8072_v3 = vrot.slane %v8071_v43, 1  ;;  %v17483_v51 = vcombine.high %v14604_v11, %v14604_v11  ;;  %v8100_v50 = vrot.slane %v8099_v19, 1  ;;  %v8155_v28 = vmax.f32 %v8153_v12, %v8154_v20 }
 0x527   :  { %v8045_v2 = vmax.f32 %v8043_v7, %v8044_v41  ;;  %v8128_v48 = vrot.slane %v8127_v33, 1  ;;  %v17484_v0 = vcombine.high %v14607_v36, %v14607_v36  ;;  %v17485_v23 = vcombine.high %v14610_v13, %v14610_v13 }
 0x528   :  { %v7962_v56 = vsel %vm7961_vm0, %v17483_v51, -inf  ;;  %v8073_v35 = vmax.f32 %v8071_v43, %v8072_v3  ;;  %v8101_v17 = vmax.f32 %v8099_v19, %v8100_v50  ;;  %v8156_v11 = vrot.slane %v8155_v28, 1 }
 0x529   :  { %v7963_v31 = vrot.slane %v7962_v56, 4  ;;  %v7990_v25 = vsel %vm7961_vm0, %v17484_v0, -inf  ;;  %v8018_v47 = vsel %vm7961_vm0, %v17485_v23, -inf  ;;  %v8651_v40 = vsel %vm8524_vm13, %v8045_v2, %v8650_v49 }
 0x52a   :  { %v8129_v61 = vmax.f32 %v8127_v33, %v8128_v48  ;;  %v8652_v57 = vsel %vm273_vm5, %v8073_v35, %v8651_v40  ;;  %v7991_v29 = vrot.slane %v7990_v25, 4  ;;  %v8019_v54 = vrot.slane %v8018_v47, 4 }
 0x52b   :  { %v7964_v10 = vmax.f32 %v7962_v56, %v7963_v31  ;;  %v8157_v55 = vmax.f32 %v8155_v28, %v8156_v11  ;;  %v8653_v36 = vsel %vm8527_vm14, %v8101_v17, %v8652_v57  ;;  %v8046_v8 = vsel %vm7961_vm0, %v7458_v37, -inf }
 0x52c   :  { %v8654_v13 = vsel %vm275_vm7, %v8129_v61, %v8653_v36  ;;  %v7992_v24 = vmax.f32 %v7990_v25, %v7991_v29  ;;  %v8020_v60 = vmax.f32 %v8018_v47, %v8019_v54  ;;  %v8047_v7 = vrot.slane %v8046_v8, 4 }
 0x52d   :  { %v7965_v62 = vrot.slane %v7964_v10, 2  ;;  %v8655_v26 = vsel %vm8530_vm15, %v8157_v55, %v8654_v13  ;;  %v8074_v49 = vsel %vm7961_vm0, %v7483_v53, -inf  ;;  %v8102_v43 = vsel %vm7961_vm0, %v7508_v45, -inf }
 0x52e   :  { %8667 = vrot.lane.b32.xlu0 %v8655_v26, %s11697_s28  ;;  %8706 = vrot.lane.b32.xlu1 %v8655_v26, %s11698_s29  ;;  %v7993_v5 = vrot.slane %v7992_v24, 2  ;;  %v8021_v41 = vrot.slane %v8020_v60, 2  ;;  %v8048_v37 = vmax.f32 %v8046_v8, %v8047_v7  ;;  %v8075_v19 = vrot.slane %v8074_v49, 4 }
 0x52f   :  { %v7966_v12 = vmax.f32 %v7964_v10, %v7965_v62  ;;  %v8103_v3 = vrot.slane %v8102_v43, 4  ;;  %v8130_v33 = vsel %vm7961_vm0, %v7533_v44, -inf  ;;  %v8158_v51 = vsel %vm7961_vm0, %v7558_v21, -inf }
 0x530   :  { %v7994_v56 = vmax.f32 %v7992_v24, %v7993_v5  ;;  %v8022_v2 = vmax.f32 %v8020_v60, %v8021_v41  ;;  %v8049_v53 = vrot.slane %v8048_v37, 2  ;;  %v8076_v50 = vmax.f32 %v8074_v49, %v8075_v19  ;;  %v11054_v24 = vld [vmem:[%s17068_s5 + $0x2d8] sm:$0xff]  ;;  %v11053_v60 = vld [vmem:[%s17068_s5 + $0x2d0] sm:$0xff]  ;;  %v9020_v5 = vld [vmem:[%s17068_s5 + $0xe8] sm:$0xff] }
 0x531   :  { %v7967_v20 = vrot.slane %v7966_v12, 1  ;;  %v8104_v28 = vmax.f32 %v8102_v43, %v8103_v3  ;;  %v8131_v31 = vrot.slane %v8130_v33, 4  ;;  %v8159_v35 = vrot.slane %v8158_v51, 4  ;;  %9224 = vmatprep.subr.mxu0 %v11054_v24  ;;  %v11052_v43 = vld [vmem:[%s17068_s5 + $0x2c8] sm:$0xff]  ;;  %v11051_v3 = vld [vmem:[%s17068_s5 + $0x2c0] sm:$0xff]  ;;  %v9014_v24 = vld [vmem:[%s17068_s5 + $0xb8] sm:$0xff] }
 0x532   :  { %8694 = vrot.lane.b32.xlu0 %v8655_v26, %s11699_s30  ;;  %8617 = vrot.lane.b32.xlu1 %v14984_v30, %s11687_s22  ;;  %v7995_v48 = vrot.slane %v7994_v56, 1  ;;  %v8023_v0 = vrot.slane %v8022_v2, 1  ;;  %v8050_v25 = vmax.f32 %v8048_v37, %v8049_v53  ;;  %v8077_v44 = vrot.slane %v8076_v50, 2 }
 0x533   :  { %v7968_v45 = vmax.f32 %v7966_v12, %v7967_v20  ;;  %v8105_v23 = vrot.slane %v8104_v28, 2  ;;  %v8132_v21 = vmax.f32 %v8130_v33, %v8131_v31  ;;  %v8160_v47 = vmax.f32 %v8158_v51, %v8159_v35  ;;  %9225 = vmatpush1.msra.mxu0 %v11053_v60  ;;  %v9019_v33 = vld [vmem:[%s17068_s5 + $0xe0] sm:$0xff]  ;;  %v11050_v51 = vld [vmem:[%s17068_s5 + $0x2b8] sm:$0xff]  ;;  %v11049_v31 = vld [vmem:[%s17068_s5 + $0x2b0] sm:$0xff] }
 0x534   :  { %v15032_v17 = vrot.slane %v14866_v15, %v12345_v46  ;;  %v7996_v11 = vmax.f32 %v7994_v56, %v7995_v48  ;;  %v8024_v40 = vmax.f32 %v8022_v2, %v8023_v0  ;;  %v8051_v10 = vrot.slane %v8050_v25, 1  ;;  %9226 = vmatprep.subr.mxu0 %v11052_v43  ;;  %v9017_v35 = vld [vmem:[%s17068_s5 + $0xd0] sm:$0xff] }
 0x535   :  { %v8078_v61 = vmax.f32 %v8076_v50, %v8077_v44  ;;  %v8106_v57 = vmax.f32 %v8104_v28, %v8105_v23  ;;  %v8133_v29 = vrot.slane %v8132_v21, 2  ;;  %v8161_v54 = vrot.slane %v8160_v47, 2  ;;  %v9018_v28 = vld [vmem:[%s17068_s5 + $0xd8] sm:$0xff]  ;;  %9227 = vmatpush1.msra.mxu0 %v11051_v3  ;;  %v11048_v23 = vld [vmem:[%s17068_s5 + $0x2a8] sm:$0xff] }
 0x536   :  { %v15036_v30 = vrot.slane %v14868_v4, %v12345_v46  ;;  %v8052_v55 = vmax.f32 %v8050_v25, %v8051_v10  ;;  %v8738_v62 = vsel %vm8521_vm12, %v7996_v11, %v7968_v45  ;;  %8839 = vrot.lane.b32.xlu1 %v8655_v26, %s11700_s12  ;;  %v17486_v8 = vrot.slane %v14779_v32, 2  ;;  %v9022_v4 = vld [vmem:[%s17068_s5 + $0xf8] sm:$0xff]  ;;  %9228 = vmatprep.subr.mxu0 %v11050_v51 }
 0x537   :  { %v8079_v36 = vrot.slane %v8078_v61, 1  ;;  %v8107_v7 = vrot.slane %v8106_v57, 1  ;;  %v8134_v12 = vmax.f32 %v8132_v21, %v8133_v29  ;;  %v8162_v49 = vmax.f32 %v8160_v47, %v8161_v54  ;;  %9396 = vmatprep.subr.mxu1 %v9022_v4  ;;  %v9016_v21 = vld [vmem:[%s17068_s5 + $0xc8] sm:$0xff]  ;;  %9229 = vmatpush1.msra.mxu0 %v11049_v31  ;;  %v9011_v31 = vld [vmem:[%s17068_s5 + $0xa0] sm:$0xff] }
 0x538   :  { %v8225_v13 = vmax.f32 %v14779_v32, %v17486_v8  ;;  %v8739_v26 = vsel %vm271_vm3, %v8024_v40, %v8738_v62  ;;  %v9021_v32 = vld [vmem:[%s17068_s5 + $0xf0] sm:$0xff]  ;;  %v15065_v19 = vrot.slane %v15036_v30, %v12345_v46  ;;  %v17487_v50 = vrot.slane %v14843_v59, 2  ;;  %9230 = vmatprep.subr.mxu0 %v11048_v23 }
 0x539   :  { %v8080_v41 = vmax.f32 %v8078_v61, %v8079_v36  ;;  %v8740_v37 = vsel %vm8524_vm13, %v8052_v55, %v8739_v26  ;;  %9397 = vmatpush1.msra.mxu1 %v9021_v32  ;;  %v8108_v56 = vmax.f32 %v8106_v57, %v8107_v7  ;;  %v8135_v2 = vrot.slane %v8134_v12, 1  ;;  %v9015_v61 = vld [vmem:[%s17068_s5 + $0xc0] sm:$0xff]  ;;  %v9013_v26 = vld [vmem:[%s17068_s5 + $0xb0] sm:$0xff] }
 0x53a   :  { %v8226_v20 = vrot.slane %v8225_v13, 1  ;;  %v8163_v53 = vrot.slane %v8162_v49, 1  ;;  %v8253_v45 = vmax.f32 %v14843_v59, %v17487_v50  ;;  %9398 = vmatprep.subr.mxu1 %v9020_v5  ;;  %v8280_v25 = vrot.slane %v14852_v52, 2 }
 0x53b   :  { %v8741_v48 = vsel %vm273_vm5, %v8080_v41, %v8740_v37  ;;  %v17488_v59 = vrot.slane %v14841_v22, 4  ;;  %9399 = vmatpush1.msra.mxu1 %v9019_v33  ;;  %v8136_v47 = vmax.f32 %v8134_v12, %v8135_v2  ;;  %v8333_v54 = vsel %vm7939_vm11, %v14812_v34, -inf  ;;  %v11044_v37 = vld [vmem:[%s17068_s5 + $0x288] sm:$0xff] }
 0x53c   :  { %v8227_v0 = vmax.f32 %v8225_v13, %v8226_v20  ;;  %v8164_v11 = vmax.f32 %v8162_v49, %v8163_v53  ;;  %v8742_v40 = vsel %vm8527_vm14, %v8108_v56, %v8741_v48  ;;  %v8254_v10 = vrot.slane %v8253_v45, 1  ;;  %9400 = vmatprep.subr.mxu1 %v9018_v28  ;;  %v11045_v49 = vld [vmem:[%s17068_s5 + $0x290] sm:$0xff]  ;;  %v9012_v56 = vld [vmem:[%s17068_s5 + $0xa8] sm:$0xff]  ;;  %v11043_v28 = vld [vmem:[%s17068_s5 + $0x280] sm:$0xff] }
 0x53d   :  { %v8307_v44 = vmax.f32 %v14841_v22, %v17488_v59  ;;  %v11047_v22 = vld [vmem:[%s17068_s5 + $0x2a0] sm:$0xff]  ;;  %v8281_v57 = vmax.f32 %v14852_v52, %v8280_v25  ;;  %v8361_v55 = vsel %vm7939_vm11, %v14875_v42, -inf  ;;  %9401 = vmatpush1.msra.mxu1 %v9017_v35  ;;  %v8743_v36 = vsel %vm275_vm7, %v8136_v47, %v8742_v40  ;;  %v11046_v52 = vld [vmem:[%s17068_s5 + $0x298] sm:$0xff]  ;;  %v11041_v40 = vld [vmem:[%s17068_s5 + $0x270] sm:$0xff] }
 0x53e   :  { %v8255_v62 = vmax.f32 %v8253_v45, %v8254_v10  ;;  %v8334_v8 = vrot.slane %v8333_v54, 4  ;;  %v8362_v13 = vrot.slane %v8361_v55, 4  ;;  %9402 = vmatprep.subr.mxu1 %v9016_v21  ;;  %v8744_v4 = vsel %vm8530_vm15, %v8164_v11, %v8743_v36  ;;  %9231 = vmatpush1.msra.mxu0 %v11047_v22  ;;  %v11042_v59 = vld [vmem:[%s17068_s5 + $0x278] sm:$0xff]  ;;  %v9009_v10 = vld [vmem:[%s17068_s5 + $0x90] sm:$0xff] }
 0x53f   :  { %v8308_v29 = vrot.slane %v8307_v44, 2  ;;  %v8282_v60 = vrot.slane %v8281_v57, 1  ;;  %v8389_v12 = vsel %vm7939_vm11, %v15032_v17, -inf  ;;  %9403 = vmatpush1.msra.mxu1 %v9015_v61  ;;  %8754 = vrot.lane.b32.xlu0 %v8744_v4, %s11700_s12  ;;  %v8417_v41 = vsel %vm7939_vm11, %v15065_v19, -inf }
 0x540   :  { %8766 = vrot.lane.b32.xlu1 %v8744_v4, %s11701_s2  ;;  %v8335_v32 = vmax.f32 %v8333_v54, %v8334_v8  ;;  %v8363_v43 = vmax.f32 %v8361_v55, %v8362_v13  ;;  %v8390_v5 = vrot.slane %v8389_v12, 4  ;;  %v8418_v33 = vrot.slane %v8417_v41, 4  ;;  %9232 = vmatprep.subr.mxu0 %v11046_v52  ;;  %v11040_v54 = vld [vmem:[%s17068_s5 + $0x268] sm:$0xff] }
 0x541   :  { %v8309_v7 = vmax.f32 %v8307_v44, %v8308_v29  ;;  %v8283_v20 = vmax.f32 %v8281_v57, %v8282_v60  ;;  %v8533_v51 = vsel %vm8521_vm12, %v8255_v62, %v8227_v0  ;;  %9404 = vmatprep.subr.mxu1 %v9014_v24  ;;  %v7757_v45 = vcombine.high %v14875_v42, %v14875_v42  ;;  %v9010_v44 = vld [vmem:[%s17068_s5 + $0x98] sm:$0xff]  ;;  %v9008_v55 = vld [vmem:[%s17068_s5 + $0x88] sm:$0xff]  ;;  %v11039_v24 = vld [vmem:[%s17068_s5 + $0x260] sm:$0xff] }
 0x542   :  { %v8336_v2 = vrot.slane %v8335_v32, 2  ;;  %v8364_v53 = vrot.slane %v8363_v43, 2  ;;  %v8391_v50 = vmax.f32 %v8389_v12, %v8390_v5  ;;  %9233 = vmatpush1.msra.mxu0 %v11045_v49  ;;  %9405 = vmatpush1.msra.mxu1 %v9013_v26  ;;  %v8419_v48 = vmax.f32 %v8417_v41, %v8418_v33  ;;  %v11038_v26 = vld [vmem:[%s17068_s5 + $0x258] sm:$0xff]  ;;  %v9005_v33 = vld [vmem:[%s17068_s5 + $0x70] sm:$0xff] }
 0x543   :  { %v8310_v3 = vrot.slane %v8309_v7, 1  ;;  %v8534_v0 = vsel %vm271_vm3, %v8283_v20, %v8533_v51  ;;  %v7782_v25 = vcombine.high %v15032_v17, %v15032_v17  ;;  %9234 = vmatprep.subr.mxu0 %v11044_v37  ;;  %8851 = vrot.lane.b32.xlu0 %v8744_v4, %s11702_s23  ;;  %v7807_v11 = vcombine.high %v15065_v19, %v15065_v19  ;;  %v9007_v4 = vld [vmem:[%s17068_s5 + $0x80] sm:$0xff]  ;;  %v11036_v51 = vld [vmem:[%s17068_s5 + $0x248] sm:$0xff]  ;;  %v11033_v42 = vld [vmem:[%s17068_s5 + $0x230] sm:$0xff] }
 0x544   :  { %v8337_v23 = vmax.f32 %v8335_v32, %v8336_v2  ;;  %v8365_v21 = vmax.f32 %v8363_v43, %v8364_v53  ;;  %v8392_v47 = vrot.slane %v8391_v50, 2  ;;  %9406 = vmatprep.subr.mxu1 %v9012_v56  ;;  %v8420_v22 = vrot.slane %v8419_v48, 2  ;;  %9235 = vmatpush1.msra.mxu0 %v11043_v28  ;;  %v9006_v32 = vld [vmem:[%s17068_s5 + $0x78] sm:$0xff] }
 0x545   :  { %v8311_v35 = vmax.f32 %v8309_v7, %v8310_v3  ;;  %v8238_v57 = vrot.slane %v14786_v63, 2  ;;  %v8266_v29 = vrot.slane %v14847_v6, 2  ;;  %9407 = vmatpush1.msra.mxu1 %v9011_v31  ;;  %v17489_v13 = vrot.slane %v14837_v1, 4  ;;  %9236 = vmatprep.subr.mxu0 %v11042_v59  ;;  %v9004_v31 = vld [vmem:[%s17068_s5 + $0x68] sm:$0xff] }
 0x546   :  { %v8338_v36 = vrot.slane %v8337_v23, 1  ;;  %v8366_v62 = vrot.slane %v8365_v21, 1  ;;  %v8393_v8 = vmax.f32 %v8391_v50, %v8392_v47  ;;  %9408 = vmatprep.subr.mxu1 %v9010_v44  ;;  %v8421_v60 = vmax.f32 %v8419_v48, %v8420_v22  ;;  %9237 = vmatpush1.msra.mxu0 %v11041_v40  ;;  %v9003_v40 = vld [vmem:[%s17068_s5 + $0x60] sm:$0xff] }
 0x547   :  { %v8535_v61 = vsel %vm8524_vm13, %v8311_v35, %v8534_v0  ;;  %v8293_v52 = vmax.f32 %v14837_v1, %v17489_v13  ;;  %v8239_v7 = vmax.f32 %v14786_v63, %v8238_v57  ;;  %v8267_v12 = vmax.f32 %v14847_v6, %v8266_v29  ;;  %9409 = vmatpush1.msra.mxu1 %v9009_v10  ;;  %v11037_v6 = vld [vmem:[%s17068_s5 + $0x250] sm:$0xff]  ;;  %v11035_v35 = vld [vmem:[%s17068_s5 + $0x240] sm:$0xff]  ;;  %v11034_v10 = vld [vmem:[%s17068_s5 + $0x238] sm:$0xff] }
 0x548   :  { %v17490_v49 = vcombine.high %v14803_v38, %v14803_v38  ;;  %v8339_v43 = vmax.f32 %v8337_v23, %v8338_v36  ;;  %v8367_v5 = vmax.f32 %v8365_v21, %v8366_v62  ;;  %v8394_v63 = vrot.slane %v8393_v8, 1  ;;  %9238 = vmatprep.subr.mxu0 %v11040_v54  ;;  %9410 = vmatprep.subr.mxu1 %v9008_v55  ;;  %v9002_v54 = vld [vmem:[%s17068_s5 + $0x58] sm:$0xff] }
 0x549   :  { %v8294_v41 = vrot.slane %v8293_v52, 2  ;;  %v8422_v38 = vrot.slane %v8421_v60, 1  ;;  %v8240_v37 = vrot.slane %v8239_v7, 1  ;;  %v8268_v20 = vrot.slane %v8267_v12, 1  ;;  %9239 = vmatpush1.msra.mxu0 %v11039_v24  ;;  %9411 = vmatpush1.msra.mxu1 %v9007_v4 }
 0x54a   :  { %v8319_v1 = vsel %vm7939_vm11, %v17490_v49, -inf  ;;  %v8395_v56 = vmax.f32 %v8393_v8, %v8394_v63  ;;  %v8536_v2 = vsel %vm273_vm5, %v8339_v43, %v8535_v61  ;;  %v17491_v50 = vcombine.high %v14812_v34, %v14812_v34  ;;  %9240 = vmatprep.subr.mxu0 %v11038_v26  ;;  %9412 = vmatprep.subr.mxu1 %v9006_v32 }
 0x54b   :  { %v8320_v3 = vrot.slane %v8319_v1, 4  ;;  %v8295_v53 = vmax.f32 %v8293_v52, %v8294_v41  ;;  %v8423_v48 = vmax.f32 %v8421_v60, %v8422_v38  ;;  %v8537_v0 = vsel %vm8527_vm14, %v8367_v5, %v8536_v2  ;;  %9241 = vmatpush1.msra.mxu0 %v11037_v6  ;;  %9413 = vmatpush1.msra.mxu1 %v9005_v33 }
 0x54c   :  { %v8347_v28 = vsel %vm7939_vm11, %v17491_v50, -inf  ;;  %v8241_v59 = vmax.f32 %v8239_v7, %v8240_v37  ;;  %v8269_v44 = vmax.f32 %v8267_v12, %v8268_v20  ;;  %v8538_v34 = vsel %vm275_vm7, %v8395_v56, %v8537_v0  ;;  %9242 = vmatprep.subr.mxu0 %v11036_v51  ;;  %9414 = vmatprep.subr.mxu1 %v9004_v31 }
 0x54d   :  { %v8296_v23 = vrot.slane %v8295_v53, 1  ;;  %v8321_v21 = vmax.f32 %v8319_v1, %v8320_v3  ;;  %v8348_v47 = vrot.slane %v8347_v28, 4  ;;  %v15223_v22 = vsel %vm8530_vm15, %v8423_v48, %v8538_v34  ;;  %9243 = vmatpush1.msra.mxu0 %v11035_v35  ;;  %9415 = vmatpush1.msra.mxu1 %v9003_v40 }
 0x54e   :  { %v8375_v61 = vsel %vm7939_vm11, %v7757_v45, -inf  ;;  %v8403_v57 = vsel %vm7939_vm11, %v7782_v25, -inf  ;;  %v8431_v29 = vsel %vm7939_vm11, %v7807_v11, -inf  ;;  %8549 = vrot.lane.b32.xlu0 %v15223_v22, %s11695_s1  ;;  %8561 = vrot.lane.b32.xlu1 %v15223_v22, %s11696_s27  ;;  %v9001_v11 = vld [vmem:[%s17068_s5 + $0x50] sm:$0xff]  ;;  %v8657_v62 = vsel %vm8521_vm12, %v8269_v44, %v8241_v59 }
 0x54f   :  { %v8297_v17 = vmax.f32 %v8295_v53, %v8296_v23  ;;  %v8322_v19 = vrot.slane %v8321_v21, 2  ;;  %v8349_v45 = vmax.f32 %v8347_v28, %v8348_v47  ;;  %v8376_v25 = vrot.slane %v8375_v61, 4  ;;  %9244 = vmatprep.subr.mxu0 %v11034_v10  ;;  %9416 = vmatprep.subr.mxu1 %v9002_v54  ;;  %v17496_v23 = vld [vmem:[#allocation44_spill] sm:$0xff] }
 0x550   :  { %v8404_v55 = vrot.slane %v8403_v57, 4  ;;  %v8432_v36 = vrot.slane %v8431_v29, 4  ;;  %v17492_v8 = vcombine.high %v14794_v14, %v14794_v14  ;;  %9245 = vmatpush1.msra.mxu0 %v11033_v42  ;;  %v17493_v49 = vcombine.high %v14857_v16, %v14857_v16  ;;  %9417 = vmatpush1.msra.mxu1 %v9001_v11 }
 0x551   :  { %v8323_v52 = vmax.f32 %v8321_v21, %v8322_v19  ;;  %v8350_v24 = vrot.slane %v8349_v45, 2  ;;  %v8377_v4 = vmax.f32 %v8375_v61, %v8376_v25  ;;  %v8658_v60 = vsel %vm271_vm3, %v8297_v17, %v8657_v62 }
 0x552   :  { %v15255_v13 = vrot.slane %v17492_v8, %v12345_v46  ;;  %v8405_v7 = vmax.f32 %v8403_v57, %v8404_v55  ;;  %v8433_v12 = vmax.f32 %v8431_v29, %v8432_v36  ;;  %v15262_v1 = vrot.slane %v17493_v49, %v12345_v46  ;;  %8827 = vrot.lane.b32.xlu0 %v15223_v22, %s11694_s0 }
 0x553   :  { %v7767_v14 = vcombine.high %v14866_v15, %v14866_v15  ;;  %v8324_v26 = vrot.slane %v8323_v52, 1  ;;  %v8351_v32 = vmax.f32 %v8349_v45, %v8350_v24  ;;  %v8378_v43 = vrot.slane %v8377_v4, 2 }
 0x554   :  { %v7792_v5 = vcombine.high %v15036_v30, %v15036_v30  ;;  %v8406_v63 = vrot.slane %v8405_v7, 2  ;;  %v8434_v41 = vrot.slane %v8433_v12, 2  ;;  %v17494_v16 = vrot.slane %v14774_v27, 4 }
 0x555   :  { %v15271_v6 = vrot.slane %v7767_v14, %v12345_v46  ;;  %v8325_v15 = vmax.f32 %v8323_v52, %v8324_v26  ;;  %v8352_v37 = vrot.slane %v8351_v32, 1  ;;  %v8379_v20 = vmax.f32 %v8377_v4, %v8378_v43  ;;  %v11032_v43 = vld [vmem:[%s17068_s5 + $0x228] sm:$0xff] }
 0x556   :  { %v8230_v38 = vmax.f32 %v14774_v27, %v17494_v16  ;;  %v15277_v3 = vrot.slane %v7792_v5, %v12345_v46  ;;  %v8407_v33 = vmax.f32 %v8405_v7, %v8406_v63  ;;  %v8435_v51 = vmax.f32 %v8433_v12, %v8434_v41  ;;  %v9000_v5 = vld [vmem:[%s17068_s5 + $0x48] sm:$0xff]  ;;  %v11031_v63 = vld [vmem:[%s17068_s5 + $0x220] sm:$0xff]  ;;  %9246 = vmatprep.subr.mxu0 %v11032_v43 }
 0x557   :  { %v17495_v30 = vrot.slane %v14829_v9, 4  ;;  %v8353_v53 = vmax.f32 %v8351_v32, %v8352_v37  ;;  %v8380_v50 = vrot.slane %v8379_v20, 1  ;;  %v8659_v28 = vsel %vm8524_vm13, %v8325_v15, %v8658_v60  ;;  %9418 = vmatprep.subr.mxu1 %v9000_v5  ;;  %v8999_v37 = vld [vmem:[%s17068_s5 + $0x40] sm:$0xff]  ;;  %9247 = vmatpush1.msra.mxu0 %v11031_v63  ;;  %v8992_v43 = vld [vmem:[%s17068_s5 + $0x8] sm:$0xff] }
 0x558   :  { %v8231_v56 = vrot.slane %v8230_v38, 2  ;;  %v8284_v27 = vsel %vm7939_vm11, %v14815_v39, -inf  ;;  %v8408_v31 = vrot.slane %v8407_v33, 1  ;;  %v8436_v35 = vrot.slane %v8435_v51, 1  ;;  %9419 = vmatpush1.msra.mxu1 %v8999_v37  ;;  %v11023_v5 = vld [vmem:[%s17068_s5 + $0x1e0] sm:$0xff] }
 0x559   :  { %v8258_v2 = vmax.f32 %v14829_v9, %v17495_v30  ;;  %v8381_v59 = vmax.f32 %v8379_v20, %v8380_v50  ;;  %v8660_v44 = vsel %vm273_vm5, %v8353_v53, %v8659_v28  ;;  %v8285_v34 = vrot.slane %v8284_v27, 4  ;;  %v11030_v20 = vld [vmem:[%s17068_s5 + $0x218] sm:$0xff]  ;;  %v11029_v53 = vld [vmem:[%s17068_s5 + $0x210] sm:$0xff] }
 0x55a   :  { %v8232_v48 = vmax.f32 %v8230_v38, %v8231_v56  ;;  %v8312_v21 = vsel %vm7939_vm11, %v17496_v23, -inf  ;;  %v8409_v47 = vmax.f32 %v8407_v33, %v8408_v31  ;;  %v8437_v9 = vmax.f32 %v8435_v51, %v8436_v35  ;;  %v8998_v33 = vld [vmem:[%s17068_s5 + $0x38] sm:$0xff]  ;;  %v8997_v50 = vld [vmem:[%s17068_s5 + $0x30] sm:$0xff]  ;;  %9248 = vmatprep.subr.mxu0 %v11030_v20  ;;  %v8991_v20 = vld [vmem:[%s17068_s5] sm:$0xff] }
 0x55b   :  { %v8259_v0 = vrot.slane %v8258_v2, 2  ;;  %v8661_v61 = vsel %vm8527_vm14, %v8381_v59, %v8660_v44  ;;  %v8286_v57 = vmax.f32 %v8284_v27, %v8285_v34  ;;  %v8313_v29 = vrot.slane %v8312_v21, 4  ;;  %9420 = vmatprep.subr.mxu1 %v8998_v33  ;;  %9249 = vmatpush1.msra.mxu0 %v11029_v53  ;;  %v11028_v34 = vld [vmem:[%s17068_s5 + $0x208] sm:$0xff]  ;;  %v11082_v33 = vld [vmem:[%s17068_s5 + $0x3b8] sm:$0xff] }
 0x55c   :  { %v8233_v40 = vrot.slane %v8232_v48, 1  ;;  %v8340_v54 = vsel %vm7939_vm11, %v15255_v13, -inf  ;;  %v8662_v42 = vsel %vm275_vm7, %v8409_v47, %v8661_v61  ;;  %v8368_v36 = vsel %vm7939_vm11, %v15262_v1, -inf  ;;  %v11027_v47 = vld [vmem:[%s17068_s5 + $0x200] sm:$0xff]  ;;  %9421 = vmatpush1.msra.mxu1 %v8997_v50  ;;  %9250 = vmatprep.subr.mxu0 %v11028_v34 }
 0x55d   :  { %v8260_v10 = vmax.f32 %v8258_v2, %v8259_v0  ;;  %v8341_v45 = vrot.slane %v8340_v54, 4  ;;  %v15293_v25 = vsel %vm8530_vm15, %v8437_v9, %v8662_v42  ;;  %v8287_v11 = vrot.slane %v8286_v57, 2  ;;  %9251 = vmatpush1.msra.mxu0 %v11027_v47 }
 0x55e   :  { %v8234_v17 = vmax.f32 %v8232_v48, %v8233_v40  ;;  %v8314_v55 = vmax.f32 %v8312_v21, %v8313_v29  ;;  %8675 = vrot.lane.b32.xlu1 %v15293_v25, %s11697_s28  ;;  %v8369_v52 = vrot.slane %v8368_v36, 4  ;;  %v8396_v24 = vsel %vm7939_vm11, %v15271_v6, -inf  ;;  %v8996_v21 = vld [vmem:[%s17068_s5 + $0x28] sm:$0xff]  ;;  %v11026_v29 = vld [vmem:[%s17068_s5 + $0x1f8] sm:$0xff] }
 0x55f   :  { %v8261_v19 = vrot.slane %v8260_v10, 1  ;;  %v8342_v8 = vmax.f32 %v8340_v54, %v8341_v45  ;;  %v8288_v4 = vmax.f32 %v8286_v57, %v8287_v11  ;;  %v8397_v7 = vrot.slane %v8396_v24, 4  ;;  %v8995_v57 = vld [vmem:[%s17068_s5 + $0x20] sm:$0xff]  ;;  %9422 = vmatprep.subr.mxu1 %v8996_v21  ;;  %9252 = vmatprep.subr.mxu0 %v11026_v29 }
 0x560   :  { %v8315_v60 = vrot.slane %v8314_v55, 2  ;;  %v8424_v12 = vsel %vm7939_vm11, %v15277_v3, -inf  ;;  %v8370_v14 = vmax.f32 %v8368_v36, %v8369_v52  ;;  %v7708_v15 = vcombine.high %v17496_v23, %v17496_v23  ;;  %v11025_v36 = vld [vmem:[%s17068_s5 + $0x1f0] sm:$0xff]  ;;  %9423 = vmatpush1.msra.mxu1 %v8995_v57  ;;  %v9050_v23 = vld [vmem:[%s17068_s5 + $0x1d8] sm:$0xff] }
 0x561   :  { %v8262_v62 = vmax.f32 %v8260_v10, %v8261_v19  ;;  %v8343_v49 = vrot.slane %v8342_v8, 2  ;;  %v8425_v26 = vrot.slane %v8424_v12, 4  ;;  %v8289_v41 = vrot.slane %v8288_v4, 1  ;;  %v17497_v19 = vld [vmem:[#allocation49_spill] sm:$0xff]  ;;  %9253 = vmatpush1.msra.mxu0 %v11025_v36  ;;  %v11080_v36 = vld [vmem:[%s17068_s5 + $0x3a8] sm:$0xff] }
 0x562   :  { %v8316_v16 = vmax.f32 %v8314_v55, %v8315_v60  ;;  %v8398_v38 = vmax.f32 %v8396_v24, %v8397_v7  ;;  %v8371_v56 = vrot.slane %v8370_v14, 2  ;;  %8710 = vrot.lane.b32.xlu1 %v15293_v25, %s11698_s29  ;;  %v7733_v2 = vcombine.high %v15255_v13, %v15255_v13  ;;  %v8994_v55 = vld [vmem:[%s17068_s5 + $0x18] sm:$0xff]  ;;  %v17499_v24 = vld [vmem:[#allocation56_spill] sm:$0xff] }
 0x563   :  { %v8597_v32 = vsel %vm8521_vm12, %v8262_v62, %v8234_v17  ;;  %v8344_v51 = vmax.f32 %v8342_v8, %v8343_v49  ;;  %v8426_v30 = vmax.f32 %v8424_v12, %v8425_v26  ;;  %v8290_v28 = vmax.f32 %v8288_v4, %v8289_v41  ;;  %v8993_v7 = vld [vmem:[%s17068_s5 + $0x10] sm:$0xff]  ;;  %9424 = vmatprep.subr.mxu1 %v8994_v55 }
 0x564   :  { %v8317_v27 = vrot.slane %v8316_v16, 1  ;;  %v8399_v31 = vrot.slane %v8398_v38, 2  ;;  %v7758_v35 = vcombine.high %v15262_v1, %v15262_v1  ;;  %v8372_v0 = vmax.f32 %v8370_v14, %v8371_v56  ;;  %9425 = vmatpush1.msra.mxu1 %v8993_v7  ;;  %v9046_v7 = vld [vmem:[%s17068_s5 + $0x1b8] sm:$0xff] }
 0x565   :  { %v8345_v48 = vrot.slane %v8344_v51, 1  ;;  %v8427_v59 = vrot.slane %v8426_v30, 2  ;;  %v7783_v44 = vcombine.high %v15271_v6, %v15271_v6  ;;  %v8598_v10 = vsel %vm271_vm3, %v8290_v28, %v8597_v32  ;;  %v11024_v32 = vld [vmem:[%s17068_s5 + $0x1e8] sm:$0xff]  ;;  %9426 = vmatprep.subr.mxu1 %v8992_v43 }
 0x566   :  { %v8318_v9 = vmax.f32 %v8316_v16, %v8317_v27  ;;  %v8400_v40 = vmax.f32 %v8398_v38, %v8399_v31  ;;  %v7808_v61 = vcombine.high %v15277_v3, %v15277_v3  ;;  %v8373_v42 = vrot.slane %v8372_v0, 1  ;;  %8843 = vrot.lane.b32.xlu1 %v15293_v25, %s11700_s12  ;;  %9254 = vmatprep.subr.mxu0 %v11024_v32  ;;  %v11081_v27 = vld [vmem:[%s17068_s5 + $0x3b0] sm:$0xff]  ;;  %v9048_v3 = vld [vmem:[%s17068_s5 + $0x1c8] sm:$0xff]  ;;  %v17503_v32 = vld [vmem:[#allocation50_spill] sm:$0xff] }
 0x567   :  { %v8346_v54 = vmax.f32 %v8344_v51, %v8345_v48  ;;  %v8428_v17 = vmax.f32 %v8426_v30, %v8427_v59  ;;  %v17498_v45 = vcombine.high %v17497_v19, %v17497_v19  ;;  %v17500_v4 = vcombine.high %v17499_v24, %v17499_v24  ;;  %9255 = vmatpush1.msra.mxu0 %v11023_v5  ;;  %v9049_v31 = vld [vmem:[%s17068_s5 + $0x1d0] sm:$0xff] }
 0x568   :  { %v8401_v62 = vrot.slane %v8400_v40, 1  ;;  %v8599_v8 = vsel %vm8524_vm13, %v8318_v9, %v8598_v10  ;;  %v8374_v12 = vmax.f32 %v8372_v0, %v8373_v42  ;;  %v17501_v16 = vcombine.high %v14815_v39, %v14815_v39  ;;  %9427 = vmatpush1.msra.mxu1 %v8991_v20  ;;  %9260 = vmatprep.subr.mxu0 %v11082_v33 }
 0x569   :  { %v8242_v11 = vsel %vm7961_vm0, %v17498_v45, -inf  ;;  %v8270_v60 = vsel %vm7961_vm0, %v17500_v4, -inf  ;;  %v8429_v49 = vrot.slane %v8428_v17, 1  ;;  %v8600_v14 = vsel %vm273_vm5, %v8346_v54, %v8599_v8  ;;  %9432 = vmatprep.subr.mxu1 %v9050_v23  ;;  %9261 = vmatpush2.msra.mxu0 %v11081_v27  ;;  %v9047_v4 = vld [vmem:[%s17068_s5 + $0x1c0] sm:$0xff] }
 0x56a   :  { %v8243_v52 = vrot.slane %v8242_v11, 4  ;;  %v8271_v26 = vrot.slane %v8270_v60, 4  ;;  %v8402_v63 = vmax.f32 %v8400_v40, %v8401_v62  ;;  %v8298_v38 = vsel %vm7961_vm0, %v17501_v16, -inf  ;;  %9433 = vmatpush2.msra.mxu1 %v9049_v31  ;;  %9262 = vmatprep.subr.mxu0 %v11080_v36 }
 0x56b   :  { %v8326_v37 = vsel %vm7961_vm0, %v7708_v15, -inf  ;;  %v8430_v51 = vmax.f32 %v8428_v17, %v8429_v49  ;;  %v8601_v39 = vsel %vm8527_vm14, %v8374_v12, %v8600_v14  ;;  %v8299_v30 = vrot.slane %v8298_v38, 4  ;;  %9434 = vmatprep.subr.mxu1 %v9048_v3 }
 0x56c   :  { %v8244_v41 = vmax.f32 %v8242_v11, %v8243_v52  ;;  %v8272_v56 = vmax.f32 %v8270_v60, %v8271_v26  ;;  %v8602_v15 = vsel %vm275_vm7, %v8402_v63, %v8601_v39  ;;  %v8327_v50 = vrot.slane %v8326_v37, 4  ;;  %v11078_v60 = vld [vmem:[%s17068_s5 + $0x398] sm:$0xff]  ;;  %v17502_v26 = vld [vmem:[#allocation40_spill] sm:$0xff]  ;;  %9435 = vmatpush2.msra.mxu1 %v9047_v4 }
 0x56d   :  { %v8354_v28 = vsel %vm7961_vm0, %v7733_v2, -inf  ;;  %v15416_v48 = vsel %vm8530_vm15, %v8430_v51, %v8602_v15  ;;  %v8300_v59 = vmax.f32 %v8298_v38, %v8299_v30  ;;  %v8382_v21 = vsel %vm7961_vm0, %v7758_v35, -inf  ;;  %v11077_v63 = vld [vmem:[%s17068_s5 + $0x390] sm:$0xff]  ;;  %9436 = vmatprep.subr.mxu1 %v9046_v7 }
 0x56e   :  { %v8245_v53 = vrot.slane %v8244_v41, 2  ;;  %v8273_v0 = vrot.slane %v8272_v56, 2  ;;  %v8355_v34 = vrot.slane %v8354_v28, 4  ;;  %8609 = vrot.lane.b32.xlu0 %v15416_v48, %s11694_s0  ;;  %v8328_v2 = vmax.f32 %v8326_v37, %v8327_v50 }
 0x56f   :  { %v8410_v47 = vsel %vm7961_vm0, %v7783_v44, -inf  ;;  %v8301_v40 = vrot.slane %v8300_v59, 2  ;;  %v8383_v57 = vrot.slane %v8382_v21, 4  ;;  %v8438_v1 = vsel %vm7961_vm0, %v7808_v61, -inf  ;;  %v11079_v61 = vld [vmem:[%s17068_s5 + $0x3a0] sm:$0xff] }
 0x570   :  { %v8246_v13 = vmax.f32 %v8244_v41, %v8245_v53  ;;  %v8274_v9 = vmax.f32 %v8272_v56, %v8273_v0  ;;  %v8356_v10 = vmax.f32 %v8354_v28, %v8355_v34  ;;  %v8329_v54 = vrot.slane %v8328_v2, 2  ;;  %9263 = vmatpush2.msra.mxu0 %v11079_v61  ;;  %v9045_v41 = vld [vmem:[%s17068_s5 + $0x1b0] sm:$0xff] }
 0x571   :  { %v8411_v42 = vrot.slane %v8410_v47, 4  ;;  %v8302_v17 = vmax.f32 %v8300_v59, %v8301_v40  ;;  %v8384_v19 = vmax.f32 %v8382_v21, %v8383_v57  ;;  %v8439_v55 = vrot.slane %v8438_v1, 4  ;;  %9264 = vmatprep.subr.mxu0 %v11078_v60  ;;  %9437 = vmatpush2.msra.mxu1 %v9045_v41 }
 0x572   :  { %v8247_v29 = vrot.slane %v8246_v13, 1  ;;  %v8275_v35 = vrot.slane %v8274_v9, 1  ;;  %v8357_v6 = vrot.slane %v8356_v10, 2  ;;  %8673 = vrot.lane.b32.xlu0 %v15416_v48, %s11697_s28  ;;  %v8330_v45 = vmax.f32 %v8328_v2, %v8329_v54  ;;  %9265 = vmatpush2.msra.mxu0 %v11077_v63 }
 0x573   :  { %v8412_v11 = vmax.f32 %v8410_v47, %v8411_v42  ;;  %v8303_v8 = vrot.slane %v8302_v17, 1  ;;  %v8385_v24 = vrot.slane %v8384_v19, 2  ;;  %v8440_v14 = vmax.f32 %v8438_v1, %v8439_v55 }
 0x574   :  { %v8248_v44 = vmax.f32 %v8246_v13, %v8247_v29  ;;  %v8276_v62 = vmax.f32 %v8274_v9, %v8275_v35  ;;  %v8358_v52 = vmax.f32 %v8356_v10, %v8357_v6  ;;  %v8331_v12 = vrot.slane %v8330_v45, 1 }
 0x575   :  { %v8413_v49 = vrot.slane %v8412_v11, 2  ;;  %v17504_v43 = vcombine.low %v17502_v26, %v17503_v32  ;;  %v8304_v16 = vmax.f32 %v8302_v17, %v8303_v8  ;;  %v8386_v37 = vmax.f32 %v8384_v19, %v8385_v24 }
 0x576   :  { %v8359_v38 = vrot.slane %v8358_v52, 1  ;;  %v8746_v20 = vsel %vm8521_vm12, %v8276_v62, %v8248_v44  ;;  %8698 = vrot.lane.b32.xlu0 %v15293_v25, %s11699_s30  ;;  %v8332_v33 = vmax.f32 %v8330_v45, %v8331_v12  ;;  %v8441_v39 = vrot.slane %v8440_v14, 2 }
 0x577   :  { %v7566_v5 = vrot.slane %v17504_v43, %v12345_v46  ;;  %v8414_v51 = vmax.f32 %v8412_v11, %v8413_v49  ;;  %v8387_v23 = vrot.slane %v8386_v37, 1  ;;  %v8747_v15 = vsel %vm271_vm3, %v8304_v16, %v8746_v20  ;;  %v9043_v16 = vld [vmem:[%s17068_s5 + $0x1a0] sm:$0xff] }
 0x578   :  { %v8360_v30 = vmax.f32 %v8358_v52, %v8359_v38  ;;  %v17505_v53 = vcombine.high %v17502_v26, %v17503_v32  ;;  %v8442_v27 = vmax.f32 %v8440_v14, %v8441_v39  ;;  %v8748_v25 = vsel %vm8524_vm13, %v8332_v33, %v8747_v15  ;;  %v11076_v14 = vld [vmem:[%s17068_s5 + $0x388] sm:$0xff]  ;;  %v11075_v32 = vld [vmem:[%s17068_s5 + $0x380] sm:$0xff]  ;;  %v11074_v38 = vld [vmem:[%s17068_s5 + $0x378] sm:$0xff] }
 0x579   :  { %v7574_v56 = vrot.slane %v7566_v5, %v12345_v46  ;;  %v8415_v28 = vrot.slane %v8414_v51, 1  ;;  %v8388_v0 = vmax.f32 %v8386_v37, %v8387_v23  ;;  %v7567_v47 = vcombine.high %v7566_v5, %v7566_v5  ;;  %v9044_v26 = vld [vmem:[%s17068_s5 + $0x1a8] sm:$0xff]  ;;  %9266 = vmatprep.subr.mxu0 %v11076_v14  ;;  %v9042_v37 = vld [vmem:[%s17068_s5 + $0x198] sm:$0xff] }
 0x57a   :  { %v7591_v50 = vrot.slane %v17505_v53, %v12345_v46  ;;  %v8749_v59 = vsel %vm273_vm5, %v8360_v30, %v8748_v25  ;;  %v8443_v21 = vrot.slane %v8442_v27, 1  ;;  %8621 = vrot.lane.b32.xlu0 %v15416_v48, %s11687_s22  ;;  %9438 = vmatprep.subr.mxu1 %v9044_v26  ;;  %v9041_v30 = vld [vmem:[%s17068_s5 + $0x190] sm:$0xff]  ;;  %v11072_v23 = vld [vmem:[%s17068_s5 + $0x368] sm:$0xff]  ;;  %v11071_v25 = vld [vmem:[%s17068_s5 + $0x360] sm:$0xff]  ;;  %vm8681_vm3 = vcmask 64512  }
 0x57b   :  { %v8165_v31 = vsel %vm7939_vm11, %v7574_v56, -inf  ;;  %v8416_v2 = vmax.f32 %v8414_v51, %v8415_v28  ;;  %v8750_v40 = vsel %vm8527_vm14, %v8388_v0, %v8749_v59  ;;  %v7582_v29 = vcombine.high %v7574_v56, %v7574_v56  ;;  %9267 = vmatpush2.msra.mxu0 %v11075_v32  ;;  %v11073_v56 = vld [vmem:[%s17068_s5 + $0x370] sm:$0xff]  ;;  %9439 = vmatpush2.msra.mxu1 %v9043_v16 }
 0x57c   :  { %v7599_v34 = vrot.slane %v7591_v50, %v12345_v46  ;;  %v8166_v13 = vrot.slane %v8165_v31, 4  ;;  %v7592_v9 = vcombine.high %v7591_v50, %v7591_v50  ;;  %v8444_v54 = vmax.f32 %v8442_v27, %v8443_v21  ;;  %9268 = vmatprep.subr.mxu0 %v11074_v38  ;;  %v9040_v27 = vld [vmem:[%s17068_s5 + $0x188] sm:$0xff]  ;;  %9440 = vmatprep.subr.mxu1 %v9042_v37  ;;  %v11070_v21 = vld [vmem:[%s17068_s5 + $0x358] sm:$0xff] }
 0x57d   :  { %v8751_v42 = vsel %vm275_vm7, %v8416_v2, %v8750_v40  ;;  %v7581_v35 = vrot.slane %v7567_v47, %v12345_v46  ;;  %v8179_v48 = vsel %vm7939_vm11, %v7582_v29, -inf  ;;  %9269 = vmatpush2.msra.mxu0 %v11073_v56  ;;  %v9039_v2 = vld [vmem:[%s17068_s5 + $0x180] sm:$0xff]  ;;  %9441 = vmatpush2.msra.mxu1 %v9041_v30  ;;  %vm8788_vm5 = vcmask 588800  }
 0x57e   :  { %v8167_v10 = vmax.f32 %v8165_v31, %v8166_v13  ;;  %v8193_v57 = vsel %vm7939_vm11, %v7599_v34, -inf  ;;  %v7606_v6 = vrot.slane %v7592_v9, %v12345_v46  ;;  %v7607_v19 = vcombine.high %v7599_v34, %v7599_v34  ;;  %v17506_v34 = vld [vmem:[#allocation37_spill] sm:$0xff]  ;;  %9270 = vmatprep.subr.mxu0 %v11072_v23  ;;  %9442 = vmatprep.subr.mxu1 %v9040_v27  ;;  %v9032_v27 = vld [vmem:[%s17068_s5 + $0x148] sm:$0xff] }
 0x57f   :  { %v8194_v1 = vrot.slane %v8193_v57, 4  ;;  %v8752_v44 = vsel %vm8530_vm15, %v8444_v54, %v8751_v42  ;;  %v8172_v11 = vsel %vm7939_vm11, %v7581_v35, -inf  ;;  %v8180_v55 = vrot.slane %v8179_v48, 4  ;;  %9271 = vmatpush2.msra.mxu0 %v11071_v25  ;;  %9443 = vmatpush2.msra.mxu1 %v9039_v2 }
 0x580   :  { %v8168_v17 = vrot.slane %v8167_v10, 2  ;;  %8758 = vrot.lane.b32.xlu1 %v8752_v44, %s11700_s12  ;;  %8770 = vrot.lane.b32.xlu0 %v8752_v44, %s11701_s2  ;;  %v8173_v3 = vrot.slane %v8172_v11, 4  ;;  %v8200_v61 = vsel %vm7939_vm11, %v7606_v6, -inf  ;;  %v8207_v62 = vsel %vm7939_vm11, %v7607_v19, -inf }
 0x581   :  { %v8195_v45 = vmax.f32 %v8193_v57, %v8194_v1  ;;  %v8201_v52 = vrot.slane %v8200_v61, 4  ;;  %v8181_v24 = vmax.f32 %v8179_v48, %v8180_v55  ;;  %v8208_v4 = vrot.slane %v8207_v62, 4  ;;  %v9038_v1 = vld [vmem:[%s17068_s5 + $0x178] sm:$0xff]  ;;  %9272 = vmatprep.subr.mxu0 %v11070_v21 }
 0x582   :  { %v8169_v36 = vmax.f32 %v8167_v10, %v8168_v17  ;;  %v8174_v7 = vmax.f32 %v8172_v11, %v8173_v3  ;;  %v7583_v12 = vcombine.high %v7581_v35, %v7581_v35  ;;  %v7608_v49 = vcombine.high %v7606_v6, %v7606_v6  ;;  %v11069_v35 = vld [vmem:[%s17068_s5 + $0x350] sm:$0xff]  ;;  %9444 = vmatprep.subr.mxu1 %v9038_v1 }
 0x583   :  { %v8196_v8 = vrot.slane %v8195_v45, 2  ;;  %v8202_v5 = vmax.f32 %v8200_v61, %v8201_v52  ;;  %v8182_v63 = vrot.slane %v8181_v24, 2  ;;  %v8209_v41 = vmax.f32 %v8207_v62, %v8208_v4  ;;  %v9036_v61 = vld [vmem:[%s17068_s5 + $0x168] sm:$0xff]  ;;  %9273 = vmatpush2.msra.mxu0 %v11069_v35 }
 0x584   :  { %v8170_v60 = vrot.slane %v8169_v36, 1  ;;  %8855 = vrot.lane.b32.xlu1 %v8752_v44, %s11702_s23  ;;  %v8175_v33 = vrot.slane %v8174_v7, 2  ;;  %v8186_v51 = vsel %vm7961_vm0, %v7583_v12, -inf  ;;  %v8214_v39 = vsel %vm7961_vm0, %v7608_v49, -inf  ;;  %v9037_v44 = vld [vmem:[%s17068_s5 + $0x170] sm:$0xff]  ;;  %v9035_v49 = vld [vmem:[%s17068_s5 + $0x160] sm:$0xff] }
 0x585   :  { %v8197_v43 = vmax.f32 %v8195_v45, %v8196_v8  ;;  %v8203_v53 = vrot.slane %v8202_v5, 2  ;;  %v8183_v50 = vmax.f32 %v8181_v24, %v8182_v63  ;;  %v8210_v28 = vrot.slane %v8209_v41, 2  ;;  %v11068_v45 = vld [vmem:[%s17068_s5 + $0x348] sm:$0xff]  ;;  %9445 = vmatpush2.msra.mxu1 %v9037_v44  ;;  %v9034_v63 = vld [vmem:[%s17068_s5 + $0x158] sm:$0xff]  ;;  %v11061_v44 = vld [vmem:[%s17068_s5 + $0x310] sm:$0xff] }
 0x586   :  { %v8171_v20 = vmax.f32 %v8169_v36, %v8170_v60  ;;  %v8176_v31 = vmax.f32 %v8174_v7, %v8175_v33  ;;  %v8187_v0 = vrot.slane %v8186_v51, 4  ;;  %v8215_v59 = vrot.slane %v8214_v39, 4  ;;  %9274 = vmatprep.subr.mxu0 %v11068_v45  ;;  %9446 = vmatprep.subr.mxu1 %v9036_v61  ;;  %v9033_v33 = vld [vmem:[%s17068_s5 + $0x150] sm:$0xff]  ;;  %v11060_v61 = vld [vmem:[%s17068_s5 + $0x308] sm:$0xff] }
 0x587   :  { %v8198_v15 = vrot.slane %v8197_v43, 1  ;;  %v7816_v13 = vrot.slane %v17506_v34, %v12345_v46  ;;  %v8204_v9 = vmax.f32 %v8202_v5, %v8203_v53  ;;  %v8184_v40 = vrot.slane %v8183_v50, 1  ;;  %v11066_v5 = vld [vmem:[%s17068_s5 + $0x338] sm:$0xff]  ;;  %9447 = vmatpush2.msra.mxu1 %v9035_v49  ;;  %v11063_v34 = vld [vmem:[%s17068_s5 + $0x320] sm:$0xff]  ;;  %v9029_v45 = vld [vmem:[%s17068_s5 + $0x130] sm:$0xff] }
 0x588   :  { %v8211_v10 = vmax.f32 %v8209_v41, %v8210_v28  ;;  %v8177_v57 = vrot.slane %v8176_v31, 1  ;;  %v8188_v29 = vmax.f32 %v8186_v51, %v8187_v0  ;;  %v8216_v54 = vmax.f32 %v8214_v39, %v8215_v59  ;;  %9448 = vmatprep.subr.mxu1 %v9034_v63  ;;  %v11064_v28 = vld [vmem:[%s17068_s5 + $0x328] sm:$0xff] }
 0x589   :  { %v8199_v47 = vmax.f32 %v8197_v43, %v8198_v15  ;;  %v15534_v42 = vrot.slane %v7816_v13, %v12345_v46  ;;  %v8205_v6 = vrot.slane %v8204_v9, 1  ;;  %v8185_v19 = vmax.f32 %v8183_v50, %v8184_v40  ;;  %9449 = vmatpush2.msra.mxu1 %v9033_v33  ;;  %v15621_v40 = vpop.permute.xlu1 %8823 }
 0x58a   :  { %v8212_v48 = vrot.slane %v8211_v10, 1  ;;  %v8178_v11 = vmax.f32 %v8176_v31, %v8177_v57  ;;  %v8189_v55 = vrot.slane %v8188_v29, 2  ;;  %v8217_v36 = vrot.slane %v8216_v54, 2  ;;  %v9030_v57 = vld [vmem:[%s17068_s5 + $0x138] sm:$0xff]  ;;  %9450 = vmatprep.subr.mxu1 %v9032_v27 }
 0x58b   :  { %v15543_v17 = vsel %vm8521_vm12, %v8199_v47, %v8171_v20  ;;  %v7841_v3 = vrot.slane %v14911_v18, %v12345_v46  ;;  %v8206_v62 = vmax.f32 %v8204_v9, %v8205_v6  ;;  %v8445_v52 = vsel %vm7939_vm11, %v15534_v42, -inf  ;;  %v11067_v18 = vld [vmem:[%s17068_s5 + $0x340] sm:$0xff]  ;;  %v11065_v20 = vld [vmem:[%s17068_s5 + $0x330] sm:$0xff] }
 0x58c   :  { %8559 = vrot.lane.b32.xlu1 %v15543_v17, %s11696_s27  ;;  %8547 = vrot.lane.b32.xlu0 %v15543_v17, %s11695_s1  ;;  %v8213_v8 = vmax.f32 %v8211_v10, %v8212_v48  ;;  %v7817_v24 = vcombine.high %v7816_v13, %v7816_v13  ;;  %v8190_v4 = vmax.f32 %v8188_v29, %v8189_v55  ;;  %v8446_v12 = vrot.slane %v8445_v52, 4  ;;  %v9031_v13 = vld [vmem:[%s17068_s5 + $0x140] sm:$0xff]  ;;  %v11062_v10 = vld [vmem:[%s17068_s5 + $0x318] sm:$0xff] }
 0x58d   :  { %v8218_v60 = vmax.f32 %v8216_v54, %v8217_v36  ;;  %v7849_v7 = vrot.slane %v7841_v3, %v12345_v46  ;;  %v15570_v14 = vsel %vm8521_vm12, %v8206_v62, %v8178_v11  ;;  %v7842_v43 = vcombine.high %v7841_v3, %v7841_v3  ;;  %9275 = vmatpush2.msra.mxu0 %v11067_v18  ;;  %v9028_v62 = vld [vmem:[%s17068_s5 + $0x128] sm:$0xff] }
 0x58e   :  { %v15573_v26 = vsel %vm8521_vm12, %v8213_v8, %v8185_v19  ;;  %v7831_v32 = vrot.slane %v7817_v24, %v12345_v46  ;;  %v8191_v41 = vrot.slane %v8190_v4, 1  ;;  %v8447_v38 = vmax.f32 %v8445_v52, %v8446_v12  ;;  %9276 = vmatprep.subr.mxu0 %v11066_v5  ;;  %9451 = vmatpush2.msra.mxu1 %v9031_v13 }
 0x58f   :  { %v8219_v16 = vrot.slane %v8218_v60, 1  ;;  %v8473_v37 = vsel %vm7939_vm11, %v7849_v7, -inf  ;;  %v15594_v39 = vrot.slane %v7842_v43, %v12345_v46  ;;  %v7832_v30 = vcombine.high %v15534_v42, %v15534_v42  ;;  %9277 = vmatpush2.msra.mxu0 %v11065_v20  ;;  %9452 = vmatprep.subr.mxu1 %v9030_v57 }
 0x590   :  { %8669 = vrot.lane.b32.xlu1 %v15570_v14, %s11697_s28  ;;  %8607 = vrot.lane.b32.xlu0 %v15570_v14, %s11694_s0  ;;  %v8474_v51 = vrot.slane %v8473_v37, 4  ;;  %v8452_v56 = vsel %vm7939_vm11, %v7831_v32, -inf  ;;  %v8192_v23 = vmax.f32 %v8190_v4, %v8191_v41  ;;  %v8448_v53 = vrot.slane %v8447_v38, 2 }
 0x591   :  { %v8220_v15 = vmax.f32 %v8218_v60, %v8219_v16  ;;  %v8453_v50 = vrot.slane %v8452_v56, 4  ;;  %v8480_v31 = vsel %vm7939_vm11, %v15594_v39, -inf  ;;  %v7857_v0 = vcombine.high %v7849_v7, %v7849_v7  ;;  %9278 = vmatprep.subr.mxu0 %v11064_v28  ;;  %v11059_v60 = vld [vmem:[%s17068_s5 + $0x300] sm:$0xff]  ;;  %9453 = vmatpush2.msra.mxu1 %v9029_v45 }
 0x592   :  { %v8475_v25 = vmax.f32 %v8473_v37, %v8474_v51  ;;  %v8459_v59 = vsel %vm7939_vm11, %v7832_v30, -inf  ;;  %v8449_v21 = vmax.f32 %v8447_v38, %v8448_v53  ;;  %v8481_v9 = vrot.slane %v8480_v31, 4  ;;  %9279 = vmatpush2.msra.mxu0 %v11063_v34  ;;  %v9027_v7 = vld [vmem:[%s17068_s5 + $0x120] sm:$0xff]  ;;  %v15656_v16 = vpop.permute.xlu1 %8605  ;;  %9454 = vmatprep.subr.mxu1 %v9028_v62  ;;  %v11058_v38 = vld [vmem:[%s17068_s5 + $0x2f8] sm:$0xff]  ;;  %v11056_v53 = vld [vmem:[%s17068_s5 + $0x2e8] sm:$0xff] }
 0x593   :  { %v15619_v2 = vsel %vm8521_vm12, %v8220_v15, %v8192_v23  ;;  %v8454_v47 = vmax.f32 %v8452_v56, %v8453_v50  ;;  %v8460_v54 = vrot.slane %v8459_v59, 4  ;;  %v8487_v42 = vsel %vm7939_vm11, %v7857_v0, -inf  ;;  %9280 = vmatprep.subr.mxu0 %v11062_v10  ;;  %v9026_v37 = vld [vmem:[%s17068_s5 + $0x118] sm:$0xff]  ;;  %9455 = vmatpush2.msra.mxu1 %v9027_v7  ;;  %v9025_v56 = vld [vmem:[%s17068_s5 + $0x110] sm:$0xff] }
 0x594   :  { %8825 = vrot.lane.b32.xlu1 %v15543_v17, %s11694_s0  ;;  %8671 = vrot.lane.b32.xlu0 %v15573_v26, %s11697_s28  ;;  %v8476_v29 = vrot.slane %v8475_v25, 2  ;;  %v7833_v1 = vcombine.high %v7831_v32, %v7831_v32  ;;  %v8450_v35 = vrot.slane %v8449_v21, 1  ;;  %v8482_v19 = vmax.f32 %v8480_v31, %v8481_v9  ;;  %v11120_v9 = vld [vmem:[%s17068_s5 + $0x4b8] sm:$0xff] }
 0x595   :  { %v8455_v6 = vrot.slane %v8454_v47, 2  ;;  %v8488_v48 = vrot.slane %v8487_v42, 4  ;;  %v8461_v55 = vmax.f32 %v8459_v59, %v8460_v54  ;;  %v7858_v36 = vcombine.high %v15594_v39, %v15594_v39  ;;  %9281 = vmatpush2.msra.mxu0 %v11061_v44  ;;  %v11057_v39 = vld [vmem:[%s17068_s5 + $0x2f0] sm:$0xff]  ;;  %9456 = vmatprep.subr.mxu1 %v9026_v37  ;;  %v11055_v59 = vld [vmem:[%s17068_s5 + $0x2e0] sm:$0xff] }
 0x596   :  { %v8477_v11 = vmax.f32 %v8475_v25, %v8476_v29  ;;  %v8466_v3 = vsel %vm7961_vm0, %v7833_v1, -inf  ;;  %v8451_v8 = vmax.f32 %v8449_v21, %v8450_v35  ;;  %v8483_v24 = vrot.slane %v8482_v19, 2  ;;  %9282 = vmatprep.subr.mxu0 %v11060_v61  ;;  %9457 = vmatpush2.msra.mxu1 %v9025_v56  ;;  %v8546_v21 = vpop.permute.xlu0 %8545  ;;  %v8666_v54 = vpop.permute.xlu1 %8665 }
 0x597   :  { %v8456_v52 = vmax.f32 %v8454_v47, %v8455_v6  ;;  %v8489_v4 = vmax.f32 %v8487_v42, %v8488_v48  ;;  %v8462_v18 = vrot.slane %v8461_v55, 2  ;;  %v8467_v49 = vrot.slane %v8466_v3, 4  ;;  %9283 = vmatpush2.msra.mxu0 %v11059_v60  ;;  %v9023_v47 = vld [vmem:[%s17068_s5 + $0x100] sm:$0xff]  ;;  %v11183_v42 = vld [vmem:[%s17068_s5 + $0x698] sm:$0xff] }
 0x598   :  { %8708 = vrot.lane.b32.xlu1 %v15573_v26, %s11698_s29  ;;  %8696 = vrot.lane.b32.xlu0 %v15573_v26, %s11699_s30  ;;  %v8478_v12 = vrot.slane %v8477_v11, 1  ;;  %v8494_v32 = vsel %vm7961_vm0, %v7858_v36, -inf  ;;  %v8484_v5 = vmax.f32 %v8482_v19, %v8483_v24  ;;  %vm8808_vm7 = vcmask 326656  }
 0x599   :  { %v8457_v43 = vrot.slane %v8456_v52, 1  ;;  %v8490_v63 = vrot.slane %v8489_v4, 2  ;;  %v8495_v41 = vrot.slane %v8494_v32, 4  ;;  %v8463_v33 = vmax.f32 %v8461_v55, %v8462_v18  ;;  %9284 = vmatprep.subr.mxu0 %v11058_v38 }
 0x59a   :  { %v8479_v20 = vmax.f32 %v8477_v11, %v8478_v12  ;;  %v8468_v51 = vmax.f32 %v8466_v3, %v8467_v49  ;;  %v8485_v30 = vrot.slane %v8484_v5, 1  ;;  %9285 = vmatpush2.msra.mxu0 %v11057_v39  ;;  %v8558_v44 = vpop.permute.xlu0 %8557  ;;  %v8831_v3 = vsel %vm2593_vm10, %v15621_v40, %v15656_v16 }
 0x59b   :  { %v8491_v23 = vmax.f32 %v8489_v4, %v8490_v63  ;;  %v8496_v15 = vmax.f32 %v8494_v32, %v8495_v41  ;;  %v8464_v28 = vrot.slane %v8463_v33, 1  ;;  %v8458_v25 = vmax.f32 %v8456_v52, %v8457_v43  ;;  %9286 = vmatprep.subr.mxu0 %v11056_v53 }
 0x59c   :  { %8841 = vrot.lane.b32.xlu1 %v15573_v26, %s11700_s12  ;;  %8619 = vrot.lane.b32.xlu0 %v15570_v14, %s11687_s22  ;;  %v15678_v50 = vsel %vm8521_vm12, %v8479_v20, %v8451_v8  ;;  %v8469_v27 = vrot.slane %v8468_v51, 2  ;;  %v8486_v31 = vmax.f32 %v8484_v5, %v8485_v30  ;;  %v9024_v14 = vld [vmem:[%s17068_s5 + $0x108] sm:$0xff]  ;;  %v8779_v8 = vsel %vm8778_vm1, %v14942_v58, %v8546_v21 }
 0x59d   :  { %v8492_v26 = vrot.slane %v8491_v23, 1  ;;  %v8497_v0 = vrot.slane %v8496_v15, 2  ;;  %v8465_v34 = vmax.f32 %v8463_v33, %v8464_v28  ;;  %9458 = vmatprep.subr.mxu1 %v9024_v14  ;;  %9287 = vmatpush2.msra.mxu0 %v11055_v59  ;;  %v8784_v52 = vsel %vm8783_vm2, %v8779_v8, %v8558_v44 }
 0x59e   :  { %v8470_v13 = vmax.f32 %v8468_v51, %v8469_v27  ;;  %v8604_v10 = vsel %vm8521_vm12, %v8486_v31, %v8458_v25  ;;  %9459 = vmatpush2.msra.mxu1 %v9023_v47  ;;  %9615 = vmatprep.subr.mxu0 %v11120_v9  ;;  %v8789_v58 = vsel %vm8788_vm5, %v8784_v52, %v15656_v16  ;;  %vm8818_vm13 = vcmask 719872  }
 0x59f   :  { %v8493_v57 = vmax.f32 %v8491_v23, %v8492_v26  ;;  %v8498_v29 = vmax.f32 %v8496_v15, %v8497_v0  ;;  %9838 = vmatprep.subr.mxu1 %v11183_v42  ;;  %vm9219_vm14 = vcmask 916480  }
 0x5a0   :  { %8768 = vrot.lane.b32.xlu1 %v15619_v2, %s11701_s2  ;;  %8756 = vrot.lane.b32.xlu0 %v15619_v2, %s11700_s12  ;;  %v8471_v1 = vrot.slane %v8470_v13, 1  ;;  %v8707_v11 = vpop.permute.xlu1 %8706  ;;  %v8668_v55 = vpop.permute.xlu0 %8667 }
 0x5a1   :  { %v8664_v35 = vsel %vm8521_vm12, %v8493_v57, %v8465_v34  ;;  %v8499_v6 = vrot.slane %v8498_v29, 1  ;;  %v8682_v4 = vsel %vm8681_vm3, %v8666_v54, %v8668_v55 }
 0x5a2   :  { %v8472_v19 = vmax.f32 %v8470_v13, %v8471_v1 }
 0x5a3   :  { %v8500_v48 = vmax.f32 %v8498_v29, %v8499_v6 }
 0x5a4   :  { %8853 = vrot.lane.b32.xlu0 %v15619_v2, %s11702_s23  ;;  %8551 = vrot.lane.b32.xlu1 %v15678_v50, %s11695_s1  ;;  %v8618_v36 = vpop.permute.xlu1 %8617  ;;  %v8863_v2 = vsel %vm8778_vm1, %v8546_v21, %v8558_v44  ;;  %v8695_v61 = vpop.permute.xlu0 %8694 }
 0x5a5   :  { %v8753_v45 = vsel %vm8521_vm12, %v8500_v48, %v8472_v19  ;;  %v8867_v24 = vsel %vm8783_vm2, %v8863_v2, %v8831_v3  ;;  %v8804_v60 = vsel %vm8803_vm4, %v8682_v4, %v8695_v61  ;;  %v8883_v7 = vsel %vm8803_vm4, %v8695_v61, %v8707_v11 }
 0x5a6   :  { %v8871_v40 = vsel %vm8788_vm5, %v8867_v24, %v8618_v36  ;;  %v8794_v12 = vsel %vm8793_vm6, %v8789_v58, %v8618_v36  ;;  %v8809_v43 = vsel %vm8808_vm7, %v8804_v60, %v8707_v11 }
 0x5a7   :  { %v8875_v18 = vsel %vm8793_vm6, %v8871_v40, %v8666_v54  ;;  %v8799_v16 = vsel %vm8798_vm8, %v8794_v12, %v8666_v54 }
 0x5a8   :  { %8563 = vrot.lane.b32.xlu0 %v15678_v50, %s11696_s27  ;;  %8611 = vrot.lane.b32.xlu1 %v8604_v10, %s11694_s0  ;;  %v8840_v62 = vpop.permute.xlu1 %8839  ;;  %v8879_v38 = vsel %vm8798_vm8, %v8875_v18, %v8695_v61 }
 0x5a9   :  { %v8887_v5 = vsel %vm8808_vm7, %v8883_v7, %v8840_v62  ;;  %v8899_v51 = vmax.f32 %v8799_v16, %v8879_v38 }
 0x5ac   :  { %8677 = vrot.lane.b32.xlu0 %v8604_v10, %s11697_s28  ;;  %8679 = vrot.lane.b32.xlu1 %v8664_v35, %s11697_s28 }
 0x5b0   :  { %8829 = vrot.lane.b32.xlu0 %v15678_v50, %s11694_s0  ;;  %8700 = vrot.lane.b32.xlu1 %v8664_v35, %s11699_s30 }
 0x5b1   :  { %v8755_v49 = vpop.permute.xlu0 %8754 }
 0x5b2   :  { %v8767_v32 = vpop.permute.xlu1 %8766  ;;  %v8814_v63 = vsel %vm8813_vm9, %v8809_v43, %v8755_v49 }
 0x5b3   :  { %v8891_v41 = vsel %vm8813_vm9, %v8887_v5, %v8767_v32  ;;  %v8819_v37 = vsel %vm8818_vm13, %v8814_v63, %v8767_v32 }
 0x5b4   :  { %8712 = vrot.lane.b32.xlu0 %v8664_v35, %s11698_s29  ;;  %8623 = vrot.lane.b32.xlu1 %v8604_v10, %s11687_s22 }
 0x5b5   :  { %v8852_v20 = vpop.permute.xlu0 %8851 }
 0x5b6   :  { %v8895_v33 = vsel %vm8818_vm13, %v8891_v41, %v8852_v20 }
 0x5b7   :  { %v8900_v39 = vmax.f32 %v8819_v37, %v8895_v33 }
 0x5b8   :  { %8845 = vrot.lane.b32.xlu0 %v8664_v35, %s11700_s12  ;;  %8760 = vrot.lane.b32.xlu1 %v8753_v45, %s11700_s12 }
 0x5b9   :  { %v8912_v56 = vcombine.high %v8899_v51, %v8900_v39  ;;  %v8911_v9 = vcombine.low %v8899_v51, %v8900_v39 }
 0x5bb   :  { %v8926_v30 = vrot.slane %v8912_v56, %v12345_v46  ;;  %v8919_v29 = vrot.slane %v8911_v9, %v12345_v46 }
 0x5bc   :  { %8772 = vrot.lane.b32.xlu0 %v8753_v45, %s11701_s2  ;;  %8857 = vrot.lane.b32.xlu1 %v8753_v45, %s11702_s23 }
 0x5bd   :  { %v9051_v23 = vcombine.high %v8926_v30, %v8926_v30  ;;  %v15749_v53 = vrot.slane %v8926_v30, %v12345_v46  ;;  %v8927_v6 = vcombine.high %v8919_v29, %v8919_v29  ;;  %v8934_v52 = vrot.slane %v8919_v29, %v12345_v46 }
 0x5bf   :  { %v15746_v15 = vrot.slane %v9051_v23, %v12345_v46  ;;  %v8948_v3 = vrot.slane %v8927_v6, %v12345_v46  ;;  %v8949_v32 = vcombine.high %v8934_v52, %v8934_v52  ;;  %v9473_v38 = vcombine.high %v15749_v53, %v15749_v53 }
 0x5c0   :  { %v8550_v14 = vpop.permute.xlu0 %8549  ;;  %v8562_v59 = vpop.permute.xlu1 %8561 }
 0x5c1   :  { %v9536_v28 = vcombine.low %v15749_v53, %v15746_v15  ;;  %v11276_v27 = vcombine.high %v15749_v53, %v15746_v15  ;;  %v8865_v1 = vsel %vm8778_vm1, %v8550_v14, %v8562_v59  ;;  %v8781_v48 = vsel %vm8778_vm1, %v15223_v22, %v8550_v14 }
 0x5c2   :  { %v8786_v11 = vsel %vm8783_vm2, %v8781_v48, %v8562_v59  ;;  %v8950_v18 = vcombine.high %v8948_v3, %v8948_v3  ;;  %v9301_v43 = vcombine.low %v8934_v52, %v8948_v3  ;;  %v11086_v5 = vcombine.high %v8934_v52, %v8948_v3 }
 0x5c3   :  { %v15756_v25 = vrot.slane %v9536_v28, %v12345_v46  ;;  %v15759_v31 = vrot.slane %v11276_v27, %v12345_v46  ;;  %v9128_v51 = vcombine.low %v8948_v3, %v8949_v32  ;;  %v9759_v14 = vcombine.low %v15746_v15, %v9473_v38 }
 0x5c4   :  { %v8828_v34 = vpop.permute.xlu0 %8827  ;;  %v9129_v37 = vcombine.low %v8950_v18, %v15749_v53  ;;  %v15793_v39 = vrot.slane %v11086_v5, %v12345_v46  ;;  %v9311_v56 = vrot.slane %v9301_v43, %v12345_v46 }
 0x5c5   :  { %v10030_v26 = vcombine.low %v15756_v25, %v15759_v31  ;;  %v10031_v0 = vcombine.high %v15756_v25, %v15759_v31  ;;  %v11155_v31 = vld [vmem:[%s17068_s5 + $0x5b8] sm:$0xff] }
 0x5c6   :  { %v9333_v9 = vcombine.low %v9311_v56, %v15793_v39  ;;  %v9553_v48 = vcombine.high %v15793_v39, %v15756_v25 }
 0x5d0   :  { %v8676_v13 = vpop.permute.xlu1 %8675 }
 0x5d4   :  { %v8711_v10 = vpop.permute.xlu1 %8710 }
 0x5d8   :  { %v8844_v42 = vpop.permute.xlu1 %8843 }
 0x5e0   :  { %v8610_v21 = vpop.permute.xlu0 %8609 }
 0x5e1   :  { %v8833_v54 = vsel %vm2593_vm10, %v8828_v34, %v8610_v21  ;;  %v8791_v2 = vsel %vm8788_vm5, %v8786_v11, %v8610_v21  ;;  %v15803_v21 = vrot.slane %v9129_v37, %v12345_v46 }
 0x5e2   :  { %v8869_v19 = vsel %vm8783_vm2, %v8865_v1, %v8833_v54  ;;  %v15818_v1 = vrot.slane %v9759_v14, %v12345_v46 }
 0x5e4   :  { %v8674_v47 = vpop.permute.xlu0 %8673 }
 0x5e5   :  { %v8684_v44 = vsel %vm8681_vm3, %v8674_v47, %v8676_v13 }
 0x5e8   :  { %v8699_v57 = vpop.permute.xlu0 %8698 }
 0x5e9   :  { %v8806_v55 = vsel %vm8803_vm4, %v8684_v44, %v8699_v57  ;;  %v8885_v36 = vsel %vm8803_vm4, %v8699_v57, %v8711_v10 }
 0x5ea   :  { %v8811_v24 = vsel %vm8808_vm7, %v8806_v55, %v8711_v10  ;;  %v8889_v4 = vsel %vm8808_vm7, %v8885_v36, %v8844_v42 }
 0x5ec   :  { %v8622_v35 = vpop.permute.xlu0 %8621 }
 0x5ed   :  { %v8873_v45 = vsel %vm8788_vm5, %v8869_v19, %v8622_v35  ;;  %v8796_v62 = vsel %vm8793_vm6, %v8791_v2, %v8622_v35  ;;  %v9334_v19 = vcombine.high %v9311_v56, %v15793_v39  ;;  %v9343_v2 = vrot.slane %v9333_v9, %v12345_v46 }
 0x5ee   :  { %v8877_v8 = vsel %vm8793_vm6, %v8873_v45, %v8674_v47  ;;  %v8801_v58 = vsel %vm8798_vm8, %v8796_v62, %v8674_v47  ;;  %v9138_v47 = vrot.slane %v9128_v51, %v12345_v46 }
 0x5ef   :  { %v8881_v7 = vsel %vm8798_vm8, %v8877_v8, %v8699_v57 }
 0x5f0   :  { %v8903_v41 = vmax.f32 %v8801_v58, %v8881_v7  ;;  %v9160_v11 = vcombine.low %v9138_v47, %v15803_v21  ;;  %v9161_v36 = vcombine.high %v9138_v47, %v15803_v21  ;;  %v15848_v7 = vrot.slane %v9553_v48, %v12345_v46 }
 0x5f2   :  { %v8759_v61 = vpop.permute.xlu1 %8758  ;;  %v8771_v22 = vpop.permute.xlu0 %8770  ;;  %v9170_v43 = vrot.slane %v9160_v11, %v12345_v46  ;;  %v9177_v5 = vrot.slane %v9161_v36, %v12345_v46 }
 0x5f3   :  { %v8816_v40 = vsel %vm8813_vm9, %v8811_v24, %v8759_v61  ;;  %v8893_v60 = vsel %vm8813_vm9, %v8889_v4, %v8771_v22 }
 0x5f4   :  { %v8821_v12 = vsel %vm8818_vm13, %v8816_v40, %v8771_v22  ;;  %v9350_v40 = vrot.slane %v9334_v19, %v12345_v46 }
 0x5f6   :  { %v8856_v49 = vpop.permute.xlu1 %8855 }
 0x5f7   :  { %v8897_v63 = vsel %vm8818_vm13, %v8893_v60, %v8856_v49 }
 0x5f8   :  { %v8904_v16 = vmax.f32 %v8821_v12, %v8897_v63 }
 0x5fa   :  { %v8951_v20 = vcombine.low %v8903_v41, %v8904_v16  ;;  %v8952_v33 = vcombine.high %v8903_v41, %v8904_v16 }
 0x5fc   :  { %v8959_v30 = vrot.slane %v8951_v20, %v12345_v46  ;;  %v8966_v23 = vrot.slane %v8952_v33, %v12345_v46 }
 0x5fe   :  { %v15798_v28 = vpop.permute.xlu1 %8559  ;;  %v8548_v27 = vpop.permute.xlu0 %8547  ;;  %v8967_v59 = vcombine.high %v8959_v30, %v8959_v30  ;;  %v8974_v34 = vrot.slane %v8959_v30, %v12345_v46  ;;  %v9059_v13 = vcombine.high %v8966_v23, %v8966_v23  ;;  %v15821_v35 = vrot.slane %v8966_v23, %v12345_v46 }
 0x5ff   :  { %v8780_v51 = vsel %vm8778_vm1, %v15543_v17, %v8548_v27  ;;  %v8864_v47 = vsel %vm8778_vm1, %v8548_v27, %v15798_v28  ;;  %v11119_v17 = vld [vmem:[%s17068_s5 + $0x4b0] sm:$0xff] }
 0x600   :  { %v15808_v10 = vrot.slane %v8967_v59, %v12345_v46  ;;  %v8989_v57 = vcombine.high %v8974_v34, %v8974_v34  ;;  %v15811_v29 = vrot.slane %v9059_v13, %v12345_v46  ;;  %v9303_v6 = vcombine.low %v15749_v53, %v8974_v34  ;;  %v11182_v27 = vld [vmem:[%s17068_s5 + $0x690] sm:$0xff] }
 0x601   :  { %v11149_v32 = vcombine.high %v15749_v53, %v8974_v34 }
 0x602   :  { %v15813_v54 = vpop.permute.xlu1 %8669  ;;  %v15815_v42 = vpop.permute.xlu0 %8607  ;;  %v9130_v44 = vcombine.low %v15746_v15, %v15808_v10  ;;  %v11083_v45 = vcombine.high %v8974_v34, %v15808_v10  ;;  %v9304_v55 = vcombine.low %v15808_v10, %v8989_v57  ;;  %v9194_v3 = vcombine.low %v15821_v35, %v15811_v29 }
 0x603   :  { %v8990_v61 = vcombine.high %v15808_v10, %v15808_v10  ;;  %v9325_v24 = vrot.slane %v9303_v6, %v12345_v46  ;;  %v11212_v53 = vcombine.high %v15746_v15, %v15808_v10  ;;  %v15871_v13 = vrot.slane %v11149_v32, %v12345_v46 }
 0x604   :  { %v9152_v22 = vrot.slane %v9130_v44, %v12345_v46  ;;  %v9159_v52 = vrot.slane %v11083_v45, %v12345_v46  ;;  %v9332_v4 = vrot.slane %v9304_v55, %v12345_v46  ;;  %v15844_v60 = vrot.slane %v9194_v3, %v12345_v46 }
 0x605   :  { %v9367_v58 = vcombine.low %v8990_v61, %v15821_v35  ;;  %v9776_v57 = vcombine.high %v15803_v21, %v15818_v1  ;;  %v8785_v6 = vsel %vm8783_vm2, %v8780_v51, %v15798_v28  ;;  %v15892_v11 = vrot.slane %v11212_v53, %v12345_v46  ;;  %v11178_v51 = vld [vmem:[%s17068_s5 + $0x670] sm:$0xff] }
 0x606   :  { %v8826_v62 = vpop.permute.xlu1 %8825  ;;  %v8672_v8 = vpop.permute.xlu0 %8671  ;;  %v9162_v12 = vcombine.low %v9152_v22, %v9159_v52  ;;  %v9163_v18 = vcombine.high %v9152_v22, %v9159_v52  ;;  %v9335_v49 = vcombine.low %v9325_v24, %v9332_v4  ;;  %v9336_v63 = vcombine.high %v9325_v24, %v9332_v4  ;;  %v11117_v22 = vld [vmem:[%s17068_s5 + $0x4a0] sm:$0xff]  ;;  %v11116_v24 = vld [vmem:[%s17068_s5 + $0x498] sm:$0xff] }
 0x607   :  { %v15854_v41 = vrot.slane %v9367_v58, %v12345_v46  ;;  %v8832_v56 = vsel %vm2593_vm10, %v8826_v62, %v15815_v42  ;;  %v9202_v23 = vcombine.high %v15844_v60, %v15844_v60  ;;  %v8683_v55 = vsel %vm8681_vm3, %v15813_v54, %v8672_v8  ;;  %v11181_v8 = vld [vmem:[%s17068_s5 + $0x688] sm:$0xff] }
 0x608   :  { %v9184_v37 = vrot.slane %v9162_v12, %v12345_v46  ;;  %v9191_v20 = vrot.slane %v9163_v18, %v12345_v46  ;;  %v9357_v33 = vrot.slane %v9335_v49, %v12345_v46  ;;  %v9364_v30 = vrot.slane %v9336_v63, %v12345_v46  ;;  %v11179_v18 = vld [vmem:[%s17068_s5 + $0x678] sm:$0xff] }
 0x609   :  { %v9375_v10 = vcombine.high %v15854_v41, %v15854_v41  ;;  %v8868_v48 = vsel %vm8783_vm2, %v8864_v47, %v8832_v56  ;;  %v9555_v45 = vcombine.high %v15871_v13, %v15854_v41  ;;  %v9216_v36 = vrot.slane %v9202_v23, %v12345_v46 }
 0x60a   :  { %v8709_v16 = vpop.permute.xlu1 %8708  ;;  %v15856_v38 = vpop.permute.xlu0 %8696  ;;  %v9193_v14 = vcombine.low %v9177_v5, %v9191_v20  ;;  %v9192_v59 = vcombine.low %v9170_v43, %v9184_v37  ;;  %v9365_v34 = vcombine.low %v9343_v2, %v9357_v33  ;;  %v9366_v9 = vcombine.low %v9350_v40, %v9364_v30  ;;  %v11118_v2 = vld [vmem:[%s17068_s5 + $0x4a8] sm:$0xff]  ;;  %v11115_v20 = vld [vmem:[%s17068_s5 + $0x490] sm:$0xff] }
 0x60b   :  { %v8790_v3 = vsel %vm8788_vm5, %v8785_v6, %v15815_v42  ;;  %v8805_v61 = vsel %vm8803_vm4, %v8683_v55, %v15856_v38  ;;  %v9389_v62 = vrot.slane %v9375_v10, %v12345_v46  ;;  %v11180_v42 = vld [vmem:[%s17068_s5 + $0x680] sm:$0xff]  ;;  %v9209_v4 = vrot.slane %v15844_v60, %v12345_v46  ;;  %v11112_v6 = vld [vmem:[%s17068_s5 + $0x478] sm:$0xff] }
 0x60c   :  { %11084 = vmatprep.mubr.msk.f32.mxu0 %vm9219_vm14, %v9193_v14  ;;  %11087 = vmatprep.mubr.msk.f32.mxu1 %vm9219_vm14, %v9366_v9  ;;  %v9792_v40 = vrot.slane %v9776_v57, %v12345_v46  ;;  %v9583_v49 = vrot.slane %v9555_v45, %v12345_v46  ;;  %v9778_v32 = vcombine.high %v15892_v11, %v15844_v60  ;;  %v11177_v14 = vld [vmem:[%s17068_s5 + $0x668] sm:$0xff]  ;;  %v11176_v57 = vld [vmem:[%s17068_s5 + $0x660] sm:$0xff] }
 0x60d   :  { %9289 = vmatmul.mubr.f32.vlgmr.msra.gmra.mxu0 %v9192_v59  ;;  %9461 = vmatmul.mubr.f32.vlgmr.msra.gmra.mxu1 %v9365_v34  ;;  %v8884_v43 = vsel %vm8803_vm4, %v15856_v38, %v8709_v16  ;;  %v8810_v63 = vsel %vm8808_vm7, %v8805_v61, %v8709_v16  ;;  %v9382_v37 = vrot.slane %v15854_v41, %v12345_v46  ;;  %v11114_v16 = vld [vmem:[%s17068_s5 + $0x488] sm:$0xff]  ;;  %v11108_v61 = vld [vmem:[%s17068_s5 + $0x458] sm:$0xff] }
 0x60e   :  { %v8842_v19 = vpop.permute.xlu1 %8841  ;;  %v8620_v44 = vpop.permute.xlu0 %8619  ;;  %9616 = vmatpush1.msra.mxu0 %v11119_v17  ;;  %9839 = vmatpush1.msra.mxu1 %v11182_v27  ;;  %v9806_v56 = vrot.slane %v9778_v32, %v12345_v46  ;;  %v11213_v59 = vcombine.high %v15821_v35, %v15811_v29  ;;  %v9585_v9 = vcombine.low %v15848_v7, %v9583_v49  ;;  %v11174_v27 = vld [vmem:[%s17068_s5 + $0x650] sm:$0xff]  ;;  %v11110_v45 = vld [vmem:[%s17068_s5 + $0x468] sm:$0xff]  ;;  %v11104_v49 = vld [vmem:[%s17068_s5 + $0x438] sm:$0xff] }
 0x60f   :  { %v8872_v28 = vsel %vm8788_vm5, %v8868_v48, %v8620_v44  ;;  %v8795_v52 = vsel %vm8793_vm6, %v8790_v3, %v8620_v44  ;;  %11085 = vmatprep.mubr.msk.f32.mxu0 %vm9219_vm14, %v9216_v36  ;;  %11088 = vmatprep.mubr.msk.f32.mxu1 %vm9219_vm14, %v9389_v62  ;;  %v8888_v33 = vsel %vm8808_vm7, %v8884_v43, %v8842_v19  ;;  %v11175_v48 = vld [vmem:[%s17068_s5 + $0x658] sm:$0xff]  ;;  %v11111_v44 = vld [vmem:[%s17068_s5 + $0x470] sm:$0xff]  ;;  %v11173_v36 = vld [vmem:[%s17068_s5 + $0x648] sm:$0xff] }
 0x610   :  { %v8876_v58 = vsel %vm8793_vm6, %v8872_v28, %v15813_v54  ;;  %9617 = vmatprep.subr.mxu0 %v11118_v2  ;;  %9840 = vmatprep.subr.mxu1 %v11181_v8  ;;  %v8800_v30 = vsel %vm8798_vm8, %v8795_v52, %v15813_v54  ;;  %v11113_v54 = vld [vmem:[%s17068_s5 + $0x480] sm:$0xff]  ;;  %v9808_v10 = vcombine.low %v9792_v40, %v9806_v56  ;;  %v11171_v8 = vld [vmem:[%s17068_s5 + $0x638] sm:$0xff]  ;;  %v11170_v52 = vld [vmem:[%s17068_s5 + $0x630] sm:$0xff] }
 0x611   :  { %9618 = vmatpush1.msra.mxu0 %v11117_v22  ;;  %9841 = vmatpush1.msra.mxu1 %v11180_v42  ;;  %v8880_v23 = vsel %vm8798_vm8, %v8876_v58, %v15856_v38  ;;  %v9474_v55 = vcombine.high %v15821_v35, %v15821_v35  ;;  %v11109_v2 = vld [vmem:[%s17068_s5 + $0x460] sm:$0xff]  ;;  %v11107_v22 = vld [vmem:[%s17068_s5 + $0x450] sm:$0xff]  ;;  %v11106_v42 = vld [vmem:[%s17068_s5 + $0x448] sm:$0xff] }
 0x612   :  { %v8757_v12 = vpop.permute.xlu0 %8756  ;;  %v8769_v5 = vpop.permute.xlu1 %8768  ;;  %9619 = vmatprep.subr.mxu0 %v11116_v24  ;;  %9842 = vmatprep.subr.mxu1 %v11179_v18  ;;  %v8901_v7 = vmax.f32 %v8800_v30, %v8880_v23  ;;  %v11172_v3 = vld [vmem:[%s17068_s5 + $0x640] sm:$0xff]  ;;  %v11169_v58 = vld [vmem:[%s17068_s5 + $0x628] sm:$0xff]  ;;  %v11100_v23 = vld [vmem:[%s17068_s5 + $0x418] sm:$0xff] }
 0x613   :  { %v8815_v53 = vsel %vm8813_vm9, %v8810_v63, %v8757_v12  ;;  %9295 = vmatmul.mubr.f32.gmra.mxu0 %v9209_v4  ;;  %v8892_v34 = vsel %vm8813_vm9, %v8888_v33, %v8769_v5  ;;  %9467 = vmatmul.mubr.f32.gmra.mxu1 %v9382_v37  ;;  %v9586_v24 = vcombine.low %v15811_v29, %v9474_v55  ;;  %v11105_v12 = vld [vmem:[%s17068_s5 + $0x440] sm:$0xff]  ;;  %v11103_v63 = vld [vmem:[%s17068_s5 + $0x430] sm:$0xff]  ;;  %v11094_v55 = vld [vmem:[%s17068_s5 + $0x3e8] sm:$0xff] }
 0x614   :  { %9620 = vmatpush1.msra.mxu0 %v11115_v20  ;;  %9843 = vmatpush1.msra.mxu1 %v11178_v51  ;;  %v8820_v38 = vsel %vm8818_vm13, %v8815_v53, %v8769_v5  ;;  %v11168_v18 = vld [vmem:[%s17068_s5 + $0x620] sm:$0xff]  ;;  %v11167_v5 = vld [vmem:[%s17068_s5 + $0x618] sm:$0xff]  ;;  %v11166_v37 = vld [vmem:[%s17068_s5 + $0x610] sm:$0xff] }
 0x615   :  { %9621 = vmatprep.subr.mxu0 %v11114_v16  ;;  %11150 = vmatprep.mubr.msk.f32.mxu0 %vm9219_vm14, %v9585_v9  ;;  %v11102_v20 = vld [vmem:[%s17068_s5 + $0x428] sm:$0xff]  ;;  %v16045_v33 = vrot.slane %v9586_v24, %v12345_v46  ;;  %v11101_v56 = vld [vmem:[%s17068_s5 + $0x420] sm:$0xff]  ;;  %v11162_v9 = vld [vmem:[%s17068_s5 + $0x5f0] sm:$0xff] }
 0x616   :  { %v8854_v47 = vpop.permute.xlu0 %8853  ;;  %9844 = vmatprep.subr.mxu1 %v11177_v14  ;;  %11214 = vmatprep.mubr.msk.f32.mxu1 %vm9219_vm14, %v9808_v10  ;;  %v11165_v16 = vld [vmem:[%s17068_s5 + $0x608] sm:$0xff]  ;;  %v11164_v30 = vld [vmem:[%s17068_s5 + $0x600] sm:$0xff] }
 0x617   :  { %v8896_v17 = vsel %vm8818_vm13, %v8892_v34, %v8854_v47  ;;  %9622 = vmatpush1.msra.mxu0 %v11113_v54  ;;  %9845 = vmatpush1.msra.mxu1 %v11176_v57  ;;  %v11163_v34 = vld [vmem:[%s17068_s5 + $0x5f8] sm:$0xff]  ;;  %v11099_v47 = vld [vmem:[%s17068_s5 + $0x410] sm:$0xff]  ;;  %v11098_v54 = vld [vmem:[%s17068_s5 + $0x408] sm:$0xff] }
 0x618   :  { %v8902_v19 = vmax.f32 %v8820_v38, %v8896_v17  ;;  %9623 = vmatprep.subr.mxu0 %v11112_v6  ;;  %9846 = vmatprep.subr.mxu1 %v11175_v48  ;;  %v11161_v10 = vld [vmem:[%s17068_s5 + $0x5e8] sm:$0xff]  ;;  %v11097_v57 = vld [vmem:[%s17068_s5 + $0x400] sm:$0xff] }
 0x619   :  { %9624 = vmatpush1.msra.mxu0 %v11111_v44  ;;  %9847 = vmatpush1.msra.mxu1 %v11174_v27  ;;  %v11160_v6 = vld [vmem:[%s17068_s5 + $0x5e0] sm:$0xff]  ;;  %v11159_v44 = vld [vmem:[%s17068_s5 + $0x5d8] sm:$0xff]  ;;  %v11095_v27 = vld [vmem:[%s17068_s5 + $0x3f0] sm:$0xff] }
 0x61a   :  { %v9923_v28 = vcombine.low %v8901_v7, %v8902_v19  ;;  %9625 = vmatprep.subr.mxu0 %v11110_v45  ;;  %9848 = vmatprep.subr.mxu1 %v11173_v36  ;;  %v11096_v7 = vld [vmem:[%s17068_s5 + $0x3f8] sm:$0xff]  ;;  %v16094_v19 = vrot.slane %v11213_v59, %v12345_v46  ;;  %v11158_v45 = vld [vmem:[%s17068_s5 + $0x5d0] sm:$0xff]  ;;  %v11157_v36 = vld [vmem:[%s17068_s5 + $0x5c8] sm:$0xff] }
 0x61b   :  { %9626 = vmatpush1.msra.mxu0 %v11109_v2  ;;  %9849 = vmatpush1.msra.mxu1 %v11172_v3  ;;  %v11093_v2 = vld [vmem:[%s17068_s5 + $0x3e0] sm:$0xff]  ;;  %v16134_v3 = vrot.slane %v10030_v26, %v12345_v46  ;;  %v11091_v26 = vld [vmem:[%s17068_s5 + $0x3d0] sm:$0xff]  ;;  %v11153_v24 = vld [vmem:[%s17068_s5 + $0x5a8] sm:$0xff] }
 0x61c   :  { %v9930_v62 = vrot.slane %v9923_v28, %v12345_v46  ;;  %9627 = vmatprep.subr.mxu0 %v11108_v61  ;;  %9850 = vmatprep.subr.mxu1 %v11171_v8  ;;  %v11092_v8 = vld [vmem:[%s17068_s5 + $0x3d8] sm:$0xff] }
 0x61d   :  { %9628 = vmatpush1.msra.mxu0 %v11107_v22  ;;  %9851 = vmatpush1.msra.mxu1 %v11170_v52  ;;  %v11154_v52 = vld [vmem:[%s17068_s5 + $0x5b0] sm:$0xff] }
 0x61e   :  { %v16015_v4 = vrot.slane %v9930_v62, %v12345_v46  ;;  %v10174_v40 = vcombine.high %v9930_v62, %v9930_v62  ;;  %9629 = vmatprep.subr.mxu0 %v11106_v42  ;;  %9852 = vmatprep.subr.mxu1 %v11169_v58  ;;  %v11156_v62 = vld [vmem:[%s17068_s5 + $0x5c0] sm:$0xff]  ;;  %v11090_v42 = vld [vmem:[%s17068_s5 + $0x3c8] sm:$0xff] }
 0x61f   :  { %9630 = vmatpush1.msra.mxu0 %v11105_v12  ;;  %9853 = vmatpush1.msra.mxu1 %v11168_v18  ;;  %v11152_v58 = vld [vmem:[%s17068_s5 + $0x5a0] sm:$0xff]  ;;  %v11148_v12 = vld [vmem:[%s17068_s5 + $0x598] sm:$0xff] }
 0x620   :  { %v10015_v32 = vcombine.low %v16015_v4, %v15821_v35  ;;  %v10181_v43 = vrot.slane %v10174_v40, %v12345_v46  ;;  %9631 = vmatprep.subr.mxu0 %v11104_v49  ;;  %9854 = vmatprep.subr.mxu1 %v11167_v5  ;;  %v16109_v35 = vrot.slane %v10031_v0, %v12345_v46  ;;  %v11089_v40 = vld [vmem:[%s17068_s5 + $0x3c0] sm:$0xff]  ;;  %v11211_v18 = vld [vmem:[%s17068_s5 + $0x778] sm:$0xff]  ;;  %v11147_v49 = vld [vmem:[%s17068_s5 + $0x590] sm:$0xff] }
 0x621   :  { %9632 = vmatpush1.msra.mxu0 %v11103_v63  ;;  %9855 = vmatpush1.msra.mxu1 %v11166_v37  ;;  %v11209_v5 = vld [vmem:[%s17068_s5 + $0x768] sm:$0xff]  ;;  %v11145_v63 = vld [vmem:[%s17068_s5 + $0x580] sm:$0xff] }
 0x622   :  { %v10029_v53 = vrot.slane %v10015_v32, %v12345_v46  ;;  %v10252_v51 = vcombine.low %v10181_v43, %v15811_v29  ;;  %9633 = vmatprep.subr.mxu0 %v11102_v20  ;;  %9856 = vmatprep.subr.mxu1 %v11165_v16  ;;  %v11210_v32 = vld [vmem:[%s17068_s5 + $0x770] sm:$0xff]  ;;  %v11146_v43 = vld [vmem:[%s17068_s5 + $0x588] sm:$0xff]  ;;  %v11208_v37 = vld [vmem:[%s17068_s5 + $0x760] sm:$0xff] }
 0x623   :  { %9634 = vmatpush1.msra.mxu0 %v11101_v56  ;;  %9857 = vmatpush1.msra.mxu1 %v11164_v30  ;;  %v11144_v20 = vld [vmem:[%s17068_s5 + $0x578] sm:$0xff]  ;;  %v11206_v16 = vld [vmem:[%s17068_s5 + $0x750] sm:$0xff]  ;;  %v11142_v56 = vld [vmem:[%s17068_s5 + $0x568] sm:$0xff] }
 0x624   :  { %v10032_v14 = vcombine.low %v10029_v53, %v16045_v33  ;;  %v10033_v38 = vcombine.high %v10029_v53, %v16045_v33  ;;  %v16076_v17 = vrot.slane %v10252_v51, %v12345_v46  ;;  %9635 = vmatprep.subr.mxu0 %v11100_v23  ;;  %9858 = vmatprep.subr.mxu1 %v11163_v34  ;;  %v11207_v53 = vld [vmem:[%s17068_s5 + $0x758] sm:$0xff]  ;;  %v11143_v51 = vld [vmem:[%s17068_s5 + $0x570] sm:$0xff]  ;;  %v11205_v30 = vld [vmem:[%s17068_s5 + $0x748] sm:$0xff] }
 0x625   :  { %9636 = vmatpush1.msra.mxu0 %v11099_v47  ;;  %9859 = vmatpush1.msra.mxu1 %v11162_v9  ;;  %v11141_v23 = vld [vmem:[%s17068_s5 + $0x560] sm:$0xff]  ;;  %v11140_v34 = vld [vmem:[%s17068_s5 + $0x558] sm:$0xff]  ;;  %v11139_v9 = vld [vmem:[%s17068_s5 + $0x550] sm:$0xff] }
 0x626   :  { %v16097_v48 = vrot.slane %v10032_v14, %v12345_v46  ;;  %9637 = vmatprep.subr.mxu0 %v11098_v54  ;;  %v16112_v59 = vrot.slane %v10033_v38, %v12345_v46  ;;  %9860 = vmatprep.subr.mxu1 %v11161_v10  ;;  %v10269_v28 = vcombine.low %v16076_v17, %v16094_v19  ;;  %v11204_v14 = vld [vmem:[%s17068_s5 + $0x740] sm:$0xff]  ;;  %v11203_v47 = vld [vmem:[%s17068_s5 + $0x738] sm:$0xff]  ;;  %v11202_v54 = vld [vmem:[%s17068_s5 + $0x730] sm:$0xff] }
 0x627   :  { %9638 = vmatpush1.msra.mxu0 %v11097_v57  ;;  %v10270_v0 = vcombine.high %v16076_v17, %v16094_v19  ;;  %9861 = vmatpush1.msra.mxu1 %v11160_v6  ;;  %v11138_v38 = vld [vmem:[%s17068_s5 + $0x548] sm:$0xff]  ;;  %v11137_v57 = vld [vmem:[%s17068_s5 + $0x540] sm:$0xff] }
 0x628   :  { %9639 = vmatprep.subr.mxu0 %v11096_v7  ;;  %v10063_v61 = vcombine.low %v16109_v35, %v16112_v59  ;;  %9862 = vmatprep.subr.mxu1 %v11159_v44  ;;  %v10062_v22 = vcombine.low %v16134_v3, %v16097_v48  ;;  %v11201_v10 = vld [vmem:[%s17068_s5 + $0x728] sm:$0xff]  ;;  %v11200_v6 = vld [vmem:[%s17068_s5 + $0x720] sm:$0xff]  ;;  %v11136_v7 = vld [vmem:[%s17068_s5 + $0x538] sm:$0xff] }
 0x629   :  { %9640 = vmatpush1.msra.mxu0 %v11095_v27  ;;  %9863 = vmatpush1.msra.mxu1 %v11158_v45  ;;  %v11199_v44 = vld [vmem:[%s17068_s5 + $0x718] sm:$0xff]  ;;  %v11135_v27 = vld [vmem:[%s17068_s5 + $0x530] sm:$0xff]  ;;  %v11248_v17 = vld [vmem:[%s17068_s5 + $0x880] sm:$0xff] }
 0x62a   :  { %9641 = vmatprep.subr.mxu0 %v11094_v55  ;;  %9864 = vmatprep.subr.mxu1 %v11157_v36  ;;  %v11198_v45 = vld [vmem:[%s17068_s5 + $0x710] sm:$0xff]  ;;  %v11134_v55 = vld [vmem:[%s17068_s5 + $0x528] sm:$0xff] }
 0x62b   :  { %9642 = vmatpush1.msra.mxu0 %v11093_v2  ;;  %9865 = vmatpush1.msra.mxu1 %v11156_v62  ;;  %v11197_v36 = vld [vmem:[%s17068_s5 + $0x708] sm:$0xff]  ;;  %v11133_v2 = vld [vmem:[%s17068_s5 + $0x520] sm:$0xff]  ;;  %v11238_v35 = vld [vmem:[%s17068_s5 + $0x830] sm:$0xff] }
 0x62c   :  { %9643 = vmatprep.subr.mxu0 %v11092_v8  ;;  %9866 = vmatprep.subr.mxu1 %v11155_v31  ;;  %v11196_v62 = vld [vmem:[%s17068_s5 + $0x700] sm:$0xff]  ;;  %v11132_v8 = vld [vmem:[%s17068_s5 + $0x518] sm:$0xff] }
 0x62d   :  { %9644 = vmatpush1.msra.mxu0 %v11091_v26  ;;  %9867 = vmatpush1.msra.mxu1 %v11154_v52  ;;  %v11195_v31 = vld [vmem:[%s17068_s5 + $0x6f8] sm:$0xff]  ;;  %v11131_v26 = vld [vmem:[%s17068_s5 + $0x510] sm:$0xff] }
 0x62e   :  { %9645 = vmatprep.subr.mxu0 %v11090_v42  ;;  %9868 = vmatprep.subr.mxu1 %v11153_v24  ;;  %v11194_v52 = vld [vmem:[%s17068_s5 + $0x6f0] sm:$0xff]  ;;  %v11130_v42 = vld [vmem:[%s17068_s5 + $0x508] sm:$0xff] }
 0x62f   :  { %9646 = vmatpush1.msra.mxu0 %v11089_v40  ;;  %9869 = vmatpush1.msra.mxu1 %v11152_v58  ;;  %v11193_v24 = vld [vmem:[%s17068_s5 + $0x6e8] sm:$0xff]  ;;  %v11129_v40 = vld [vmem:[%s17068_s5 + $0x500] sm:$0xff] }
 0x630   :  { %9651 = vmatprep.subr.mxu0 %v11148_v12  ;;  %9874 = vmatprep.subr.mxu1 %v11211_v18  ;;  %v11192_v58 = vld [vmem:[%s17068_s5 + $0x6e0] sm:$0xff]  ;;  %v11128_v12 = vld [vmem:[%s17068_s5 + $0x4f8] sm:$0xff]  ;;  %v16290_v18 = vpop.permute.xlu1 %8551 }
 0x631   :  { %9652 = vmatpush2.msra.mxu0 %v11147_v49  ;;  %9875 = vmatpush2.msra.mxu1 %v11210_v32  ;;  %v9554_v49 = vcombine.low %v15871_v13, %v15854_v41  ;;  %v11191_v32 = vld [vmem:[%s17068_s5 + $0x6d8] sm:$0xff]  ;;  %v11126_v41 = vld [vmem:[%s17068_s5 + $0x4e8] sm:$0xff]  ;;  %v9696_v13 = vcombine.high %v15746_v15, %v15746_v15  ;;  %v11188_v15 = vld [vmem:[%s17068_s5 + $0x6c0] sm:$0xff] }
 0x632   :  { %9653 = vmatprep.subr.mxu0 %v11146_v43  ;;  %9876 = vmatprep.subr.mxu1 %v11209_v5  ;;  %v11127_v43 = vld [vmem:[%s17068_s5 + $0x4f0] sm:$0xff]  ;;  %v9777_v5 = vcombine.low %v15892_v11, %v15844_v60  ;;  %v11125_v60 = vld [vmem:[%s17068_s5 + $0x4e0] sm:$0xff]  ;;  %v9552_v11 = vcombine.low %v15793_v39, %v15756_v25  ;;  %v11187_v25 = vld [vmem:[%s17068_s5 + $0x6b8] sm:$0xff] }
 0x633   :  { %9654 = vmatpush2.msra.mxu0 %v11145_v63  ;;  %9877 = vmatpush2.msra.mxu1 %v11208_v37  ;;  %v11190_v63 = vld [vmem:[%s17068_s5 + $0x6d0] sm:$0xff]  ;;  %v11189_v37 = vld [vmem:[%s17068_s5 + $0x6c8] sm:$0xff] }
 0x634   :  { %9655 = vmatprep.subr.mxu0 %v11144_v20  ;;  %9878 = vmatprep.subr.mxu1 %v11207_v53  ;;  %v16318_v20 = vpop.permute.xlu0 %8563  ;;  %v11124_v53 = vld [vmem:[%s17068_s5 + $0x4d8] sm:$0xff]  ;;  %v11123_v39 = vld [vmem:[%s17068_s5 + $0x4d0] sm:$0xff] }
 0x635   :  { %9656 = vmatpush2.msra.mxu0 %v11143_v51  ;;  %9879 = vmatpush2.msra.mxu1 %v11206_v16  ;;  %v9775_v51 = vcombine.low %v15803_v21, %v15818_v1  ;;  %v10251_v16 = vcombine.low %v9696_v13, %v16015_v4  ;;  %v11186_v21 = vld [vmem:[%s17068_s5 + $0x6b0] sm:$0xff]  ;;  %v11122_v4 = vld [vmem:[%s17068_s5 + $0x4c8] sm:$0xff] }
 0x636   :  { %9657 = vmatprep.subr.mxu0 %v11142_v56  ;;  %9880 = vmatprep.subr.mxu1 %v11205_v30  ;;  %v9576_v56 = vrot.slane %v9554_v49, %v12345_v46  ;;  %v9799_v30 = vrot.slane %v9777_v5, %v12345_v46 }
 0x637   :  { %9658 = vmatpush2.msra.mxu0 %v11141_v23  ;;  %9881 = vmatpush2.msra.mxu1 %v11204_v14  ;;  %v16343_v23 = vpop.permute.xlu1 %8611  ;;  %v11185_v14 = vld [vmem:[%s17068_s5 + $0x6a8] sm:$0xff] }
 0x638   :  { %9659 = vmatprep.subr.mxu0 %v11140_v34  ;;  %9882 = vmatprep.subr.mxu1 %v11203_v47  ;;  %v11121_v34 = vld [vmem:[%s17068_s5 + $0x4c0] sm:$0xff]  ;;  %v9562_v47 = vrot.slane %v9552_v11, %v12345_v46 }
 0x639   :  { %9660 = vmatpush2.msra.mxu0 %v11139_v9  ;;  %9883 = vmatpush2.msra.mxu1 %v11202_v54  ;;  %v9594_v9 = vcombine.high %v16045_v33, %v16045_v33  ;;  %v11184_v54 = vld [vmem:[%s17068_s5 + $0x6a0] sm:$0xff] }
 0x63a   :  { %9661 = vmatprep.subr.mxu0 %v11138_v38  ;;  %9884 = vmatprep.subr.mxu1 %v11201_v10  ;;  %v9785_v38 = vrot.slane %v9775_v51, %v12345_v46  ;;  %v9817_v10 = vcombine.high %v16094_v19, %v16094_v19  ;;  %v11303_v11 = vld [vmem:[%s17068_s5 + $0xa20] sm:$0xff]  ;;  %v11237_v51 = vld [vmem:[%s17068_s5 + $0x828] sm:$0xff] }
 0x63b   :  { %9662 = vmatpush2.msra.mxu0 %v11137_v57  ;;  %9885 = vmatpush2.msra.mxu1 %v11200_v6  ;;  %v16361_v57 = vrot.slane %v10251_v16, %v12345_v46  ;;  %v9584_v6 = vcombine.low %v9562_v47, %v9576_v56  ;;  %v11300_v16 = vld [vmem:[%s17068_s5 + $0xa08] sm:$0xff]  ;;  %v11236_v56 = vld [vmem:[%s17068_s5 + $0x820] sm:$0xff] }
 0x63c   :  { %9663 = vmatprep.subr.mxu0 %v11136_v7  ;;  %9886 = vmatprep.subr.mxu1 %v11199_v44  ;;  %v11247_v7 = vld [vmem:[%s17068_s5 + $0x878] sm:$0xff]  ;;  %v16366_v44 = vpop.permute.xlu0 %8677  ;;  %v11296_v47 = vld [vmem:[%s17068_s5 + $0x9e8] sm:$0xff] }
 0x63d   :  { %9664 = vmatpush2.msra.mxu0 %v11135_v27  ;;  %9887 = vmatpush2.msra.mxu1 %v11198_v45  ;;  %v9807_v27 = vcombine.low %v9785_v38, %v9799_v30  ;;  %v11310_v45 = vld [vmem:[%s17068_s5 + $0xa58] sm:$0xff]  ;;  %v11295_v38 = vld [vmem:[%s17068_s5 + $0x9e0] sm:$0xff] }
 0x63e   :  { %9665 = vmatprep.subr.mxu0 %v11134_v55  ;;  %9888 = vmatprep.subr.mxu1 %v11197_v36  ;;  %v9608_v55 = vrot.slane %v9594_v9, %v12345_v46  ;;  %v11246_v36 = vld [vmem:[%s17068_s5 + $0x870] sm:$0xff]  ;;  %v11232_v9 = vld [vmem:[%s17068_s5 + $0x800] sm:$0xff] }
 0x63f   :  { %9666 = vmatpush2.msra.mxu0 %v11133_v2  ;;  %9889 = vmatpush2.msra.mxu1 %v11196_v62  ;;  %v9831_v2 = vrot.slane %v9817_v10, %v12345_v46  ;;  %v11309_v62 = vld [vmem:[%s17068_s5 + $0xa50] sm:$0xff]  ;;  %v11231_v10 = vld [vmem:[%s17068_s5 + $0x7f8] sm:$0xff] }
 0x640   :  { %9667 = vmatprep.subr.mxu0 %v11132_v8  ;;  %9890 = vmatprep.subr.mxu1 %v11195_v31  ;;  %v11245_v8 = vld [vmem:[%s17068_s5 + $0x868] sm:$0xff]  ;;  %v16382_v31 = vpop.permute.xlu1 %8679  ;;  %v16406_v49 = vpop.permute.xlu0 %8829 }
 0x641   :  { %9668 = vmatpush2.msra.mxu0 %v11131_v26  ;;  %9891 = vmatpush2.msra.mxu1 %v11194_v52  ;;  %v11308_v26 = vld [vmem:[%s17068_s5 + $0xa48] sm:$0xff]  ;;  %v11244_v52 = vld [vmem:[%s17068_s5 + $0x860] sm:$0xff] }
 0x642   :  { %9669 = vmatprep.subr.mxu0 %v11130_v42  ;;  %9892 = vmatprep.subr.mxu1 %v11193_v24  ;;  %v10268_v42 = vcombine.high %v15818_v1, %v16361_v57  ;;  %v11307_v24 = vld [vmem:[%s17068_s5 + $0xa40] sm:$0xff] }
 0x643   :  { %9670 = vmatpush2.msra.mxu0 %v11129_v40  ;;  %9893 = vmatpush2.msra.mxu1 %v11192_v58  ;;  %v9601_v40 = vrot.slane %v16045_v33, %v12345_v46  ;;  %v11243_v58 = vld [vmem:[%s17068_s5 + $0x858] sm:$0xff] }
 0x644   :  { %9671 = vmatprep.subr.mxu0 %v11128_v12  ;;  %9894 = vmatprep.subr.mxu1 %v11191_v32  ;;  %v10298_v12 = vrot.slane %v10270_v0, %v12345_v46  ;;  %v9824_v32 = vrot.slane %v16094_v19, %v12345_v46  ;;  %v11306_v33 = vld [vmem:[%s17068_s5 + $0xa38] sm:$0xff]  ;;  %v11305_v0 = vld [vmem:[%s17068_s5 + $0xa30] sm:$0xff]  ;;  %v10284_v5 = vrot.slane %v10268_v42, %v12345_v46  ;;  %v16448_v59 = vpop.permute.xlu0 %8712 }
 0x645   :  { %9672 = vmatpush2.msra.mxu0 %v11127_v43  ;;  %9895 = vmatpush2.msra.mxu1 %v11190_v63  ;;  %v11242_v43 = vld [vmem:[%s17068_s5 + $0x850] sm:$0xff]  ;;  %v11241_v63 = vld [vmem:[%s17068_s5 + $0x848] sm:$0xff] }
 0x646   :  { %9673 = vmatprep.subr.mxu0 %v11126_v41  ;;  %9896 = vmatprep.subr.mxu1 %v11189_v37  ;;  %v16423_v41 = vpop.permute.xlu1 %8700  ;;  %v10300_v13 = vcombine.low %v10284_v5, %v10298_v12  ;;  %v11304_v37 = vld [vmem:[%s17068_s5 + $0xa28] sm:$0xff]  ;;  %v11226_v42 = vld [vmem:[%s17068_s5 + $0x7d0] sm:$0xff] }
 0x647   :  { %9674 = vmatpush2.msra.mxu0 %v11125_v60  ;;  %9897 = vmatpush2.msra.mxu1 %v11188_v15  ;;  %v11240_v60 = vld [vmem:[%s17068_s5 + $0x840] sm:$0xff]  ;;  %v11239_v15 = vld [vmem:[%s17068_s5 + $0x838] sm:$0xff]  ;;  %v11289_v12 = vld [vmem:[%s17068_s5 + $0x9b0] sm:$0xff] }
 0x648   :  { %9675 = vmatprep.subr.mxu0 %v11124_v53  ;;  %9898 = vmatprep.subr.mxu1 %v11187_v25  ;;  %v11302_v53 = vld [vmem:[%s17068_s5 + $0xa18] sm:$0xff]  ;;  %v11299_v25 = vld [vmem:[%s17068_s5 + $0xa00] sm:$0xff] }
 0x649   :  { %9676 = vmatpush2.msra.mxu0 %v11123_v39  ;;  %9899 = vmatpush2.msra.mxu1 %v11186_v21  ;;  %v11235_v39 = vld [vmem:[%s17068_s5 + $0x818] sm:$0xff] }
 0x64a   :  { %9677 = vmatprep.subr.mxu0 %v11122_v4  ;;  %9900 = vmatprep.subr.mxu1 %v11185_v14  ;;  %v16468_v30 = vpop.permute.xlu1 %8623  ;;  %v11298_v21 = vld [vmem:[%s17068_s5 + $0x9f8] sm:$0xff]  ;;  %v11234_v4 = vld [vmem:[%s17068_s5 + $0x810] sm:$0xff] }
 0x64b   :  { %9678 = vmatpush2.msra.mxu0 %v11121_v34  ;;  %9901 = vmatpush2.msra.mxu1 %v11184_v54  ;;  %v11297_v14 = vld [vmem:[%s17068_s5 + $0x9f0] sm:$0xff]  ;;  %v11233_v34 = vld [vmem:[%s17068_s5 + $0x808] sm:$0xff]  ;;  %v8846_v54 = vpop.permute.xlu0 %8845 }
 0x64c   :  { %9680 = vmatmul.mubr.f32.vlgmr.msra.gmra.mxu0 %v9584_v6  ;;  %9903 = vmatmul.mubr.f32.vlgmr.msra.gmra.mxu1 %v9807_v27  ;;  %v11294_v6 = vld [vmem:[%s17068_s5 + $0x9d8] sm:$0xff]  ;;  %v11293_v27 = vld [vmem:[%s17068_s5 + $0x9d0] sm:$0xff] }
 0x64d   :  { %10093 = vmatprep.subr.mxu0 %v11247_v7  ;;  %10330 = vmatprep.subr.mxu1 %v11310_v45  ;;  %v11230_v7 = vld [vmem:[%s17068_s5 + $0x7f0] sm:$0xff]  ;;  %v11229_v45 = vld [vmem:[%s17068_s5 + $0x7e8] sm:$0xff] }
 0x64e   :  { %11151 = vmatprep.mubr.msk.f32.mxu0 %vm9219_vm14, %v9608_v55  ;;  %11215 = vmatprep.mubr.msk.f32.mxu1 %vm9219_vm14, %v9831_v2  ;;  %v8761_v55 = vpop.permute.xlu1 %8760  ;;  %v11228_v2 = vld [vmem:[%s17068_s5 + $0x7e0] sm:$0xff] }
 0x64f   :  { %10094 = vmatpush1.msra.mxu0 %v11246_v36  ;;  %10331 = vmatpush1.msra.mxu1 %v11309_v62  ;;  %v11292_v36 = vld [vmem:[%s17068_s5 + $0x9c8] sm:$0xff]  ;;  %v8834_v62 = vsel %vm2593_vm10, %v16406_v49, %v16343_v23  ;;  %vm10606_vm10 = vcmask 261120  }
 0x650   :  { %10095 = vmatprep.subr.mxu0 %v11245_v8  ;;  %10332 = vmatprep.subr.mxu1 %v11308_v26  ;;  %v11291_v8 = vld [vmem:[%s17068_s5 + $0x9c0] sm:$0xff]  ;;  %v11227_v26 = vld [vmem:[%s17068_s5 + $0x7d8] sm:$0xff]  ;;  %v11225_v49 = vld [vmem:[%s17068_s5 + $0x7c8] sm:$0xff] }
 0x651   :  { %10096 = vmatpush1.msra.mxu0 %v11244_v52  ;;  %10333 = vmatpush1.msra.mxu1 %v11307_v24  ;;  %v11290_v52 = vld [vmem:[%s17068_s5 + $0x9b8] sm:$0xff]  ;;  %v8782_v24 = vsel %vm8778_vm1, %v15678_v50, %v16290_v18  ;;  %v8886_v50 = vsel %vm8803_vm4, %v16423_v41, %v16448_v59 }
 0x652   :  { %9686 = vmatmul.mubr.f32.gmra.mxu0 %v9601_v40  ;;  %9909 = vmatmul.mubr.f32.gmra.mxu1 %v9824_v32  ;;  %v8866_v40 = vsel %vm8778_vm1, %v16290_v18, %v16318_v20  ;;  %v8787_v32 = vsel %vm8783_vm2, %v8782_v24, %v16318_v20  ;;  %v8685_v20 = vsel %vm8681_vm3, %v16366_v44, %v16382_v31  ;;  %v11334_v24 = vld [vmem:[%s17068_s5 + $0xb18] sm:$0xff] }
 0x653   :  { %10097 = vmatprep.subr.mxu0 %v11243_v58  ;;  %10334 = vmatprep.subr.mxu1 %v11306_v33  ;;  %v8773_v58 = vpop.permute.xlu0 %8772  ;;  %v8870_v18 = vsel %vm8783_vm2, %v8866_v40, %v8834_v62  ;;  %v11288_v33 = vld [vmem:[%s17068_s5 + $0x9a8] sm:$0xff]  ;;  %v8890_v5 = vsel %vm8808_vm7, %v8886_v50, %v8846_v54  ;;  %v11281_v54 = vld [vmem:[%s17068_s5 + $0x970] sm:$0xff]  ;;  %v11268_v50 = vld [vmem:[%s17068_s5 + $0x920] sm:$0xff] }
 0x654   :  { %10098 = vmatpush1.msra.mxu0 %v11242_v43  ;;  %11277 = vmatprep.mubr.msk.f32.mxu0 %vm9219_vm14, %v10063_v61  ;;  %v11301_v61 = vld [vmem:[%s17068_s5 + $0xa10] sm:$0xff]  ;;  %v11224_v43 = vld [vmem:[%s17068_s5 + $0x7c0] sm:$0xff]  ;;  %v8894_v31 = vsel %vm8813_vm9, %v8890_v5, %v8773_v58  ;;  %v11265_v5 = vld [vmem:[%s17068_s5 + $0x908] sm:$0xff] }
 0x655   :  { %10335 = vmatpush1.msra.mxu1 %v11305_v0  ;;  %11339 = vmatprep.mubr.msk.f32.mxu1 %vm9219_vm14, %v10300_v13  ;;  %v8874_v0 = vsel %vm8788_vm5, %v8870_v18, %v16468_v30  ;;  %v11223_v13 = vld [vmem:[%s17068_s5 + $0x7b8] sm:$0xff]  ;;  %v11270_v40 = vld [vmem:[%s17068_s5 + $0x930] sm:$0xff]  ;;  %v11331_v18 = vld [vmem:[%s17068_s5 + $0xb00] sm:$0xff] }
 0x656   :  { %10099 = vmatprep.subr.mxu0 %v11241_v63  ;;  %10336 = vmatprep.subr.mxu1 %v11304_v37  ;;  %v11287_v63 = vld [vmem:[%s17068_s5 + $0x9a0] sm:$0xff]  ;;  %v8807_v37 = vsel %vm8803_vm4, %v8685_v20, %v16423_v41  ;;  %v11266_v20 = vld [vmem:[%s17068_s5 + $0x910] sm:$0xff] }
 0x657   :  { %10100 = vmatpush1.msra.mxu0 %v11240_v60  ;;  %10337 = vmatpush1.msra.mxu1 %v11303_v11  ;;  %v8858_v60 = vpop.permute.xlu1 %8857  ;;  %v11286_v11 = vld [vmem:[%s17068_s5 + $0x998] sm:$0xff] }
 0x658   :  { %10101 = vmatprep.subr.mxu0 %v11239_v15  ;;  %10338 = vmatprep.subr.mxu1 %v11302_v53  ;;  %v11222_v15 = vld [vmem:[%s17068_s5 + $0x7b0] sm:$0xff]  ;;  %v8792_v53 = vsel %vm8788_vm5, %v8787_v32, %v16343_v23  ;;  %v11332_v32 = vld [vmem:[%s17068_s5 + $0xb08] sm:$0xff] }
 0x659   :  { %10102 = vmatpush1.msra.mxu0 %v11238_v35  ;;  %10339 = vmatpush1.msra.mxu1 %v11301_v61  ;;  %v8812_v35 = vsel %vm8808_vm7, %v8807_v37, %v16448_v59  ;;  %v11285_v61 = vld [vmem:[%s17068_s5 + $0x990] sm:$0xff]  ;;  %v11284_v59 = vld [vmem:[%s17068_s5 + $0x988] sm:$0xff]  ;;  %v11264_v37 = vld [vmem:[%s17068_s5 + $0x900] sm:$0xff] }
 0x65a   :  { %10103 = vmatprep.subr.mxu0 %v11237_v51  ;;  %10340 = vmatprep.subr.mxu1 %v11300_v16  ;;  %v11221_v51 = vld [vmem:[%s17068_s5 + $0x7a8] sm:$0xff]  ;;  %v8797_v16 = vsel %vm8793_vm6, %v8792_v53, %v16468_v30  ;;  %v8817_v23 = vsel %vm8813_vm9, %v8812_v35, %v8761_v55  ;;  %v11283_v30 = vld [vmem:[%s17068_s5 + $0x980] sm:$0xff]  ;;  %v11274_v55 = vld [vmem:[%s17068_s5 + $0x950] sm:$0xff] }
 0x65b   :  { %10104 = vmatpush1.msra.mxu0 %v11236_v56  ;;  %10341 = vmatpush1.msra.mxu1 %v11299_v25  ;;  %v8878_v56 = vsel %vm8793_vm6, %v8874_v0, %v16366_v44  ;;  %v11220_v25 = vld [vmem:[%s17068_s5 + $0x7a0] sm:$0xff]  ;;  %v11329_v0 = vld [vmem:[%s17068_s5 + $0xaf0] sm:$0xff] }
 0x65c   :  { %10105 = vmatprep.subr.mxu0 %v11235_v39  ;;  %10342 = vmatprep.subr.mxu1 %v11298_v21  ;;  %v8822_v39 = vsel %vm8818_vm13, %v8817_v23, %v8773_v58  ;;  %v8898_v21 = vsel %vm8818_vm13, %v8894_v31, %v8858_v60  ;;  %v11333_v58 = vld [vmem:[%s17068_s5 + $0xb10] sm:$0xff]  ;;  %v11327_v31 = vld [vmem:[%s17068_s5 + $0xae0] sm:$0xff]  ;;  %v11263_v60 = vld [vmem:[%s17068_s5 + $0x8f8] sm:$0xff]  ;;  %v9697_v23 = vcombine.high %v15811_v29, %v15811_v29 }
 0x65d   :  { %10106 = vmatpush1.msra.mxu0 %v11234_v4  ;;  %10343 = vmatpush1.msra.mxu1 %v11297_v14  ;;  %v11219_v4 = vld [vmem:[%s17068_s5 + $0x798] sm:$0xff]  ;;  %v11325_v35 = vld [vmem:[%s17068_s5 + $0xad0] sm:$0xff] }
 0x65e   :  { %10107 = vmatprep.subr.mxu0 %v11233_v34  ;;  %10344 = vmatprep.subr.mxu1 %v11296_v47  ;;  %v11282_v14 = vld [vmem:[%s17068_s5 + $0x978] sm:$0xff]  ;;  %v11218_v34 = vld [vmem:[%s17068_s5 + $0x790] sm:$0xff]  ;;  %v8802_v47 = vsel %vm8798_vm8, %v8797_v16, %v16366_v44  ;;  %v11280_v44 = vld [vmem:[%s17068_s5 + $0x968] sm:$0xff] }
 0x65f   :  { %10108 = vmatpush1.msra.mxu0 %v11232_v9  ;;  %10345 = vmatpush1.msra.mxu1 %v11295_v38  ;;  %v8882_v9 = vsel %vm8798_vm8, %v8878_v56, %v16423_v41  ;;  %v11217_v38 = vld [vmem:[%s17068_s5 + $0x788] sm:$0xff]  ;;  %v11216_v41 = vld [vmem:[%s17068_s5 + $0x780] sm:$0xff]  ;;  %v11258_v29 = vld [vmem:[%s17068_s5 + $0x8d0] sm:$0xff] }
 0x660   :  { %10109 = vmatprep.subr.mxu0 %v11231_v10  ;;  %10346 = vmatprep.subr.mxu1 %v11294_v6  ;;  %v8906_v10 = vmax.f32 %v8822_v39, %v8898_v21  ;;  %v11279_v6 = vld [vmem:[%s17068_s5 + $0x960] sm:$0xff]  ;;  %v11324_v16 = vld [vmem:[%s17068_s5 + $0xac8] sm:$0xff]  ;;  %v11322_v39 = vld [vmem:[%s17068_s5 + $0xab8] sm:$0xff] }
 0x661   :  { %10110 = vmatpush1.msra.mxu0 %v11230_v7  ;;  %10347 = vmatpush1.msra.mxu1 %v11293_v27  ;;  %v11275_v7 = vld [vmem:[%s17068_s5 + $0x958] sm:$0xff]  ;;  %v8905_v27 = vmax.f32 %v8802_v47, %v8882_v9  ;;  %v11260_v56 = vld [vmem:[%s17068_s5 + $0x8e0] sm:$0xff] }
 0x662   :  { %10111 = vmatprep.subr.mxu0 %v11229_v45  ;;  %10348 = vmatprep.subr.mxu1 %v11292_v36  ;;  %v11338_v45 = vld [vmem:[%s17068_s5 + $0xb38] sm:$0xff]  ;;  %v11337_v36 = vld [vmem:[%s17068_s5 + $0xb30] sm:$0xff]  ;;  %v11256_v47 = vld [vmem:[%s17068_s5 + $0x8c0] sm:$0xff] }
 0x663   :  { %10112 = vmatpush1.msra.mxu0 %v11228_v2  ;;  %10349 = vmatpush1.msra.mxu1 %v11291_v8  ;;  %v11273_v2 = vld [vmem:[%s17068_s5 + $0x948] sm:$0xff]  ;;  %v9938_v62 = vcombine.low %v8905_v27, %v8906_v10  ;;  %v11319_v9 = vld [vmem:[%s17068_s5 + $0xaa0] sm:$0xff]  ;;  %v11254_v10 = vld [vmem:[%s17068_s5 + $0x8b0] sm:$0xff] }
 0x664   :  { %10113 = vmatprep.subr.mxu0 %v11227_v26  ;;  %10350 = vmatprep.subr.mxu1 %v11290_v52  ;;  %v11336_v8 = vld [vmem:[%s17068_s5 + $0xb28] sm:$0xff]  ;;  %v11272_v26 = vld [vmem:[%s17068_s5 + $0x940] sm:$0xff] }
 0x665   :  { %10114 = vmatpush1.msra.mxu0 %v11226_v42  ;;  %10351 = vmatpush1.msra.mxu1 %v11289_v12  ;;  %v11335_v52 = vld [vmem:[%s17068_s5 + $0xb20] sm:$0xff]  ;;  %v11271_v42 = vld [vmem:[%s17068_s5 + $0x938] sm:$0xff]  ;;  %v11269_v12 = vld [vmem:[%s17068_s5 + $0x928] sm:$0xff] }
 0x666   :  { %10115 = vmatprep.subr.mxu0 %v11225_v49  ;;  %10352 = vmatprep.subr.mxu1 %v11288_v33  ;;  %v9945_v49 = vrot.slane %v9938_v62, %v12345_v46  ;;  %v11267_v33 = vld [vmem:[%s17068_s5 + $0x918] sm:$0xff]  ;;  %v11252_v27 = vld [vmem:[%s17068_s5 + $0x8a0] sm:$0xff] }
 0x667   :  { %10116 = vmatpush1.msra.mxu0 %v11224_v43  ;;  %10353 = vmatpush1.msra.mxu1 %v11287_v63  ;;  %v11330_v43 = vld [vmem:[%s17068_s5 + $0xaf8] sm:$0xff] }
 0x668   :  { %10117 = vmatprep.subr.mxu0 %v11223_v13  ;;  %10354 = vmatprep.subr.mxu1 %v11286_v11  ;;  %v10182_v63 = vcombine.high %v9945_v49, %v9945_v49  ;;  %v11328_v13 = vld [vmem:[%s17068_s5 + $0xae8] sm:$0xff]  ;;  %v11326_v11 = vld [vmem:[%s17068_s5 + $0xad8] sm:$0xff]  ;;  %v9952_v53 = vrot.slane %v9945_v49, %v12345_v46 }
 0x669   :  { %10118 = vmatpush1.msra.mxu0 %v11222_v15  ;;  %10355 = vmatpush1.msra.mxu1 %v11285_v61  ;;  %v11262_v15 = vld [vmem:[%s17068_s5 + $0x8f0] sm:$0xff]  ;;  %v11261_v61 = vld [vmem:[%s17068_s5 + $0x8e8] sm:$0xff]  ;;  %v11314_v62 = vld [vmem:[%s17068_s5 + $0xa78] sm:$0xff] }
 0x66a   :  { %10119 = vmatprep.subr.mxu0 %v11221_v51  ;;  %10356 = vmatprep.subr.mxu1 %v11284_v59  ;;  %v10189_v51 = vrot.slane %v10182_v63, %v12345_v46  ;;  %v11323_v59 = vld [vmem:[%s17068_s5 + $0xac0] sm:$0xff]  ;;  %v10064_v21 = vcombine.low %v9697_v23, %v9952_v53 }
 0x66b   :  { %10120 = vmatpush1.msra.mxu0 %v11220_v25  ;;  %10357 = vmatpush1.msra.mxu1 %v11283_v30  ;;  %v11259_v25 = vld [vmem:[%s17068_s5 + $0x8d8] sm:$0xff]  ;;  %v11321_v30 = vld [vmem:[%s17068_s5 + $0xab0] sm:$0xff] }
 0x66c   :  { %10121 = vmatprep.subr.mxu0 %v11219_v4  ;;  %10358 = vmatprep.subr.mxu1 %v11282_v14  ;;  %v11257_v4 = vld [vmem:[%s17068_s5 + $0x8c8] sm:$0xff]  ;;  %v10301_v14 = vcombine.low %v9952_v53, %v10189_v51 }
 0x66d   :  { %10122 = vmatpush1.msra.mxu0 %v11218_v34  ;;  %10359 = vmatpush1.msra.mxu1 %v11281_v54  ;;  %v11320_v34 = vld [vmem:[%s17068_s5 + $0xaa8] sm:$0xff]  ;;  %v11255_v54 = vld [vmem:[%s17068_s5 + $0x8b8] sm:$0xff] }
 0x66e   :  { %10123 = vmatprep.subr.mxu0 %v11217_v38  ;;  %10360 = vmatprep.subr.mxu1 %v11280_v44  ;;  %v11318_v38 = vld [vmem:[%s17068_s5 + $0xa98] sm:$0xff]  ;;  %v11317_v44 = vld [vmem:[%s17068_s5 + $0xa90] sm:$0xff] }
 0x66f   :  { %10124 = vmatpush1.msra.mxu0 %v11216_v41  ;;  %10361 = vmatpush1.msra.mxu1 %v11279_v6  ;;  %v11253_v41 = vld [vmem:[%s17068_s5 + $0x8a8] sm:$0xff]  ;;  %v10071_v6 = vrot.slane %v10064_v21, %v12345_v46 }
 0x670   :  { %10129 = vmatprep.subr.mxu0 %v11275_v7  ;;  %10366 = vmatprep.subr.mxu1 %v11338_v45  ;;  %v11316_v7 = vld [vmem:[%s17068_s5 + $0xa88] sm:$0xff]  ;;  %v10308_v45 = vrot.slane %v10301_v14, %v12345_v46  ;;  %v17508_v14 = vld [vmem:[#allocation21_spill] sm:$0xff] }
 0x671   :  { %10130 = vmatpush2.msra.mxu0 %v11274_v55  ;;  %10367 = vmatpush2.msra.mxu1 %v11337_v36  ;;  %v10267_v55 = vcombine.low %v15818_v1, %v16361_v57  ;;  %v11315_v36 = vld [vmem:[%s17068_s5 + $0xa80] sm:$0xff]  ;;  %v11250_v1 = vld [vmem:[%s17068_s5 + $0x890] sm:$0xff]  ;;  %v10291_v57 = vrot.slane %v10269_v28, %v12345_v46  ;;  %v10079_v49 = vrot.slane %v10071_v6, %v12345_v46 }
 0x672   :  { %10131 = vmatprep.subr.mxu0 %v11273_v2  ;;  %10368 = vmatprep.subr.mxu1 %v11336_v8  ;;  %v11251_v2 = vld [vmem:[%s17068_s5 + $0x898] sm:$0xff]  ;;  %v11313_v8 = vld [vmem:[%s17068_s5 + $0xa70] sm:$0xff]  ;;  %v10309_v19 = vcombine.high %v10308_v45, %v10308_v45 }
 0x673   :  { %10132 = vmatpush2.msra.mxu0 %v11272_v26  ;;  %10369 = vmatpush2.msra.mxu1 %v11335_v52  ;;  %v11249_v26 = vld [vmem:[%s17068_s5 + $0x888] sm:$0xff]  ;;  %v10072_v52 = vcombine.high %v10071_v6, %v10071_v6  ;;  %v10277_v28 = vrot.slane %v10267_v55, %v12345_v46 }
 0x674   :  { %10133 = vmatprep.subr.mxu0 %v11271_v42  ;;  %10370 = vmatprep.subr.mxu1 %v11334_v24  ;;  %v11312_v42 = vld [vmem:[%s17068_s5 + $0xa68] sm:$0xff]  ;;  %v11311_v24 = vld [vmem:[%s17068_s5 + $0xa60] sm:$0xff]  ;;  %s11703_s5 = smov 96  }
 0x675   :  { %10134 = vmatpush2.msra.mxu0 %v11270_v40  ;;  %10371 = vmatpush2.msra.mxu1 %v11333_v58  ;;  %v10299_v40 = vcombine.low %v10277_v28, %v10291_v57  ;;  %v10086_v58 = vrot.slane %v10072_v52, %v12345_v46 }
 0x676   :  { %10135 = vmatprep.subr.mxu0 %v11269_v12  ;;  %10372 = vmatprep.subr.mxu1 %v11332_v32  ;;  %v10323_v12 = vrot.slane %v10309_v19, %v12345_v46  ;;  %v17507_v32 = vmov 0.0  }
 0x677   :  { %10136 = vmatpush2.msra.mxu0 %v11268_v50  ;;  %10373 = vmatpush2.msra.mxu1 %v11331_v18  ;;  %v10316_v50 = vrot.slane %v10308_v45, %v12345_v46 }
 0x678   :  { %10137 = vmatprep.subr.mxu0 %v11267_v33  ;;  %10374 = vmatprep.subr.mxu1 %v11330_v43 }
 0x679   :  { %10138 = vmatpush2.msra.mxu0 %v11266_v20  ;;  %10375 = vmatpush2.msra.mxu1 %v11329_v0 }
 0x67a   :  { %10139 = vmatprep.subr.mxu0 %v11265_v5  ;;  %10376 = vmatprep.subr.mxu1 %v11328_v13 }
 0x67b   :  { %10140 = vmatpush2.msra.mxu0 %v11264_v37  ;;  %10377 = vmatpush2.msra.mxu1 %v11327_v31 }
 0x67c   :  { %10141 = vmatprep.subr.mxu0 %v11263_v60  ;;  %10378 = vmatprep.subr.mxu1 %v11326_v11 }
 0x67d   :  { %10142 = vmatpush2.msra.mxu0 %v11262_v15  ;;  %10379 = vmatpush2.msra.mxu1 %v11325_v35 }
 0x67e   :  { %10143 = vmatprep.subr.mxu0 %v11261_v61  ;;  %10380 = vmatprep.subr.mxu1 %v11324_v16  ;;  %v10411_v16 = vld [vmem:[#allocation10] sm:$0x3] }
 0x67f   :  { %10144 = vmatpush2.msra.mxu0 %v11260_v56  ;;  %10381 = vmatpush2.msra.mxu1 %v11323_v59 }
 0x680   :  { %10145 = vmatprep.subr.mxu0 %v11259_v25  ;;  %10382 = vmatprep.subr.mxu1 %v11322_v39 }
 0x681   :  { %10146 = vmatpush2.msra.mxu0 %v11258_v29  ;;  %10383 = vmatpush2.msra.mxu1 %v11321_v30 }
 0x682   :  { %10147 = vmatprep.subr.mxu0 %v11257_v4  ;;  %10384 = vmatprep.subr.mxu1 %v11320_v34  ;;  %v10416_v34 = vrot.slane %v10411_v16, %v17508_v14 }
 0x683   :  { %10148 = vmatpush2.msra.mxu0 %v11256_v47  ;;  %10385 = vmatpush2.msra.mxu1 %v11319_v9 }
 0x684   :  { %10149 = vmatprep.subr.mxu0 %v11255_v54  ;;  %10386 = vmatprep.subr.mxu1 %v11318_v38 }
 0x685   :  { %10150 = vmatpush2.msra.mxu0 %v11254_v10  ;;  %10387 = vmatpush2.msra.mxu1 %v11317_v44  ;;  %v17509_v44 = vld [vmem:[#allocation22_spill] sm:$0xff] }
 0x686   :  { %10151 = vmatprep.subr.mxu0 %v11253_v41  ;;  %10388 = vmatprep.subr.mxu1 %v11316_v7  ;;  %v10420_v41 = vrot.slane %v10411_v16, %v17509_v44 }
 0x687   :  { %10152 = vmatpush2.msra.mxu0 %v11252_v27  ;;  %10389 = vmatpush2.msra.mxu1 %v11315_v36 }
 0x688   :  { %10153 = vmatprep.subr.mxu0 %v11251_v2  ;;  %10390 = vmatprep.subr.mxu1 %v11314_v62 }
 0x689   :  { %10154 = vmatpush2.msra.mxu0 %v11250_v1  ;;  %10391 = vmatpush2.msra.mxu1 %v11313_v8 }
 0x68a   :  { %10155 = vmatprep.subr.mxu0 %v11249_v26  ;;  %10392 = vmatprep.subr.mxu1 %v11312_v42 }
 0x68b   :  { %10156 = vmatpush2.msra.mxu0 %v11248_v17  ;;  %10393 = vmatpush2.msra.mxu1 %v11311_v24 }
 0x68c   :  { %10158 = vmatmul.mubr.f32.vlgmr.msra.gmra.mxu0 %v10062_v22  ;;  %10395 = vmatmul.mubr.f32.vlgmr.msra.gmra.mxu1 %v10299_v40 }
 0x68d   :  { %11278 = vmatprep.mubr.msk.f32.mxu0 %vm9219_vm14, %v10086_v58  ;;  %11340 = vmatprep.mubr.msk.f32.mxu1 %vm9219_vm14, %v10323_v12 }
 0x68e   :  { %10785 = vmatprep.subr.mxu1 %v17507_v32 }
 0x690   :  { %10164 = vmatmul.mubr.f32.gmra.mxu0 %v10079_v49  ;;  %10401 = vmatmul.mubr.f32.gmra.mxu1 %v10316_v50 }
 0x691   :  { %10741 = vmatprep.mubr.f32.mxu0 %v17507_v32 }
 0x6cd   :  { %v9290_v18 = vpop.f32.mrf.mxu0  ;;  %v9462_v48 = vpop.f32.mrf.mxu1 }
 0x6ce   :  { %v9463_v31 = vadd.f32 %v9462_v48, %v9290_v18 }
 0x6cf   :  { %v9292_v3 = vpop.f32.mrf.mxu0  ;;  %v9464_v22 = vpop.f32.mrf.mxu1 }
 0x6d0   :  { %v9465_v11 = vadd.f32 %v9464_v22, %v9292_v3 }
 0x6d3   :  { %v9296_v33 = vpop.f32.mrf.mxu0  ;;  %v9468_v43 = vpop.f32.mrf.mxu1 }
 0x6d4   :  { %v9469_v35 = vadd.f32 %v9468_v43, %v9296_v33 }
 0x6d5   :  { %v9298_v20 = vpop.f32.mrf.mxu0  ;;  %v9470_v0 = vpop.f32.mrf.mxu1 }
 0x6d6   :  { %v9471_v56 = vadd.f32 %v9470_v0, %v9298_v20 }
 0x70c   :  { %v9681_v5 = vpop.f32.mrf.mxu0  ;;  %v9904_v63 = vpop.f32.mrf.mxu1 }
 0x70d   :  { %v9692_v15 = vadd.f32 %v9681_v5, %v9463_v31 }
 0x70e   :  { %v9683_v13 = vpop.f32.mrf.mxu0  ;;  %v9906_v37 = vpop.f32.mrf.mxu1 }
 0x70f   :  { %v9693_v61 = vadd.f32 %v9683_v13, %v9465_v11  ;;  %v9915_v23 = vadd.f32 %v9904_v63, %v9692_v15 }
 0x711   :  { %v9916_v29 = vadd.f32 %v9906_v37, %v9693_v61 }
 0x712   :  { %v9687_v60 = vpop.f32.mrf.mxu0  ;;  %v9910_v53 = vpop.f32.mrf.mxu1 }
 0x713   :  { %v9694_v59 = vadd.f32 %v9687_v60, %v9469_v35 }
 0x714   :  { %v9689_v51 = vpop.f32.mrf.mxu0  ;;  %v9912_v25 = vpop.f32.mrf.mxu1 }
 0x715   :  { %v9695_v21 = vadd.f32 %v9689_v51, %v9471_v56  ;;  %v9917_v9 = vadd.f32 %v9910_v53, %v9694_v59 }
 0x717   :  { %v9918_v7 = vadd.f32 %v9912_v25, %v9695_v21 }
 0x74c   :  { %v10159_v39 = vpop.f32.mrf.mxu0  ;;  %v10396_v4 = vpop.f32.mrf.mxu1 }
 0x74d   :  { %v10170_v30 = vadd.f32 %v10159_v39, %v9915_v23 }
 0x74e   :  { %v10161_v47 = vpop.f32.mrf.mxu0  ;;  %v10398_v10 = vpop.f32.mrf.mxu1 }
 0x74f   :  { %v10407_v54 = vadd.f32 %v10396_v4, %v10170_v30  ;;  %v10171_v38 = vadd.f32 %v10161_v47, %v9916_v29 }
 0x750   :  { %v10165_v6 = vpop.f32.mrf.mxu0  ;;  %v10402_v36 = vpop.f32.mrf.mxu1 }
 0x751   :  { %v10423_v27 = vadd.f32 %v10416_v34, %v10407_v54  ;;  %v10408_v45 = vadd.f32 %v10398_v10, %v10171_v38  ;;  %v10172_v55 = vadd.f32 %v10165_v6, %v9917_v9 }
 0x752   :  { %v10167_v2 = vpop.f32.mrf.mxu0  ;;  %v10404_v8 = vpop.f32.mrf.mxu1 }
 0x753   :  { %v10424_v62 = vadd.f32 %v10420_v41, %v10408_v45  ;;  %v10409_v1 = vadd.f32 %v10402_v36, %v10172_v55  ;;  %v10173_v57 = vadd.f32 %v10167_v2, %v9918_v7  ;;  %v10427_v26 = vmax.f32 %v10423_v27, 0.0 }
 0x755   :  { %v10428_v52 = vmax.f32 %v10424_v62, 0.0  ;;  %v10410_v42 = vadd.f32 %v10404_v8, %v10173_v57  ;;  %v10425_v17 = vadd.f32 %v10416_v34, %v10409_v1 }
 0x757   :  { %v10435_v19 = vcombine.low %v10427_v26, %v10428_v52  ;;  %v10436_v28 = vcombine.high %v10427_v26, %v10428_v52  ;;  %v10426_v24 = vadd.f32 %v10420_v41, %v10410_v42  ;;  %v10429_v49 = vmax.f32 %v10425_v17, 0.0  ;;  %v10664_v17 = vld [vmem:[%s17070_s7 + $0xf8] sm:$0xff] }
 0x758   :  { %10677 = vmatprep.subr.mxu0 %v10664_v17  ;;  %v10754_v17 = vld [vmem:[%s17072_s9 + $0x20] sm:$0xff] }
 0x759   :  { %v10443_v40 = vrot.slane %v10435_v19, %v12345_v46  ;;  %v10450_v58 = vrot.slane %v10436_v28, %v12345_v46  ;;  %v10430_v12 = vmax.f32 %v10426_v24, 0.0  ;;  %v10663_v19 = vld [vmem:[%s17070_s7 + $0xf0] sm:$0xff]  ;;  %v10662_v28 = vld [vmem:[%s17070_s7 + $0xe8] sm:$0xff]  ;;  %v10661_v24 = vld [vmem:[%s17070_s7 + $0xe0] sm:$0xff] }
 0x75a   :  { %10678 = vmatpush1.msra.mxu0 %v10663_v19  ;;  %v10753_v19 = vld [vmem:[%s17072_s9 + $0x18] sm:$0xff] }
 0x75b   :  { %v10451_v50 = vcombine.high %v10443_v40, %v10443_v40  ;;  %v10452_v18 = vcombine.high %v10450_v58, %v10450_v58  ;;  %v10466_v48 = vrot.slane %v10450_v58, %v12345_v46  ;;  %v10485_v3 = vcombine.low %v10429_v49, %v10430_v12  ;;  %10679 = vmatprep.subr.mxu0 %v10662_v28  ;;  %v10659_v58 = vld [vmem:[%s17070_s7 + $0xd0] sm:$0xff]  ;;  %v10658_v12 = vld [vmem:[%s17070_s7 + $0xc8] sm:$0xff]  ;;  %v10657_v49 = vld [vmem:[%s17070_s7 + $0xc0] sm:$0xff] }
 0x75c   :  { %v10459_v22 = vrot.slane %v10443_v40, %v12345_v46  ;;  %v10660_v40 = vld [vmem:[%s17070_s7 + $0xd8] sm:$0xff]  ;;  %10680 = vmatpush1.msra.mxu0 %v10661_v24  ;;  %v10752_v28 = vld [vmem:[%s17072_s9 + $0x10] sm:$0xff]  ;;  %v10751_v24 = vld [vmem:[%s17072_s9 + $0x8] sm:$0xff] }
 0x75d   :  { %v10473_v33 = vrot.slane %v10451_v50, %v12345_v46  ;;  %v10480_v43 = vrot.slane %v10452_v18, %v12345_v46  ;;  %v10482_v20 = vcombine.high %v10466_v48, %v10466_v48  ;;  %v10492_v0 = vrot.slane %v10485_v3, %v12345_v46  ;;  %10681 = vmatprep.subr.mxu0 %v10660_v40  ;;  %v10656_v50 = vld [vmem:[%s17070_s7 + $0xb8] sm:$0xff]  ;;  %v10655_v18 = vld [vmem:[%s17070_s7 + $0xb0] sm:$0xff]  ;;  %v10654_v48 = vld [vmem:[%s17070_s7 + $0xa8] sm:$0xff] }
 0x75e   :  { %10682 = vmatpush1.msra.mxu0 %v10659_v58  ;;  %v10653_v3 = vld [vmem:[%s17070_s7 + $0xa0] sm:$0xff] }
 0x75f   :  { %v10500_v5 = vcombine.low %v10459_v22, %v10473_v33  ;;  %v11341_v63 = vcombine.high %v10459_v22, %v10473_v33  ;;  %v10530_v13 = vcombine.low %v10480_v43, %v10482_v20  ;;  %v10484_v37 = vcombine.high %v10480_v43, %v10480_v43  ;;  %10683 = vmatprep.subr.mxu0 %v10658_v12  ;;  %v10652_v22 = vld [vmem:[%s17070_s7 + $0x98] sm:$0xff]  ;;  %v10651_v33 = vld [vmem:[%s17070_s7 + $0x90] sm:$0xff]  ;;  %v10650_v43 = vld [vmem:[%s17070_s7 + $0x88] sm:$0xff] }
 0x760   :  { %v10499_v31 = vrot.slane %v10492_v0, %v12345_v46  ;;  %10684 = vmatpush1.msra.mxu0 %v10657_v49  ;;  %v10649_v20 = vld [vmem:[%s17070_s7 + $0x80] sm:$0xff]  ;;  %v10648_v0 = vld [vmem:[%s17070_s7 + $0x78] sm:$0xff]  ;;  %v10772_v49 = vld [vmem:[%s17072_s9 + $0xb0] sm:$0xff] }
 0x761   :  { %v10507_v60 = vrot.slane %v10500_v5, %v12345_v46  ;;  %v10522_v11 = vrot.slane %v11341_v63, %v12345_v46  ;;  %v10537_v15 = vrot.slane %v10530_v13, %v12345_v46  ;;  %10685 = vmatprep.subr.mxu0 %v10656_v50  ;;  %v10647_v5 = vld [vmem:[%s17070_s7 + $0x70] sm:$0xff]  ;;  %v10646_v63 = vld [vmem:[%s17070_s7 + $0x68] sm:$0xff]  ;;  %v10645_v13 = vld [vmem:[%s17070_s7 + $0x60] sm:$0xff] }
 0x762   :  { %v10545_v53 = vcombine.low %v10484_v37, %v10499_v31  ;;  %10686 = vmatpush1.msra.mxu0 %v10655_v18  ;;  %v10644_v37 = vld [vmem:[%s17070_s7 + $0x58] sm:$0xff]  ;;  %v10643_v31 = vld [vmem:[%s17070_s7 + $0x50] sm:$0xff]  ;;  %v10750_v40 = vld [vmem:[%s17072_s9] sm:$0xff] }
 0x763   :  { %v10514_v35 = vrot.slane %v10507_v60, %v12345_v46  ;;  %v10529_v61 = vrot.slane %v10522_v11, %v12345_v46  ;;  %v10544_v51 = vrot.slane %v10537_v15, %v12345_v46  ;;  %10687 = vmatprep.subr.mxu0 %v10654_v48  ;;  %v10642_v60 = vld [vmem:[%s17070_s7 + $0x48] sm:$0xff]  ;;  %v10641_v11 = vld [vmem:[%s17070_s7 + $0x40] sm:$0xff]  ;;  %v10640_v15 = vld [vmem:[%s17070_s7 + $0x38] sm:$0xff] }
 0x764   :  { %v10552_v16 = vrot.slane %v10545_v53, %v12345_v46  ;;  %10688 = vmatpush1.msra.mxu0 %v10653_v3  ;;  %v10639_v53 = vld [vmem:[%s17070_s7 + $0x30] sm:$0xff]  ;;  %v10774_v58 = vld [vmem:[%s17072_s9 + $0xc0] sm:$0xff]  ;;  %v10773_v12 = vld [vmem:[%s17072_s9 + $0xb8] sm:$0xff] }
 0x765   :  { %v10564_v56 = vsel %vm7939_vm11, %v10514_v35, -inf  ;;  %v10571_v23 = vsel %vm7939_vm11, %v10529_v61, -inf  ;;  %v10578_v59 = vsel %vm7939_vm11, %v10544_v51, -inf  ;;  %10689 = vmatprep.subr.mxu0 %v10652_v22  ;;  %v10638_v35 = vld [vmem:[%s17070_s7 + $0x28] sm:$0xff]  ;;  %v10637_v61 = vld [vmem:[%s17070_s7 + $0x20] sm:$0xff]  ;;  %v10636_v51 = vld [vmem:[%s17070_s7 + $0x18] sm:$0xff] }
 0x766   :  { %v10565_v25 = vrot.slane %v10564_v56, 4  ;;  %v10572_v39 = vrot.slane %v10571_v23, 4  ;;  %v10559_v29 = vrot.slane %v10552_v16, %v12345_v46  ;;  %v10579_v21 = vrot.slane %v10578_v59, 4  ;;  %10690 = vmatpush1.msra.mxu0 %v10651_v33  ;;  %v10635_v16 = vld [vmem:[%s17070_s7 + $0x10] sm:$0xff]  ;;  %v10771_v50 = vld [vmem:[%s17072_s9 + $0xa8] sm:$0xff]  ;;  %v10770_v18 = vld [vmem:[%s17072_s9 + $0xa0] sm:$0xff] }
 0x767   :  { %10691 = vmatprep.subr.mxu0 %v10650_v43  ;;  %v10769_v22 = vld [vmem:[%s17072_s9 + $0x98] sm:$0xff]  ;;  %v10768_v33 = vld [vmem:[%s17072_s9 + $0x90] sm:$0xff]  ;;  %v10767_v43 = vld [vmem:[%s17072_s9 + $0x88] sm:$0xff] }
 0x768   :  { %v10566_v30 = vmax.f32 %v10564_v56, %v10565_v25  ;;  %v10573_v4 = vmax.f32 %v10571_v23, %v10572_v39  ;;  %v10580_v34 = vmax.f32 %v10578_v59, %v10579_v21  ;;  %v10585_v47 = vsel %vm7939_vm11, %v10559_v29, -inf  ;;  %10692 = vmatpush1.msra.mxu0 %v10649_v20  ;;  %v10634_v56 = vld [vmem:[%s17070_s7 + $0x8] sm:$0xff]  ;;  %v10633_v21 = vld [vmem:[%s17070_s7] sm:$0xff] }
 0x769   :  { %v10586_v9 = vrot.slane %v10585_v47, 4  ;;  %10693 = vmatprep.subr.mxu0 %v10648_v0  ;;  %v11704_v59 = vmov 1934713408   ;;  %v10766_v20 = vld [vmem:[%s17072_s9 + $0x80] sm:$0xff]  ;;  %v10665_v0 = vld [vmem:[#allocation11] sm:$0x3] }
 0x76a   :  { %v10567_v54 = vrot.slane %v10566_v30, 2  ;;  %v10574_v38 = vrot.slane %v10573_v4, 2  ;;  %v10581_v10 = vrot.slane %v10580_v34, 2  ;;  %10694 = vmatpush1.msra.mxu0 %v10647_v5  ;;  %v10621_v25 = vunpack.c.l.s4 %v11704_v59 }
 0x76b   :  { %v10587_v41 = vmax.f32 %v10585_v47, %v10586_v9  ;;  %10695 = vmatprep.subr.mxu0 %v10646_v63  ;;  %v10670_v5 = vrot.slane %v10665_v0, %v17508_v14  ;;  %v10674_v63 = vrot.slane %v10665_v0, %v17509_v44  ;;  %vm10855_vm11 = vcmask 74752  }
 0x76c   :  { %v10568_v6 = vmax.f32 %v10566_v30, %v10567_v54  ;;  %v10575_v7 = vmax.f32 %v10573_v4, %v10574_v38  ;;  %v10582_v27 = vmax.f32 %v10580_v34, %v10581_v10  ;;  %10696 = vmatpush1.msra.mxu0 %v10645_v13  ;;  %v10622_v30 = vunpack.c.0.s8 %v10621_v25  ;;  %v10765_v4 = vld [vmem:[%s17072_s9 + $0x78] sm:$0xff]  ;;  %v10764_v34 = vld [vmem:[%s17072_s9 + $0x70] sm:$0xff]  ;;  %v10763_v54 = vld [vmem:[%s17072_s9 + $0x68] sm:$0xff] }
 0x76d   :  { %v10588_v45 = vrot.slane %v10587_v41, 2  ;;  %10697 = vmatprep.subr.mxu0 %v10644_v37  ;;  %10786 = vmatpush1.msra.mxu1 %v10765_v4 }
 0x76e   :  { %v10569_v55 = vrot.slane %v10568_v6, 1  ;;  %v10576_v36 = vrot.slane %v10575_v7, 1  ;;  %v10583_v2 = vrot.slane %v10582_v27, 1  ;;  %10698 = vmatpush1.msra.mxu0 %v10643_v31  ;;  %10787 = vmatprep.subr.mxu1 %v17507_v32 }
 0x76f   :  { %v10589_v62 = vmax.f32 %v10587_v41, %v10588_v45  ;;  %10699 = vmatprep.subr.mxu0 %v10642_v60  ;;  %10788 = vmatpush1.msra.mxu1 %v10764_v34 }
 0x770   :  { %v10570_v46 = vmax.f32 %v10568_v6, %v10569_v55  ;;  %v10577_v1 = vmax.f32 %v10575_v7, %v10576_v36  ;;  %v10584_v26 = vmax.f32 %v10582_v27, %v10583_v2  ;;  %10700 = vmatpush1.msra.mxu0 %v10641_v11  ;;  %v17510_v27 = vld [vmem:[#allocation20_spill] sm:$0xff]  ;;  %10789 = vmatprep.subr.mxu1 %v17507_v32  ;;  %v10762_v55 = vld [vmem:[%s17072_s9 + $0x60] sm:$0xff]  ;;  %v10761_v2 = vld [vmem:[%s17072_s9 + $0x58] sm:$0xff] }
 0x771   :  { %v10590_v57 = vrot.slane %v10589_v62, 1  ;;  %10701 = vmatprep.subr.mxu0 %v10640_v15  ;;  %v10625_v45 = vsub.s32 %v10622_v30, %v17510_v27  ;;  %10790 = vmatpush1.msra.mxu1 %v10763_v54 }
 0x772   :  { %v16842_v8 = vsel %vm8521_vm12, %v10577_v1, %v10570_v46  ;;  %10702 = vmatpush1.msra.mxu0 %v10639_v53  ;;  %10791 = vmatprep.subr.mxu1 %v17507_v32  ;;  %v10760_v46 = vld [vmem:[%s17072_s9 + $0x50] sm:$0xff]  ;;  %v11342_v53 = vld [vmem:[#allocation13] ss:$0 sm:$0xff] }
 0x773   :  { %10600 = vrot.lane.b32.xlu0 %v16842_v8, %s11703_s5  ;;  %v10591_v52 = vmax.f32 %v10589_v62, %v10590_v57  ;;  %10703 = vmatprep.subr.mxu0 %v10638_v35  ;;  %v10759_v57 = vld [vmem:[%s17072_s9 + $0x48] sm:$0xff] }
 0x774   :  { %10704 = vmatpush1.msra.mxu0 %v10637_v61  ;;  %10792 = vmatpush1.msra.mxu1 %v10762_v55 }
 0x775   :  { %v16846_v42 = vsel %vm8521_vm12, %v10591_v52, %v10584_v26  ;;  %10705 = vmatprep.subr.mxu0 %v10636_v51  ;;  %10793 = vmatprep.subr.mxu1 %v17507_v32  ;;  %v10757_v26 = vld [vmem:[%s17072_s9 + $0x38] sm:$0xff]  ;;  %v10756_v52 = vld [vmem:[%s17072_s9 + $0x30] sm:$0xff] }
 0x776   :  { %10602 = vrot.lane.b32.xlu1 %v16846_v42, %s11703_s5  ;;  %10706 = vmatpush1.msra.mxu0 %v10635_v16 }
 0x777   :  { %10609 = vrot.lane.b32.xlu0 %v16842_v8, %s11700_s12  ;;  %10707 = vmatprep.subr.mxu0 %v10634_v56 }
 0x778   :  { %10708 = vmatpush1.msra.mxu0 %v10633_v21  ;;  %10794 = vmatpush1.msra.mxu1 %v10761_v2 }
 0x779   :  { %10795 = vmatprep.subr.mxu1 %v17507_v32 }
 0x77a   :  { %10611 = vrot.lane.b32.xlu1 %v16846_v42, %s11700_s12  ;;  %10796 = vmatpush1.msra.mxu1 %v10760_v46 }
 0x77b   :  { %10797 = vmatprep.subr.mxu1 %v17507_v32 }
 0x77c   :  { %10798 = vmatpush1.msra.mxu1 %v10759_v57 }
 0x77d   :  { %10799 = vmatprep.subr.mxu1 %v17507_v32 }
 0x7e5   :  { %v10601_v23 = vpop.permute.xlu0 %10600 }
 0x7e6   :  { %v10607_v38 = vsel %vm10606_vm10, %v16842_v8, %v10601_v23  ;;  %v10758_v8 = vld [vmem:[%s17072_s9 + $0x40] sm:$0xff] }
 0x7e7   :  { %10800 = vmatpush1.msra.mxu1 %v10758_v8 }
 0x7e8   :  { %v10603_v39 = vpop.permute.xlu1 %10602  ;;  %10801 = vmatprep.subr.mxu1 %v17507_v32 }
 0x7e9   :  { %v10610_v29 = vpop.permute.xlu0 %10609  ;;  %v10608_v10 = vsel %vm10606_vm10, %v16846_v42, %v10603_v39  ;;  %10802 = vmatpush1.msra.mxu1 %v10757_v26  ;;  %v10755_v42 = vld [vmem:[%s17072_s9 + $0x28] sm:$0xff]  ;;  %s11705_s9 = smov [#allocation14]  }
 0x7ea   :  { %v10615_v47 = vsel %vm10606_vm10, %v10601_v23, %v10610_v29  ;;  %10803 = vmatprep.subr.mxu1 %v17507_v32  ;;  %s10875_s10 = sshll.u32 %s11705_s9, 4  ;;  %s10876_s10 = int_to_ptr.vmem [resolvable:$true] %s10875_s10 }
 0x7eb   :  { %v10617_v6 = vmax.f32 %v10607_v38, %v10615_v47  ;;  %10804 = vmatpush1.msra.mxu1 %v10756_v52  ;;  %s11649_s14 = scalar_lea.vmem %s10876_s10, 32  ;;  %p11654_p8 = scmp.lt.s32.totalorder %s10876_s10, %s10876_s10 }
 0x7ec   :  { %v10612_v9 = vpop.permute.xlu1 %10611  ;;  %10805 = vmatprep.subr.mxu1 %v17507_v32  ;;  %p11650_p7 = scmp.ne.s32.totalorder %s10876_s10, %s11649_s14  ;;  %p11655_p9 = scmp.lt.s32.totalorder %s11649_s14, %s11649_s14 }
 0x7ed   :  { %v10616_v41 = vsel %vm10606_vm10, %v10603_v39, %v10612_v9  ;;  %10806 = vmatpush1.msra.mxu1 %v10755_v42 }
 0x7ee   :  { %v10618_v7 = vmax.f32 %v10608_v10, %v10616_v41  ;;  %10807 = vmatprep.subr.mxu1 %v17507_v32  ;;  %p11656_p10 = por %p11655_p9, %p11654_p8 }
 0x7ef   :  { %10808 = vmatpush1.msra.mxu1 %v10754_v17 }
 0x7f0   :  { %v10619_v36 = vcombine.low %v10617_v6, %v10618_v7  ;;  %10809 = vmatprep.subr.mxu1 %v17507_v32  ;;  %p11657_p11 = pnand %p11656_p10, %p11650_p7 }
 0x7f1   :  { %10810 = vmatpush1.msra.mxu1 %v10753_v19 }
 0x7f2   :  { %v10626_v62 = vrot.slane %v10619_v36, %v10625_v45  ;;  %10811 = vmatprep.subr.mxu1 %v17507_v32 }
 0x7f3   :  { %10812 = vmatpush1.msra.mxu1 %v10752_v28 }
 0x7f4   :  { %v10627_v1 = vcombine.high %v10626_v62, %v17507_v32  ;;  %10813 = vmatprep.subr.mxu1 %v17507_v32 }
 0x7f5   :  { %10814 = vmatpush1.msra.mxu1 %v10751_v24 }
 0x7f6   :  { %10629 = vrot.lane.b32.xlu0 %v10627_v1, %s11700_s12  ;;  %10815 = vmatprep.subr.mxu1 %v17507_v32 }
 0x7f7   :  { %10816 = vmatpush1.msra.mxu1 %v10750_v40 }
 0x7f8   :  { %10831 = vmatprep.subr.mxu1 %v17507_v32 }
 0x7f9   :  { %10832 = vmatpush2.msra.mxu1 %v10774_v58 }
 0x7fa   :  { %10833 = vmatprep.subr.mxu1 %v17507_v32 }
 0x7fb   :  { %10834 = vmatpush2.msra.mxu1 %v10773_v12 }
 0x7fc   :  { %10835 = vmatprep.subr.mxu1 %v17507_v32 }
 0x7fd   :  { %10836 = vmatpush2.msra.mxu1 %v10772_v49 }
 0x7fe   :  { %10837 = vmatprep.subr.mxu1 %v17507_v32 }
 0x7ff   :  { %10838 = vmatpush2.msra.mxu1 %v10771_v50 }
 0x800   :  { %10839 = vmatprep.subr.mxu1 %v17507_v32 }
 0x801   :  { %10840 = vmatpush2.msra.mxu1 %v10770_v18 }
 0x802   :  { %10841 = vmatprep.subr.mxu1 %v17507_v32 }
 0x803   :  { %10842 = vmatpush2.msra.mxu1 %v10769_v22 }
 0x804   :  { %10843 = vmatprep.subr.mxu1 %v17507_v32 }
 0x805   :  { %10844 = vmatpush2.msra.mxu1 %v10768_v33 }
 0x806   :  { %10845 = vmatprep.subr.mxu1 %v17507_v32 }
 0x807   :  { %10846 = vmatpush2.msra.mxu1 %v10767_v43 }
 0x808   :  { %10847 = vmatprep.subr.mxu1 %v17507_v32 }
 0x809   :  { %10848 = vmatpush2.msra.mxu1 %v10766_v20 }
 0x868   :  { %v10630_v48 = vpop.permute.xlu0 %10629 }
 0x869   :  { %v10632_v3 = vsel %vm8813_vm9, %v10626_v62, %v10630_v48 }
 0x86a   :  { %10742 = vmatmul.mubr.f32.vlgmr.msra.gmra.mxu0 %v10632_v3 }
 0x92a   :  { %v10743_v13 = vpop.f32.mrf.mxu0 }
 0x92b   :  { %v10744_v37 = vadd.f32 %v10743_v13, %v10670_v5 }
 0x92c   :  { %v10745_v31 = vpop.f32.mrf.mxu0 }
 0x92d   :  { %v10746_v60 = vadd.f32 %v10745_v31, %v10674_v63  ;;  %v10748_v15 = vmax.f32 %v10744_v37, 0.0 }
 0x92f   :  { %v10749_v11 = vmax.f32 %v10746_v60, 0.0 }
 0x931   :  { %11343 = vmatprep.mubr.msk.f32.mxu1 %vm8788_vm5, %v10749_v11 }
 0x932   :  { %10850 = vmatmul.mubr.f32.vlgmr.msra.gmra.mxu1 %v10748_v15 }
 0x9f2   :  { %v10851_v35 = vpop.f32.mrf.mxu1 }
 0x9f3   :  { %v10852_v61 = vadd.f32 %v11342_v53, %v10851_v35 }
 0x9f4   :  { %v10853_v32 = vpop.f32.mrf.mxu1 }
 0x9f5   :  { %v10856_v51 = vsel %vm10855_vm11, %v10852_v61, -inf }
 0x9f6   :  { %10857 = vmax.xlane.f32.xlu1 %v10856_v51 }
 0xa7f   :  { %v10858_v14 = vpop.xlane.xlu1 %10857 }
 0xa80   :  { %v10859_v16 = vsub.f32 %v10852_v61, %v10858_v14 }
 0xa82   :  { %v10860_v44 = vmul.f32 1.442695, %v10859_v16 }
 0xa84   :  { %11505 = vpow2.f32 %v10860_v44 }
 0xa91   :  { %v11506_v56 = vpop.eup %11505 }
 0xa92   :  { %v10862_v23 = vsel %vm10855_vm11, %v11506_v56, 0.0 }
 0xa93   :  { %10863 = vadd.xlane.f32.xlu0 %v10862_v23 }
 0xb1c   :  { %v10864_v59 = vpop.xlane.xlu0 %10863 }
 0xb1d   :  { %11507 = vlog2.f32 %v10864_v59 }
 0xb2a   :  { %v11508_v25 = vpop.eup %11507 }
 0xb2b   :  { %v10866_v39 = vmul.f32 0.6931472, %v11508_v25 }
 0xb2d   :  { %v10867_v29 = vsub.f32 %v10859_v16, %v10866_v39 }
 0xb2f   :  { %10868 = vst.msk [vmem:[#allocation14] sm:$0x3] %vm10855_vm11, %v10867_v29 }
 0xb30   :  { %11660 = shalt.err (!%p11657_p11)
}
 0xb31   :  { %10878 = dma.vmem_to_hbm [thread:$0]  %s10876_s10, 32, %s17074_s11, [#allocation4]  }
 0xb32   :  { %11677 = dma.done.wait [#allocation4], 32  }
 0xb33   :  { %11678 = vsyncadd [#allocation4], 4294967264 }
 0xb34   :  { %10882 = vsyncpa [#allocation3], 1 }
 0xb35   :  { %10883 = vsyncpa [#allocation6], 1 }
 0xb36   :  { %10884 = vsyncpa [#allocation9], 1 }
 0xb37   :  { %10885 = vsyncpa [#allocation12], 1 }
 0xb38   :  { %10886 = vsyncpa [#allocation4], 1 }

</bundles_post_ra>
